<compile_context>
chip_gen: v7x
topology: tpu7x:2x2x1
jax: 0.10.0
libtpu: 0.0.40
codegen_flags: <defaults>
</compile_context>

<pallas_src>
import functools

import jax
import jax.numpy as jnp
from jax.experimental import pallas as pl
from jax.experimental.pallas import tpu as pltpu

TM = 256      # row tile for the tiled fused-matmul kernels
LANE = 128    # channel padding target (TPU lane width)


def _round_up(x, m):
    return ((x + m - 1) // m) * m


def _pad1(v, n):
    return jnp.pad(v.astype(jnp.float32), (0, n - v.shape[0]))


def _pad2(m, r, c):
    return jnp.pad(m.astype(jnp.float32),
                   ((0, r - m.shape[0]), (0, c - m.shape[1])))


# ----------------------------- Pallas kernels -----------------------------

def _fused_mm_kernel(x_ref, w_ref, si_ref, ti_ref, so_ref, to_ref, m_ref,
                     o_ref, *, relu_in, relu_out):
    # prologue: eval-mode BN scale/shift [+ ReLU] on the conv input (f32)
    h = x_ref[...] * si_ref[...] + ti_ref[...]
    if relu_in:
        h = jnp.maximum(h, 0.0)
    # bf16 MXU matmul with f32 accumulation
    acc = jnp.dot(h.astype(jnp.bfloat16), w_ref[...],
                  preferred_element_type=jnp.float32)
    # epilogue: BN scale/shift (or bias) [+ ReLU], then row-validity mask
    y = acc * so_ref[...] + to_ref[...]
    if relu_out:
        y = jnp.maximum(y, 0.0)
    o_ref[...] = (y * m_ref[...]).astype(o_ref.dtype)


def fused_mm(x, w, s_in, t_in, s_out, t_out, mask, *, relu_in, relu_out):
    """relu_out?(relu_in?(x*s_in+t_in) @ w * s_out + t_out) * rowmask."""
    M, K = x.shape
    N = w.shape[1]
    assert M % TM == 0
    return pl.pallas_call(
        functools.partial(_fused_mm_kernel,
                          relu_in=relu_in, relu_out=relu_out),
        out_shape=jax.ShapeDtypeStruct((M, N), jnp.float32),
        grid=(M // TM,),
        in_specs=[
            pl.BlockSpec((TM, K), lambda i: (i, 0)),
            pl.BlockSpec((K, N), lambda i: (0, 0)),
            pl.BlockSpec((1, K), lambda i: (0, 0)),
            pl.BlockSpec((1, K), lambda i: (0, 0)),
            pl.BlockSpec((1, N), lambda i: (0, 0)),
            pl.BlockSpec((1, N), lambda i: (0, 0)),
            pl.BlockSpec((TM, 1), lambda i: (i, 0)),
        ],
        out_specs=pl.BlockSpec((TM, N), lambda i: (i, 0)),
        compiler_params=pltpu.CompilerParams(
            dimension_semantics=("parallel",)),
    )(x, w, s_in.reshape(1, K), t_in.reshape(1, K),
      s_out.reshape(1, N), t_out.reshape(1, N), mask)


def _conv3x3_append_kernel(y_ref, f_ref, w_ref, m_ref, o_ref, *, shifts):
    # y: (R, Kmid) spatially zero-padded flat intermediate (whole slab in VMEM)
    # 9 taps = 9 row-rolled matmuls; the tap weights are zero-placed into the
    # new layer's channel slice, so "out = feat + acc" is the channel concat.
    y = y_ref[...]
    acc = jnp.zeros(o_ref.shape, jnp.float32)
    for t, s in enumerate(shifts):
        yt = pltpu.roll(y, s, axis=0) if s else y
        acc = acc + jnp.dot(yt.astype(jnp.bfloat16), w_ref[t],
                            preferred_element_type=jnp.float32)
    o_ref[...] = f_ref[...] + acc * m_ref[...]


def conv3x3_append(y, feat, w_taps, mask, shifts):
    R, Km = y.shape
    C = feat.shape[1]
    return pl.pallas_call(
        functools.partial(_conv3x3_append_kernel, shifts=shifts),
        out_shape=jax.ShapeDtypeStruct((R, C), jnp.float32),
        grid=(1,),
        in_specs=[
            pl.BlockSpec((R, Km), lambda i: (0, 0)),
            pl.BlockSpec((R, C), lambda i: (0, 0)),
            pl.BlockSpec((9, Km, C), lambda i: (0, 0, 0)),
            pl.BlockSpec((R, 1), lambda i: (0, 0)),
        ],
        out_specs=pl.BlockSpec((R, C), lambda i: (0, 0)),
        compiler_params=pltpu.CompilerParams(
            dimension_semantics=("arbitrary",)),
    )(y, feat, w_taps, mask)


def _residual_mm_kernel(x_ref, w_ref, b_ref, r_ref, sr_ref, tr_ref, o_ref):
    # ForgetLayer conv2: relu(x @ w + b + relu(bn(residual)))
    acc = jnp.dot(x_ref[...].astype(jnp.bfloat16), w_ref[...],
                  preferred_element_type=jnp.float32) + b_ref[...]
    idn = jnp.maximum(r_ref[...] * sr_ref[...] + tr_ref[...], 0.0)
    o_ref[...] = jnp.maximum(acc + idn, 0.0)


def residual_mm(x, w, b, res, s_res, t_res):
    M, K = x.shape
    C = w.shape[1]
    assert M % TM == 0
    return pl.pallas_call(
        _residual_mm_kernel,
        out_shape=jax.ShapeDtypeStruct((M, C), jnp.float32),
        grid=(M // TM,),
        in_specs=[
            pl.BlockSpec((TM, K), lambda i: (i, 0)),
            pl.BlockSpec((K, C), lambda i: (0, 0)),
            pl.BlockSpec((1, C), lambda i: (0, 0)),
            pl.BlockSpec((TM, C), lambda i: (i, 0)),
            pl.BlockSpec((1, C), lambda i: (0, 0)),
            pl.BlockSpec((1, C), lambda i: (0, 0)),
        ],
        out_specs=pl.BlockSpec((TM, C), lambda i: (i, 0)),
        compiler_params=pltpu.CompilerParams(
            dimension_semantics=("parallel",)),
    )(x, w, b.reshape(1, C), res, s_res.reshape(1, C), t_res.reshape(1, C))


def _tail_kernel(x_ref, s_ref, t_ref, p_ref, wc_ref, bc_ref, o_ref):
    # norm5 + ReLU + global 7x7 average pool (as a matmul) + classifier.
    h = jnp.maximum(x_ref[...] * s_ref[...] + t_ref[...], 0.0)
    pooled = jnp.dot(p_ref[...], h, preferred_element_type=jnp.float32)
    o_ref[...] = jnp.dot(pooled, wc_ref[...],
                         preferred_element_type=jnp.float32) + bc_ref[...]


def tail_head(xf, s5, t5, pool, wc, bc):
    R, C = xf.shape
    Nb = pool.shape[0]
    nc = wc.shape[1]
    return pl.pallas_call(
        _tail_kernel,
        out_shape=jax.ShapeDtypeStruct((Nb, nc), jnp.float32),
        grid=(1,),
        in_specs=[
            pl.BlockSpec((R, C), lambda i: (0, 0)),
            pl.BlockSpec((1, C), lambda i: (0, 0)),
            pl.BlockSpec((1, C), lambda i: (0, 0)),
            pl.BlockSpec((Nb, R), lambda i: (0, 0)),
            pl.BlockSpec((C, nc), lambda i: (0, 0)),
            pl.BlockSpec((1, nc), lambda i: (0, 0)),
        ],
        out_specs=pl.BlockSpec((Nb, nc), lambda i: (0, 0)),
    )(xf, s5.reshape(1, C), t5.reshape(1, C), pool, wc, bc.reshape(1, nc))


# ----------------------------- XLA glue -----------------------------

def im2col(x, kh, kw, stride, pad):
    # Only used for the stem 7x7 conv (3-channel input, one-off & tiny).
    N, H, W, C = x.shape
    xp = jnp.pad(x, ((0, 0), (pad, pad), (pad, pad), (0, 0)))
    Ho = (H + 2 * pad - kh) // stride + 1
    Wo = (W + 2 * pad - kw) // stride + 1
    cols = []
    for i in range(kh):
        for j in range(kw):
            cols.append(xp[:, i::stride, j::stride, :][:, :Ho, :Wo, :])
    return jnp.concatenate(cols, axis=-1)


def maxpool_3x3_s2_p1(x):
    N, H, W, C = x.shape
    xp = jnp.pad(x, ((0, 0), (1, 1), (1, 1), (0, 0)),
                 constant_values=-jnp.inf)
    Ho = (H + 2 - 3) // 2 + 1
    Wo = (W + 2 - 3) // 2 + 1
    out = jnp.full((N, Ho, Wo, C), -jnp.inf, dtype=x.dtype)
    for i in range(3):
        for j in range(3):
            out = jnp.maximum(out, xp[:, i::2, j::2, :][:, :Ho, :Wo, :])
    return out


def avgpool_2x2_s2(x):
    N, H, W, C = x.shape
    return x.reshape(N, H // 2, 2, W // 2, 2, C).mean(axis=(2, 4))


# ----------------------------- parameters (pre-prepped) -----------------------------

def _bn_scale_shift(c, eps=1e-5):
    # Fresh eval-mode BatchNorm stats (gamma=1, beta=0, mean=0, var=1).
    gamma = jnp.ones((c,), jnp.float32)
    beta = jnp.zeros((c,), jnp.float32)
    mean = jnp.zeros((c,), jnp.float32)
    var = jnp.ones((c,), jnp.float32)
    scale = gamma / jnp.sqrt(var + eps)
    return scale, beta - mean * scale


def _kaiming(key, shape):  # (Cout, Cin, kh, kw)
    fan_in = shape[1] * shape[2] * shape[3]
    return (2.0 / fan_in) ** 0.5 * jax.random.normal(key, shape, jnp.float32)


def _conv_bias(key, n, fan_in):
    b = 1.0 / (fan_in ** 0.5)
    return jax.random.uniform(key, (n,), jnp.float32, -b, b)


def build_params(key, growth_rate, block_config, num_init_features, bn_size,
                 num_classes):
    """Weights are pre-transposed to (K, N), zero-padded to 128-wide channel
    layouts and pre-cast to bf16 so no per-call prep happens in the forward."""
    keys = iter(jax.random.split(key, 256))
    nk = lambda: next(keys)
    p = {}
    # stem: conv0 (7x7 s2 p3, no bias), norm0+relu0 fused as its epilogue
    f0 = num_init_features
    w0 = _kaiming(nk(), (f0, 3, 7, 7))
    w0m = jnp.transpose(w0, (2, 3, 1, 0)).reshape(7 * 7 * 3, f0)
    s0, t0 = _bn_scale_shift(f0)
    p["stem"] = {
        "w": _pad2(w0m, 7 * 7 * 3, LANE).astype(jnp.bfloat16),
        "s_in": jnp.ones((7 * 7 * 3,), jnp.float32),
        "t_in": jnp.zeros((7 * 7 * 3,), jnp.float32),
        "s_out": _pad1(s0, LANE),
        "t_out": _pad1(t0, LANE),
    }
    nf = f0
    blocks = []
    for bi, num_layers in enumerate(block_config):
        c_in = nf
        nf_end = c_in + num_layers * growth_rate
        cpad = _round_up(nf_end, LANE)
        kmid = bn_size * growth_rate
        kmid_pad = _round_up(kmid, LANE)
        layers = []
        for li in range(num_layers):
            c_cur = c_in + li * growth_rate
            s1, t1 = _bn_scale_shift(c_cur)
            w1 = _kaiming(nk(), (kmid, c_cur, 1, 1))[:, :, 0, 0].T  # (c_cur,kmid)
            s2, t2 = _bn_scale_shift(kmid)
            w2 = _kaiming(nk(), (growth_rate, kmid, 3, 3))
            taps = []
            for di in range(3):
                for dj in range(3):
                    tap = jnp.zeros((kmid_pad, cpad), jnp.float32)
                    tap = tap.at[:kmid, c_cur:c_cur + growth_rate].set(
                        w2[:, :, di, dj].T)
                    taps.append(tap)
            layers.append({
                "w1": _pad2(w1, cpad, kmid_pad).astype(jnp.bfloat16),
                "s1": _pad1(s1, cpad), "t1": _pad1(t1, cpad),
                "s2": _pad1(s2, kmid_pad), "t2": _pad1(t2, kmid_pad),
                "w2": jnp.stack(taps).astype(jnp.bfloat16),
            })
        nf = nf_end
        blk = {"layers": layers}
        # forget stage (num_layers != 133 always holds for this config)
        sfn, tfn = _bn_scale_shift(nf)
        half = nf // 2
        half_pad = _round_up(half, LANE)
        fw1 = _kaiming(nk(), (half, nf, 1, 1))[:, :, 0, 0].T        # (nf, half)
        fb1 = _conv_bias(nk(), half, nf)
        fw2 = _kaiming(nk(), (nf, half, 1, 1))[:, :, 0, 0].T        # (half, nf)
        fb2 = _conv_bias(nk(), nf, half)
        blk.update({
            "fn_s": _pad1(sfn, cpad), "fn_t": _pad1(tfn, cpad),
            "fw1": _pad2(fw1, cpad, half_pad).astype(jnp.bfloat16),
            "fb1": _pad1(fb1, half_pad),
            "fw2": _pad2(fw2, half_pad, cpad).astype(jnp.bfloat16),
            "fb2": _pad1(fb2, cpad),
        })
        if bi != len(block_config) - 1:
            st, tt = _bn_scale_shift(nf)
            tw = _kaiming(nk(), (nf // 2, nf, 1, 1))[:, :, 0, 0].T  # (nf, nf//2)
            blk["trans"] = {
                "w": _pad2(tw, cpad,
                           _round_up(nf // 2, LANE)).astype(jnp.bfloat16),
                "s": _pad1(st, cpad), "t": _pad1(tt, cpad),
            }
            nf //= 2
        blocks.append(blk)
    p["blocks"] = blocks
    s5, t5 = _bn_scale_shift(nf)
    cpad5 = _round_up(nf, LANE)
    bound = 1.0 / (nf ** 0.5)
    wc = jax.random.uniform(nk(), (num_classes, nf), jnp.float32,
                            -bound, bound)
    p["tail"] = {
        "s5": _pad1(s5, cpad5), "t5": _pad1(t5, cpad5),
        "wc": _pad2(wc.T, cpad5, num_classes),   # kept f32 (tiny)
        "bc": jnp.zeros((num_classes,), jnp.float32),
    }
    return p


# ----------------------------- forward -----------------------------

def dense_block_forward(x, bp):
    # x: (N, H, W, Cprev_pad) with zeros in the padded channels.
    N, H, W, _ = x.shape
    cpad = bp["fn_s"].shape[0]
    Hp, Wp = H + 2, W + 2
    Rp = N * Hp * Wp
    Rs = _round_up(Rp, TM)
    # Build the spatially zero-padded, row-flattened feature slab ONCE.
    cw = min(x.shape[-1], cpad)
    f4 = jnp.zeros((N, Hp, Wp, cpad), jnp.float32)
    f4 = f4.at[:, 1:H + 1, 1:W + 1, :cw].set(x[..., :cw])
    feat = jnp.pad(f4.reshape(Rp, cpad), ((0, Rs - Rp), (0, 0)))
    m4 = jnp.zeros((N, Hp, Wp, 1), jnp.float32)
    m4 = m4.at[:, 1:H + 1, 1:W + 1, :].set(1.0)
    mask = jnp.pad(m4.reshape(Rp, 1), ((0, Rs - Rp), (0, 0)))
    # Static row shifts for the 9 conv taps in the padded-flat layout.
    shifts = tuple(int((-((di - 1) * Wp + (dj - 1))) % Rs)
                   for di in range(3) for dj in range(3))

    for lp in bp["layers"]:
        # BN1+ReLU -> 1x1 conv -> BN2+ReLU in one kernel (mask zeroes the
        # spatial border rows so the 3x3 sees correct zero padding).
        y1 = fused_mm(feat, lp["w1"], lp["s1"], lp["t1"], lp["s2"], lp["t2"],
                      mask, relu_in=True, relu_out=True)
        # 3x3 conv via 9 rolled matmuls + in-kernel "concat" into the slab.
        feat = conv3x3_append(y1, feat, lp["w2"], mask, shifts)

    # ForgetLayer: forgetnorm+ReLU as prologue of conv1 (bias+ReLU epilogue),
    # residual (recomputed forgetnorm+ReLU of feat) + ReLU fused into conv2.
    kw = bp["fw1"].shape[1]
    y = fused_mm(feat, bp["fw1"], bp["fn_s"], bp["fn_t"],
                 jnp.ones((kw,), jnp.float32), bp["fb1"],
                 mask, relu_in=True, relu_out=True)
    feat = residual_mm(y, bp["fw2"], bp["fb2"], feat, bp["fn_s"], bp["fn_t"])

    if "trans" in bp:
        tp = bp["trans"]
        cout = tp["w"].shape[1]
        y = fused_mm(feat, tp["w"], tp["s"], tp["t"],
                     jnp.ones((cout,), jnp.float32),
                     jnp.zeros((cout,), jnp.float32),
                     mask, relu_in=True, relu_out=False)
        x_out = y[:Rp].reshape(N, Hp, Wp, cout)[:, 1:H + 1, 1:W + 1, :]
        return avgpool_2x2_s2(x_out)
    return feat[:Rp].reshape(N, Hp, Wp, cpad)[:, 1:H + 1, 1:W + 1, :]


def densenet_forward(p, x_nchw):
    x = jnp.transpose(x_nchw, (0, 2, 3, 1)).astype(jnp.float32)  # NCHW->NHWC
    N = x.shape[0]
    # ---- stem: conv0 via im2col (3-channel input) + fused norm0/relu0
    cols = im2col(x, 7, 7, 2, 3)
    Ho, Wo = cols.shape[1], cols.shape[2]
    cols = cols.reshape(N * Ho * Wo, cols.shape[-1])
    R = cols.shape[0]
    Rpad = _round_up(R, TM)
    cols = jnp.pad(cols, ((0, Rpad - R), (0, 0)))
    st = p["stem"]
    y = fused_mm(cols, st["w"], st["s_in"], st["t_in"], st["s_out"],
                 st["t_out"], jnp.ones((Rpad, 1), jnp.float32),
                 relu_in=False, relu_out=True)
    x = y[:R].reshape(N, Ho, Wo, LANE)
    x = maxpool_3x3_s2_p1(x)                                     # pool0
    # ---- dense blocks (+ forget stage, transitions)
    for bp in p["blocks"]:
        x = dense_block_forward(x, bp)
    # ---- tail: norm5 + ReLU + avg_pool2d(7, 1) + classifier, one kernel
    N, Hf, Wf, C = x.shape
    assert Hf == 7 and Wf == 7  # matches F.avg_pool2d(kernel_size=7, stride=1)
    xf = x.reshape(N * Hf * Wf, C)
    Rf = _round_up(N * Hf * Wf, 8)
    xf = jnp.pad(xf, ((0, Rf - N * Hf * Wf), (0, 0)))
    pool = jnp.repeat(jnp.eye(N, dtype=jnp.float32), Hf * Wf, axis=1)
    pool = jnp.pad(pool, ((0, 0), (0, Rf - N * Hf * Wf))) / float(Hf * Wf)
    t = p["tail"]
    return tail_head(xf, t["s5"], t["t5"], pool, t["wc"], t["bc"])


# ----------------------------- main -----------------------------

if __name__ == "__main__":
    # Small DenseNet config consistent with the module's constructor.
    growth_rate = 8
    block_config = (2, 2)
    num_init_features = 16
    bn_size = 2
    num_classes = 10

    key = jax.random.PRNGKey(0)
    kp, kx = jax.random.split(key)
    params = build_params(kp, growth_rate, block_config, num_init_features,
                          bn_size, num_classes)

    # 56x56 input so the map reaching avg_pool2d(7, 1) is exactly 7x7
    # (the reference DenseNet maps 224 -> 7).
    x = jax.random.normal(kx, (2, 3, 56, 56), jnp.float32)

    fwd = jax.jit(densenet_forward)
    out = jax.block_until_ready(fwd(params, x))
    assert out.shape == (2, num_classes)
    assert bool(jnp.all(jnp.isfinite(out)))
    print("KERNEL_OK")
</pallas_src>

<mosaic_0001>
module attributes {stable_mosaic.version = 11 : i64} {
  func.func @_fused_mm_kernel(%arg0: i32, %arg1: memref<256x147xf32, #tpu.memory_space<vmem>>, %arg2: memref<147x128xbf16, #tpu.memory_space<vmem>>, %arg3: memref<1x147xf32, #tpu.memory_space<vmem>>, %arg4: memref<1x147xf32, #tpu.memory_space<vmem>>, %arg5: memref<1x128xf32, #tpu.memory_space<vmem>>, %arg6: memref<1x128xf32, #tpu.memory_space<vmem>>, %arg7: memref<256x1xf32, #tpu.memory_space<vmem>>, %arg8: memref<256x128xf32, #tpu.memory_space<vmem>>) attributes {dimension_semantics = [#tpu.dimension_semantics<parallel>], iteration_bounds = array<i64: 7>, scalar_prefetch = 0 : i64, scratch_operands = 0 : i64, tpu.core_type = #tpu.core_type<tc>, window_params = [{transform_indices = @transform_0, window_bounds = array<i64: 256, 147>}, {pipeline_mode = #tpu.pipeline_mode<synchronous>, transform_indices = @transform_1, window_bounds = array<i64: 147, 128>}, {pipeline_mode = #tpu.pipeline_mode<synchronous>, transform_indices = @transform_2, window_bounds = array<i64: 1, 147>}, {pipeline_mode = #tpu.pipeline_mode<synchronous>, transform_indices = @transform_3, window_bounds = array<i64: 1, 147>}, {pipeline_mode = #tpu.pipeline_mode<synchronous>, transform_indices = @transform_4, window_bounds = array<i64: 1, 128>}, {pipeline_mode = #tpu.pipeline_mode<synchronous>, transform_indices = @transform_5, window_bounds = array<i64: 1, 128>}, {transform_indices = @transform_6, window_bounds = array<i64: 256, 1>}, {transform_indices = @transform_7, window_bounds = array<i64: 256, 128>}]} {
    %c0 = arith.constant 0 : index
    %c0_0 = arith.constant 0 : index
    %0 = vector.load %arg1[%c0, %c0_0] : memref<256x147xf32, #tpu.memory_space<vmem>>, vector<256x147xf32>
    %c0_1 = arith.constant 0 : index
    %c0_2 = arith.constant 0 : index
    %1 = vector.load %arg3[%c0_1, %c0_2] : memref<1x147xf32, #tpu.memory_space<vmem>>, vector<1x147xf32>
    %2 = vector.broadcast %1 : vector<1x147xf32> to vector<256x147xf32>
    %3 = arith.mulf %0, %2 : vector<256x147xf32>
    %c0_3 = arith.constant 0 : index
    %c0_4 = arith.constant 0 : index
    %4 = vector.load %arg4[%c0_3, %c0_4] : memref<1x147xf32, #tpu.memory_space<vmem>>, vector<1x147xf32>
    %5 = vector.broadcast %4 : vector<1x147xf32> to vector<256x147xf32>
    %6 = arith.addf %3, %5 : vector<256x147xf32>
    %7 = arith.truncf %6 : vector<256x147xf32> to vector<256x147xbf16>
    %c0_5 = arith.constant 0 : index
    %c0_6 = arith.constant 0 : index
    %8 = vector.load %arg2[%c0_5, %c0_6] : memref<147x128xbf16, #tpu.memory_space<vmem>>, vector<147x128xbf16>
    %cst = arith.constant dense<0.000000e+00> : vector<256x128xf32>
    %9 = tpu.matmul %7, %8, %cst {dimension_numbers = #tpu.dot_dimension_numbers<[1], [0], [0], [1], [0, 0, 1, 1], [], []>} : vector<256x147xbf16>, vector<147x128xbf16>, vector<256x128xf32> -> vector<256x128xf32>
    %c0_7 = arith.constant 0 : index
    %c0_8 = arith.constant 0 : index
    %10 = vector.load %arg5[%c0_7, %c0_8] : memref<1x128xf32, #tpu.memory_space<vmem>>, vector<1x128xf32>
    %11 = vector.broadcast %10 : vector<1x128xf32> to vector<256x128xf32>
    %12 = arith.mulf %9, %11 : vector<256x128xf32>
    %c0_9 = arith.constant 0 : index
    %c0_10 = arith.constant 0 : index
    %13 = vector.load %arg6[%c0_9, %c0_10] : memref<1x128xf32, #tpu.memory_space<vmem>>, vector<1x128xf32>
    %14 = vector.broadcast %13 : vector<1x128xf32> to vector<256x128xf32>
    %15 = arith.addf %12, %14 : vector<256x128xf32>
    %cst_11 = arith.constant 0.000000e+00 : f32
    %16 = vector.broadcast %cst_11 : f32 to vector<256x128xf32>
    %17 = arith.maximumf %15, %16 : vector<256x128xf32>
    %c0_12 = arith.constant 0 : index
    %c0_13 = arith.constant 0 : index
    %18 = vector.load %arg7[%c0_12, %c0_13] : memref<256x1xf32, #tpu.memory_space<vmem>>, vector<256x1xf32>
    %19 = vector.broadcast %18 : vector<256x1xf32> to vector<256x128xf32>
    %20 = arith.mulf %17, %19 : vector<256x128xf32>
    %c0_14 = arith.constant 0 : index
    %c0_15 = arith.constant 0 : index
    %21 = vector.load %arg8[%c0_14, %c0_15] : memref<256x128xf32, #tpu.memory_space<vmem>>, vector<256x128xf32>
    tpu.vector_store %arg8[%c0_14, %c0_15], %20 {strides = array<i32>} : memref<256x128xf32, #tpu.memory_space<vmem>>, vector<256x128xf32>,
    return
  }
  func.func @transform_0(%arg0: i32) -> (i32, i32) {
    %c0_i32 = arith.constant 0 : i32
    %c0_i32_0 = arith.constant 0 : i32
    return %arg0, %c0_i32 : i32, i32
  }
  func.func @transform_1(%arg0: i32) -> (i32, i32) {
    %c0_i32 = arith.constant 0 : i32
    %c0_i32_0 = arith.constant 0 : i32
    %c0_i32_1 = arith.constant 0 : i32
    return %c0_i32, %c0_i32_0 : i32, i32
  }
  func.func @transform_2(%arg0: i32) -> (i32, i32) {
    %c0_i32 = arith.constant 0 : i32
    %c0_i32_0 = arith.constant 0 : i32
    %c0_i32_1 = arith.constant 0 : i32
    return %c0_i32, %c0_i32_0 : i32, i32
  }
  func.func @transform_3(%arg0: i32) -> (i32, i32) {
    %c0_i32 = arith.constant 0 : i32
    %c0_i32_0 = arith.constant 0 : i32
    %c0_i32_1 = arith.constant 0 : i32
    return %c0_i32, %c0_i32_0 : i32, i32
  }
  func.func @transform_4(%arg0: i32) -> (i32, i32) {
    %c0_i32 = arith.constant 0 : i32
    %c0_i32_0 = arith.constant 0 : i32
    %c0_i32_1 = arith.constant 0 : i32
    return %c0_i32, %c0_i32_0 : i32, i32
  }
  func.func @transform_5(%arg0: i32) -> (i32, i32) {
    %c0_i32 = arith.constant 0 : i32
    %c0_i32_0 = arith.constant 0 : i32
    %c0_i32_1 = arith.constant 0 : i32
    return %c0_i32, %c0_i32_0 : i32, i32
  }
  func.func @transform_6(%arg0: i32) -> (i32, i32) {
    %c0_i32 = arith.constant 0 : i32
    %c0_i32_0 = arith.constant 0 : i32
    return %arg0, %c0_i32 : i32, i32
  }
  func.func @transform_7(%arg0: i32) -> (i32, i32) {
    %c0_i32 = arith.constant 0 : i32
    %c0_i32_0 = arith.constant 0 : i32
    return %arg0, %c0_i32 : i32, i32
  }
}

module attributes {stable_mosaic.version = 11 : i64} {
  func.func @_conv3x3_append_kernel(%arg0: i32, %arg1: memref<512x128xf32, #tpu.memory_space<vmem>>, %arg2: memref<512x128xf32, #tpu.memory_space<vmem>>, %arg3: memref<9x128x128xbf16, #tpu.memory_space<vmem>>, %arg4: memref<512x1xf32, #tpu.memory_space<vmem>>, %arg5: memref<512x128xf32, #tpu.memory_space<vmem>>) attributes {dimension_semantics = [#tpu.dimension_semantics<arbitrary>], iteration_bounds = array<i64: 1>, scalar_prefetch = 0 : i64, scratch_operands = 0 : i64, tpu.core_type = #tpu.core_type<tc>, window_params = [{pipeline_mode = #tpu.pipeline_mode<synchronous>, transform_indices = @transform_0, window_bounds = array<i64: 512, 128>}, {pipeline_mode = #tpu.pipeline_mode<synchronous>, transform_indices = @transform_1, window_bounds = array<i64: 512, 128>}, {pipeline_mode = #tpu.pipeline_mode<synchronous>, transform_indices = @transform_2, window_bounds = array<i64: 9, 128, 128>}, {pipeline_mode = #tpu.pipeline_mode<synchronous>, transform_indices = @transform_3, window_bounds = array<i64: 512, 1>}, {pipeline_mode = #tpu.pipeline_mode<synchronous>, transform_indices = @transform_4, window_bounds = array<i64: 512, 128>}]} {
    %c0 = arith.constant 0 : index
    %c0_0 = arith.constant 0 : index
    %0 = vector.load %arg1[%c0, %c0_0] : memref<512x128xf32, #tpu.memory_space<vmem>>, vector<512x128xf32>
    %cst = arith.constant 0.000000e+00 : f32
    %1 = vector.broadcast %cst : f32 to vector<512x128xf32>
    %c17_i32 = arith.constant 17 : i32
    %2 = tpu.dynamic_rotate %0 by %c17_i32 dim 0 : vector<512x128xf32>, i32 -> vector<512x128xf32>
    %3 = arith.truncf %2 : vector<512x128xf32> to vector<512x128xbf16>
    %c0_1 = arith.constant 0 : index
    %c0_2 = arith.constant 0 : index
    %c0_3 = arith.constant 0 : index
    %4 = vector.load %arg3[%c0_1, %c0_2, %c0_3] : memref<9x128x128xbf16, #tpu.memory_space<vmem>>, vector<1x128x128xbf16>
    %5 = vector.shape_cast %4 : vector<1x128x128xbf16> to vector<128x128xbf16>
    %cst_4 = arith.constant dense<0.000000e+00> : vector<512x128xf32>
    %6 = tpu.matmul %3, %5, %cst_4 {dimension_numbers = #tpu.dot_dimension_numbers<[1], [0], [0], [1], [0, 0, 1, 1], [], []>} : vector<512x128xbf16>, vector<128x128xbf16>, vector<512x128xf32> -> vector<512x128xf32>
    %7 = arith.addf %1, %6 : vector<512x128xf32>
    %c16_i32 = arith.constant 16 : i32
    %8 = tpu.dynamic_rotate %0 by %c16_i32 dim 0 : vector<512x128xf32>, i32 -> vector<512x128xf32>
    %9 = arith.truncf %8 : vector<512x128xf32> to vector<512x128xbf16>
    %c1 = arith.constant 1 : index
    %c0_5 = arith.constant 0 : index
    %c0_6 = arith.constant 0 : index
    %10 = vector.load %arg3[%c1, %c0_5, %c0_6] : memref<9x128x128xbf16, #tpu.memory_space<vmem>>, vector<1x128x128xbf16>
    %11 = vector.shape_cast %10 : vector<1x128x128xbf16> to vector<128x128xbf16>
    %cst_7 = arith.constant dense<0.000000e+00> : vector<512x128xf32>
    %12 = tpu.matmul %9, %11, %cst_7 {dimension_numbers = #tpu.dot_dimension_numbers<[1], [0], [0], [1], [0, 0, 1, 1], [], []>} : vector<512x128xbf16>, vector<128x128xbf16>, vector<512x128xf32> -> vector<512x128xf32>
    %13 = arith.addf %7, %12 : vector<512x128xf32>
    %c15_i32 = arith.constant 15 : i32
    %14 = tpu.dynamic_rotate %0 by %c15_i32 dim 0 : vector<512x128xf32>, i32 -> vector<512x128xf32>
    %15 = arith.truncf %14 : vector<512x128xf32> to vector<512x128xbf16>
    %c2 = arith.constant 2 : index
    %c0_8 = arith.constant 0 : index
    %c0_9 = arith.constant 0 : index
    %16 = vector.load %arg3[%c2, %c0_8, %c0_9] : memref<9x128x128xbf16, #tpu.memory_space<vmem>>, vector<1x128x128xbf16>
    %17 = vector.shape_cast %16 : vector<1x128x128xbf16> to vector<128x128xbf16>
    %cst_10 = arith.constant dense<0.000000e+00> : vector<512x128xf32>
    %18 = tpu.matmul %15, %17, %cst_10 {dimension_numbers = #tpu.dot_dimension_numbers<[1], [0], [0], [1], [0, 0, 1, 1], [], []>} : vector<512x128xbf16>, vector<128x128xbf16>, vector<512x128xf32> -> vector<512x128xf32>
    %19 = arith.addf %13, %18 : vector<512x128xf32>
    %c1_i32 = arith.constant 1 : i32
    %20 = tpu.dynamic_rotate %0 by %c1_i32 dim 0 : vector<512x128xf32>, i32 -> vector<512x128xf32>
    %21 = arith.truncf %20 : vector<512x128xf32> to vector<512x128xbf16>
    %c3 = arith.constant 3 : index
    %c0_11 = arith.constant 0 : index
    %c0_12 = arith.constant 0 : index
    %22 = vector.load %arg3[%c3, %c0_11, %c0_12] : memref<9x128x128xbf16, #tpu.memory_space<vmem>>, vector<1x128x128xbf16>
    %23 = vector.shape_cast %22 : vector<1x128x128xbf16> to vector<128x128xbf16>
    %cst_13 = arith.constant dense<0.000000e+00> : vector<512x128xf32>
    %24 = tpu.matmul %21, %23, %cst_13 {dimension_numbers = #tpu.dot_dimension_numbers<[1], [0], [0], [1], [0, 0, 1, 1], [], []>} : vector<512x128xbf16>, vector<128x128xbf16>, vector<512x128xf32> -> vector<512x128xf32>
    %25 = arith.addf %19, %24 : vector<512x128xf32>
    %26 = arith.truncf %0 : vector<512x128xf32> to vector<512x128xbf16>
    %c4 = arith.constant 4 : index
    %c0_14 = arith.constant 0 : index
    %c0_15 = arith.constant 0 : index
    %27 = vector.load %arg3[%c4, %c0_14, %c0_15] : memref<9x128x128xbf16, #tpu.memory_space<vmem>>, vector<1x128x128xbf16>
    %28 = vector.shape_cast %27 : vector<1x128x128xbf16> to vector<128x128xbf16>
    %cst_16 = arith.constant dense<0.000000e+00> : vector<512x128xf32>
    %29 = tpu.matmul %26, %28, %cst_16 {dimension_numbers = #tpu.dot_dimension_numbers<[1], [0], [0], [1], [0, 0, 1, 1], [], []>} : vector<512x128xbf16>, vector<128x128xbf16>, vector<512x128xf32> -> vector<512x128xf32>
    %30 = arith.addf %25, %29 : vector<512x128xf32>
    %c511_i32 = arith.constant 511 : i32
    %31 = tpu.dynamic_rotate %0 by %c511_i32 dim 0 : vector<512x128xf32>, i32 -> vector<512x128xf32>
    %32 = arith.truncf %31 : vector<512x128xf32> to vector<512x128xbf16>
    %c5 = arith.constant 5 : index
    %c0_17 = arith.constant 0 : index
    %c0_18 = arith.constant 0 : index
    %33 = vector.load %arg3[%c5, %c0_17, %c0_18] : memref<9x128x128xbf16, #tpu.memory_space<vmem>>, vector<1x128x128xbf16>
    %34 = vector.shape_cast %33 : vector<1x128x128xbf16> to vector<128x128xbf16>
    %cst_19 = arith.constant dense<0.000000e+00> : vector<512x128xf32>
    %35 = tpu.matmul %32, %34, %cst_19 {dimension_numbers = #tpu.dot_dimension_numbers<[1], [0], [0], [1], [0, 0, 1, 1], [], []>} : vector<512x128xbf16>, vector<128x128xbf16>, vector<512x128xf32> -> vector<512x128xf32>
    %36 = arith.addf %30, %35 : vector<512x128xf32>
    %c497_i32 = arith.constant 497 : i32
    %37 = tpu.dynamic_rotate %0 by %c497_i32 dim 0 : vector<512x128xf32>, i32 -> vector<512x128xf32>
    %38 = arith.truncf %37 : vector<512x128xf32> to vector<512x128xbf16>
    %c6 = arith.constant 6 : index
    %c0_20 = arith.constant 0 : index
    %c0_21 = arith.constant 0 : index
    %39 = vector.load %arg3[%c6, %c0_20, %c0_21] : memref<9x128x128xbf16, #tpu.memory_space<vmem>>, vector<1x128x128xbf16>
    %40 = vector.shape_cast %39 : vector<1x128x128xbf16> to vector<128x128xbf16>
    %cst_22 = arith.constant dense<0.000000e+00> : vector<512x128xf32>
    %41 = tpu.matmul %38, %40, %cst_22 {dimension_numbers = #tpu.dot_dimension_numbers<[1], [0], [0], [1], [0, 0, 1, 1], [], []>} : vector<512x128xbf16>, vector<128x128xbf16>, vector<512x128xf32> -> vector<512x128xf32>
    %42 = arith.addf %36, %41 : vector<512x128xf32>
    %c496_i32 = arith.constant 496 : i32
    %43 = tpu.dynamic_rotate %0 by %c496_i32 dim 0 : vector<512x128xf32>, i32 -> vector<512x128xf32>
    %44 = arith.truncf %43 : vector<512x128xf32> to vector<512x128xbf16>
    %c7 = arith.constant 7 : index
    %c0_23 = arith.constant 0 : index
    %c0_24 = arith.constant 0 : index
    %45 = vector.load %arg3[%c7, %c0_23, %c0_24] : memref<9x128x128xbf16, #tpu.memory_space<vmem>>, vector<1x128x128xbf16>
    %46 = vector.shape_cast %45 : vector<1x128x128xbf16> to vector<128x128xbf16>
    %cst_25 = arith.constant dense<0.000000e+00> : vector<512x128xf32>
    %47 = tpu.matmul %44, %46, %cst_25 {dimension_numbers = #tpu.dot_dimension_numbers<[1], [0], [0], [1], [0, 0, 1, 1], [], []>} : vector<512x128xbf16>, vector<128x128xbf16>, vector<512x128xf32> -> vector<512x128xf32>
    %48 = arith.addf %42, %47 : vector<512x128xf32>
    %c495_i32 = arith.constant 495 : i32
    %49 = tpu.dynamic_rotate %0 by %c495_i32 dim 0 : vector<512x128xf32>, i32 -> vector<512x128xf32>
    %50 = arith.truncf %49 : vector<512x128xf32> to vector<512x128xbf16>
    %c8 = arith.constant 8 : index
    %c0_26 = arith.constant 0 : index
    %c0_27 = arith.constant 0 : index
    %51 = vector.load %arg3[%c8, %c0_26, %c0_27] : memref<9x128x128xbf16, #tpu.memory_space<vmem>>, vector<1x128x128xbf16>
    %52 = vector.shape_cast %51 : vector<1x128x128xbf16> to vector<128x128xbf16>
    %cst_28 = arith.constant dense<0.000000e+00> : vector<512x128xf32>
    %53 = tpu.matmul %50, %52, %cst_28 {dimension_numbers = #tpu.dot_dimension_numbers<[1], [0], [0], [1], [0, 0, 1, 1], [], []>} : vector<512x128xbf16>, vector<128x128xbf16>, vector<512x128xf32> -> vector<512x128xf32>
    %54 = arith.addf %48, %53 : vector<512x128xf32>
    %c0_29 = arith.constant 0 : index
    %c0_30 = arith.constant 0 : index
    %55 = vector.load %arg2[%c0_29, %c0_30] : memref<512x128xf32, #tpu.memory_space<vmem>>, vector<512x128xf32>
    %c0_31 = arith.constant 0 : index
    %c0_32 = arith.constant 0 : index
    %56 = vector.load %arg4[%c0_31, %c0_32] : memref<512x1xf32, #tpu.memory_space<vmem>>, vector<512x1xf32>
    %57 = vector.broadcast %56 : vector<512x1xf32> to vector<512x128xf32>
    %58 = arith.mulf %54, %57 : vector<512x128xf32>
    %59 = arith.addf %55, %58 : vector<512x128xf32>
    %c0_33 = arith.constant 0 : index
    %c0_34 = arith.constant 0 : index
    %60 = vector.load %arg5[%c0_33, %c0_34] : memref<512x128xf32, #tpu.memory_space<vmem>>, vector<512x128xf32>
    tpu.vector_store %arg5[%c0_33, %c0_34], %59 {strides = array<i32>} : memref<512x128xf32, #tpu.memory_space<vmem>>, vector<512x128xf32>,
    return
  }
  func.func @transform_0(%arg0: i32) -> (i32, i32) {
    %c0_i32 = arith.constant 0 : i32
    %c0_i32_0 = arith.constant 0 : i32
    %c0_i32_1 = arith.constant 0 : i32
    return %c0_i32, %c0_i32_0 : i32, i32
  }
  func.func @transform_1(%arg0: i32) -> (i32, i32) {
    %c0_i32 = arith.constant 0 : i32
    %c0_i32_0 = arith.constant 0 : i32
    %c0_i32_1 = arith.constant 0 : i32
    return %c0_i32, %c0_i32_0 : i32, i32
  }
  func.func @transform_2(%arg0: i32) -> (i32, i32, i32) {
    %c0_i32 = arith.constant 0 : i32
    %c0_i32_0 = arith.constant 0 : i32
    %c0_i32_1 = arith.constant 0 : i32
    %c0_i32_2 = arith.constant 0 : i32
    return %c0_i32, %c0_i32_0, %c0_i32_1 : i32, i32, i32
  }
  func.func @transform_3(%arg0: i32) -> (i32, i32) {
    %c0_i32 = arith.constant 0 : i32
    %c0_i32_0 = arith.constant 0 : i32
    %c0_i32_1 = arith.constant 0 : i32
    return %c0_i32, %c0_i32_0 : i32, i32
  }
  func.func @transform_4(%arg0: i32) -> (i32, i32) {
    %c0_i32 = arith.constant 0 : i32
    %c0_i32_0 = arith.constant 0 : i32
    %c0_i32_1 = arith.constant 0 : i32
    return %c0_i32, %c0_i32_0 : i32, i32
  }
}

module attributes {stable_mosaic.version = 11 : i64} {
  func.func @_fused_mm_kernel(%arg0: i32, %arg1: memref<256x128xf32, #tpu.memory_space<vmem>>, %arg2: memref<128x128xbf16, #tpu.memory_space<vmem>>, %arg3: memref<1x128xf32, #tpu.memory_space<vmem>>, %arg4: memref<1x128xf32, #tpu.memory_space<vmem>>, %arg5: memref<1x128xf32, #tpu.memory_space<vmem>>, %arg6: memref<1x128xf32, #tpu.memory_space<vmem>>, %arg7: memref<256x1xf32, #tpu.memory_space<vmem>>, %arg8: memref<256x128xf32, #tpu.memory_space<vmem>>) attributes {dimension_semantics = [#tpu.dimension_semantics<parallel>], iteration_bounds = array<i64: 2>, scalar_prefetch = 0 : i64, scratch_operands = 0 : i64, tpu.core_type = #tpu.core_type<tc>, window_params = [{transform_indices = @transform_0, window_bounds = array<i64: 256, 128>}, {pipeline_mode = #tpu.pipeline_mode<synchronous>, transform_indices = @transform_1, window_bounds = array<i64: 128, 128>}, {pipeline_mode = #tpu.pipeline_mode<synchronous>, transform_indices = @transform_2, window_bounds = array<i64: 1, 128>}, {pipeline_mode = #tpu.pipeline_mode<synchronous>, transform_indices = @transform_3, window_bounds = array<i64: 1, 128>}, {pipeline_mode = #tpu.pipeline_mode<synchronous>, transform_indices = @transform_4, window_bounds = array<i64: 1, 128>}, {pipeline_mode = #tpu.pipeline_mode<synchronous>, transform_indices = @transform_5, window_bounds = array<i64: 1, 128>}, {transform_indices = @transform_6, window_bounds = array<i64: 256, 1>}, {transform_indices = @transform_7, window_bounds = array<i64: 256, 128>}]} {
    %c0 = arith.constant 0 : index
    %c0_0 = arith.constant 0 : index
    %0 = vector.load %arg1[%c0, %c0_0] : memref<256x128xf32, #tpu.memory_space<vmem>>, vector<256x128xf32>
    %c0_1 = arith.constant 0 : index
    %c0_2 = arith.constant 0 : index
    %1 = vector.load %arg3[%c0_1, %c0_2] : memref<1x128xf32, #tpu.memory_space<vmem>>, vector<1x128xf32>
    %2 = vector.broadcast %1 : vector<1x128xf32> to vector<256x128xf32>
    %3 = arith.mulf %0, %2 : vector<256x128xf32>
    %c0_3 = arith.constant 0 : index
    %c0_4 = arith.constant 0 : index
    %4 = vector.load %arg4[%c0_3, %c0_4] : memref<1x128xf32, #tpu.memory_space<vmem>>, vector<1x128xf32>
    %5 = vector.broadcast %4 : vector<1x128xf32> to vector<256x128xf32>
    %6 = arith.addf %3, %5 : vector<256x128xf32>
    %cst = arith.constant 0.000000e+00 : f32
    %7 = vector.broadcast %cst : f32 to vector<256x128xf32>
    %8 = arith.maximumf %6, %7 : vector<256x128xf32>
    %9 = arith.truncf %8 : vector<256x128xf32> to vector<256x128xbf16>
    %c0_5 = arith.constant 0 : index
    %c0_6 = arith.constant 0 : index
    %10 = vector.load %arg2[%c0_5, %c0_6] : memref<128x128xbf16, #tpu.memory_space<vmem>>, vector<128x128xbf16>
    %cst_7 = arith.constant dense<0.000000e+00> : vector<256x128xf32>
    %11 = tpu.matmul %9, %10, %cst_7 {dimension_numbers = #tpu.dot_dimension_numbers<[1], [0], [0], [1], [0, 0, 1, 1], [], []>} : vector<256x128xbf16>, vector<128x128xbf16>, vector<256x128xf32> -> vector<256x128xf32>
    %c0_8 = arith.constant 0 : index
    %c0_9 = arith.constant 0 : index
    %12 = vector.load %arg5[%c0_8, %c0_9] : memref<1x128xf32, #tpu.memory_space<vmem>>, vector<1x128xf32>
    %13 = vector.broadcast %12 : vector<1x128xf32> to vector<256x128xf32>
    %14 = arith.mulf %11, %13 : vector<256x128xf32>
    %c0_10 = arith.constant 0 : index
    %c0_11 = arith.constant 0 : index
    %15 = vector.load %arg6[%c0_10, %c0_11] : memref<1x128xf32, #tpu.memory_space<vmem>>, vector<1x128xf32>
    %16 = vector.broadcast %15 : vector<1x128xf32> to vector<256x128xf32>
    %17 = arith.addf %14, %16 : vector<256x128xf32>
    %cst_12 = arith.constant 0.000000e+00 : f32
    %18 = vector.broadcast %cst_12 : f32 to vector<256x128xf32>
    %19 = arith.maximumf %17, %18 : vector<256x128xf32>
    %c0_13 = arith.constant 0 : index
    %c0_14 = arith.constant 0 : index
    %20 = vector.load %arg7[%c0_13, %c0_14] : memref<256x1xf32, #tpu.memory_space<vmem>>, vector<256x1xf32>
    %21 = vector.broadcast %20 : vector<256x1xf32> to vector<256x128xf32>
    %22 = arith.mulf %19, %21 : vector<256x128xf32>
    %c0_15 = arith.constant 0 : index
    %c0_16 = arith.constant 0 : index
    %23 = vector.load %arg8[%c0_15, %c0_16] : memref<256x128xf32, #tpu.memory_space<vmem>>, vector<256x128xf32>
    tpu.vector_store %arg8[%c0_15, %c0_16], %22 {strides = array<i32>} : memref<256x128xf32, #tpu.memory_space<vmem>>, vector<256x128xf32>,
    return
  }
  func.func @transform_0(%arg0: i32) -> (i32, i32) {
    %c0_i32 = arith.constant 0 : i32
    %c0_i32_0 = arith.constant 0 : i32
    return %arg0, %c0_i32 : i32, i32
  }
  func.func @transform_1(%arg0: i32) -> (i32, i32) {
    %c0_i32 = arith.constant 0 : i32
    %c0_i32_0 = arith.constant 0 : i32
    %c0_i32_1 = arith.constant 0 : i32
    return %c0_i32, %c0_i32_0 : i32, i32
  }
  func.func @transform_2(%arg0: i32) -> (i32, i32) {
    %c0_i32 = arith.constant 0 : i32
    %c0_i32_0 = arith.constant 0 : i32
    %c0_i32_1 = arith.constant 0 : i32
    return %c0_i32, %c0_i32_0 : i32, i32
  }
  func.func @transform_3(%arg0: i32) -> (i32, i32) {
    %c0_i32 = arith.constant 0 : i32
    %c0_i32_0 = arith.constant 0 : i32
    %c0_i32_1 = arith.constant 0 : i32
    return %c0_i32, %c0_i32_0 : i32, i32
  }
  func.func @transform_4(%arg0: i32) -> (i32, i32) {
    %c0_i32 = arith.constant 0 : i32
    %c0_i32_0 = arith.constant 0 : i32
    %c0_i32_1 = arith.constant 0 : i32
    return %c0_i32, %c0_i32_0 : i32, i32
  }
  func.func @transform_5(%arg0: i32) -> (i32, i32) {
    %c0_i32 = arith.constant 0 : i32
    %c0_i32_0 = arith.constant 0 : i32
    %c0_i32_1 = arith.constant 0 : i32
    return %c0_i32, %c0_i32_0 : i32, i32
  }
  func.func @transform_6(%arg0: i32) -> (i32, i32) {
    %c0_i32 = arith.constant 0 : i32
    %c0_i32_0 = arith.constant 0 : i32
    return %arg0, %c0_i32 : i32, i32
  }
  func.func @transform_7(%arg0: i32) -> (i32, i32) {
    %c0_i32 = arith.constant 0 : i32
    %c0_i32_0 = arith.constant 0 : i32
    return %arg0, %c0_i32 : i32, i32
  }
}

module attributes {stable_mosaic.version = 11 : i64} {
  func.func @_residual_mm_kernel(%arg0: i32, %arg1: memref<256x128xf32, #tpu.memory_space<vmem>>, %arg2: memref<128x128xbf16, #tpu.memory_space<vmem>>, %arg3: memref<1x128xf32, #tpu.memory_space<vmem>>, %arg4: memref<256x128xf32, #tpu.memory_space<vmem>>, %arg5: memref<1x128xf32, #tpu.memory_space<vmem>>, %arg6: memref<1x128xf32, #tpu.memory_space<vmem>>, %arg7: memref<256x128xf32, #tpu.memory_space<vmem>>) attributes {dimension_semantics = [#tpu.dimension_semantics<parallel>], iteration_bounds = array<i64: 2>, scalar_prefetch = 0 : i64, scratch_operands = 0 : i64, tpu.core_type = #tpu.core_type<tc>, window_params = [{transform_indices = @transform_0, window_bounds = array<i64: 256, 128>}, {pipeline_mode = #tpu.pipeline_mode<synchronous>, transform_indices = @transform_1, window_bounds = array<i64: 128, 128>}, {pipeline_mode = #tpu.pipeline_mode<synchronous>, transform_indices = @transform_2, window_bounds = array<i64: 1, 128>}, {transform_indices = @transform_3, window_bounds = array<i64: 256, 128>}, {pipeline_mode = #tpu.pipeline_mode<synchronous>, transform_indices = @transform_4, window_bounds = array<i64: 1, 128>}, {pipeline_mode = #tpu.pipeline_mode<synchronous>, transform_indices = @transform_5, window_bounds = array<i64: 1, 128>}, {transform_indices = @transform_6, window_bounds = array<i64: 256, 128>}]} {
    %c0 = arith.constant 0 : index
    %c0_0 = arith.constant 0 : index
    %0 = vector.load %arg1[%c0, %c0_0] : memref<256x128xf32, #tpu.memory_space<vmem>>, vector<256x128xf32>
    %1 = arith.truncf %0 : vector<256x128xf32> to vector<256x128xbf16>
    %c0_1 = arith.constant 0 : index
    %c0_2 = arith.constant 0 : index
    %2 = vector.load %arg2[%c0_1, %c0_2] : memref<128x128xbf16, #tpu.memory_space<vmem>>, vector<128x128xbf16>
    %cst = arith.constant dense<0.000000e+00> : vector<256x128xf32>
    %3 = tpu.matmul %1, %2, %cst {dimension_numbers = #tpu.dot_dimension_numbers<[1], [0], [0], [1], [0, 0, 1, 1], [], []>} : vector<256x128xbf16>, vector<128x128xbf16>, vector<256x128xf32> -> vector<256x128xf32>
    %c0_3 = arith.constant 0 : index
    %c0_4 = arith.constant 0 : index
    %4 = vector.load %arg3[%c0_3, %c0_4] : memref<1x128xf32, #tpu.memory_space<vmem>>, vector<1x128xf32>
    %5 = vector.broadcast %4 : vector<1x128xf32> to vector<256x128xf32>
    %6 = arith.addf %3, %5 : vector<256x128xf32>
    %c0_5 = arith.constant 0 : index
    %c0_6 = arith.constant 0 : index
    %7 = vector.load %arg4[%c0_5, %c0_6] : memref<256x128xf32, #tpu.memory_space<vmem>>, vector<256x128xf32>
    %c0_7 = arith.constant 0 : index
    %c0_8 = arith.constant 0 : index
    %8 = vector.load %arg5[%c0_7, %c0_8] : memref<1x128xf32, #tpu.memory_space<vmem>>, vector<1x128xf32>
    %9 = vector.broadcast %8 : vector<1x128xf32> to vector<256x128xf32>
    %10 = arith.mulf %7, %9 : vector<256x128xf32>
    %c0_9 = arith.constant 0 : index
    %c0_10 = arith.constant 0 : index
    %11 = vector.load %arg6[%c0_9, %c0_10] : memref<1x128xf32, #tpu.memory_space<vmem>>, vector<1x128xf32>
    %12 = vector.broadcast %11 : vector<1x128xf32> to vector<256x128xf32>
    %13 = arith.addf %10, %12 : vector<256x128xf32>
    %cst_11 = arith.constant 0.000000e+00 : f32
    %14 = vector.broadcast %cst_11 : f32 to vector<256x128xf32>
    %15 = arith.maximumf %13, %14 : vector<256x128xf32>
    %16 = arith.addf %6, %15 : vector<256x128xf32>
    %cst_12 = arith.constant 0.000000e+00 : f32
    %17 = vector.broadcast %cst_12 : f32 to vector<256x128xf32>
    %18 = arith.maximumf %16, %17 : vector<256x128xf32>
    %c0_13 = arith.constant 0 : index
    %c0_14 = arith.constant 0 : index
    %19 = vector.load %arg7[%c0_13, %c0_14] : memref<256x128xf32, #tpu.memory_space<vmem>>, vector<256x128xf32>
    tpu.vector_store %arg7[%c0_13, %c0_14], %18 {strides = array<i32>} : memref<256x128xf32, #tpu.memory_space<vmem>>, vector<256x128xf32>,
    return
  }
  func.func @transform_0(%arg0: i32) -> (i32, i32) {
    %c0_i32 = arith.constant 0 : i32
    %c0_i32_0 = arith.constant 0 : i32
    return %arg0, %c0_i32 : i32, i32
  }
  func.func @transform_1(%arg0: i32) -> (i32, i32) {
    %c0_i32 = arith.constant 0 : i32
    %c0_i32_0 = arith.constant 0 : i32
    %c0_i32_1 = arith.constant 0 : i32
    return %c0_i32, %c0_i32_0 : i32, i32
  }
  func.func @transform_2(%arg0: i32) -> (i32, i32) {
    %c0_i32 = arith.constant 0 : i32
    %c0_i32_0 = arith.constant 0 : i32
    %c0_i32_1 = arith.constant 0 : i32
    return %c0_i32, %c0_i32_0 : i32, i32
  }
  func.func @transform_3(%arg0: i32) -> (i32, i32) {
    %c0_i32 = arith.constant 0 : i32
    %c0_i32_0 = arith.constant 0 : i32
    return %arg0, %c0_i32 : i32, i32
  }
  func.func @transform_4(%arg0: i32) -> (i32, i32) {
    %c0_i32 = arith.constant 0 : i32
    %c0_i32_0 = arith.constant 0 : i32
    %c0_i32_1 = arith.constant 0 : i32
    return %c0_i32, %c0_i32_0 : i32, i32
  }
  func.func @transform_5(%arg0: i32) -> (i32, i32) {
    %c0_i32 = arith.constant 0 : i32
    %c0_i32_0 = arith.constant 0 : i32
    %c0_i32_1 = arith.constant 0 : i32
    return %c0_i32, %c0_i32_0 : i32, i32
  }
  func.func @transform_6(%arg0: i32) -> (i32, i32) {
    %c0_i32 = arith.constant 0 : i32
    %c0_i32_0 = arith.constant 0 : i32
    return %arg0, %c0_i32 : i32, i32
  }
}

module attributes {stable_mosaic.version = 11 : i64} {
  func.func @_fused_mm_kernel(%arg0: i32, %arg1: memref<256x128xf32, #tpu.memory_space<vmem>>, %arg2: memref<128x128xbf16, #tpu.memory_space<vmem>>, %arg3: memref<1x128xf32, #tpu.memory_space<vmem>>, %arg4: memref<1x128xf32, #tpu.memory_space<vmem>>, %arg5: memref<1x128xf32, #tpu.memory_space<vmem>>, %arg6: memref<1x128xf32, #tpu.memory_space<vmem>>, %arg7: memref<256x1xf32, #tpu.memory_space<vmem>>, %arg8: memref<256x128xf32, #tpu.memory_space<vmem>>) attributes {dimension_semantics = [#tpu.dimension_semantics<parallel>], iteration_bounds = array<i64: 2>, scalar_prefetch = 0 : i64, scratch_operands = 0 : i64, tpu.core_type = #tpu.core_type<tc>, window_params = [{transform_indices = @transform_0, window_bounds = array<i64: 256, 128>}, {pipeline_mode = #tpu.pipeline_mode<synchronous>, transform_indices = @transform_1, window_bounds = array<i64: 128, 128>}, {pipeline_mode = #tpu.pipeline_mode<synchronous>, transform_indices = @transform_2, window_bounds = array<i64: 1, 128>}, {pipeline_mode = #tpu.pipeline_mode<synchronous>, transform_indices = @transform_3, window_bounds = array<i64: 1, 128>}, {pipeline_mode = #tpu.pipeline_mode<synchronous>, transform_indices = @transform_4, window_bounds = array<i64: 1, 128>}, {pipeline_mode = #tpu.pipeline_mode<synchronous>, transform_indices = @transform_5, window_bounds = array<i64: 1, 128>}, {transform_indices = @transform_6, window_bounds = array<i64: 256, 1>}, {transform_indices = @transform_7, window_bounds = array<i64: 256, 128>}]} {
    %c0 = arith.constant 0 : index
    %c0_0 = arith.constant 0 : index
    %0 = vector.load %arg1[%c0, %c0_0] : memref<256x128xf32, #tpu.memory_space<vmem>>, vector<256x128xf32>
    %c0_1 = arith.constant 0 : index
    %c0_2 = arith.constant 0 : index
    %1 = vector.load %arg3[%c0_1, %c0_2] : memref<1x128xf32, #tpu.memory_space<vmem>>, vector<1x128xf32>
    %2 = vector.broadcast %1 : vector<1x128xf32> to vector<256x128xf32>
    %3 = arith.mulf %0, %2 : vector<256x128xf32>
    %c0_3 = arith.constant 0 : index
    %c0_4 = arith.constant 0 : index
    %4 = vector.load %arg4[%c0_3, %c0_4] : memref<1x128xf32, #tpu.memory_space<vmem>>, vector<1x128xf32>
    %5 = vector.broadcast %4 : vector<1x128xf32> to vector<256x128xf32>
    %6 = arith.addf %3, %5 : vector<256x128xf32>
    %cst = arith.constant 0.000000e+00 : f32
    %7 = vector.broadcast %cst : f32 to vector<256x128xf32>
    %8 = arith.maximumf %6, %7 : vector<256x128xf32>
    %9 = arith.truncf %8 : vector<256x128xf32> to vector<256x128xbf16>
    %c0_5 = arith.constant 0 : index
    %c0_6 = arith.constant 0 : index
    %10 = vector.load %arg2[%c0_5, %c0_6] : memref<128x128xbf16, #tpu.memory_space<vmem>>, vector<128x128xbf16>
    %cst_7 = arith.constant dense<0.000000e+00> : vector<256x128xf32>
    %11 = tpu.matmul %9, %10, %cst_7 {dimension_numbers = #tpu.dot_dimension_numbers<[1], [0], [0], [1], [0, 0, 1, 1], [], []>} : vector<256x128xbf16>, vector<128x128xbf16>, vector<256x128xf32> -> vector<256x128xf32>
    %c0_8 = arith.constant 0 : index
    %c0_9 = arith.constant 0 : index
    %12 = vector.load %arg5[%c0_8, %c0_9] : memref<1x128xf32, #tpu.memory_space<vmem>>, vector<1x128xf32>
    %13 = vector.broadcast %12 : vector<1x128xf32> to vector<256x128xf32>
    %14 = arith.mulf %11, %13 : vector<256x128xf32>
    %c0_10 = arith.constant 0 : index
    %c0_11 = arith.constant 0 : index
    %15 = vector.load %arg6[%c0_10, %c0_11] : memref<1x128xf32, #tpu.memory_space<vmem>>, vector<1x128xf32>
    %16 = vector.broadcast %15 : vector<1x128xf32> to vector<256x128xf32>
    %17 = arith.addf %14, %16 : vector<256x128xf32>
    %c0_12 = arith.constant 0 : index
    %c0_13 = arith.constant 0 : index
    %18 = vector.load %arg7[%c0_12, %c0_13] : memref<256x1xf32, #tpu.memory_space<vmem>>, vector<256x1xf32>
    %19 = vector.broadcast %18 : vector<256x1xf32> to vector<256x128xf32>
    %20 = arith.mulf %17, %19 : vector<256x128xf32>
    %c0_14 = arith.constant 0 : index
    %c0_15 = arith.constant 0 : index
    %21 = vector.load %arg8[%c0_14, %c0_15] : memref<256x128xf32, #tpu.memory_space<vmem>>, vector<256x128xf32>
    tpu.vector_store %arg8[%c0_14, %c0_15], %20 {strides = array<i32>} : memref<256x128xf32, #tpu.memory_space<vmem>>, vector<256x128xf32>,
    return
  }
  func.func @transform_0(%arg0: i32) -> (i32, i32) {
    %c0_i32 = arith.constant 0 : i32
    %c0_i32_0 = arith.constant 0 : i32
    return %arg0, %c0_i32 : i32, i32
  }
  func.func @transform_1(%arg0: i32) -> (i32, i32) {
    %c0_i32 = arith.constant 0 : i32
    %c0_i32_0 = arith.constant 0 : i32
    %c0_i32_1 = arith.constant 0 : i32
    return %c0_i32, %c0_i32_0 : i32, i32
  }
  func.func @transform_2(%arg0: i32) -> (i32, i32) {
    %c0_i32 = arith.constant 0 : i32
    %c0_i32_0 = arith.constant 0 : i32
    %c0_i32_1 = arith.constant 0 : i32
    return %c0_i32, %c0_i32_0 : i32, i32
  }
  func.func @transform_3(%arg0: i32) -> (i32, i32) {
    %c0_i32 = arith.constant 0 : i32
    %c0_i32_0 = arith.constant 0 : i32
    %c0_i32_1 = arith.constant 0 : i32
    return %c0_i32, %c0_i32_0 : i32, i32
  }
  func.func @transform_4(%arg0: i32) -> (i32, i32) {
    %c0_i32 = arith.constant 0 : i32
    %c0_i32_0 = arith.constant 0 : i32
    %c0_i32_1 = arith.constant 0 : i32
    return %c0_i32, %c0_i32_0 : i32, i32
  }
  func.func @transform_5(%arg0: i32) -> (i32, i32) {
    %c0_i32 = arith.constant 0 : i32
    %c0_i32_0 = arith.constant 0 : i32
    %c0_i32_1 = arith.constant 0 : i32
    return %c0_i32, %c0_i32_0 : i32, i32
  }
  func.func @transform_6(%arg0: i32) -> (i32, i32) {
    %c0_i32 = arith.constant 0 : i32
    %c0_i32_0 = arith.constant 0 : i32
    return %arg0, %c0_i32 : i32, i32
  }
  func.func @transform_7(%arg0: i32) -> (i32, i32) {
    %c0_i32 = arith.constant 0 : i32
    %c0_i32_0 = arith.constant 0 : i32
    return %arg0, %c0_i32 : i32, i32
  }
}

module attributes {stable_mosaic.version = 11 : i64} {
  func.func @_conv3x3_append_kernel(%arg0: i32, %arg1: memref<256x128xf32, #tpu.memory_space<vmem>>, %arg2: memref<256x128xf32, #tpu.memory_space<vmem>>, %arg3: memref<9x128x128xbf16, #tpu.memory_space<vmem>>, %arg4: memref<256x1xf32, #tpu.memory_space<vmem>>, %arg5: memref<256x128xf32, #tpu.memory_space<vmem>>) attributes {dimension_semantics = [#tpu.dimension_semantics<arbitrary>], iteration_bounds = array<i64: 1>, scalar_prefetch = 0 : i64, scratch_operands = 0 : i64, tpu.core_type = #tpu.core_type<tc>, window_params = [{pipeline_mode = #tpu.pipeline_mode<synchronous>, transform_indices = @transform_0, window_bounds = array<i64: 256, 128>}, {pipeline_mode = #tpu.pipeline_mode<synchronous>, transform_indices = @transform_1, window_bounds = array<i64: 256, 128>}, {pipeline_mode = #tpu.pipeline_mode<synchronous>, transform_indices = @transform_2, window_bounds = array<i64: 9, 128, 128>}, {pipeline_mode = #tpu.pipeline_mode<synchronous>, transform_indices = @transform_3, window_bounds = array<i64: 256, 1>}, {pipeline_mode = #tpu.pipeline_mode<synchronous>, transform_indices = @transform_4, window_bounds = array<i64: 256, 128>}]} {
    %c0 = arith.constant 0 : index
    %c0_0 = arith.constant 0 : index
    %0 = vector.load %arg1[%c0, %c0_0] : memref<256x128xf32, #tpu.memory_space<vmem>>, vector<256x128xf32>
    %cst = arith.constant 0.000000e+00 : f32
    %1 = vector.broadcast %cst : f32 to vector<256x128xf32>
    %c10_i32 = arith.constant 10 : i32
    %2 = tpu.dynamic_rotate %0 by %c10_i32 dim 0 : vector<256x128xf32>, i32 -> vector<256x128xf32>
    %3 = arith.truncf %2 : vector<256x128xf32> to vector<256x128xbf16>
    %c0_1 = arith.constant 0 : index
    %c0_2 = arith.constant 0 : index
    %c0_3 = arith.constant 0 : index
    %4 = vector.load %arg3[%c0_1, %c0_2, %c0_3] : memref<9x128x128xbf16, #tpu.memory_space<vmem>>, vector<1x128x128xbf16>
    %5 = vector.shape_cast %4 : vector<1x128x128xbf16> to vector<128x128xbf16>
    %cst_4 = arith.constant dense<0.000000e+00> : vector<256x128xf32>
    %6 = tpu.matmul %3, %5, %cst_4 {dimension_numbers = #tpu.dot_dimension_numbers<[1], [0], [0], [1], [0, 0, 1, 1], [], []>} : vector<256x128xbf16>, vector<128x128xbf16>, vector<256x128xf32> -> vector<256x128xf32>
    %7 = arith.addf %1, %6 : vector<256x128xf32>
    %c9_i32 = arith.constant 9 : i32
    %8 = tpu.dynamic_rotate %0 by %c9_i32 dim 0 : vector<256x128xf32>, i32 -> vector<256x128xf32>
    %9 = arith.truncf %8 : vector<256x128xf32> to vector<256x128xbf16>
    %c1 = arith.constant 1 : index
    %c0_5 = arith.constant 0 : index
    %c0_6 = arith.constant 0 : index
    %10 = vector.load %arg3[%c1, %c0_5, %c0_6] : memref<9x128x128xbf16, #tpu.memory_space<vmem>>, vector<1x128x128xbf16>
    %11 = vector.shape_cast %10 : vector<1x128x128xbf16> to vector<128x128xbf16>
    %cst_7 = arith.constant dense<0.000000e+00> : vector<256x128xf32>
    %12 = tpu.matmul %9, %11, %cst_7 {dimension_numbers = #tpu.dot_dimension_numbers<[1], [0], [0], [1], [0, 0, 1, 1], [], []>} : vector<256x128xbf16>, vector<128x128xbf16>, vector<256x128xf32> -> vector<256x128xf32>
    %13 = arith.addf %7, %12 : vector<256x128xf32>
    %c8_i32 = arith.constant 8 : i32
    %14 = tpu.dynamic_rotate %0 by %c8_i32 dim 0 : vector<256x128xf32>, i32 -> vector<256x128xf32>
    %15 = arith.truncf %14 : vector<256x128xf32> to vector<256x128xbf16>
    %c2 = arith.constant 2 : index
    %c0_8 = arith.constant 0 : index
    %c0_9 = arith.constant 0 : index
    %16 = vector.load %arg3[%c2, %c0_8, %c0_9] : memref<9x128x128xbf16, #tpu.memory_space<vmem>>, vector<1x128x128xbf16>
    %17 = vector.shape_cast %16 : vector<1x128x128xbf16> to vector<128x128xbf16>
    %cst_10 = arith.constant dense<0.000000e+00> : vector<256x128xf32>
    %18 = tpu.matmul %15, %17, %cst_10 {dimension_numbers = #tpu.dot_dimension_numbers<[1], [0], [0], [1], [0, 0, 1, 1], [], []>} : vector<256x128xbf16>, vector<128x128xbf16>, vector<256x128xf32> -> vector<256x128xf32>
    %19 = arith.addf %13, %18 : vector<256x128xf32>
    %c1_i32 = arith.constant 1 : i32
    %20 = tpu.dynamic_rotate %0 by %c1_i32 dim 0 : vector<256x128xf32>, i32 -> vector<256x128xf32>
    %21 = arith.truncf %20 : vector<256x128xf32> to vector<256x128xbf16>
    %c3 = arith.constant 3 : index
    %c0_11 = arith.constant 0 : index
    %c0_12 = arith.constant 0 : index
    %22 = vector.load %arg3[%c3, %c0_11, %c0_12] : memref<9x128x128xbf16, #tpu.memory_space<vmem>>, vector<1x128x128xbf16>
    %23 = vector.shape_cast %22 : vector<1x128x128xbf16> to vector<128x128xbf16>
    %cst_13 = arith.constant dense<0.000000e+00> : vector<256x128xf32>
    %24 = tpu.matmul %21, %23, %cst_13 {dimension_numbers = #tpu.dot_dimension_numbers<[1], [0], [0], [1], [0, 0, 1, 1], [], []>} : vector<256x128xbf16>, vector<128x128xbf16>, vector<256x128xf32> -> vector<256x128xf32>
    %25 = arith.addf %19, %24 : vector<256x128xf32>
    %26 = arith.truncf %0 : vector<256x128xf32> to vector<256x128xbf16>
    %c4 = arith.constant 4 : index
    %c0_14 = arith.constant 0 : index
    %c0_15 = arith.constant 0 : index
    %27 = vector.load %arg3[%c4, %c0_14, %c0_15] : memref<9x128x128xbf16, #tpu.memory_space<vmem>>, vector<1x128x128xbf16>
    %28 = vector.shape_cast %27 : vector<1x128x128xbf16> to vector<128x128xbf16>
    %cst_16 = arith.constant dense<0.000000e+00> : vector<256x128xf32>
    %29 = tpu.matmul %26, %28, %cst_16 {dimension_numbers = #tpu.dot_dimension_numbers<[1], [0], [0], [1], [0, 0, 1, 1], [], []>} : vector<256x128xbf16>, vector<128x128xbf16>, vector<256x128xf32> -> vector<256x128xf32>
    %30 = arith.addf %25, %29 : vector<256x128xf32>
    %c255_i32 = arith.constant 255 : i32
    %31 = tpu.dynamic_rotate %0 by %c255_i32 dim 0 : vector<256x128xf32>, i32 -> vector<256x128xf32>
    %32 = arith.truncf %31 : vector<256x128xf32> to vector<256x128xbf16>
    %c5 = arith.constant 5 : index
    %c0_17 = arith.constant 0 : index
    %c0_18 = arith.constant 0 : index
    %33 = vector.load %arg3[%c5, %c0_17, %c0_18] : memref<9x128x128xbf16, #tpu.memory_space<vmem>>, vector<1x128x128xbf16>
    %34 = vector.shape_cast %33 : vector<1x128x128xbf16> to vector<128x128xbf16>
    %cst_19 = arith.constant dense<0.000000e+00> : vector<256x128xf32>
    %35 = tpu.matmul %32, %34, %cst_19 {dimension_numbers = #tpu.dot_dimension_numbers<[1], [0], [0], [1], [0, 0, 1, 1], [], []>} : vector<256x128xbf16>, vector<128x128xbf16>, vector<256x128xf32> -> vector<256x128xf32>
    %36 = arith.addf %30, %35 : vector<256x128xf32>
    %c248_i32 = arith.constant 248 : i32
    %37 = tpu.dynamic_rotate %0 by %c248_i32 dim 0 : vector<256x128xf32>, i32 -> vector<256x128xf32>
    %38 = arith.truncf %37 : vector<256x128xf32> to vector<256x128xbf16>
    %c6 = arith.constant 6 : index
    %c0_20 = arith.constant 0 : index
    %c0_21 = arith.constant 0 : index
    %39 = vector.load %arg3[%c6, %c0_20, %c0_21] : memref<9x128x128xbf16, #tpu.memory_space<vmem>>, vector<1x128x128xbf16>
    %40 = vector.shape_cast %39 : vector<1x128x128xbf16> to vector<128x128xbf16>
    %cst_22 = arith.constant dense<0.000000e+00> : vector<256x128xf32>
    %41 = tpu.matmul %38, %40, %cst_22 {dimension_numbers = #tpu.dot_dimension_numbers<[1], [0], [0], [1], [0, 0, 1, 1], [], []>} : vector<256x128xbf16>, vector<128x128xbf16>, vector<256x128xf32> -> vector<256x128xf32>
    %42 = arith.addf %36, %41 : vector<256x128xf32>
    %c247_i32 = arith.constant 247 : i32
    %43 = tpu.dynamic_rotate %0 by %c247_i32 dim 0 : vector<256x128xf32>, i32 -> vector<256x128xf32>
    %44 = arith.truncf %43 : vector<256x128xf32> to vector<256x128xbf16>
    %c7 = arith.constant 7 : index
    %c0_23 = arith.constant 0 : index
    %c0_24 = arith.constant 0 : index
    %45 = vector.load %arg3[%c7, %c0_23, %c0_24] : memref<9x128x128xbf16, #tpu.memory_space<vmem>>, vector<1x128x128xbf16>
    %46 = vector.shape_cast %45 : vector<1x128x128xbf16> to vector<128x128xbf16>
    %cst_25 = arith.constant dense<0.000000e+00> : vector<256x128xf32>
    %47 = tpu.matmul %44, %46, %cst_25 {dimension_numbers = #tpu.dot_dimension_numbers<[1], [0], [0], [1], [0, 0, 1, 1], [], []>} : vector<256x128xbf16>, vector<128x128xbf16>, vector<256x128xf32> -> vector<256x128xf32>
    %48 = arith.addf %42, %47 : vector<256x128xf32>
    %c246_i32 = arith.constant 246 : i32
    %49 = tpu.dynamic_rotate %0 by %c246_i32 dim 0 : vector<256x128xf32>, i32 -> vector<256x128xf32>
    %50 = arith.truncf %49 : vector<256x128xf32> to vector<256x128xbf16>
    %c8 = arith.constant 8 : index
    %c0_26 = arith.constant 0 : index
    %c0_27 = arith.constant 0 : index
    %51 = vector.load %arg3[%c8, %c0_26, %c0_27] : memref<9x128x128xbf16, #tpu.memory_space<vmem>>, vector<1x128x128xbf16>
    %52 = vector.shape_cast %51 : vector<1x128x128xbf16> to vector<128x128xbf16>
    %cst_28 = arith.constant dense<0.000000e+00> : vector<256x128xf32>
    %53 = tpu.matmul %50, %52, %cst_28 {dimension_numbers = #tpu.dot_dimension_numbers<[1], [0], [0], [1], [0, 0, 1, 1], [], []>} : vector<256x128xbf16>, vector<128x128xbf16>, vector<256x128xf32> -> vector<256x128xf32>
    %54 = arith.addf %48, %53 : vector<256x128xf32>
    %c0_29 = arith.constant 0 : index
    %c0_30 = arith.constant 0 : index
    %55 = vector.load %arg2[%c0_29, %c0_30] : memref<256x128xf32, #tpu.memory_space<vmem>>, vector<256x128xf32>
    %c0_31 = arith.constant 0 : index
    %c0_32 = arith.constant 0 : index
    %56 = vector.load %arg4[%c0_31, %c0_32] : memref<256x1xf32, #tpu.memory_space<vmem>>, vector<256x1xf32>
    %57 = vector.broadcast %56 : vector<256x1xf32> to vector<256x128xf32>
    %58 = arith.mulf %54, %57 : vector<256x128xf32>
    %59 = arith.addf %55, %58 : vector<256x128xf32>
    %c0_33 = arith.constant 0 : index
    %c0_34 = arith.constant 0 : index
    %60 = vector.load %arg5[%c0_33, %c0_34] : memref<256x128xf32, #tpu.memory_space<vmem>>, vector<256x128xf32>
    tpu.vector_store %arg5[%c0_33, %c0_34], %59 {strides = array<i32>} : memref<256x128xf32, #tpu.memory_space<vmem>>, vector<256x128xf32>,
    return
  }
  func.func @transform_0(%arg0: i32) -> (i32, i32) {
    %c0_i32 = arith.constant 0 : i32
    %c0_i32_0 = arith.constant 0 : i32
    %c0_i32_1 = arith.constant 0 : i32
    return %c0_i32, %c0_i32_0 : i32, i32
  }
  func.func @transform_1(%arg0: i32) -> (i32, i32) {
    %c0_i32 = arith.constant 0 : i32
    %c0_i32_0 = arith.constant 0 : i32
    %c0_i32_1 = arith.constant 0 : i32
    return %c0_i32, %c0_i32_0 : i32, i32
  }
  func.func @transform_2(%arg0: i32) -> (i32, i32, i32) {
    %c0_i32 = arith.constant 0 : i32
    %c0_i32_0 = arith.constant 0 : i32
    %c0_i32_1 = arith.constant 0 : i32
    %c0_i32_2 = arith.constant 0 : i32
    return %c0_i32, %c0_i32_0, %c0_i32_1 : i32, i32, i32
  }
  func.func @transform_3(%arg0: i32) -> (i32, i32) {
    %c0_i32 = arith.constant 0 : i32
    %c0_i32_0 = arith.constant 0 : i32
    %c0_i32_1 = arith.constant 0 : i32
    return %c0_i32, %c0_i32_0 : i32, i32
  }
  func.func @transform_4(%arg0: i32) -> (i32, i32) {
    %c0_i32 = arith.constant 0 : i32
    %c0_i32_0 = arith.constant 0 : i32
    %c0_i32_1 = arith.constant 0 : i32
    return %c0_i32, %c0_i32_0 : i32, i32
  }
}

module attributes {stable_mosaic.version = 11 : i64} {
  func.func @_residual_mm_kernel(%arg0: i32, %arg1: memref<256x128xf32, #tpu.memory_space<vmem>>, %arg2: memref<128x128xbf16, #tpu.memory_space<vmem>>, %arg3: memref<1x128xf32, #tpu.memory_space<vmem>>, %arg4: memref<256x128xf32, #tpu.memory_space<vmem>>, %arg5: memref<1x128xf32, #tpu.memory_space<vmem>>, %arg6: memref<1x128xf32, #tpu.memory_space<vmem>>, %arg7: memref<256x128xf32, #tpu.memory_space<vmem>>) attributes {dimension_semantics = [#tpu.dimension_semantics<parallel>], iteration_bounds = array<i64: 1>, scalar_prefetch = 0 : i64, scratch_operands = 0 : i64, tpu.core_type = #tpu.core_type<tc>, window_params = [{transform_indices = @transform_0, window_bounds = array<i64: 256, 128>}, {pipeline_mode = #tpu.pipeline_mode<synchronous>, transform_indices = @transform_1, window_bounds = array<i64: 128, 128>}, {pipeline_mode = #tpu.pipeline_mode<synchronous>, transform_indices = @transform_2, window_bounds = array<i64: 1, 128>}, {transform_indices = @transform_3, window_bounds = array<i64: 256, 128>}, {pipeline_mode = #tpu.pipeline_mode<synchronous>, transform_indices = @transform_4, window_bounds = array<i64: 1, 128>}, {pipeline_mode = #tpu.pipeline_mode<synchronous>, transform_indices = @transform_5, window_bounds = array<i64: 1, 128>}, {transform_indices = @transform_6, window_bounds = array<i64: 256, 128>}]} {
    %c0 = arith.constant 0 : index
    %c0_0 = arith.constant 0 : index
    %0 = vector.load %arg1[%c0, %c0_0] : memref<256x128xf32, #tpu.memory_space<vmem>>, vector<256x128xf32>
    %1 = arith.truncf %0 : vector<256x128xf32> to vector<256x128xbf16>
    %c0_1 = arith.constant 0 : index
    %c0_2 = arith.constant 0 : index
    %2 = vector.load %arg2[%c0_1, %c0_2] : memref<128x128xbf16, #tpu.memory_space<vmem>>, vector<128x128xbf16>
    %cst = arith.constant dense<0.000000e+00> : vector<256x128xf32>
    %3 = tpu.matmul %1, %2, %cst {dimension_numbers = #tpu.dot_dimension_numbers<[1], [0], [0], [1], [0, 0, 1, 1], [], []>} : vector<256x128xbf16>, vector<128x128xbf16>, vector<256x128xf32> -> vector<256x128xf32>
    %c0_3 = arith.constant 0 : index
    %c0_4 = arith.constant 0 : index
    %4 = vector.load %arg3[%c0_3, %c0_4] : memref<1x128xf32, #tpu.memory_space<vmem>>, vector<1x128xf32>
    %5 = vector.broadcast %4 : vector<1x128xf32> to vector<256x128xf32>
    %6 = arith.addf %3, %5 : vector<256x128xf32>
    %c0_5 = arith.constant 0 : index
    %c0_6 = arith.constant 0 : index
    %7 = vector.load %arg4[%c0_5, %c0_6] : memref<256x128xf32, #tpu.memory_space<vmem>>, vector<256x128xf32>
    %c0_7 = arith.constant 0 : index
    %c0_8 = arith.constant 0 : index
    %8 = vector.load %arg5[%c0_7, %c0_8] : memref<1x128xf32, #tpu.memory_space<vmem>>, vector<1x128xf32>
    %9 = vector.broadcast %8 : vector<1x128xf32> to vector<256x128xf32>
    %10 = arith.mulf %7, %9 : vector<256x128xf32>
    %c0_9 = arith.constant 0 : index
    %c0_10 = arith.constant 0 : index
    %11 = vector.load %arg6[%c0_9, %c0_10] : memref<1x128xf32, #tpu.memory_space<vmem>>, vector<1x128xf32>
    %12 = vector.broadcast %11 : vector<1x128xf32> to vector<256x128xf32>
    %13 = arith.addf %10, %12 : vector<256x128xf32>
    %cst_11 = arith.constant 0.000000e+00 : f32
    %14 = vector.broadcast %cst_11 : f32 to vector<256x128xf32>
    %15 = arith.maximumf %13, %14 : vector<256x128xf32>
    %16 = arith.addf %6, %15 : vector<256x128xf32>
    %cst_12 = arith.constant 0.000000e+00 : f32
    %17 = vector.broadcast %cst_12 : f32 to vector<256x128xf32>
    %18 = arith.maximumf %16, %17 : vector<256x128xf32>
    %c0_13 = arith.constant 0 : index
    %c0_14 = arith.constant 0 : index
    %19 = vector.load %arg7[%c0_13, %c0_14] : memref<256x128xf32, #tpu.memory_space<vmem>>, vector<256x128xf32>
    tpu.vector_store %arg7[%c0_13, %c0_14], %18 {strides = array<i32>} : memref<256x128xf32, #tpu.memory_space<vmem>>, vector<256x128xf32>,
    return
  }
  func.func @transform_0(%arg0: i32) -> (i32, i32) {
    %c0_i32 = arith.constant 0 : i32
    %c0_i32_0 = arith.constant 0 : i32
    return %arg0, %c0_i32 : i32, i32
  }
  func.func @transform_1(%arg0: i32) -> (i32, i32) {
    %c0_i32 = arith.constant 0 : i32
    %c0_i32_0 = arith.constant 0 : i32
    %c0_i32_1 = arith.constant 0 : i32
    return %c0_i32, %c0_i32_0 : i32, i32
  }
  func.func @transform_2(%arg0: i32) -> (i32, i32) {
    %c0_i32 = arith.constant 0 : i32
    %c0_i32_0 = arith.constant 0 : i32
    %c0_i32_1 = arith.constant 0 : i32
    return %c0_i32, %c0_i32_0 : i32, i32
  }
  func.func @transform_3(%arg0: i32) -> (i32, i32) {
    %c0_i32 = arith.constant 0 : i32
    %c0_i32_0 = arith.constant 0 : i32
    return %arg0, %c0_i32 : i32, i32
  }
  func.func @transform_4(%arg0: i32) -> (i32, i32) {
    %c0_i32 = arith.constant 0 : i32
    %c0_i32_0 = arith.constant 0 : i32
    %c0_i32_1 = arith.constant 0 : i32
    return %c0_i32, %c0_i32_0 : i32, i32
  }
  func.func @transform_5(%arg0: i32) -> (i32, i32) {
    %c0_i32 = arith.constant 0 : i32
    %c0_i32_0 = arith.constant 0 : i32
    %c0_i32_1 = arith.constant 0 : i32
    return %c0_i32, %c0_i32_0 : i32, i32
  }
  func.func @transform_6(%arg0: i32) -> (i32, i32) {
    %c0_i32 = arith.constant 0 : i32
    %c0_i32_0 = arith.constant 0 : i32
    return %arg0, %c0_i32 : i32, i32
  }
}

module attributes {stable_mosaic.version = 11 : i64} {
  func.func @_fused_mm_kernel(%arg0: i32, %arg1: memref<256x128xf32, #tpu.memory_space<vmem>>, %arg2: memref<128x128xbf16, #tpu.memory_space<vmem>>, %arg3: memref<1x128xf32, #tpu.memory_space<vmem>>, %arg4: memref<1x128xf32, #tpu.memory_space<vmem>>, %arg5: memref<1x128xf32, #tpu.memory_space<vmem>>, %arg6: memref<1x128xf32, #tpu.memory_space<vmem>>, %arg7: memref<256x1xf32, #tpu.memory_space<vmem>>, %arg8: memref<256x128xf32, #tpu.memory_space<vmem>>) attributes {dimension_semantics = [#tpu.dimension_semantics<parallel>], iteration_bounds = array<i64: 1>, scalar_prefetch = 0 : i64, scratch_operands = 0 : i64, tpu.core_type = #tpu.core_type<tc>, window_params = [{transform_indices = @transform_0, window_bounds = array<i64: 256, 128>}, {pipeline_mode = #tpu.pipeline_mode<synchronous>, transform_indices = @transform_1, window_bounds = array<i64: 128, 128>}, {pipeline_mode = #tpu.pipeline_mode<synchronous>, transform_indices = @transform_2, window_bounds = array<i64: 1, 128>}, {pipeline_mode = #tpu.pipeline_mode<synchronous>, transform_indices = @transform_3, window_bounds = array<i64: 1, 128>}, {pipeline_mode = #tpu.pipeline_mode<synchronous>, transform_indices = @transform_4, window_bounds = array<i64: 1, 128>}, {pipeline_mode = #tpu.pipeline_mode<synchronous>, transform_indices = @transform_5, window_bounds = array<i64: 1, 128>}, {transform_indices = @transform_6, window_bounds = array<i64: 256, 1>}, {transform_indices = @transform_7, window_bounds = array<i64: 256, 128>}]} {
    %c0 = arith.constant 0 : index
    %c0_0 = arith.constant 0 : index
    %0 = vector.load %arg1[%c0, %c0_0] : memref<256x128xf32, #tpu.memory_space<vmem>>, vector<256x128xf32>
    %c0_1 = arith.constant 0 : index
    %c0_2 = arith.constant 0 : index
    %1 = vector.load %arg3[%c0_1, %c0_2] : memref<1x128xf32, #tpu.memory_space<vmem>>, vector<1x128xf32>
    %2 = vector.broadcast %1 : vector<1x128xf32> to vector<256x128xf32>
    %3 = arith.mulf %0, %2 : vector<256x128xf32>
    %c0_3 = arith.constant 0 : index
    %c0_4 = arith.constant 0 : index
    %4 = vector.load %arg4[%c0_3, %c0_4] : memref<1x128xf32, #tpu.memory_space<vmem>>, vector<1x128xf32>
    %5 = vector.broadcast %4 : vector<1x128xf32> to vector<256x128xf32>
    %6 = arith.addf %3, %5 : vector<256x128xf32>
    %cst = arith.constant 0.000000e+00 : f32
    %7 = vector.broadcast %cst : f32 to vector<256x128xf32>
    %8 = arith.maximumf %6, %7 : vector<256x128xf32>
    %9 = arith.truncf %8 : vector<256x128xf32> to vector<256x128xbf16>
    %c0_5 = arith.constant 0 : index
    %c0_6 = arith.constant 0 : index
    %10 = vector.load %arg2[%c0_5, %c0_6] : memref<128x128xbf16, #tpu.memory_space<vmem>>, vector<128x128xbf16>
    %cst_7 = arith.constant dense<0.000000e+00> : vector<256x128xf32>
    %11 = tpu.matmul %9, %10, %cst_7 {dimension_numbers = #tpu.dot_dimension_numbers<[1], [0], [0], [1], [0, 0, 1, 1], [], []>} : vector<256x128xbf16>, vector<128x128xbf16>, vector<256x128xf32> -> vector<256x128xf32>
    %c0_8 = arith.constant 0 : index
    %c0_9 = arith.constant 0 : index
    %12 = vector.load %arg5[%c0_8, %c0_9] : memref<1x128xf32, #tpu.memory_space<vmem>>, vector<1x128xf32>
    %13 = vector.broadcast %12 : vector<1x128xf32> to vector<256x128xf32>
    %14 = arith.mulf %11, %13 : vector<256x128xf32>
    %c0_10 = arith.constant 0 : index
    %c0_11 = arith.constant 0 : index
    %15 = vector.load %arg6[%c0_10, %c0_11] : memref<1x128xf32, #tpu.memory_space<vmem>>, vector<1x128xf32>
    %16 = vector.broadcast %15 : vector<1x128xf32> to vector<256x128xf32>
    %17 = arith.addf %14, %16 : vector<256x128xf32>
    %cst_12 = arith.constant 0.000000e+00 : f32
    %18 = vector.broadcast %cst_12 : f32 to vector<256x128xf32>
    %19 = arith.maximumf %17, %18 : vector<256x128xf32>
    %c0_13 = arith.constant 0 : index
    %c0_14 = arith.constant 0 : index
    %20 = vector.load %arg7[%c0_13, %c0_14] : memref<256x1xf32, #tpu.memory_space<vmem>>, vector<256x1xf32>
    %21 = vector.broadcast %20 : vector<256x1xf32> to vector<256x128xf32>
    %22 = arith.mulf %19, %21 : vector<256x128xf32>
    %c0_15 = arith.constant 0 : index
    %c0_16 = arith.constant 0 : index
    %23 = vector.load %arg8[%c0_15, %c0_16] : memref<256x128xf32, #tpu.memory_space<vmem>>, vector<256x128xf32>
    tpu.vector_store %arg8[%c0_15, %c0_16], %22 {strides = array<i32>} : memref<256x128xf32, #tpu.memory_space<vmem>>, vector<256x128xf32>,
    return
  }
  func.func @transform_0(%arg0: i32) -> (i32, i32) {
    %c0_i32 = arith.constant 0 : i32
    %c0_i32_0 = arith.constant 0 : i32
    return %arg0, %c0_i32 : i32, i32
  }
  func.func @transform_1(%arg0: i32) -> (i32, i32) {
    %c0_i32 = arith.constant 0 : i32
    %c0_i32_0 = arith.constant 0 : i32
    %c0_i32_1 = arith.constant 0 : i32
    return %c0_i32, %c0_i32_0 : i32, i32
  }
  func.func @transform_2(%arg0: i32) -> (i32, i32) {
    %c0_i32 = arith.constant 0 : i32
    %c0_i32_0 = arith.constant 0 : i32
    %c0_i32_1 = arith.constant 0 : i32
    return %c0_i32, %c0_i32_0 : i32, i32
  }
  func.func @transform_3(%arg0: i32) -> (i32, i32) {
    %c0_i32 = arith.constant 0 : i32
    %c0_i32_0 = arith.constant 0 : i32
    %c0_i32_1 = arith.constant 0 : i32
    return %c0_i32, %c0_i32_0 : i32, i32
  }
  func.func @transform_4(%arg0: i32) -> (i32, i32) {
    %c0_i32 = arith.constant 0 : i32
    %c0_i32_0 = arith.constant 0 : i32
    %c0_i32_1 = arith.constant 0 : i32
    return %c0_i32, %c0_i32_0 : i32, i32
  }
  func.func @transform_5(%arg0: i32) -> (i32, i32) {
    %c0_i32 = arith.constant 0 : i32
    %c0_i32_0 = arith.constant 0 : i32
    %c0_i32_1 = arith.constant 0 : i32
    return %c0_i32, %c0_i32_0 : i32, i32
  }
  func.func @transform_6(%arg0: i32) -> (i32, i32) {
    %c0_i32 = arith.constant 0 : i32
    %c0_i32_0 = arith.constant 0 : i32
    return %arg0, %c0_i32 : i32, i32
  }
  func.func @transform_7(%arg0: i32) -> (i32, i32) {
    %c0_i32 = arith.constant 0 : i32
    %c0_i32_0 = arith.constant 0 : i32
    return %arg0, %c0_i32 : i32, i32
  }
}

module attributes {stable_mosaic.version = 11 : i64} {
  func.func @_tail_kernel(%arg0: i32, %arg1: memref<104x128xf32, #tpu.memory_space<vmem>>, %arg2: memref<1x128xf32, #tpu.memory_space<vmem>>, %arg3: memref<1x128xf32, #tpu.memory_space<vmem>>, %arg4: memref<2x104xf32, #tpu.memory_space<vmem>>, %arg5: memref<128x10xf32, #tpu.memory_space<vmem>>, %arg6: memref<1x10xf32, #tpu.memory_space<vmem>>, %arg7: memref<2x10xf32, #tpu.memory_space<vmem>>) attributes {dimension_semantics = [#tpu.dimension_semantics<arbitrary>], iteration_bounds = array<i64: 1>, scalar_prefetch = 0 : i64, scratch_operands = 0 : i64, tpu.core_type = #tpu.core_type<tc>, window_params = [{pipeline_mode = #tpu.pipeline_mode<synchronous>, transform_indices = @transform_0, window_bounds = array<i64: 104, 128>}, {pipeline_mode = #tpu.pipeline_mode<synchronous>, transform_indices = @transform_1, window_bounds = array<i64: 1, 128>}, {pipeline_mode = #tpu.pipeline_mode<synchronous>, transform_indices = @transform_2, window_bounds = array<i64: 1, 128>}, {pipeline_mode = #tpu.pipeline_mode<synchronous>, transform_indices = @transform_3, window_bounds = array<i64: 2, 104>}, {pipeline_mode = #tpu.pipeline_mode<synchronous>, transform_indices = @transform_4, window_bounds = array<i64: 128, 10>}, {pipeline_mode = #tpu.pipeline_mode<synchronous>, transform_indices = @transform_5, window_bounds = array<i64: 1, 10>}, {pipeline_mode = #tpu.pipeline_mode<synchronous>, transform_indices = @transform_6, window_bounds = array<i64: 2, 10>}]} {
    %c0 = arith.constant 0 : index
    %c0_0 = arith.constant 0 : index
    %0 = vector.load %arg1[%c0, %c0_0] : memref<104x128xf32, #tpu.memory_space<vmem>>, vector<104x128xf32>
    %c0_1 = arith.constant 0 : index
    %c0_2 = arith.constant 0 : index
    %1 = vector.load %arg2[%c0_1, %c0_2] : memref<1x128xf32, #tpu.memory_space<vmem>>, vector<1x128xf32>
    %2 = vector.broadcast %1 : vector<1x128xf32> to vector<104x128xf32>
    %3 = arith.mulf %0, %2 : vector<104x128xf32>
    %c0_3 = arith.constant 0 : index
    %c0_4 = arith.constant 0 : index
    %4 = vector.load %arg3[%c0_3, %c0_4] : memref<1x128xf32, #tpu.memory_space<vmem>>, vector<1x128xf32>
    %5 = vector.broadcast %4 : vector<1x128xf32> to vector<104x128xf32>
    %6 = arith.addf %3, %5 : vector<104x128xf32>
    %cst = arith.constant 0.000000e+00 : f32
    %7 = vector.broadcast %cst : f32 to vector<104x128xf32>
    %8 = arith.maximumf %6, %7 : vector<104x128xf32>
    %c0_5 = arith.constant 0 : index
    %c0_6 = arith.constant 0 : index
    %9 = vector.load %arg4[%c0_5, %c0_6] : memref<2x104xf32, #tpu.memory_space<vmem>>, vector<2x104xf32>
    %cst_7 = arith.constant dense<0.000000e+00> : vector<2x128xf32>
    %10 = tpu.matmul %9, %8, %cst_7 {dimension_numbers = #tpu.dot_dimension_numbers<[1], [0], [0], [1], [0, 0, 1, 1], [], []>} : vector<2x104xf32>, vector<104x128xf32>, vector<2x128xf32> -> vector<2x128xf32>
    %c0_8 = arith.constant 0 : index
    %c0_9 = arith.constant 0 : index
    %11 = vector.load %arg5[%c0_8, %c0_9] : memref<128x10xf32, #tpu.memory_space<vmem>>, vector<128x10xf32>
    %cst_10 = arith.constant dense<0.000000e+00> : vector<2x10xf32>
    %12 = tpu.matmul %10, %11, %cst_10 {dimension_numbers = #tpu.dot_dimension_numbers<[1], [0], [0], [1], [0, 0, 1, 1], [], []>} : vector<2x128xf32>, vector<128x10xf32>, vector<2x10xf32> -> vector<2x10xf32>
    %c0_11 = arith.constant 0 : index
    %c0_12 = arith.constant 0 : index
    %13 = vector.load %arg6[%c0_11, %c0_12] : memref<1x10xf32, #tpu.memory_space<vmem>>, vector<1x10xf32>
    %14 = vector.broadcast %13 : vector<1x10xf32> to vector<2x10xf32>
    %15 = arith.addf %12, %14 : vector<2x10xf32>
    %c0_13 = arith.constant 0 : index
    %c0_14 = arith.constant 0 : index
    %16 = vector.load %arg7[%c0_13, %c0_14] : memref<2x10xf32, #tpu.memory_space<vmem>>, vector<2x10xf32>
    tpu.vector_store %arg7[%c0_13, %c0_14], %15 {strides = array<i32>} : memref<2x10xf32, #tpu.memory_space<vmem>>, vector<2x10xf32>,
    return
  }
  func.func @transform_0(%arg0: i32) -> (i32, i32) {
    %c0_i32 = arith.constant 0 : i32
    %c0_i32_0 = arith.constant 0 : i32
    %c0_i32_1 = arith.constant 0 : i32
    return %c0_i32, %c0_i32_0 : i32, i32
  }
  func.func @transform_1(%arg0: i32) -> (i32, i32) {
    %c0_i32 = arith.constant 0 : i32
    %c0_i32_0 = arith.constant 0 : i32
    %c0_i32_1 = arith.constant 0 : i32
    return %c0_i32, %c0_i32_0 : i32, i32
  }
  func.func @transform_2(%arg0: i32) -> (i32, i32) {
    %c0_i32 = arith.constant 0 : i32
    %c0_i32_0 = arith.constant 0 : i32
    %c0_i32_1 = arith.constant 0 : i32
    return %c0_i32, %c0_i32_0 : i32, i32
  }
  func.func @transform_3(%arg0: i32) -> (i32, i32) {
    %c0_i32 = arith.constant 0 : i32
    %c0_i32_0 = arith.constant 0 : i32
    %c0_i32_1 = arith.constant 0 : i32
    return %c0_i32, %c0_i32_0 : i32, i32
  }
  func.func @transform_4(%arg0: i32) -> (i32, i32) {
    %c0_i32 = arith.constant 0 : i32
    %c0_i32_0 = arith.constant 0 : i32
    %c0_i32_1 = arith.constant 0 : i32
    return %c0_i32, %c0_i32_0 : i32, i32
  }
  func.func @transform_5(%arg0: i32) -> (i32, i32) {
    %c0_i32 = arith.constant 0 : i32
    %c0_i32_0 = arith.constant 0 : i32
    %c0_i32_1 = arith.constant 0 : i32
    return %c0_i32, %c0_i32_0 : i32, i32
  }
  func.func @transform_6(%arg0: i32) -> (i32, i32) {
    %c0_i32 = arith.constant 0 : i32
    %c0_i32_0 = arith.constant 0 : i32
    %c0_i32_1 = arith.constant 0 : i32
    return %c0_i32, %c0_i32_0 : i32, i32
  }
}

</mosaic_0001>

<bundles_post_ra>
// kernel: densenet_forward.15
= control target key start
LH: loop header
LB: loop body
LE: loop exit
PB: predicated region body
PF: predicated region fallthrough
CT: control target
= control target key end

     0   :  { %s1418_s24 = smov 0   ;;  %s1943_s0 = inlined_call_operand.vmem [shape: f32[1792,147], index: 0, kind: input, shape index: {}]   ;;  %s1944_s1 = inlined_call_operand.vmem [shape: bf16[147,128], index: 1, kind: input, shape index: {}]   ;;  %s1945_s2 = inlined_call_operand.vmem [shape: f32[1,147], index: 2, kind: input, shape index: {}]   ;;  %s1946_s3 = inlined_call_operand.vmem [shape: f32[1,147], index: 3, kind: input, shape index: {}]   ;;  %s1947_s4 = inlined_call_operand.vmem [shape: f32[1,128], index: 4, kind: input, shape index: {}]   ;;  %s1948_s5 = inlined_call_operand.vmem [shape: f32[1,128], index: 5, kind: input, shape index: {}]   ;;  %s1949_s6 = inlined_call_operand.vmem [shape: f32[1792,1], index: 6, kind: input, shape index: {}]   ;;  %s1950_s7 = inlined_call_operand.vmem [shape: f32[1792,128], index: 7, kind: output, shape index: {}]  }
   0x1 LB: > { %s1283_s25 = sadd.s32 4294967295, %s1374_s24   ;;  %p1287_p0 = scmp.ge.s32.totalorder %s1374_s24, 1  ;;  %s1374_s24 = sphi %s1418_s24, %s17_s24  }
   0x2   : > { %p250_p1 = scmp.lt.s32.totalorder %s1374_s24, 8 }
   0x4   : > { %p251_p2 = pnand %p1287_p0, %p250_p1 }
   0x5   : > { %v1358_v0 = vld [vmem:[%s1944_s1] sm:$0xff] (!%p251_p2)   ;;  %v1376_v1 = vmov (!%p251_p2), 0   ;;  %v1359_v2 = vld [vmem:[%s1944_s1 + $0x8] sm:$0xff] (!%p251_p2)   ;;  %v374_v3 = vlaneseq (!%p251_p2)  ;;  %v1360_v4 = vld [vmem:[%s1944_s1 + $0x10] sm:$0xff] (!%p251_p2)   ;;  %s1288_s9 = sshll.u32 (!%p251_p2), %s1283_s25, 5  ;;  %vm632_vm0 = vcmask (!%p251_p2), 154624  }
   0x6   : > { %254 = sbr.rel (%p251_p2) target bundleno = 325 (0x145), region = 48  ;;  %688 = vmatprep.subr.bf16.mxu0 (!%p251_p2), %v1376_v1  ;;  %1326 = vmatprep.subr.bf16.mxu1 (!%p251_p2), %v1376_v1  ;;  %p289_p3 = scmp.lt.s32.totalorder (!%p251_p2), %s1288_s9, 223  ;;  %v1361_v6 = vld [vmem:[%s1944_s1 + $0x18] sm:$0xff] (!%p251_p2)   ;;  %v372_v7 = vld [vmem:[%s1945_s2] sm:$0x3] (!%p251_p2)  ;;  %v1363_v25 = vld [vmem:[%s1944_s1 + $0x28] sm:$0xff] (!%p251_p2)  }
   0x7   : > { %689 = vmatpush1.bf16.msra.mxu0 (!%p251_p2), %v1358_v0  ;;  %1336 = vmatpush1.bf16.msra.mxu1 (!%p251_p2), %v1358_v0  ;;  %v1443_v5 = vshrl.u32 (!%p251_p2), %v374_v3, 7  ;;  %v1457_v9 = vld [vmem:[%s1946_s3] sm:$0x3] (!%p251_p2)  ;;  %v1364_v29 = vld [vmem:[%s1944_s1 + $0x30] sm:$0xff] (!%p251_p2)   ;;  %v1365_v31 = vld [vmem:[%s1944_s1 + $0x38] sm:$0xff] (!%p251_p2)   ;;  %vm681_vm1 = vcmask (!%p251_p2), 1040384  }
   0x8   : > { %690 = vmatprep.subr.bf16.mxu0 (!%p251_p2), %v1376_v1  ;;  %1327 = vmatprep.subr.bf16.mxu1 (!%p251_p2), %v1376_v1  ;;  %v1362_v15 = vld [vmem:[%s1944_s1 + $0x20] sm:$0xff] (!%p251_p2)   ;;  %vm682_vm2 = vcmask (!%p251_p2), 1041408   ;;  %v1377_v41 = vmov (!%p251_p2), 65535   ;;  %v1367_v49 = vld [vmem:[%s1944_s1 + $0x48] ss:$0 sps:$4 sm:$0x33] (!%p251_p2)  }
   0x9   : > { %1357 = vset.pattern.permute.xlu1 (!%p251_p2), %v1376_v1  ;;  %1356 = vset.pattern.permute.xlu0 (!%p251_p2), %v1376_v1  ;;  %v380_v8 = vsub.s32 (!%p251_p2), 1, %v1443_v5  ;;  %v376_v28 = vsub.s32 (!%p251_p2), 0, %v1443_v5  ;;  %v683_v42 = vsel (!%p251_p2), %vm681_vm1, 4294967295, %v1377_v41  ;;  %v1366_v54 = vld [vmem:[%s1944_s1 + $0x40] sm:$0xff] (!%p251_p2)  }
   0xa   : > { %v684_v55 = vsel (!%p251_p2), %vm682_vm2, %v683_v42, 0 }
   0xb   : > { %691 = vmatpush1.bf16.msra.mxu0 (!%p251_p2), %v1359_v2  ;;  %1337 = vmatpush1.bf16.msra.mxu1 (!%p251_p2), %v1359_v2  ;;  %v1467_v10 = vrot.slane (!%p251_p2), %v372_v7, %v380_v8  ;;  %v1470_v11 = vrot.slane (!%p251_p2), %v1457_v9, %v380_v8  ;;  %v1514_v32 = vrot.slane (!%p251_p2), %v372_v7, %v376_v28 }
   0xc   : > { %692 = vmatprep.subr.bf16.mxu0 (!%p251_p2), %v1376_v1  ;;  %1328 = vmatprep.subr.bf16.mxu1 (!%p251_p2), %v1376_v1  ;;  %v1531_v46 = vrot.slane (!%p251_p2), %v1457_v9, %v376_v28  ;;  %v686_v3 = vand.u32 (!%p251_p2), %v1367_v49, %v684_v55 }
   0xd   : > { %s1952_s9 = smov (!%p289_p3, %s1288_s9), 223 }
   0xe   : > { %s1325_s16 = sshll.u32 %s1952_s9, 4  ;;  %s1292_s22 = sshll.u32 %s1952_s9, 3 }
   0xf   : > { %693 = vmatpush1.bf16.msra.mxu0 %v1360_v4  ;;  %1338 = vmatpush1.bf16.msra.mxu1 %v1360_v4  ;;  %s1465_s19 = scalar_lea.vmem %s1943_s0, %s1325_s16  ;;  %s1502_s28 = scalar_lea.vmem %s1949_s6, %s1292_s22 }
  0x10   : > { %694 = vmatprep.subr.bf16.mxu0 %v1376_v1  ;;  %1329 = vmatprep.subr.bf16.mxu1 %v1376_v1  ;;  %v309_v12 = vld [vmem:[%s1465_s19 + $0x8] sm:$0xff]  ;;  %v311_v13 = vld [vmem:[%s1465_s19 + $0x18] sm:$0xff]  ;;  %v961_v30 = vld [vmem:[%s1502_s28 + $0x10] sm:$0xff]  ;;  %s1836_s21 = scalar_lea.vmem %s1950_s7, %s1292_s22 }
  0x11   : > { %v341_v14 = vld [vmem:[%s1465_s19 + $0x108] sm:$0xff]  ;;  %v385_v16 = vmul.f32 %v1467_v10, %v309_v12  ;;  %v387_v17 = vmul.f32 %v1467_v10, %v311_v13  ;;  %v343_v18 = vld [vmem:[%s1465_s19 + $0x118] sm:$0xff]  ;;  %v308_v33 = vld [vmem:[%s1465_s19] sm:$0xff]  ;;  %1003 = vperm.xlu1 %1357, %v961_v30  }
  0x12   : > { %v417_v19 = vmul.f32 %v1467_v10, %v341_v14  ;;  %v419_v20 = vmul.f32 %v1467_v10, %v343_v18  ;;  %v959_v34 = vld [vmem:[%s1502_s28] sm:$0xff]  ;;  %v310_v35 = vld [vmem:[%s1465_s19 + $0x10] sm:$0xff]  ;;  %v962_v37 = vld [vmem:[%s1502_s28 + $0x18] sm:$0xff]  ;;  %v384_v47 = vmul.f32 %v1514_v32, %v308_v33 }
  0x13   : > { %695 = vmatpush1.bf16.msra.mxu0 %v1361_v6  ;;  %1339 = vmatpush1.bf16.msra.mxu1 %v1361_v6  ;;  %v461_v21 = vadd.f32 %v1470_v11, %v385_v16  ;;  %v463_v22 = vadd.f32 %v1470_v11, %v387_v17  ;;  %v340_v36 = vld [vmem:[%s1465_s19 + $0x100] sm:$0xff]  ;;  %v342_v38 = vld [vmem:[%s1465_s19 + $0x110] sm:$0xff]  ;;  %v313_v39 = vld [vmem:[%s1465_s19 + $0x28] sm:$0xff]  ;;  %v386_v48 = vmul.f32 %v1514_v32, %v310_v35 }
  0x14   : > { %696 = vmatprep.subr.bf16.mxu0 %v1376_v1  ;;  %1330 = vmatprep.subr.bf16.mxu1 %v1376_v1  ;;  %v493_v23 = vadd.f32 %v1470_v11, %v417_v19  ;;  %v495_v24 = vadd.f32 %v1470_v11, %v419_v20  ;;  %v960_v40 = vld [vmem:[%s1502_s28 + $0x8] sm:$0xff]  ;;  %v315_v43 = vld [vmem:[%s1465_s19 + $0x38] sm:$0xff]  ;;  %v416_v50 = vmul.f32 %v1514_v32, %v340_v36  ;;  %v963_v59 = vld [vmem:[%s1502_s28 + $0x20] sm:$0xff] }
  0x15   : > { %v525_v26 = vpack.c.bf16 %v463_v22, %v461_v21  ;;  %993 = vperm.xlu0 %1356, %v959_v34   ;;  %v345_v44 = vld [vmem:[%s1465_s19 + $0x128] sm:$0xff]  ;;  %v347_v45 = vld [vmem:[%s1465_s19 + $0x138] sm:$0xff]  ;;  %1008 = vperm.xlu1 %1357, %v962_v37   ;;  %v418_v51 = vmul.f32 %v1514_v32, %v342_v38  ;;  %v389_v52 = vmul.f32 %v1467_v10, %v313_v39  ;;  %v312_v60 = vld [vmem:[%s1465_s19 + $0x20] sm:$0xff] }
  0x16   : > { %v541_v27 = vpack.c.bf16 %v495_v24, %v493_v23  ;;  %v964_v53 = vld [vmem:[%s1502_s28 + $0x28] sm:$0xff]  ;;  %v391_v56 = vmul.f32 %v1467_v10, %v315_v43  ;;  %v421_v57 = vmul.f32 %v1467_v10, %v345_v44  ;;  %v423_v58 = vmul.f32 %v1467_v10, %v347_v45  ;;  %v314_v63 = vld [vmem:[%s1465_s19 + $0x30] sm:$0xff]  ;;  %v344_v0 = vld [vmem:[%s1465_s19 + $0x120] sm:$0xff] }
  0x17   : > { %697 = vmatpush1.bf16.msra.mxu0 %v1362_v15  ;;  %1340 = vmatpush1.bf16.msra.mxu1 %v1362_v15  ;;  %v460_v61 = vadd.f32 %v1531_v46, %v384_v47  ;;  %v462_v62 = vadd.f32 %v1531_v46, %v386_v48  ;;  %v346_v2 = vld [vmem:[%s1465_s19 + $0x130] sm:$0xff]  ;;  %v492_v4 = vadd.f32 %v1531_v46, %v416_v50  ;;  %v317_v7 = vld [vmem:[%s1465_s19 + $0x48] sm:$0xff]  ;;  %v319_v8 = vld [vmem:[%s1465_s19 + $0x58] sm:$0xff] }
  0x18   : > { %698 = vmatprep.subr.bf16.mxu0 %v1376_v1  ;;  %1331 = vmatprep.subr.bf16.mxu1 %v1376_v1  ;;  %v494_v5 = vadd.f32 %v1531_v46, %v418_v51  ;;  %v465_v6 = vadd.f32 %v1470_v11, %v389_v52  ;;  %v966_v9 = vld [vmem:[%s1502_s28 + $0x38] sm:$0xff]  ;;  %v467_v12 = vadd.f32 %v1470_v11, %v391_v56  ;;  %v349_v15 = vld [vmem:[%s1465_s19 + $0x148] sm:$0xff]  ;;  %v965_v17 = vld [vmem:[%s1502_s28 + $0x30] sm:$0xff] }
  0x19   : > { %1305 = vmatprep.mubr.msk.bf16.mxu0 %vm632_vm0, %v525_v26  ;;  %1313 = vmatprep.mubr.msk.bf16.mxu1 %vm632_vm0, %v541_v27  ;;  %v497_v13 = vadd.f32 %v1470_v11, %v421_v57  ;;  %v499_v14 = vadd.f32 %v1470_v11, %v423_v58  ;;  %v351_v16 = vld [vmem:[%s1465_s19 + $0x158] sm:$0xff]  ;;  %v388_v18 = vmul.f32 %v1514_v32, %v312_v60  ;;  %v316_v27 = vld [vmem:[%s1465_s19 + $0x40] sm:$0xff]  ;;  %v968_v28 = vld [vmem:[%s1502_s28 + $0x48] sm:$0xff] }
  0x1a   : > { %998 = vperm.xlu0 %1356, %v960_v40   ;;  %1018 = vperm.xlu1 %1357, %v964_v53   ;;  %v390_v19 = vmul.f32 %v1514_v32, %v314_v63  ;;  %v524_v20 = vpack.c.bf16 %v462_v62, %v460_v61  ;;  %v420_v21 = vmul.f32 %v1514_v32, %v344_v0  ;;  %v318_v34 = vld [vmem:[%s1465_s19 + $0x50] sm:$0xff]  ;;  %v348_v35 = vld [vmem:[%s1465_s19 + $0x140] sm:$0xff]  ;;  %v321_v41 = vld [vmem:[%s1465_s19 + $0x68] sm:$0xff] }
  0x1b   : > { %699 = vmatpush1.bf16.msra.mxu0 %v1363_v25  ;;  %1341 = vmatpush1.bf16.msra.mxu1 %v1363_v25  ;;  %v422_v22 = vmul.f32 %v1514_v32, %v346_v2  ;;  %v393_v23 = vmul.f32 %v1467_v10, %v317_v7  ;;  %v540_v24 = vpack.c.bf16 %v494_v5, %v492_v4  ;;  %v350_v36 = vld [vmem:[%s1465_s19 + $0x150] sm:$0xff]  ;;  %v323_v42 = vld [vmem:[%s1465_s19 + $0x78] sm:$0xff]  ;;  %v967_v43 = vld [vmem:[%s1502_s28 + $0x40] sm:$0xff] }
  0x1c   : > { %700 = vmatprep.subr.bf16.mxu0 %v1376_v1  ;;  %1332 = vmatprep.subr.bf16.mxu1 %v1376_v1  ;;  %v395_v25 = vmul.f32 %v1467_v10, %v319_v8  ;;  %v427_v26 = vmul.f32 %v1467_v10, %v351_v16  ;;  %v543_v30 = vpack.c.bf16 %v499_v14, %v497_v13  ;;  %v353_v48 = vld [vmem:[%s1465_s19 + $0x168] sm:$0xff]  ;;  %v355_v49 = vld [vmem:[%s1465_s19 + $0x178] sm:$0xff]  ;;  %v969_v58 = vld [vmem:[%s1502_s28 + $0x50] sm:$0xff] }
  0x1d   : > { %v466_v33 = vadd.f32 %v1531_v46, %v390_v19  ;;  %v496_v37 = vadd.f32 %v1531_v46, %v420_v21  ;;  %v498_v38 = vadd.f32 %v1531_v46, %v422_v22  ;;  %v469_v39 = vadd.f32 %v1470_v11, %v393_v23  ;;  %v970_v50 = vld [vmem:[%s1502_s28 + $0x58] sm:$0xff]  ;;  %v972_v63 = vld [vmem:[%s1502_s28 + $0x68] sm:$0xff]  ;;  %v320_v7 = vld [vmem:[%s1465_s19 + $0x60] sm:$0xff] }
  0x1e   : > { %1013 = vperm.xlu0 %1356, %v963_v59   ;;  %1028 = vperm.xlu1 %1357, %v966_v9   ;;  %v392_v40 = vmul.f32 %v1514_v32, %v316_v27  ;;  %v471_v44 = vadd.f32 %v1470_v11, %v395_v25  ;;  %v503_v47 = vadd.f32 %v1470_v11, %v427_v26  ;;  %v322_v8 = vld [vmem:[%s1465_s19 + $0x70] sm:$0xff]  ;;  %v352_v9 = vld [vmem:[%s1465_s19 + $0x160] sm:$0xff]  ;;  %v337_v16 = vld [vmem:[%s1465_s19 + $0xe8] sm:$0xff] }
  0x1f   : > { %701 = vmatpush1.bf16.msra.mxu0 %v1364_v29  ;;  %1342 = vmatpush1.bf16.msra.mxu1 %v1364_v29  ;;  %v527_v29 = vpack.c.bf16 %v467_v12, %v465_v6  ;;  %v394_v51 = vmul.f32 %v1514_v32, %v318_v34  ;;  %v424_v52 = vmul.f32 %v1514_v32, %v348_v35  ;;  %v354_v14 = vld [vmem:[%s1465_s19 + $0x170] sm:$0xff]  ;;  %v974_v19 = vld [vmem:[%s1502_s28 + $0x78] sm:$0xff]  ;;  %v325_v23 = vld [vmem:[%s1465_s19 + $0x88] sm:$0xff] }
  0x20   : > { %702 = vmatprep.subr.bf16.mxu0 %v1376_v1  ;;  %1333 = vmatprep.subr.bf16.mxu1 %v1376_v1  ;;  %v426_v53 = vmul.f32 %v1514_v32, %v350_v36  ;;  %v399_v55 = vmul.f32 %v1467_v10, %v323_v42  ;;  %v429_v56 = vmul.f32 %v1467_v10, %v353_v48  ;;  %v371_v25 = vld [vmem:[%s1465_s19 + $0x1f8] sm:$0xff]  ;;  %v973_v36 = vld [vmem:[%s1502_s28 + $0x70] sm:$0xff] }
  0x21   : > { %v431_v57 = vmul.f32 %v1467_v10, %v355_v49  ;;  %v542_v60 = vpack.c.bf16 %v498_v38, %v496_v37  ;;  %v529_v61 = vpack.c.bf16 %v471_v44, %v469_v39  ;;  %v1611_v62 = vadd.f32 %v1531_v46, %v392_v40 }
  0x22   : > { %1023 = vperm.xlu0 %1356, %v965_v17   ;;  %1038 = vperm.xlu1 %1357, %v968_v28   ;;  %v470_v2 = vadd.f32 %v1531_v46, %v394_v51  ;;  %v502_v4 = vadd.f32 %v1531_v46, %v426_v53  ;;  %v1621_v6 = vadd.f32 %v1470_v11, %v399_v55  ;;  %v339_v17 = vld [vmem:[%s1465_s19 + $0xf8] sm:$0xff]  ;;  %v357_v28 = vld [vmem:[%s1465_s19 + $0x188] sm:$0xff]  ;;  %v324_v51 = vld [vmem:[%s1465_s19 + $0x80] sm:$0xff] }
  0x23   : > { %703 = vmatpush1.bf16.msra.mxu0 %v1365_v31  ;;  %1343 = vmatpush1.bf16.msra.mxu1 %v1365_v31  ;;  %v464_v31 = vadd.f32 %v1531_v46, %v388_v18  ;;  %v505_v12 = vadd.f32 %v1470_v11, %v429_v56  ;;  %v507_v13 = vadd.f32 %v1470_v11, %v431_v57  ;;  %v369_v18 = vld [vmem:[%s1465_s19 + $0x1e8] sm:$0xff]  ;;  %v356_v57 = vld [vmem:[%s1465_s19 + $0x180] sm:$0xff] }
  0x24   : > { %704 = vmatprep.subr.bf16.mxu0 %v1376_v1  ;;  %1334 = vmatprep.subr.bf16.mxu1 %v1376_v1  ;;  %v396_v22 = vmul.f32 %v1514_v32, %v320_v7  ;;  %v398_v26 = vmul.f32 %v1514_v32, %v322_v8  ;;  %v428_v27 = vmul.f32 %v1514_v32, %v352_v9  ;;  %v977_v9 = vld [vmem:[%s1502_s28 + $0x90] sm:$0xff] }
  0x25   : > { %v526_v59 = vpack.c.bf16 %v466_v33, %v464_v31  ;;  %v547_v31 = vpack.c.bf16 %v507_v13, %v505_v12  ;;  %v430_v33 = vmul.f32 %v1514_v32, %v354_v14  ;;  %v415_v34 = vmul.f32 %v1467_v10, %v339_v17 }
  0x26   : > { %1033 = vperm.xlu0 %1356, %v967_v43   ;;  %1048 = vperm.xlu1 %1357, %v970_v50   ;;  %v445_v35 = vmul.f32 %v1467_v10, %v369_v18  ;;  %v401_v37 = vmul.f32 %v1467_v10, %v325_v23  ;;  %v447_v40 = vmul.f32 %v1467_v10, %v371_v25  ;;  %v979_v25 = vld [vmem:[%s1502_s28 + $0xa0] sm:$0xff] }
  0x27   : > { %705 = vmatpush1.bf16.msra.mxu0 %v1366_v54  ;;  %1344 = vmatpush1.bf16.msra.mxu1 %v1366_v54  ;;  %v397_v54 = vmul.f32 %v1467_v10, %v321_v41  ;;  %v976_v41 = vld [vmem:[%s1502_s28 + $0x88] sm:$0xff]  ;;  %v433_v42 = vmul.f32 %v1467_v10, %v357_v28  ;;  %v1662_v44 = vadd.f32 %v1470_v11, %v415_v34  ;;  %v330_v28 = vld [vmem:[%s1465_s19 + $0xb0] sm:$0xff] }
  0x28   : > { %706 = vmatprep.subr.bf16.mxu0 %v1376_v1  ;;  %1335 = vmatprep.subr.bf16.mxu1 %v1376_v1  ;;  %v425_v1 = vmul.f32 %v1467_v10, %v349_v15  ;;  %v971_v15 = vld [vmem:[%s1502_s28 + $0x60] sm:$0xff]  ;;  %v472_v48 = vadd.f32 %v1531_v46, %v396_v22  ;;  %v474_v49 = vadd.f32 %v1531_v46, %v398_v26  ;;  %v362_v34 = vld [vmem:[%s1465_s19 + $0x1b0] sm:$0xff] }
  0x29   : > { %v1618_v5 = vadd.f32 %v1470_v11, %v397_v54  ;;  %v504_v50 = vadd.f32 %v1531_v46, %v428_v27  ;;  %v975_v54 = vld [vmem:[%s1502_s28 + $0x80] sm:$0xff]  ;;  %v506_v55 = vadd.f32 %v1531_v46, %v430_v33  ;;  %v477_v56 = vadd.f32 %v1470_v11, %v401_v37  ;;  %v365_v37 = vld [vmem:[%s1465_s19 + $0x1c8] sm:$0xff] }
  0x2a   : > { %v501_v45 = vadd.f32 %v1470_v11, %v425_v1  ;;  %1043 = vperm.xlu0 %1356, %v969_v58   ;;  %1058 = vperm.xlu1 %1357, %v972_v63   ;;  %v358_v58 = vld [vmem:[%s1465_s19 + $0x190] sm:$0xff]  ;;  %v432_v7 = vmul.f32 %v1514_v32, %v356_v57  ;;  %v530_v12 = vpack.c.bf16 %v474_v49, %v472_v48  ;;  %v328_v27 = vld [vmem:[%s1465_s19 + $0xa0] sm:$0xff] }
  0x2b   : > { %707 = vmatpush1.bf16.msra.mxu0 %v686_v3  ;;  %1345 = vmatpush1.bf16.msra.mxu1 %v686_v3  ;;  %v500_v3 = vadd.f32 %v1531_v46, %v424_v52  ;;  %v531_v1 = vpack.c.bf16 %v1621_v6, %v1618_v5  ;;  %v326_v52 = vld [vmem:[%s1465_s19 + $0x90] sm:$0xff]  ;;  %v400_v5 = vmul.f32 %v1514_v32, %v324_v51  ;;  %v360_v33 = vld [vmem:[%s1465_s19 + $0x1a0] sm:$0xff] }
  0x2c   : > { %v545_v0 = vpack.c.bf16 %v503_v47, %v501_v45  ;;  %v1665_v45 = vadd.f32 %v1470_v11, %v445_v35  ;;  %v1668_v47 = vadd.f32 %v1470_v11, %v447_v40  ;;  %v402_v6 = vmul.f32 %v1514_v32, %v326_v52  ;;  %v333_v35 = vld [vmem:[%s1465_s19 + $0xc8] sm:$0xff]  ;;  %v981_v48 = vld [vmem:[%s1502_s28 + $0xb0] sm:$0xff] }
  0x2d   : > { %v544_v21 = vpack.c.bf16 %v502_v4, %v500_v3  ;;  %v361_v3 = vld [vmem:[%s1465_s19 + $0x1a8] sm:$0xff]  ;;  %v363_v4 = vld [vmem:[%s1465_s19 + $0x1b8] sm:$0xff]  ;;  %v434_v8 = vmul.f32 %v1514_v32, %v358_v58  ;;  %v546_v13 = vpack.c.bf16 %v506_v55, %v504_v50  ;;  %v508_v23 = vadd.f32 %v1531_v46, %v432_v7 }
  0x2e   : > { %721 = vmatmul.mubr.bf16.vlgmr.msra.gmra.mrb[0].mxu0 %v524_v20  ;;  %785 = vmatmul.mubr.bf16.vlgmr.msra.gmra.mrb[0].mxu1 %v540_v24  ;;  %v528_v20 = vpack.c.bf16 %v470_v2, %v1611_v62  ;;  %v327_v24 = vld [vmem:[%s1465_s19 + $0x98] sm:$0xff]  ;;  %v509_v62 = vadd.f32 %v1470_v11, %v433_v42  ;;  %v478_v22 = vadd.f32 %v1531_v46, %v402_v6 }
  0x2f   : > { %1306 = vmatprep.mubr.msk.bf16.mxu0 %vm632_vm0, %v527_v29  ;;  %1314 = vmatprep.mubr.msk.bf16.mxu1 %vm632_vm0, %v543_v30  ;;  %v359_v29 = vld [vmem:[%s1465_s19 + $0x198] sm:$0xff]  ;;  %v413_v30 = vmul.f32 %v1467_v10, %v337_v16  ;;  %v403_v38 = vmul.f32 %v1467_v10, %v327_v24  ;;  %v980_v16 = vld [vmem:[%s1502_s28 + $0xa8] sm:$0xff]  ;;  %v510_v24 = vadd.f32 %v1531_v46, %v434_v8  ;;  %v364_v8 = vld [vmem:[%s1465_s19 + $0x1c0] sm:$0xff] }
  0x30   : > { %1053 = vperm.xlu0 %1356, %v971_v15   ;;  %1068 = vperm.xlu1 %1357, %v974_v19   ;;  %v435_v43 = vmul.f32 %v1467_v10, %v359_v29  ;;  %v331_v2 = vld [vmem:[%s1465_s19 + $0xb8] sm:$0xff]  ;;  %v437_v19 = vmul.f32 %v1467_v10, %v361_v3  ;;  %v404_v42 = vmul.f32 %v1514_v32, %v328_v27  ;;  %v332_v3 = vld [vmem:[%s1465_s19 + $0xc0] sm:$0xff]  ;;  %v338_v27 = vld [vmem:[%s1465_s19 + $0xf0] sm:$0xff] }
  0x31   : > { %v1655_v39 = vadd.f32 %v1470_v11, %v413_v30  ;;  %v407_v15 = vmul.f32 %v1467_v10, %v331_v2  ;;  %v982_v29 = vld [vmem:[%s1502_s28 + $0xb8] sm:$0xff]  ;;  %v436_v50 = vmul.f32 %v1514_v32, %v360_v33  ;;  %v438_v51 = vmul.f32 %v1514_v32, %v362_v34  ;;  %v989_v33 = vld [vmem:[%s1502_s28 + $0xf0] sm:$0xff] }
  0x32   : > { %v511_v63 = vadd.f32 %v1470_v11, %v435_v43  ;;  %v513_v30 = vadd.f32 %v1470_v11, %v437_v19  ;;  %v406_v43 = vmul.f32 %v1514_v32, %v330_v28  ;;  %v409_v52 = vmul.f32 %v1467_v10, %v333_v35  ;;  %v988_v19 = vld [vmem:[%s1502_s28 + $0xe8] sm:$0xff]  ;;  %v368_v28 = vld [vmem:[%s1465_s19 + $0x1e0] sm:$0xff] }
  0x33   : > { %v539_v53 = vpack.c.bf16 %v1662_v44, %v1655_v39  ;;  %v483_v26 = vadd.f32 %v1470_v11, %v407_v15  ;;  %v441_v57 = vmul.f32 %v1467_v10, %v365_v37  ;;  %v414_v35 = vmul.f32 %v1514_v32, %v338_v27 }
  0x34   : > { %1063 = vperm.xlu0 %1356, %v973_v36   ;;  %1078 = vperm.xlu1 %1357, %v976_v41   ;;  %v549_v18 = vpack.c.bf16 %v511_v63, %v509_v62  ;;  %v335_v36 = vld [vmem:[%s1465_s19 + $0xd8] sm:$0xff]  ;;  %v548_v41 = vpack.c.bf16 %v510_v24, %v508_v23  ;;  %v983_v62 = vld [vmem:[%s1502_s28 + $0xc0] sm:$0xff]  ;;  %v512_v63 = vadd.f32 %v1531_v46, %v436_v50 }
  0x35   : > { %v485_v2 = vadd.f32 %v1470_v11, %v409_v52  ;;  %v517_v6 = vadd.f32 %v1470_v11, %v441_v57  ;;  %v987_v23 = vld [vmem:[%s1502_s28 + $0xe0] sm:$0xff] }
  0x36   : > { %729 = vmatmul.mubr.bf16.gmra.mrb[4].mxu0 %v526_v59  ;;  %793 = vmatmul.mubr.bf16.gmra.mrb[4].mxu1 %v542_v60  ;;  %v555_v59 = vpack.c.bf16 %v1668_v47, %v1665_v45  ;;  %v978_v60 = vld [vmem:[%s1502_s28 + $0x98] sm:$0xff] }
  0x37   : > { %1307 = vmatprep.mubr.msk.bf16.mxu0 %vm632_vm0, %v529_v61  ;;  %1315 = vmatprep.mubr.msk.bf16.mxu1 %vm632_vm0, %v545_v0  ;;  %v479_v61 = vadd.f32 %v1470_v11, %v403_v38  ;;  %v329_v0 = vld [vmem:[%s1465_s19 + $0xa8] sm:$0xff]  ;;  %v367_v38 = vld [vmem:[%s1465_s19 + $0x1d8] sm:$0xff] }
  0x38   : > { %1073 = vperm.xlu0 %1356, %v975_v54   ;;  %1088 = vperm.xlu1 %1357, %v978_v60   ;;  %v405_v14 = vmul.f32 %v1467_v10, %v329_v0  ;;  %v984_v54 = vld [vmem:[%s1502_s28 + $0xc8] sm:$0xff]  ;;  %v443_v58 = vmul.f32 %v1467_v10, %v367_v38  ;;  %v480_v60 = vadd.f32 %v1531_v46, %v404_v42 }
  0x39   : > { %v533_v17 = vpack.c.bf16 %v479_v61, %v477_v56  ;;  %v411_v56 = vmul.f32 %v1467_v10, %v335_v36  ;;  %v482_v61 = vadd.f32 %v1531_v46, %v406_v43  ;;  %v514_v0 = vadd.f32 %v1531_v46, %v438_v51 }
  0x3a   : > { %v519_v7 = vadd.f32 %v1470_v11, %v443_v58  ;;  %v444_v36 = vmul.f32 %v1514_v32, %v368_v28 }
  0x3b   : > { %v534_v15 = vpack.c.bf16 %v482_v61, %v480_v60  ;;  %v1821_v61 = vld [vmem:[%s1948_s5] ss:$0 sm:$0xff] }
  0x3c   : > { %1083 = vperm.xlu0 %1356, %v977_v9   ;;  %1098 = vperm.xlu1 %1357, %v980_v16   ;;  %v366_v9 = vld [vmem:[%s1465_s19 + $0x1d0] sm:$0xff]  ;;  %v550_v16 = vpack.c.bf16 %v514_v0, %v512_v63 }
  0x3e   : > { %737 = vmatmul.mubr.bf16.gmra.mrb[8].mxu0 %v528_v20  ;;  %801 = vmatmul.mubr.bf16.gmra.mrb[8].mxu1 %v544_v21  ;;  %v439_v20 = vmul.f32 %v1467_v10, %v363_v4  ;;  %v476_v21 = vadd.f32 %v1531_v46, %v400_v5  ;;  %v334_v10 = vld [vmem:[%s1465_s19 + $0xd0] sm:$0xff]  ;;  %v986_v4 = vld [vmem:[%s1502_s28 + $0xd8] sm:$0xff]  ;;  %v487_v5 = vadd.f32 %v1470_v11, %v411_v56  ;;  %v1812_v56 = vld [vmem:[%s1947_s4] ss:$0 sm:$0xff] }
  0x3f   : > { %1308 = vmatprep.mubr.msk.bf16.mxu0 %vm632_vm0, %v531_v1  ;;  %1316 = vmatprep.mubr.msk.bf16.mxu1 %vm632_vm0, %v547_v31  ;;  %v481_v1 = vadd.f32 %v1470_v11, %v405_v14  ;;  %v985_v14 = vld [vmem:[%s1502_s28 + $0xd0] sm:$0xff] }
  0x40   : > { %v515_v31 = vadd.f32 %v1470_v11, %v439_v20  ;;  %1093 = vperm.xlu0 %1356, %v979_v25   ;;  %v532_v40 = vpack.c.bf16 %v478_v22, %v476_v21  ;;  %1108 = vperm.xlu1 %1357, %v982_v29   ;;  %v537_v11 = vpack.c.bf16 %v487_v5, %v485_v2  ;;  %v370_v29 = vld [vmem:[%s1465_s19 + $0x1f0] sm:$0xff] }
  0x41   : > { %v535_v49 = vpack.c.bf16 %v483_v26, %v481_v1  ;;  %v553_v20 = vpack.c.bf16 %v519_v7, %v517_v6  ;;  %v336_v1 = vld [vmem:[%s1465_s19 + $0xe0] sm:$0xff]  ;;  %v990_v26 = vld [vmem:[%s1502_s28 + $0xf8] sm:$0xff]  ;;  %v446_v37 = vmul.f32 %v1514_v32, %v370_v29 }
  0x42   : > { %v551_v55 = vpack.c.bf16 %v515_v31, %v513_v30  ;;  %v412_v31 = vmul.f32 %v1514_v32, %v336_v1 }
  0x43   : > { %v522_v42 = vadd.f32 %v1531_v46, %v446_v37 }
  0x44   : > { %1103 = vperm.xlu0 %1356, %v981_v48   ;;  %1118 = vperm.xlu1 %1357, %v984_v54   ;;  %v488_v38 = vadd.f32 %v1531_v46, %v412_v31 }
  0x46   : > { %745 = vmatmul.mubr.bf16.gmra.mrb[12].mxu0 %v530_v12  ;;  %809 = vmatmul.mubr.bf16.gmra.mrb[12].mxu1 %v546_v13  ;;  %v408_v12 = vmul.f32 %v1514_v32, %v332_v3  ;;  %v410_v13 = vmul.f32 %v1514_v32, %v334_v10 }
  0x47   : > { %1309 = vmatprep.mubr.msk.bf16.mxu0 %vm632_vm0, %v533_v17  ;;  %1317 = vmatprep.mubr.msk.bf16.mxu1 %vm632_vm0, %v549_v18  ;;  %v440_v17 = vmul.f32 %v1514_v32, %v364_v8  ;;  %v442_v18 = vmul.f32 %v1514_v32, %v366_v9 }
  0x48   : > { %1113 = vperm.xlu0 %1356, %v983_v62   ;;  %1128 = vperm.xlu1 %1357, %v986_v4   ;;  %v484_v21 = vadd.f32 %v1531_v46, %v408_v12  ;;  %v486_v22 = vadd.f32 %v1531_v46, %v410_v13 }
  0x49   : > { %v516_v24 = vadd.f32 %v1531_v46, %v440_v17  ;;  %v518_v25 = vadd.f32 %v1531_v46, %v442_v18 }
  0x4a   : > { %v536_v30 = vpack.c.bf16 %v486_v22, %v484_v21 }
  0x4b   : > { %v552_v34 = vpack.c.bf16 %v518_v25, %v516_v24 }
  0x4c   : > { %1123 = vperm.xlu0 %1356, %v985_v14   ;;  %1138 = vperm.xlu1 %1357, %v988_v19  }
  0x4e   : > { %753 = vmatmul.mubr.bf16.gmra.mrb[16].mxu0 %v532_v40  ;;  %817 = vmatmul.mubr.bf16.gmra.mrb[16].mxu1 %v548_v41  ;;  %v490_v40 = vadd.f32 %v1531_v46, %v414_v35  ;;  %v520_v41 = vadd.f32 %v1531_v46, %v444_v36 }
  0x4f   : > { %1310 = vmatprep.mubr.msk.bf16.mxu0 %vm632_vm0, %v535_v49  ;;  %1318 = vmatprep.mubr.msk.bf16.mxu1 %vm632_vm0, %v551_v55 }
  0x50   : > { %1133 = vperm.xlu0 %1356, %v987_v23   ;;  %1148 = vperm.xlu1 %1357, %v990_v26   ;;  %v538_v32 = vpack.c.bf16 %v490_v40, %v488_v38  ;;  %v554_v43 = vpack.c.bf16 %v522_v42, %v520_v41 }
  0x54   : > { %1143 = vperm.xlu0 %1356, %v989_v33  }
  0x56   : > { %761 = vmatmul.mubr.bf16.gmra.mrb[20].mxu0 %v534_v15  ;;  %825 = vmatmul.mubr.bf16.gmra.mrb[20].mxu1 %v550_v16 }
  0x57   : > { %1311 = vmatprep.mubr.msk.bf16.mxu0 %vm632_vm0, %v537_v11  ;;  %1319 = vmatprep.mubr.msk.bf16.mxu1 %vm632_vm0, %v553_v20 }
  0x5e   : > { %769 = vmatmul.mubr.bf16.gmra.mrb[24].mxu0 %v536_v30  ;;  %833 = vmatmul.mubr.bf16.gmra.mrb[24].mxu1 %v552_v34 }
  0x5f   : > { %1312 = vmatprep.mubr.msk.bf16.mxu0 %vm632_vm0, %v539_v53  ;;  %1320 = vmatprep.mubr.msk.bf16.mxu1 %vm632_vm0, %v555_v59 }
  0x66   : > { %777 = vmatmul.mubr.bf16.gmra.mrb[28].mxu0 %v538_v32  ;;  %841 = vmatmul.mubr.bf16.gmra.mrb[28].mxu1 %v554_v43 }
  0x90   : > { %v1785_v48 = vpop.permute.xlu1 %1003 }
  0x94   : > { %v994_v49 = vpop.permute.xlu0 %993  ;;  %v1787_v50 = vpop.permute.xlu1 %1008 }
  0x99   : > { %v999_v46 = vpop.permute.xlu0 %998  ;;  %v1789_v51 = vpop.permute.xlu1 %1018 }
  0x9d   : > { %v1791_v39 = vpop.permute.xlu0 %1013  ;;  %v1793_v44 = vpop.permute.xlu1 %1028 }
  0xa1   : > { %v1795_v53 = vpop.permute.xlu0 %1023  ;;  %v1797_v45 = vpop.permute.xlu1 %1038 }
  0xa5   : > { %v1799_v47 = vpop.permute.xlu0 %1033  ;;  %v1801_v59 = vpop.permute.xlu1 %1048 }
  0xa9   : > { %v1803_v52 = vpop.permute.xlu0 %1043  ;;  %v1805_v54 = vpop.permute.xlu1 %1058 }
  0xaf   : > { %v1807_v55 = vpop.permute.xlu0 %1053  ;;  %v1814_v57 = vpop.permute.xlu1 %1068 }
  0xb3   : > { %v1816_v58 = vpop.permute.xlu0 %1063  ;;  %v1079_v18 = vpop.permute.xlu1 %1078 }
  0xb7   : > { %v1074_v17 = vpop.permute.xlu0 %1073  ;;  %v1089_v43 = vpop.permute.xlu1 %1088 }
  0xbb   : > { %v1084_v32 = vpop.permute.xlu0 %1083 }
 0x101   : > { %v722_v60 = vpop.f32.mrb[0].mxu0  ;;  %v786_v62 = vpop.f32.mrb[0].mxu1 }
 0x102   : > { %v856_v63 = vmul.f32 %v1812_v56, %v722_v60  ;;  %v872_v0 = vmul.f32 %v1812_v56, %v786_v62  ;;  %v724_v2 = vpop.f32.mrb[1].mxu0  ;;  %v788_v3 = vpop.f32.mrb[1].mxu1 }
 0x103   : > { %v725_v10 = vpop.f32.mrb[2].mxu0  ;;  %v789_v4 = vpop.f32.mrb[2].mxu1 }
 0x104   : > { %v895_v5 = vadd.f32 %v1821_v61, %v856_v63  ;;  %v911_v6 = vadd.f32 %v1821_v61, %v872_v0  ;;  %v857_v7 = vmul.f32 %v1812_v56, %v725_v10  ;;  %v873_v8 = vmul.f32 %v1812_v56, %v789_v4  ;;  %v727_v9 = vpop.f32.mrb[3].mxu0  ;;  %v791_v12 = vpop.f32.mrb[3].mxu1 }
 0x106   : > { %v927_v13 = vmax.f32 %v895_v5, 0.0  ;;  %v943_v14 = vmax.f32 %v911_v6, 0.0  ;;  %v896_v15 = vadd.f32 %v1821_v61, %v857_v7  ;;  %v912_v16 = vadd.f32 %v1821_v61, %v873_v8 }
 0x108   : > { %v1151_v19 = vmul.f32 %v994_v49, %v927_v13  ;;  %v1167_v11 = vmul.f32 %v1074_v17, %v943_v14  ;;  %v928_v20 = vmax.f32 %v896_v15, 0.0  ;;  %v944_v21 = vmax.f32 %v912_v16, 0.0 }
 0x109   : > { %v730_v22 = vpop.f32.mrb[4].mxu0  ;;  %v794_v23 = vpop.f32.mrb[4].mxu1 }
 0x10a   : > { %1183 = vst [vmem:[%s1836_s21] sm:$0xff] %v1151_v19  ;;  %1199 = vst [vmem:[%s1836_s21 + $0x80] sm:$0xff] %v1167_v11  ;;  %v1152_v24 = vmul.f32 %v999_v46, %v928_v20  ;;  %v1168_v25 = vmul.f32 %v1079_v18, %v944_v21  ;;  %v858_v1 = vmul.f32 %v1812_v56, %v730_v22  ;;  %v732_v27 = vpop.f32.mrb[5].mxu0  ;;  %v796_v28 = vpop.f32.mrb[5].mxu1 }
 0x10b   : > { %v874_v26 = vmul.f32 %v1812_v56, %v794_v23  ;;  %v733_v29 = vpop.f32.mrb[6].mxu0  ;;  %v797_v30 = vpop.f32.mrb[6].mxu1 }
 0x10c   : > { %1184 = vst [vmem:[%s1836_s21 + $0x8] sm:$0xff] %v1152_v24  ;;  %1200 = vst [vmem:[%s1836_s21 + $0x88] sm:$0xff] %v1168_v25  ;;  %v897_v31 = vadd.f32 %v1821_v61, %v858_v1  ;;  %v859_v34 = vmul.f32 %v1812_v56, %v733_v29  ;;  %v875_v35 = vmul.f32 %v1812_v56, %v797_v30  ;;  %v735_v36 = vpop.f32.mrb[7].mxu0  ;;  %v799_v37 = vpop.f32.mrb[7].mxu1 }
 0x10d   : > { %v913_v33 = vadd.f32 %v1821_v61, %v874_v26  ;;  %v1094_v19 = vpop.permute.xlu0 %1093  ;;  %v1099_v11 = vpop.permute.xlu1 %1098 }
 0x10e   : > { %v929_v38 = vmax.f32 %v897_v31, 0.0  ;;  %v898_v41 = vadd.f32 %v1821_v61, %v859_v34  ;;  %v914_v42 = vadd.f32 %v1821_v61, %v875_v35 }
 0x10f   : > { %v945_v40 = vmax.f32 %v913_v33, 0.0 }
 0x110   : > { %v1153_v49 = vmul.f32 %v1785_v48, %v929_v38  ;;  %v930_v60 = vmax.f32 %v898_v41, 0.0  ;;  %v946_v62 = vmax.f32 %v914_v42, 0.0 }
 0x111   : > { %v1169_v46 = vmul.f32 %v1084_v32, %v945_v40  ;;  %v738_v63 = vpop.f32.mrb[8].mxu0  ;;  %v802_v0 = vpop.f32.mrb[8].mxu1 }
 0x112   : > { %1185 = vst [vmem:[%s1836_s21 + $0x10] sm:$0xff] %v1153_v49  ;;  %v1154_v2 = vmul.f32 %v1787_v50, %v930_v60  ;;  %v1170_v3 = vmul.f32 %v1089_v43, %v946_v62  ;;  %v860_v10 = vmul.f32 %v1812_v56, %v738_v63  ;;  %v876_v4 = vmul.f32 %v1812_v56, %v802_v0  ;;  %v740_v5 = vpop.f32.mrb[9].mxu0  ;;  %v804_v6 = vpop.f32.mrb[9].mxu1 }
 0x113   : > { %1201 = vst [vmem:[%s1836_s21 + $0x90] sm:$0xff] %v1169_v46  ;;  %v741_v7 = vpop.f32.mrb[10].mxu0  ;;  %v805_v48 = vpop.f32.mrb[10].mxu1 }
 0x114   : > { %1186 = vst [vmem:[%s1836_s21 + $0x18] sm:$0xff] %v1154_v2  ;;  %1202 = vst [vmem:[%s1836_s21 + $0x98] sm:$0xff] %v1170_v3  ;;  %v899_v8 = vadd.f32 %v1821_v61, %v860_v10  ;;  %v915_v9 = vadd.f32 %v1821_v61, %v876_v4  ;;  %v861_v12 = vmul.f32 %v1812_v56, %v741_v7  ;;  %v743_v13 = vpop.f32.mrb[11].mxu0  ;;  %v807_v14 = vpop.f32.mrb[11].mxu1 }
 0x115   : > { %v877_v50 = vmul.f32 %v1812_v56, %v805_v48  ;;  %v1104_v32 = vpop.permute.xlu0 %1103  ;;  %v1109_v43 = vpop.permute.xlu1 %1108 }
 0x116   : > { %v931_v15 = vmax.f32 %v899_v8, 0.0  ;;  %v947_v16 = vmax.f32 %v915_v9, 0.0  ;;  %v900_v17 = vadd.f32 %v1821_v61, %v861_v12 }
 0x117   : > { %v916_v18 = vadd.f32 %v1821_v61, %v877_v50 }
 0x118   : > { %v1155_v20 = vmul.f32 %v1791_v39, %v931_v15  ;;  %v1171_v21 = vmul.f32 %v1094_v19, %v947_v16  ;;  %v932_v22 = vmax.f32 %v900_v17, 0.0 }
 0x119   : > { %v948_v23 = vmax.f32 %v916_v18, 0.0  ;;  %v746_v24 = vpop.f32.mrb[12].mxu0  ;;  %v810_v25 = vpop.f32.mrb[12].mxu1 }
 0x11a   : > { %1187 = vst [vmem:[%s1836_s21 + $0x20] sm:$0xff] %v1155_v20  ;;  %1203 = vst [vmem:[%s1836_s21 + $0xa0] sm:$0xff] %v1171_v21  ;;  %v1156_v1 = vmul.f32 %v1789_v51, %v932_v22  ;;  %v862_v27 = vmul.f32 %v1812_v56, %v746_v24  ;;  %v878_v28 = vmul.f32 %v1812_v56, %v810_v25  ;;  %v748_v29 = vpop.f32.mrb[13].mxu0  ;;  %v812_v30 = vpop.f32.mrb[13].mxu1 }
 0x11b   : > { %v1172_v26 = vmul.f32 %v1099_v11, %v948_v23  ;;  %v749_v31 = vpop.f32.mrb[14].mxu0  ;;  %v813_v39 = vpop.f32.mrb[14].mxu1 }
 0x11c   : > { %1188 = vst [vmem:[%s1836_s21 + $0x28] sm:$0xff] %v1156_v1  ;;  %v901_v33 = vadd.f32 %v1821_v61, %v862_v27  ;;  %v917_v34 = vadd.f32 %v1821_v61, %v878_v28  ;;  %v863_v35 = vmul.f32 %v1812_v56, %v749_v31  ;;  %v879_v51 = vmul.f32 %v1812_v56, %v813_v39  ;;  %v751_v36 = vpop.f32.mrb[15].mxu0  ;;  %v815_v37 = vpop.f32.mrb[15].mxu1 }
 0x11d   : > { %1204 = vst [vmem:[%s1836_s21 + $0xa8] sm:$0xff] %v1172_v26  ;;  %v1114_v17 = vpop.permute.xlu0 %1113  ;;  %v1119_v18 = vpop.permute.xlu1 %1118 }
 0x11e   : > { %v933_v38 = vmax.f32 %v901_v33, 0.0  ;;  %v949_v40 = vmax.f32 %v917_v34, 0.0  ;;  %v902_v41 = vadd.f32 %v1821_v61, %v863_v35  ;;  %v918_v42 = vadd.f32 %v1821_v61, %v879_v51 }
 0x120   : > { %v1157_v49 = vmul.f32 %v1795_v53, %v933_v38  ;;  %v1173_v46 = vmul.f32 %v1104_v32, %v949_v40  ;;  %v934_v60 = vmax.f32 %v902_v41, 0.0  ;;  %v950_v62 = vmax.f32 %v918_v42, 0.0 }
 0x121   : > { %v754_v63 = vpop.f32.mrb[16].mxu0  ;;  %v818_v0 = vpop.f32.mrb[16].mxu1 }
 0x122   : > { %1189 = vst [vmem:[%s1836_s21 + $0x30] sm:$0xff] %v1157_v49  ;;  %1205 = vst [vmem:[%s1836_s21 + $0xb0] sm:$0xff] %v1173_v46  ;;  %v1158_v2 = vmul.f32 %v1793_v44, %v934_v60  ;;  %v1174_v3 = vmul.f32 %v1109_v43, %v950_v62  ;;  %v864_v10 = vmul.f32 %v1812_v56, %v754_v63  ;;  %v756_v5 = vpop.f32.mrb[17].mxu0  ;;  %v820_v6 = vpop.f32.mrb[17].mxu1 }
 0x123   : > { %v880_v4 = vmul.f32 %v1812_v56, %v818_v0  ;;  %v757_v7 = vpop.f32.mrb[18].mxu0  ;;  %v821_v53 = vpop.f32.mrb[18].mxu1 }
 0x124   : > { %1190 = vst [vmem:[%s1836_s21 + $0x38] sm:$0xff] %v1158_v2  ;;  %1206 = vst [vmem:[%s1836_s21 + $0xb8] sm:$0xff] %v1174_v3  ;;  %v903_v48 = vadd.f32 %v1821_v61, %v864_v10  ;;  %v865_v9 = vmul.f32 %v1812_v56, %v757_v7  ;;  %v881_v44 = vmul.f32 %v1812_v56, %v821_v53  ;;  %v759_v12 = vpop.f32.mrb[19].mxu0  ;;  %v823_v50 = vpop.f32.mrb[19].mxu1 }
 0x125   : > { %v919_v8 = vadd.f32 %v1821_v61, %v880_v4  ;;  %v1124_v38 = vpop.permute.xlu0 %1123  ;;  %v1129_v40 = vpop.permute.xlu1 %1128 }
 0x126   : > { %v935_v13 = vmax.f32 %v903_v48, 0.0  ;;  %v904_v15 = vadd.f32 %v1821_v61, %v865_v9  ;;  %v920_v16 = vadd.f32 %v1821_v61, %v881_v44 }
 0x127   : > { %v951_v14 = vmax.f32 %v919_v8, 0.0 }
 0x128   : > { %v1159_v19 = vmul.f32 %v1799_v47, %v935_v13  ;;  %v936_v20 = vmax.f32 %v904_v15, 0.0  ;;  %v952_v21 = vmax.f32 %v920_v16, 0.0 }
 0x129   : > { %v1175_v11 = vmul.f32 %v1114_v17, %v951_v14  ;;  %v762_v22 = vpop.f32.mrb[20].mxu0  ;;  %v826_v23 = vpop.f32.mrb[20].mxu1 }
 0x12a   : > { %1191 = vst [vmem:[%s1836_s21 + $0x40] sm:$0xff] %v1159_v19  ;;  %v1160_v24 = vmul.f32 %v1797_v45, %v936_v20  ;;  %v1176_v25 = vmul.f32 %v1119_v18, %v952_v21  ;;  %v866_v1 = vmul.f32 %v1812_v56, %v762_v22  ;;  %v882_v26 = vmul.f32 %v1812_v56, %v826_v23  ;;  %v764_v27 = vpop.f32.mrb[21].mxu0  ;;  %v828_v28 = vpop.f32.mrb[21].mxu1 }
 0x12b   : > { %1207 = vst [vmem:[%s1836_s21 + $0xc0] sm:$0xff] %v1175_v11  ;;  %v765_v29 = vpop.f32.mrb[22].mxu0  ;;  %v829_v47 = vpop.f32.mrb[22].mxu1 }
 0x12c   : > { %1192 = vst [vmem:[%s1836_s21 + $0x48] sm:$0xff] %v1160_v24  ;;  %1208 = vst [vmem:[%s1836_s21 + $0xc8] sm:$0xff] %v1176_v25  ;;  %v905_v30 = vadd.f32 %v1821_v61, %v866_v1  ;;  %v921_v31 = vadd.f32 %v1821_v61, %v882_v26  ;;  %v867_v39 = vmul.f32 %v1812_v56, %v765_v29  ;;  %v767_v33 = vpop.f32.mrb[23].mxu0  ;;  %v831_v34 = vpop.f32.mrb[23].mxu1 }
 0x12d   : > { %v883_v45 = vmul.f32 %v1812_v56, %v829_v47  ;;  %v1134_v12 = vpop.permute.xlu0 %1133  ;;  %v1139_v50 = vpop.permute.xlu1 %1138 }
 0x12e   : > { %v937_v35 = vmax.f32 %v905_v30, 0.0  ;;  %v953_v51 = vmax.f32 %v921_v31, 0.0  ;;  %v906_v36 = vadd.f32 %v1821_v61, %v867_v39 }
 0x12f   : > { %v922_v37 = vadd.f32 %v1821_v61, %v883_v45 }
 0x130   : > { %v1161_v41 = vmul.f32 %v1803_v52, %v937_v35  ;;  %v1177_v42 = vmul.f32 %v1124_v38, %v953_v51  ;;  %v938_v32 = vmax.f32 %v906_v36, 0.0 }
 0x131   : > { %v954_v43 = vmax.f32 %v922_v37, 0.0  ;;  %v770_v49 = vpop.f32.mrb[24].mxu0  ;;  %v834_v46 = vpop.f32.mrb[24].mxu1 }
 0x132   : > { %1193 = vst [vmem:[%s1836_s21 + $0x50] sm:$0xff] %v1161_v41  ;;  %1209 = vst [vmem:[%s1836_s21 + $0xd0] sm:$0xff] %v1177_v42  ;;  %v1162_v60 = vmul.f32 %v1801_v59, %v938_v32  ;;  %v868_v63 = vmul.f32 %v1812_v56, %v770_v49  ;;  %v884_v0 = vmul.f32 %v1812_v56, %v834_v46  ;;  %v772_v2 = vpop.f32.mrb[25].mxu0  ;;  %v836_v3 = vpop.f32.mrb[25].mxu1 }
 0x133   : > { %v1178_v62 = vmul.f32 %v1129_v40, %v954_v43  ;;  %v773_v10 = vpop.f32.mrb[26].mxu0  ;;  %v837_v52 = vpop.f32.mrb[26].mxu1 }
 0x134   : > { %1194 = vst [vmem:[%s1836_s21 + $0x58] sm:$0xff] %v1162_v60  ;;  %v907_v4 = vadd.f32 %v1821_v61, %v868_v63  ;;  %v923_v5 = vadd.f32 %v1821_v61, %v884_v0  ;;  %v869_v6 = vmul.f32 %v1812_v56, %v773_v10  ;;  %v885_v59 = vmul.f32 %v1812_v56, %v837_v52  ;;  %v775_v7 = vpop.f32.mrb[27].mxu0  ;;  %v839_v53 = vpop.f32.mrb[27].mxu1 }
 0x135   : > { %1210 = vst [vmem:[%s1836_s21 + $0xd8] sm:$0xff] %v1178_v62  ;;  %v1144_v39 = vpop.permute.xlu0 %1143  ;;  %v1149_v51 = vpop.permute.xlu1 %1148 }
 0x136   : > { %v939_v48 = vmax.f32 %v907_v4, 0.0  ;;  %v955_v8 = vmax.f32 %v923_v5, 0.0  ;;  %v908_v9 = vadd.f32 %v1821_v61, %v869_v6  ;;  %v924_v44 = vadd.f32 %v1821_v61, %v885_v59 }
 0x138   : > { %v1163_v13 = vmul.f32 %v1807_v55, %v939_v48  ;;  %v1179_v14 = vmul.f32 %v1134_v12, %v955_v8  ;;  %v940_v15 = vmax.f32 %v908_v9, 0.0  ;;  %v956_v16 = vmax.f32 %v924_v44, 0.0 }
 0x139   : > { %v778_v17 = vpop.f32.mrb[28].mxu0  ;;  %v842_v18 = vpop.f32.mrb[28].mxu1 }
 0x13a   : > { %1195 = vst [vmem:[%s1836_s21 + $0x60] sm:$0xff] %v1163_v13  ;;  %1211 = vst [vmem:[%s1836_s21 + $0xe0] sm:$0xff] %v1179_v14  ;;  %v1164_v19 = vmul.f32 %v1805_v54, %v940_v15  ;;  %v1180_v11 = vmul.f32 %v1139_v50, %v956_v16  ;;  %v870_v20 = vmul.f32 %v1812_v56, %v778_v17  ;;  %v780_v22 = vpop.f32.mrb[29].mxu0  ;;  %v844_v23 = vpop.f32.mrb[29].mxu1 }
 0x13b   : > { %v886_v21 = vmul.f32 %v1812_v56, %v842_v18  ;;  %v781_v24 = vpop.f32.mrb[30].mxu0  ;;  %v845_v55 = vpop.f32.mrb[30].mxu1 }
 0x13c   : > { %1196 = vst [vmem:[%s1836_s21 + $0x68] sm:$0xff] %v1164_v19  ;;  %1212 = vst [vmem:[%s1836_s21 + $0xe8] sm:$0xff] %v1180_v11  ;;  %v909_v25 = vadd.f32 %v1821_v61, %v870_v20  ;;  %v871_v26 = vmul.f32 %v1812_v56, %v781_v24  ;;  %v887_v54 = vmul.f32 %v1812_v56, %v845_v55  ;;  %v783_v27 = vpop.f32.mrb[31].mxu0  ;;  %v847_v28 = vpop.f32.mrb[31].mxu1 }
 0x13d   : > { %v925_v1 = vadd.f32 %v1821_v61, %v886_v21 }
 0x13e   : > { %v941_v29 = vmax.f32 %v909_v25, 0.0  ;;  %v910_v30 = vadd.f32 %v1821_v61, %v871_v26  ;;  %v926_v31 = vadd.f32 %v1821_v61, %v887_v54 }
 0x13f   : > { %v957_v47 = vmax.f32 %v925_v1, 0.0 }
 0x140   : > { %v1165_v45 = vmul.f32 %v1816_v58, %v941_v29  ;;  %v942_v34 = vmax.f32 %v910_v30, 0.0  ;;  %v958_v35 = vmax.f32 %v926_v31, 0.0 }
 0x141   : > { %v1181_v33 = vmul.f32 %v1144_v39, %v957_v47 }
 0x142   : > { %1197 = vst [vmem:[%s1836_s21 + $0x70] sm:$0xff] %v1165_v45  ;;  %v1166_v56 = vmul.f32 %v1814_v57, %v942_v34  ;;  %v1182_v36 = vmul.f32 %v1149_v51, %v958_v35 }
 0x143   : > { %1213 = vst [vmem:[%s1836_s21 + $0xf0] sm:$0xff] %v1181_v33 }
 0x144   : > { %1198 = vst [vmem:[%s1836_s21 + $0x78] sm:$0xff] %v1166_v56  ;;  %1214 = vst [vmem:[%s1836_s21 + $0xf8] sm:$0xff] %v1182_v36 }
 0x145 PF: > { %s17_s24 = sadd.s32 1, %s1374_s24  }
 0x146   : > { %p14_p4 = scmp.ge.s32.totalorder %s17_s24, 9  }
 0x148   :  { %16 = sbr.rel (!%p14_p4) target bundleno = 1 (0x1), region = 81 }

// kernel: densenet_forward.16
= control target key start
LH: loop header
LB: loop body
LE: loop exit
PB: predicated region body
PF: predicated region fallthrough
CT: control target
= control target key end

     0   :  { %s1303_s24 = smov 0   ;;  %s1668_s0 = inlined_call_operand.vmem [shape: f32[512,128], index: 0, kind: input, shape index: {}]   ;;  %s1669_s1 = inlined_call_operand.vmem [shape: bf16[128,128], index: 1, kind: input, shape index: {}]   ;;  %s1670_s2 = inlined_call_operand.vmem [shape: f32[1,128], index: 2, kind: input, shape index: {}]   ;;  %s1671_s3 = inlined_call_operand.vmem [shape: f32[1,128], index: 3, kind: input, shape index: {}]   ;;  %s1672_s4 = inlined_call_operand.vmem [shape: f32[1,128], index: 4, kind: input, shape index: {}]   ;;  %s1673_s5 = inlined_call_operand.vmem [shape: f32[1,128], index: 5, kind: input, shape index: {}]   ;;  %s1674_s6 = inlined_call_operand.vmem [shape: f32[512,1], index: 6, kind: input, shape index: {}]   ;;  %s1675_s7 = inlined_call_operand.vmem [shape: f32[512,128], index: 7, kind: output, shape index: {}]  }
   0x1 LB: > { %s1122_s25 = sadd.s32 4294967295, %s1260_s24   ;;  %p1126_p0 = scmp.ge.s32.totalorder %s1260_s24, 1  ;;  %s1260_s24 = sphi %s1303_s24, %s17_s24  }
   0x2   : > { %p249_p1 = scmp.lt.s32.totalorder %s1260_s24, 3 }
   0x4   : > { %p250_p2 = pnand %p1126_p0, %p249_p1 }
   0x5   : > { %v1246_v0 = vld [vmem:[%s1669_s1] sm:$0xff] (!%p250_p2)   ;;  %v1247_v1 = vld [vmem:[%s1669_s1 + $0x8] sm:$0xff] (!%p250_p2)   ;;  %v1262_v2 = vmov (!%p250_p2), 0   ;;  %s1127_s30 = sshll.u32 (!%p250_p2), %s1122_s25, 5  ;;  %v1248_v3 = vld [vmem:[%s1669_s1 + $0x10] sm:$0xff] (!%p250_p2)  }
   0x6   : > { %253 = sbr.rel (%p250_p2) target bundleno = 290 (0x122), region = 48  ;;  %1245 = vset.pattern.permute.xlu1 (!%p250_p2), %v1262_v2  ;;  %1244 = vset.pattern.permute.xlu0 (!%p250_p2), %v1262_v2  ;;  %p287_p3 = scmp.lt.s32.totalorder (!%p250_p2), %s1127_s30, 63  ;;  %v1249_v4 = vld [vmem:[%s1669_s1 + $0x18] sm:$0xff] (!%p250_p2)   ;;  %v1342_v7 = vld [vmem:[%s1670_s2] ss:$0 sm:$0xff] (!%p250_p2)  ;;  %v1251_v37 = vld [vmem:[%s1669_s1 + $0x28] sm:$0xff] (!%p250_p2)  }
   0x7   : > { %1171 = vmatprep.subr.bf16.mxu0 (!%p250_p2), %v1246_v0  ;;  %1219 = vmatprep.subr.bf16.mxu1 (!%p250_p2), %v1246_v0  ;;  %v1349_v10 = vld [vmem:[%s1671_s3] ss:$0 sm:$0xff] (!%p250_p2)  ;;  %v1252_v51 = vld [vmem:[%s1669_s1 + $0x30] sm:$0xff] (!%p250_p2)  }
   0x8   : > { %1172 = vmatpush3.bf16.msra.mxu0 (!%p250_p2), %v1246_v0  ;;  %1227 = vmatpush3.bf16.msra.mxu1 (!%p250_p2), %v1246_v0  ;;  %v1250_v17 = vld [vmem:[%s1669_s1 + $0x20] sm:$0xff] (!%p250_p2)  }
   0x9   : > { %1173 = vmatprep.subr.bf16.mxu0 (!%p250_p2), %v1247_v1  ;;  %1220 = vmatprep.subr.bf16.mxu1 (!%p250_p2), %v1247_v1 }
   0xc   : > { %1174 = vmatpush3.bf16.msra.mxu0 (!%p250_p2), %v1247_v1  ;;  %1228 = vmatpush3.bf16.msra.mxu1 (!%p250_p2), %v1247_v1 }
   0xd   : > { %s1677_s30 = smov (!%p287_p3, %s1127_s30), 63  ;;  %1175 = vmatprep.subr.bf16.mxu0 %v1248_v3  ;;  %1221 = vmatprep.subr.bf16.mxu1 %v1248_v3 }
   0xe   : > { %s1320_s10 = sshll.u32 %s1677_s30, 3 }
   0xf   : > { %s1329_s15 = scalar_lea.vmem %s1674_s6, %s1320_s10  ;;  %s1336_s18 = scalar_lea.vmem %s1668_s0, %s1320_s10 }
  0x10   : > { %v800_v5 = vld [vmem:[%s1329_s15 + $0x10] sm:$0xff]  ;;  %v798_v6 = vld [vmem:[%s1329_s15] sm:$0xff]  ;;  %v306_v9 = vld [vmem:[%s1336_s18 + $0x8] sm:$0xff]  ;;  %1176 = vmatpush3.bf16.msra.mxu0 %v1248_v3  ;;  %1229 = vmatpush3.bf16.msra.mxu1 %v1248_v3  ;;  %s1551_s16 = scalar_lea.vmem %s1675_s7, %s1320_s10 }
  0x11   : > { %842 = vperm.xlu1 %1245, %v800_v5   ;;  %832 = vperm.xlu0 %1244, %v798_v6   ;;  %v305_v8 = vld [vmem:[%s1336_s18] sm:$0xff]  ;;  %v345_v12 = vmul.f32 %v1342_v7, %v306_v9  ;;  %v322_v14 = vld [vmem:[%s1336_s18 + $0x88] sm:$0xff]  ;;  %v801_v20 = vld [vmem:[%s1329_s15 + $0x18] sm:$0xff] }
  0x12   : > { %v344_v11 = vmul.f32 %v1342_v7, %v305_v8  ;;  %v321_v13 = vld [vmem:[%s1336_s18 + $0x80] sm:$0xff]  ;;  %v361_v16 = vmul.f32 %v1342_v7, %v322_v14  ;;  %1177 = vmatprep.subr.bf16.mxu0 %v1249_v4  ;;  %1222 = vmatprep.subr.bf16.mxu1 %v1249_v4  ;;  %v799_v21 = vld [vmem:[%s1329_s15 + $0x8] sm:$0xff]  ;;  %v307_v24 = vld [vmem:[%s1336_s18 + $0x10] sm:$0xff] }
  0x13   : > { %v360_v15 = vmul.f32 %v1342_v7, %v321_v13  ;;  %v384_v19 = vadd.f32 %v1349_v10, %v345_v12  ;;  %v308_v25 = vld [vmem:[%s1336_s18 + $0x18] sm:$0xff]  ;;  %v323_v26 = vld [vmem:[%s1336_s18 + $0x90] sm:$0xff]  ;;  %v803_v30 = vld [vmem:[%s1329_s15 + $0x28] sm:$0xff]  ;;  %v346_v39 = vmul.f32 %v1342_v7, %v307_v24 }
  0x14   : > { %v383_v18 = vadd.f32 %v1349_v10, %v344_v11  ;;  %v400_v23 = vadd.f32 %v1349_v10, %v361_v16  ;;  %v324_v29 = vld [vmem:[%s1336_s18 + $0x98] sm:$0xff]  ;;  %v802_v31 = vld [vmem:[%s1329_s15 + $0x20] sm:$0xff]  ;;  %1178 = vmatpush3.bf16.msra.mxu0 %v1249_v4  ;;  %1230 = vmatpush3.bf16.msra.mxu1 %v1249_v4  ;;  %v310_v35 = vld [vmem:[%s1336_s18 + $0x28] sm:$0xff]  ;;  %v347_v42 = vmul.f32 %v1342_v7, %v308_v25 }
  0x15   : > { %v399_v22 = vadd.f32 %v1349_v10, %v360_v15  ;;  %847 = vperm.xlu1 %1245, %v801_v20   ;;  %v416_v28 = vmax.f32 %v384_v19, 0.0  ;;  %837 = vperm.xlu0 %1244, %v799_v21   ;;  %v309_v34 = vld [vmem:[%s1336_s18 + $0x20] sm:$0xff]  ;;  %v326_v40 = vld [vmem:[%s1336_s18 + $0xa8] sm:$0xff]  ;;  %v362_v43 = vmul.f32 %v1342_v7, %v323_v26  ;;  %v363_v44 = vmul.f32 %v1342_v7, %v324_v29  ;;  %v805_v48 = vld [vmem:[%s1329_s15 + $0x38] sm:$0xff] }
  0x16   : > { %v415_v27 = vmax.f32 %v383_v18, 0.0  ;;  %v432_v33 = vmax.f32 %v400_v23, 0.0  ;;  %v325_v36 = vld [vmem:[%s1336_s18 + $0xa0] sm:$0xff]  ;;  %1179 = vmatprep.subr.bf16.mxu0 %v1250_v17  ;;  %1223 = vmatprep.subr.bf16.mxu1 %v1250_v17  ;;  %v348_v45 = vmul.f32 %v1342_v7, %v309_v34  ;;  %v349_v46 = vmul.f32 %v1342_v7, %v310_v35  ;;  %v804_v50 = vld [vmem:[%s1329_s15 + $0x30] sm:$0xff]  ;;  %v312_v54 = vld [vmem:[%s1336_s18 + $0x38] sm:$0xff] }
  0x17   : > { %v431_v32 = vmax.f32 %v399_v22, 0.0  ;;  %v364_v47 = vmul.f32 %v1342_v7, %v325_v36  ;;  %v365_v49 = vmul.f32 %v1342_v7, %v326_v40  ;;  %v385_v52 = vadd.f32 %v1349_v10, %v346_v39  ;;  %v311_v53 = vld [vmem:[%s1336_s18 + $0x30] sm:$0xff]  ;;  %v328_v59 = vld [vmem:[%s1336_s18 + $0xb8] sm:$0xff]  ;;  %v313_v60 = vld [vmem:[%s1336_s18 + $0x40] sm:$0xff] }
  0x18   : > { %v447_v38 = vpack.c.bf16 %v416_v28, %v415_v27  ;;  %1180 = vmatpush3.bf16.msra.mxu0 %v1250_v17  ;;  %1231 = vmatpush3.bf16.msra.mxu1 %v1250_v17  ;;  %v386_v55 = vadd.f32 %v1349_v10, %v347_v42  ;;  %v401_v56 = vadd.f32 %v1349_v10, %v362_v43  ;;  %v327_v58 = vld [vmem:[%s1336_s18 + $0xb0] sm:$0xff]  ;;  %v807_v0 = vld [vmem:[%s1329_s15 + $0x48] sm:$0xff]  ;;  %v806_v5 = vld [vmem:[%s1329_s15 + $0x40] sm:$0xff] }
  0x19   : > { %v455_v41 = vpack.c.bf16 %v432_v33, %v431_v32  ;;  %857 = vperm.xlu1 %1245, %v803_v30   ;;  %852 = vperm.xlu0 %1244, %v802_v31   ;;  %v402_v57 = vadd.f32 %v1349_v10, %v363_v44  ;;  %v387_v61 = vadd.f32 %v1349_v10, %v348_v45  ;;  %v314_v1 = vld [vmem:[%s1336_s18 + $0x48] sm:$0xff]  ;;  %v329_v6 = vld [vmem:[%s1336_s18 + $0xc0] sm:$0xff]  ;;  %v1253_v9 = vld [vmem:[%s1669_s1 + $0x38] sm:$0xff]   ;;  %v417_v11 = vmax.f32 %v385_v52, 0.0 }
  0x1a   : > { %1187 = vmatprep.mubr.bf16.mxu0 %v447_v38  ;;  %1181 = vmatprep.subr.bf16.mxu0 %v1251_v37  ;;  %v388_v62 = vadd.f32 %v1349_v10, %v349_v46  ;;  %v403_v63 = vadd.f32 %v1349_v10, %v364_v47  ;;  %v404_v2 = vadd.f32 %v1349_v10, %v365_v49  ;;  %v330_v8 = vld [vmem:[%s1336_s18 + $0xc8] sm:$0xff]  ;;  %v418_v15 = vmax.f32 %v386_v55, 0.0  ;;  %v809_v23 = vld [vmem:[%s1329_s15 + $0x58] sm:$0xff]  ;;  %v808_v28 = vld [vmem:[%s1329_s15 + $0x50] sm:$0xff] }
  0x1b   : > { %1224 = vmatprep.subr.bf16.mxu1 %v1251_v37  ;;  %1203 = vmatprep.mubr.bf16.mxu1 %v455_v41  ;;  %v350_v3 = vmul.f32 %v1342_v7, %v311_v53  ;;  %v351_v4 = vmul.f32 %v1342_v7, %v312_v54  ;;  %v366_v12 = vmul.f32 %v1342_v7, %v327_v58  ;;  %v433_v16 = vmax.f32 %v401_v56, 0.0  ;;  %v315_v33 = vld [vmem:[%s1336_s18 + $0x50] sm:$0xff]  ;;  %v316_v38 = vld [vmem:[%s1336_s18 + $0x58] sm:$0xff]  ;;  %v811_v40 = vld [vmem:[%s1329_s15 + $0x68] sm:$0xff] }
  0x1c   : > { %1182 = vmatpush3.bf16.msra.mxu0 %v1251_v37  ;;  %1232 = vmatpush3.bf16.msra.mxu1 %v1251_v37  ;;  %v367_v13 = vmul.f32 %v1342_v7, %v328_v59  ;;  %v352_v14 = vmul.f32 %v1342_v7, %v313_v60  ;;  %v434_v17 = vmax.f32 %v402_v57, 0.0  ;;  %v353_v18 = vmul.f32 %v1342_v7, %v314_v1  ;;  %v331_v39 = vld [vmem:[%s1336_s18 + $0xd0] sm:$0xff]  ;;  %v332_v44 = vld [vmem:[%s1336_s18 + $0xd8] sm:$0xff]  ;;  %v317_v45 = vld [vmem:[%s1336_s18 + $0x60] sm:$0xff] }
  0x1d   : > { %867 = vperm.xlu1 %1245, %v805_v48   ;;  %862 = vperm.xlu0 %1244, %v804_v50   ;;  %v419_v19 = vmax.f32 %v387_v61, 0.0  ;;  %v420_v20 = vmax.f32 %v388_v62, 0.0  ;;  %v368_v21 = vmul.f32 %v1342_v7, %v329_v6  ;;  %v369_v22 = vmul.f32 %v1342_v7, %v330_v8  ;;  %v318_v46 = vld [vmem:[%s1336_s18 + $0x68] sm:$0xff]  ;;  %v810_v57 = vld [vmem:[%s1329_s15 + $0x60] sm:$0xff]  ;;  %v813_v62 = vld [vmem:[%s1329_s15 + $0x78] sm:$0xff] }
  0x1e   : > { %1183 = vmatprep.subr.bf16.mxu0 %v1252_v51  ;;  %1225 = vmatprep.subr.bf16.mxu1 %v1252_v51  ;;  %v435_v24 = vmax.f32 %v403_v63, 0.0  ;;  %v436_v25 = vmax.f32 %v404_v2, 0.0  ;;  %v389_v26 = vadd.f32 %v1349_v10, %v350_v3  ;;  %v390_v27 = vadd.f32 %v1349_v10, %v351_v4  ;;  %v334_v52 = vld [vmem:[%s1336_s18 + $0xe8] sm:$0xff]  ;;  %v812_v6 = vld [vmem:[%s1329_s15 + $0x70] sm:$0xff] }
  0x1f   : > { %v405_v29 = vadd.f32 %v1349_v10, %v366_v12  ;;  %v406_v30 = vadd.f32 %v1349_v10, %v367_v13  ;;  %v391_v31 = vadd.f32 %v1349_v10, %v352_v14  ;;  %v392_v32 = vadd.f32 %v1349_v10, %v353_v18  ;;  %v319_v13 = vld [vmem:[%s1336_s18 + $0x70] sm:$0xff]  ;;  %v815_v14 = vld [vmem:[%s1329_s15 + $0x88] sm:$0xff] }
  0x20   : > { %1184 = vmatpush3.bf16.msra.mxu0 %v1252_v51  ;;  %1233 = vmatpush3.bf16.msra.mxu1 %v1252_v51  ;;  %v448_v34 = vpack.c.bf16 %v418_v15, %v417_v11  ;;  %v456_v35 = vpack.c.bf16 %v434_v17, %v433_v16  ;;  %v407_v36 = vadd.f32 %v1349_v10, %v368_v21  ;;  %v421_v43 = vmax.f32 %v389_v26, 0.0  ;;  %v333_v51 = vld [vmem:[%s1336_s18 + $0xe0] sm:$0xff]  ;;  %v336_v21 = vld [vmem:[%s1336_s18 + $0xf8] sm:$0xff] }
  0x21   : > { %877 = vperm.xlu1 %1245, %v807_v0   ;;  %872 = vperm.xlu0 %1244, %v806_v5   ;;  %v408_v37 = vadd.f32 %v1349_v10, %v369_v22  ;;  %v449_v41 = vpack.c.bf16 %v420_v20, %v419_v19  ;;  %v457_v42 = vpack.c.bf16 %v436_v25, %v435_v24  ;;  %v422_v47 = vmax.f32 %v390_v27, 0.0  ;;  %v320_v19 = vld [vmem:[%s1336_s18 + $0x78] sm:$0xff]  ;;  %v335_v20 = vld [vmem:[%s1336_s18 + $0xf0] sm:$0xff]  ;;  %v814_v26 = vld [vmem:[%s1329_s15 + $0x80] sm:$0xff] }
  0x22   : > { %1185 = vmatprep.subr.bf16.mxu0 %v1253_v9  ;;  %1226 = vmatprep.subr.bf16.mxu1 %v1253_v9  ;;  %v437_v48 = vmax.f32 %v405_v29, 0.0  ;;  %v438_v49 = vmax.f32 %v406_v30, 0.0  ;;  %v423_v50 = vmax.f32 %v391_v31, 0.0  ;;  %v424_v53 = vmax.f32 %v392_v32, 0.0  ;;  %v817_v31 = vld [vmem:[%s1329_s15 + $0x98] sm:$0xff] }
  0x23   : > { %v354_v54 = vmul.f32 %v1342_v7, %v315_v33  ;;  %v355_v55 = vmul.f32 %v1342_v7, %v316_v38  ;;  %v370_v56 = vmul.f32 %v1342_v7, %v331_v39  ;;  %v439_v58 = vmax.f32 %v407_v36, 0.0  ;;  %v816_v38 = vld [vmem:[%s1329_s15 + $0x90] sm:$0xff] }
  0x24   : > { %1186 = vmatpush3.bf16.msra.mxu0 %v1253_v9  ;;  %1234 = vmatpush3.bf16.msra.mxu1 %v1253_v9  ;;  %v440_v59 = vmax.f32 %v408_v37, 0.0  ;;  %v371_v60 = vmul.f32 %v1342_v7, %v332_v44  ;;  %v356_v61 = vmul.f32 %v1342_v7, %v317_v45  ;;  %v357_v63 = vmul.f32 %v1342_v7, %v318_v46  ;;  %v818_v45 = vld [vmem:[%s1329_s15 + $0xa0] sm:$0xff] }
  0x25   : > { %887 = vperm.xlu1 %1245, %v809_v23   ;;  %882 = vperm.xlu0 %1244, %v808_v28   ;;  %v372_v0 = vmul.f32 %v1342_v7, %v333_v51  ;;  %v373_v1 = vmul.f32 %v1342_v7, %v334_v52  ;;  %v450_v2 = vpack.c.bf16 %v422_v47, %v421_v43 }
  0x26   : > { %v393_v3 = vadd.f32 %v1349_v10, %v354_v54  ;;  %v394_v4 = vadd.f32 %v1349_v10, %v355_v55  ;;  %v409_v5 = vadd.f32 %v1349_v10, %v370_v56  ;;  %v458_v8 = vpack.c.bf16 %v438_v49, %v437_v48  ;;  %v822_v54 = vld [vmem:[%s1329_s15 + $0xc0] sm:$0xff]  ;;  %v825_v55 = vld [vmem:[%s1329_s15 + $0xd8] sm:$0xff]  ;;  %v824_v56 = vld [vmem:[%s1329_s15 + $0xd0] sm:$0xff] }
  0x27   : > { %1188 = vmatmul.mubr.bf16.vlgmr.msra.gmra.mrb[0].mxu0 %v448_v34  ;;  %1204 = vmatmul.mubr.bf16.vlgmr.msra.gmra.mrb[0].mxu1 %v456_v35  ;;  %v451_v9 = vpack.c.bf16 %v424_v53, %v423_v50  ;;  %v459_v11 = vpack.c.bf16 %v440_v59, %v439_v58  ;;  %v410_v12 = vadd.f32 %v1349_v10, %v371_v60  ;;  %v821_v50 = vld [vmem:[%s1329_s15 + $0xb8] sm:$0xff]  ;;  %v823_v53 = vld [vmem:[%s1329_s15 + $0xc8] sm:$0xff]  ;;  %v826_v58 = vld [vmem:[%s1329_s15 + $0xe0] sm:$0xff] }
  0x28   : > { %1191 = vmatprep.mubr.bf16.mxu0 %v449_v41  ;;  %1207 = vmatprep.mubr.bf16.mxu1 %v457_v42  ;;  %v395_v15 = vadd.f32 %v1349_v10, %v356_v61  ;;  %v396_v16 = vadd.f32 %v1349_v10, %v357_v63  ;;  %v411_v17 = vadd.f32 %v1349_v10, %v372_v0  ;;  %v425_v22 = vmax.f32 %v393_v3, 0.0  ;;  %v819_v42 = vld [vmem:[%s1329_s15 + $0xa8] sm:$0xff]  ;;  %v829_v59 = vld [vmem:[%s1329_s15 + $0xf8] sm:$0xff]  ;;  %v828_v60 = vld [vmem:[%s1329_s15 + $0xf0] sm:$0xff] }
  0x29   : > { %897 = vperm.xlu1 %1245, %v811_v40   ;;  %892 = vperm.xlu0 %1244, %v810_v57   ;;  %v412_v18 = vadd.f32 %v1349_v10, %v373_v1  ;;  %v426_v23 = vmax.f32 %v394_v4, 0.0  ;;  %v441_v24 = vmax.f32 %v409_v5, 0.0  ;;  %v358_v25 = vmul.f32 %v1342_v7, %v319_v13  ;;  %v827_v57 = vld [vmem:[%s1329_s15 + $0xe8] sm:$0xff] }
  0x2a   : > { %v442_v27 = vmax.f32 %v410_v12, 0.0  ;;  %v359_v28 = vmul.f32 %v1342_v7, %v320_v19  ;;  %v374_v29 = vmul.f32 %v1342_v7, %v335_v20  ;;  %v375_v30 = vmul.f32 %v1342_v7, %v336_v21  ;;  %v1522_v21 = vld [vmem:[%s1672_s4] ss:$0 sm:$0xff] }
  0x2b   : > { %v427_v32 = vmax.f32 %v395_v15, 0.0  ;;  %v428_v33 = vmax.f32 %v396_v16, 0.0  ;;  %v443_v34 = vmax.f32 %v411_v17, 0.0  ;;  %v444_v35 = vmax.f32 %v412_v18, 0.0 }
  0x2c   : > { %v452_v36 = vpack.c.bf16 %v426_v23, %v425_v22  ;;  %v397_v37 = vadd.f32 %v1349_v10, %v358_v25  ;;  %v460_v39 = vpack.c.bf16 %v442_v27, %v441_v24  ;;  %v398_v40 = vadd.f32 %v1349_v10, %v359_v28  ;;  %v1531_v25 = vld [vmem:[%s1673_s5] ss:$0 sm:$0xff] }
  0x2d   : > { %907 = vperm.xlu1 %1245, %v813_v62   ;;  %902 = vperm.xlu0 %1244, %v812_v6   ;;  %v413_v7 = vadd.f32 %v1349_v10, %v374_v29  ;;  %v414_v41 = vadd.f32 %v1349_v10, %v375_v30  ;;  %v453_v43 = vpack.c.bf16 %v428_v33, %v427_v32  ;;  %v820_v10 = vld [vmem:[%s1329_s15 + $0xb0] sm:$0xff] }
  0x2e   : > { %v461_v44 = vpack.c.bf16 %v444_v35, %v443_v34  ;;  %v429_v46 = vmax.f32 %v397_v37, 0.0  ;;  %v430_v47 = vmax.f32 %v398_v40, 0.0 }
  0x2f   : > { %1192 = vmatmul.mubr.bf16.gmra.mrb[4].mxu0 %v450_v2  ;;  %1208 = vmatmul.mubr.bf16.gmra.mrb[4].mxu1 %v458_v8  ;;  %v445_v48 = vmax.f32 %v413_v7, 0.0  ;;  %v446_v49 = vmax.f32 %v414_v41, 0.0 }
  0x30   : > { %1195 = vmatprep.mubr.bf16.mxu0 %v451_v9  ;;  %1211 = vmatprep.mubr.bf16.mxu1 %v459_v11  ;;  %v454_v51 = vpack.c.bf16 %v430_v47, %v429_v46 }
  0x31   : > { %917 = vperm.xlu1 %1245, %v815_v14   ;;  %912 = vperm.xlu0 %1244, %v814_v26   ;;  %v462_v52 = vpack.c.bf16 %v446_v49, %v445_v48 }
  0x35   : > { %927 = vperm.xlu1 %1245, %v817_v31   ;;  %922 = vperm.xlu0 %1244, %v816_v38  }
  0x37   : > { %1196 = vmatmul.mubr.bf16.gmra.mrb[8].mxu0 %v452_v36  ;;  %1212 = vmatmul.mubr.bf16.gmra.mrb[8].mxu1 %v460_v39 }
  0x38   : > { %1199 = vmatprep.mubr.bf16.mxu0 %v453_v43  ;;  %1215 = vmatprep.mubr.bf16.mxu1 %v461_v44 }
  0x39   : > { %937 = vperm.xlu1 %1245, %v819_v42   ;;  %932 = vperm.xlu0 %1244, %v818_v45  }
  0x3d   : > { %947 = vperm.xlu1 %1245, %v821_v50   ;;  %942 = vperm.xlu0 %1244, %v820_v10  }
  0x3f   : > { %1200 = vmatmul.mubr.bf16.gmra.mrb[12].mxu0 %v454_v51  ;;  %1216 = vmatmul.mubr.bf16.gmra.mrb[12].mxu1 %v462_v52 }
  0x41   : > { %957 = vperm.xlu1 %1245, %v823_v53   ;;  %952 = vperm.xlu0 %1244, %v822_v54  }
  0x45   : > { %967 = vperm.xlu1 %1245, %v825_v55   ;;  %962 = vperm.xlu0 %1244, %v824_v56  }
  0x49   : > { %977 = vperm.xlu1 %1245, %v827_v57   ;;  %972 = vperm.xlu0 %1244, %v826_v58  }
  0x4d   : > { %987 = vperm.xlu1 %1245, %v829_v59   ;;  %982 = vperm.xlu0 %1244, %v828_v60  }
  0x90   : > { %v843_v61 = vpop.permute.xlu1 %842  ;;  %v833_v62 = vpop.permute.xlu0 %832 }
  0x94   : > { %v1487_v63 = vpop.permute.xlu1 %847  ;;  %v1489_v0 = vpop.permute.xlu0 %837 }
  0x98   : > { %v1491_v1 = vpop.permute.xlu1 %857  ;;  %v1493_v2 = vpop.permute.xlu0 %852 }
  0x9c   : > { %v1495_v3 = vpop.permute.xlu1 %867  ;;  %v1497_v4 = vpop.permute.xlu0 %862 }
  0xa0   : > { %v1499_v5 = vpop.permute.xlu1 %877  ;;  %v1501_v6 = vpop.permute.xlu0 %872 }
  0xa4   : > { %v1503_v8 = vpop.permute.xlu1 %887  ;;  %v1505_v9 = vpop.permute.xlu0 %882 }
  0xa8   : > { %v1507_v11 = vpop.permute.xlu1 %897  ;;  %v1509_v12 = vpop.permute.xlu0 %892 }
  0xac   : > { %v1511_v13 = vpop.permute.xlu1 %907  ;;  %v1513_v14 = vpop.permute.xlu0 %902 }
  0xb0   : > { %v918_v15 = vpop.permute.xlu1 %917  ;;  %v913_v16 = vpop.permute.xlu0 %912 }
  0xb4   : > { %v928_v17 = vpop.permute.xlu1 %927  ;;  %v923_v18 = vpop.permute.xlu0 %922 }
  0xb8   : > { %v1515_v19 = vpop.permute.xlu1 %937  ;;  %v1517_v20 = vpop.permute.xlu0 %932 }
  0xbc   : > { %v1524_v22 = vpop.permute.xlu1 %947  ;;  %v1526_v23 = vpop.permute.xlu0 %942 }
  0xc0   : > { %v1555_v51 = vpop.permute.xlu1 %957  ;;  %v1557_v52 = vpop.permute.xlu0 %952 }
  0xfa   : > { %v1189_v24 = vpop.f32.mrb[0].mxu0  ;;  %v1205_v26 = vpop.f32.mrb[0].mxu1 }
  0xfb   : > { %v697_v27 = vmul.f32 %v1189_v24, %v1522_v21  ;;  %v713_v28 = vmul.f32 %v1205_v26, %v1522_v21  ;;  %v561_v29 = vpop.f32.mrb[1].mxu0  ;;  %v625_v30 = vpop.f32.mrb[1].mxu1 }
  0xfc   : > { %v695_v31 = vmul.f32 %v1522_v21, %v561_v29  ;;  %v711_v32 = vmul.f32 %v1522_v21, %v625_v30  ;;  %v1190_v33 = vpop.f32.mrb[2].mxu0  ;;  %v1206_v34 = vpop.f32.mrb[2].mxu1 }
  0xfd   : > { %v736_v35 = vadd.f32 %v1531_v25, %v697_v27  ;;  %v752_v36 = vadd.f32 %v1531_v25, %v713_v28  ;;  %v698_v37 = vmul.f32 %v1190_v33, %v1522_v21  ;;  %v714_v38 = vmul.f32 %v1206_v34, %v1522_v21  ;;  %v564_v39 = vpop.f32.mrb[3].mxu0  ;;  %v628_v40 = vpop.f32.mrb[3].mxu1 }
  0xfe   : > { %v734_v7 = vadd.f32 %v1531_v25, %v695_v31  ;;  %v750_v41 = vadd.f32 %v1531_v25, %v711_v32  ;;  %v696_v42 = vmul.f32 %v1522_v21, %v564_v39  ;;  %v712_v43 = vmul.f32 %v1522_v21, %v628_v40 }
  0xff   : > { %v768_v44 = vmax.f32 %v736_v35, 0.0  ;;  %v784_v45 = vmax.f32 %v752_v36, 0.0  ;;  %v737_v46 = vadd.f32 %v1531_v25, %v698_v37  ;;  %v753_v47 = vadd.f32 %v1531_v25, %v714_v38 }
 0x100   : > { %v766_v48 = vmax.f32 %v734_v7, 0.0  ;;  %v782_v49 = vmax.f32 %v750_v41, 0.0  ;;  %v735_v50 = vadd.f32 %v1531_v25, %v696_v42  ;;  %v751_v10 = vadd.f32 %v1531_v25, %v712_v43 }
 0x101   : > { %v992_v53 = vmul.f32 %v843_v61, %v768_v44  ;;  %v1008_v54 = vmul.f32 %v923_v18, %v784_v45  ;;  %v769_v55 = vmax.f32 %v737_v46, 0.0  ;;  %v785_v56 = vmax.f32 %v753_v47, 0.0 }
 0x102   : > { %v990_v57 = vmul.f32 %v833_v62, %v766_v48  ;;  %v1006_v58 = vmul.f32 %v913_v16, %v782_v49  ;;  %v767_v59 = vmax.f32 %v735_v50, 0.0  ;;  %v783_v60 = vmax.f32 %v751_v10, 0.0  ;;  %v1193_v24 = vpop.f32.mrb[4].mxu0  ;;  %v1209_v26 = vpop.f32.mrb[4].mxu1 }
 0x103   : > { %1024 = vst [vmem:[%s1551_s16 + $0x10] sm:$0xff] %v992_v53  ;;  %1040 = vst [vmem:[%s1551_s16 + $0x90] sm:$0xff] %v1008_v54  ;;  %v993_v27 = vmul.f32 %v1487_v63, %v769_v55  ;;  %v1009_v28 = vmul.f32 %v928_v17, %v785_v56  ;;  %v701_v61 = vmul.f32 %v1193_v24, %v1522_v21  ;;  %v577_v29 = vpop.f32.mrb[5].mxu0  ;;  %v641_v30 = vpop.f32.mrb[5].mxu1 }
 0x104   : > { %v717_v18 = vmul.f32 %v1209_v26, %v1522_v21  ;;  %1022 = vst [vmem:[%s1551_s16] sm:$0xff] %v990_v57  ;;  %1038 = vst [vmem:[%s1551_s16 + $0x80] sm:$0xff] %v1006_v58  ;;  %v991_v62 = vmul.f32 %v1489_v0, %v767_v59  ;;  %v1007_v16 = vmul.f32 %v918_v15, %v783_v60  ;;  %v1194_v33 = vpop.f32.mrb[6].mxu0  ;;  %v1210_v63 = vpop.f32.mrb[6].mxu1 }
 0x105   : > { %v699_v31 = vmul.f32 %v1522_v21, %v577_v29  ;;  %v715_v32 = vmul.f32 %v1522_v21, %v641_v30  ;;  %1025 = vst [vmem:[%s1551_s16 + $0x18] sm:$0xff] %v993_v27  ;;  %1041 = vst [vmem:[%s1551_s16 + $0x98] sm:$0xff] %v1009_v28  ;;  %v740_v17 = vadd.f32 %v1531_v25, %v701_v61  ;;  %v580_v37 = vpop.f32.mrb[7].mxu0  ;;  %v644_v38 = vpop.f32.mrb[7].mxu1 }
 0x106   : > { %v756_v34 = vadd.f32 %v1531_v25, %v717_v18  ;;  %v702_v35 = vmul.f32 %v1194_v33, %v1522_v21  ;;  %v718_v36 = vmul.f32 %v1210_v63, %v1522_v21  ;;  %1023 = vst [vmem:[%s1551_s16 + $0x8] sm:$0xff] %v991_v62  ;;  %1039 = vst [vmem:[%s1551_s16 + $0x88] sm:$0xff] %v1007_v16  ;;  %v1585_v48 = vpop.permute.xlu1 %967  ;;  %v963_v49 = vpop.permute.xlu0 %962 }
 0x107   : > { %v738_v0 = vadd.f32 %v1531_v25, %v699_v31  ;;  %v754_v15 = vadd.f32 %v1531_v25, %v715_v32  ;;  %v700_v39 = vmul.f32 %v1522_v21, %v580_v37  ;;  %v716_v40 = vmul.f32 %v1522_v21, %v644_v38 }
 0x108   : > { %v772_v7 = vmax.f32 %v740_v17, 0.0  ;;  %v788_v41 = vmax.f32 %v756_v34, 0.0  ;;  %v741_v42 = vadd.f32 %v1531_v25, %v702_v35  ;;  %v757_v43 = vadd.f32 %v1531_v25, %v718_v36 }
 0x109   : > { %v770_v44 = vmax.f32 %v738_v0, 0.0  ;;  %v786_v45 = vmax.f32 %v754_v15, 0.0  ;;  %v739_v46 = vadd.f32 %v1531_v25, %v700_v39  ;;  %v755_v47 = vadd.f32 %v1531_v25, %v716_v40 }
 0x10a   : > { %v996_v50 = vmul.f32 %v1497_v4, %v772_v7  ;;  %v1012_v10 = vmul.f32 %v1526_v23, %v788_v41  ;;  %v773_v53 = vmax.f32 %v741_v42, 0.0  ;;  %v789_v54 = vmax.f32 %v757_v43, 0.0  ;;  %v1197_v59 = vpop.f32.mrb[8].mxu0  ;;  %v1213_v60 = vpop.f32.mrb[8].mxu1 }
 0x10b   : > { %v994_v55 = vmul.f32 %v1493_v2, %v770_v44  ;;  %v1010_v56 = vmul.f32 %v1517_v20, %v786_v45  ;;  %v771_v57 = vmax.f32 %v739_v46, 0.0  ;;  %v787_v58 = vmax.f32 %v755_v47, 0.0  ;;  %v593_v27 = vpop.f32.mrb[9].mxu0  ;;  %v657_v2 = vpop.f32.mrb[9].mxu1 }
 0x10c   : > { %1028 = vst [vmem:[%s1551_s16 + $0x30] sm:$0xff] %v996_v50  ;;  %1044 = vst [vmem:[%s1551_s16 + $0xb0] sm:$0xff] %v1012_v10  ;;  %v997_v4 = vmul.f32 %v1495_v3, %v773_v53  ;;  %v1013_v23 = vmul.f32 %v1524_v22, %v789_v54  ;;  %v705_v24 = vmul.f32 %v1197_v59, %v1522_v21  ;;  %v1198_v18 = vpop.f32.mrb[10].mxu0  ;;  %v1214_v22 = vpop.f32.mrb[10].mxu1 }
 0x10d   : > { %v721_v26 = vmul.f32 %v1213_v60, %v1522_v21  ;;  %1026 = vst [vmem:[%s1551_s16 + $0x20] sm:$0xff] %v994_v55  ;;  %1042 = vst [vmem:[%s1551_s16 + $0xa0] sm:$0xff] %v1010_v56  ;;  %v995_v20 = vmul.f32 %v1491_v1, %v771_v57  ;;  %v1011_v28 = vmul.f32 %v1515_v19, %v787_v58  ;;  %v596_v31 = vpop.f32.mrb[11].mxu0  ;;  %v660_v1 = vpop.f32.mrb[11].mxu1 }
 0x10e   : > { %v703_v61 = vmul.f32 %v1522_v21, %v593_v27  ;;  %v719_v3 = vmul.f32 %v1522_v21, %v657_v2  ;;  %1029 = vst [vmem:[%s1551_s16 + $0x38] sm:$0xff] %v997_v4  ;;  %1045 = vst [vmem:[%s1551_s16 + $0xb8] sm:$0xff] %v1013_v23  ;;  %v744_v29 = vadd.f32 %v1531_v25, %v705_v24  ;;  %v1619_v39 = vpop.permute.xlu1 %977  ;;  %v973_v40 = vpop.permute.xlu0 %972 }
 0x10f   : > { %v760_v30 = vadd.f32 %v1531_v25, %v721_v26  ;;  %v706_v62 = vmul.f32 %v1198_v18, %v1522_v21  ;;  %v722_v16 = vmul.f32 %v1214_v22, %v1522_v21  ;;  %1027 = vst [vmem:[%s1551_s16 + $0x28] sm:$0xff] %v995_v20  ;;  %1043 = vst [vmem:[%s1551_s16 + $0xa8] sm:$0xff] %v1011_v28 }
 0x110   : > { %v742_v19 = vadd.f32 %v1531_v25, %v703_v61  ;;  %v758_v32 = vadd.f32 %v1531_v25, %v719_v3  ;;  %v704_v33 = vmul.f32 %v1522_v21, %v596_v31  ;;  %v720_v63 = vmul.f32 %v1522_v21, %v660_v1 }
 0x111   : > { %v776_v17 = vmax.f32 %v744_v29, 0.0  ;;  %v792_v34 = vmax.f32 %v760_v30, 0.0  ;;  %v745_v35 = vadd.f32 %v1531_v25, %v706_v62  ;;  %v761_v36 = vadd.f32 %v1531_v25, %v722_v16 }
 0x112   : > { %v774_v37 = vmax.f32 %v742_v19, 0.0  ;;  %v790_v38 = vmax.f32 %v758_v32, 0.0  ;;  %v743_v0 = vadd.f32 %v1531_v25, %v704_v33  ;;  %v759_v15 = vadd.f32 %v1531_v25, %v720_v63  ;;  %v1201_v50 = vpop.f32.mrb[12].mxu0  ;;  %v1217_v10 = vpop.f32.mrb[12].mxu1 }
 0x113   : > { %v1000_v7 = vmul.f32 %v1505_v9, %v776_v17  ;;  %v1016_v41 = vmul.f32 %v963_v49, %v792_v34  ;;  %v777_v42 = vmax.f32 %v745_v35, 0.0  ;;  %v793_v43 = vmax.f32 %v761_v36, 0.0  ;;  %v609_v55 = vpop.f32.mrb[13].mxu0  ;;  %v983_v18 = vpop.permute.xlu0 %982 }
 0x114   : > { %v998_v44 = vmul.f32 %v1501_v6, %v774_v37  ;;  %v1014_v45 = vmul.f32 %v1557_v52, %v790_v38  ;;  %v775_v46 = vmax.f32 %v743_v0, 0.0  ;;  %v791_v47 = vmax.f32 %v759_v15, 0.0  ;;  %v673_v6 = vpop.f32.mrb[13].mxu1  ;;  %v1202_v58 = vpop.f32.mrb[14].mxu0 }
 0x115   : > { %1032 = vst [vmem:[%s1551_s16 + $0x50] sm:$0xff] %v1000_v7  ;;  %1048 = vst [vmem:[%s1551_s16 + $0xd0] sm:$0xff] %v1016_v41  ;;  %v1001_v53 = vmul.f32 %v1503_v8, %v777_v42  ;;  %v1017_v9 = vmul.f32 %v1585_v48, %v793_v43  ;;  %v709_v49 = vmul.f32 %v1201_v50, %v1522_v21  ;;  %v1218_v48 = vpop.f32.mrb[14].mxu1  ;;  %v612_v24 = vpop.f32.mrb[15].mxu0 }
 0x116   : > { %v725_v54 = vmul.f32 %v1217_v10, %v1522_v21  ;;  %1030 = vst [vmem:[%s1551_s16 + $0x40] sm:$0xff] %v998_v44  ;;  %1046 = vst [vmem:[%s1551_s16 + $0xc0] sm:$0xff] %v1014_v45  ;;  %v999_v52 = vmul.f32 %v1499_v5, %v775_v46  ;;  %v1015_v56 = vmul.f32 %v1555_v51, %v791_v47  ;;  %v676_v5 = vpop.f32.mrb[15].mxu1  ;;  %v988_v19 = vpop.permute.xlu1 %987 }
 0x117   : > { %v707_v57 = vmul.f32 %v1522_v21, %v609_v55  ;;  %v723_v8 = vmul.f32 %v1522_v21, %v673_v6  ;;  %1033 = vst [vmem:[%s1551_s16 + $0x58] sm:$0xff] %v1001_v53  ;;  %1049 = vst [vmem:[%s1551_s16 + $0xd8] sm:$0xff] %v1017_v9  ;;  %v748_v59 = vadd.f32 %v1531_v25, %v709_v49 }
 0x118   : > { %v764_v60 = vadd.f32 %v1531_v25, %v725_v54  ;;  %v710_v4 = vmul.f32 %v1202_v58, %v1522_v21  ;;  %v726_v23 = vmul.f32 %v1218_v48, %v1522_v21  ;;  %1031 = vst [vmem:[%s1551_s16 + $0x48] sm:$0xff] %v999_v52  ;;  %1047 = vst [vmem:[%s1551_s16 + $0xc8] sm:$0xff] %v1015_v56 }
 0x119   : > { %v746_v51 = vadd.f32 %v1531_v25, %v707_v57  ;;  %v762_v26 = vadd.f32 %v1531_v25, %v723_v8  ;;  %v708_v27 = vmul.f32 %v1522_v21, %v612_v24  ;;  %v724_v2 = vmul.f32 %v1522_v21, %v676_v5 }
 0x11a   : > { %v780_v20 = vmax.f32 %v748_v59, 0.0  ;;  %v796_v28 = vmax.f32 %v764_v60, 0.0  ;;  %v749_v61 = vadd.f32 %v1531_v25, %v710_v4  ;;  %v765_v3 = vadd.f32 %v1531_v25, %v726_v23 }
 0x11b   : > { %v778_v22 = vmax.f32 %v746_v51, 0.0  ;;  %v794_v29 = vmax.f32 %v762_v26, 0.0  ;;  %v747_v30 = vadd.f32 %v1531_v25, %v708_v27  ;;  %v763_v62 = vadd.f32 %v1531_v25, %v724_v2 }
 0x11c   : > { %v1004_v16 = vmul.f32 %v1513_v14, %v780_v20  ;;  %v1020_v21 = vmul.f32 %v983_v18, %v796_v28  ;;  %v781_v31 = vmax.f32 %v749_v61, 0.0  ;;  %v797_v1 = vmax.f32 %v765_v3, 0.0 }
 0x11d   : > { %v1002_v32 = vmul.f32 %v1509_v12, %v778_v22  ;;  %v1018_v33 = vmul.f32 %v973_v40, %v794_v29  ;;  %v779_v63 = vmax.f32 %v747_v30, 0.0  ;;  %v795_v17 = vmax.f32 %v763_v62, 0.0 }
 0x11e   : > { %1036 = vst [vmem:[%s1551_s16 + $0x70] sm:$0xff] %v1004_v16  ;;  %1052 = vst [vmem:[%s1551_s16 + $0xf0] sm:$0xff] %v1020_v21  ;;  %v1005_v34 = vmul.f32 %v1511_v13, %v781_v31  ;;  %v1021_v25 = vmul.f32 %v988_v19, %v797_v1 }
 0x11f   : > { %1034 = vst [vmem:[%s1551_s16 + $0x60] sm:$0xff] %v1002_v32  ;;  %1050 = vst [vmem:[%s1551_s16 + $0xe0] sm:$0xff] %v1018_v33  ;;  %v1003_v14 = vmul.f32 %v1507_v11, %v779_v63  ;;  %v1019_v35 = vmul.f32 %v1619_v39, %v795_v17 }
 0x120   : > { %1037 = vst [vmem:[%s1551_s16 + $0x78] sm:$0xff] %v1005_v34  ;;  %1053 = vst [vmem:[%s1551_s16 + $0xf8] sm:$0xff] %v1021_v25 }
 0x121   : > { %1035 = vst [vmem:[%s1551_s16 + $0x68] sm:$0xff] %v1003_v14  ;;  %1051 = vst [vmem:[%s1551_s16 + $0xe8] sm:$0xff] %v1019_v35 }
 0x122 PF: > { %s17_s24 = sadd.s32 1, %s1260_s24  }
 0x123   : > { %p14_p4 = scmp.ge.s32.totalorder %s17_s24, 4  }
 0x125   :  { %16 = sbr.rel (!%p14_p4) target bundleno = 1 (0x1), region = 81 }

// kernel: densenet_forward.21
= control target key start
LH: loop header
LB: loop body
LE: loop exit
PB: predicated region body
PF: predicated region fallthrough
CT: control target
= control target key end

     0   :  { %s1035_s21 = smov 0   ;;  %s1441_s0 = inlined_call_operand.vmem [shape: f32[512,128], index: 0, kind: input, shape index: {}]   ;;  %s1442_s1 = inlined_call_operand.vmem [shape: bf16[128,128], index: 1, kind: input, shape index: {}]   ;;  %s1443_s2 = inlined_call_operand.vmem [shape: f32[1,128], index: 2, kind: input, shape index: {}]   ;;  %s1444_s3 = inlined_call_operand.vmem [shape: f32[512,128], index: 3, kind: input, shape index: {}]   ;;  %s1445_s4 = inlined_call_operand.vmem [shape: f32[1,128], index: 4, kind: input, shape index: {}]   ;;  %s1446_s5 = inlined_call_operand.vmem [shape: f32[1,128], index: 5, kind: input, shape index: {}]   ;;  %s1447_s6 = inlined_call_operand.vmem [shape: f32[512,128], index: 6, kind: output, shape index: {}]  }
   0x1 LB: > { %s864_s22 = sadd.s32 4294967295, %s998_s21   ;;  %p868_p0 = scmp.ge.s32.totalorder %s998_s21, 1  ;;  %s998_s21 = sphi %s1035_s21, %s16_s21  }
   0x2   : > { %p224_p1 = scmp.lt.s32.totalorder %s998_s21, 3 }
   0x4   : > { %p225_p2 = pnand %p868_p0, %p224_p1 }
   0x5   : > { %v984_v0 = vld [vmem:[%s1442_s1] sm:$0xff] (!%p225_p2)   ;;  %s869_s25 = sshll.u32 (!%p225_p2), %s864_s22, 5  ;;  %v985_v1 = vld [vmem:[%s1442_s1 + $0x8] sm:$0xff] (!%p225_p2)   ;;  %v986_v2 = vld [vmem:[%s1442_s1 + $0x10] sm:$0xff] (!%p225_p2)  }
   0x6   : > { %228 = sbr.rel (%p225_p2) target bundleno = 285 (0x11d), region = 44  ;;  %p260_p3 = scmp.lt.s32.totalorder (!%p225_p2), %s869_s25, 63  ;;  %912 = vmatprep.subr.bf16.mxu0 (!%p225_p2), %v984_v0  ;;  %960 = vmatprep.subr.bf16.mxu1 (!%p225_p2), %v984_v0  ;;  %v987_v3 = vld [vmem:[%s1442_s1 + $0x18] sm:$0xff] (!%p225_p2)   ;;  %v988_v10 = vld [vmem:[%s1442_s1 + $0x20] sm:$0xff] (!%p225_p2)   ;;  %v989_v11 = vld [vmem:[%s1442_s1 + $0x28] sm:$0xff] (!%p225_p2)  }
   0x7   : > { %913 = vmatpush3.bf16.msra.mxu0 (!%p225_p2), %v984_v0  ;;  %968 = vmatpush3.bf16.msra.mxu1 (!%p225_p2), %v984_v0  ;;  %v990_v12 = vld [vmem:[%s1442_s1 + $0x30] sm:$0xff] (!%p225_p2)   ;;  %v991_v13 = vld [vmem:[%s1442_s1 + $0x38] sm:$0xff] (!%p225_p2)   ;;  %v1117_v57 = vld [vmem:[%s1445_s4] ss:$0 sm:$0xff] (!%p225_p2) }
   0x8   : > { %914 = vmatprep.subr.bf16.mxu0 (!%p225_p2), %v985_v1  ;;  %961 = vmatprep.subr.bf16.mxu1 (!%p225_p2), %v985_v1 }
   0xb   : > { %915 = vmatpush3.bf16.msra.mxu0 (!%p225_p2), %v985_v1  ;;  %969 = vmatpush3.bf16.msra.mxu1 (!%p225_p2), %v985_v1 }
   0xc   : > { %916 = vmatprep.subr.bf16.mxu0 (!%p225_p2), %v986_v2  ;;  %962 = vmatprep.subr.bf16.mxu1 (!%p225_p2), %v986_v2 }
   0xd   : > { %s1449_s25 = smov (!%p260_p3, %s869_s25), 63 }
   0xe   : > { %s1052_s30 = sshll.u32 %s1449_s25, 3 }
   0xf   : > { %s1058_s9 = scalar_lea.vmem %s1441_s0, %s1052_s30  ;;  %917 = vmatpush3.bf16.msra.mxu0 %v986_v2  ;;  %970 = vmatpush3.bf16.msra.mxu1 %v986_v2  ;;  %s1111_s23 = scalar_lea.vmem %s1444_s3, %s1052_s30  ;;  %v1130_v2 = vld [vmem:[%s1446_s5] ss:$0 sm:$0xff] }
  0x10   : > { %v278_v4 = vld [vmem:[%s1058_s9] sm:$0xff]  ;;  %v279_v5 = vld [vmem:[%s1058_s9 + $0x8] sm:$0xff]  ;;  %918 = vmatprep.subr.bf16.mxu0 %v987_v3  ;;  %963 = vmatprep.subr.bf16.mxu1 %v987_v3  ;;  %v280_v14 = vld [vmem:[%s1058_s9 + $0x10] sm:$0xff] }
  0x11   : > { %v294_v6 = vld [vmem:[%s1058_s9 + $0x80] sm:$0xff]  ;;  %v310_v7 = vpack.c.bf16 %v279_v5, %v278_v4  ;;  %v295_v8 = vld [vmem:[%s1058_s9 + $0x88] sm:$0xff]  ;;  %v281_v15 = vld [vmem:[%s1058_s9 + $0x18] sm:$0xff] }
  0x12   : > { %v318_v9 = vpack.c.bf16 %v295_v8, %v294_v6  ;;  %v296_v16 = vld [vmem:[%s1058_s9 + $0x90] sm:$0xff]  ;;  %v297_v17 = vld [vmem:[%s1058_s9 + $0x98] sm:$0xff]  ;;  %v282_v18 = vld [vmem:[%s1058_s9 + $0x20] sm:$0xff]  ;;  %v311_v22 = vpack.c.bf16 %v281_v15, %v280_v14 }
  0x13   : > { %928 = vmatprep.mubr.bf16.mxu0 %v310_v7  ;;  %919 = vmatpush3.bf16.msra.mxu0 %v987_v3  ;;  %v283_v19 = vld [vmem:[%s1058_s9 + $0x28] sm:$0xff]  ;;  %v298_v20 = vld [vmem:[%s1058_s9 + $0xa0] sm:$0xff]  ;;  %v319_v23 = vpack.c.bf16 %v297_v17, %v296_v16  ;;  %v284_v26 = vld [vmem:[%s1058_s9 + $0x30] sm:$0xff] }
  0x14   : > { %944 = vmatprep.mubr.bf16.mxu1 %v318_v9  ;;  %971 = vmatpush3.bf16.msra.mxu1 %v987_v3  ;;  %v299_v21 = vld [vmem:[%s1058_s9 + $0xa8] sm:$0xff]  ;;  %v312_v24 = vpack.c.bf16 %v283_v19, %v282_v18  ;;  %v285_v27 = vld [vmem:[%s1058_s9 + $0x38] sm:$0xff]  ;;  %v300_v28 = vld [vmem:[%s1058_s9 + $0xb0] sm:$0xff] }
  0x15   : > { %920 = vmatprep.subr.bf16.mxu0 %v988_v10  ;;  %964 = vmatprep.subr.bf16.mxu1 %v988_v10  ;;  %v320_v25 = vpack.c.bf16 %v299_v21, %v298_v20  ;;  %v301_v29 = vld [vmem:[%s1058_s9 + $0xb8] sm:$0xff]  ;;  %v286_v30 = vld [vmem:[%s1058_s9 + $0x40] sm:$0xff]  ;;  %v287_v31 = vld [vmem:[%s1058_s9 + $0x48] sm:$0xff]  ;;  %v313_v34 = vpack.c.bf16 %v285_v27, %v284_v26 }
  0x16   : > { %v302_v32 = vld [vmem:[%s1058_s9 + $0xc0] sm:$0xff]  ;;  %v303_v33 = vld [vmem:[%s1058_s9 + $0xc8] sm:$0xff]  ;;  %v321_v35 = vpack.c.bf16 %v301_v29, %v300_v28  ;;  %v314_v36 = vpack.c.bf16 %v287_v31, %v286_v30  ;;  %v288_v38 = vld [vmem:[%s1058_s9 + $0x50] sm:$0xff] }
  0x17   : > { %921 = vmatpush3.bf16.msra.mxu0 %v988_v10  ;;  %v322_v37 = vpack.c.bf16 %v303_v33, %v302_v32  ;;  %v289_v39 = vld [vmem:[%s1058_s9 + $0x58] sm:$0xff]  ;;  %v304_v40 = vld [vmem:[%s1058_s9 + $0xd0] sm:$0xff]  ;;  %v290_v42 = vld [vmem:[%s1058_s9 + $0x60] sm:$0xff] }
  0x18   : > { %972 = vmatpush3.bf16.msra.mxu1 %v988_v10  ;;  %922 = vmatprep.subr.bf16.mxu0 %v989_v11  ;;  %v305_v41 = vld [vmem:[%s1058_s9 + $0xd8] sm:$0xff]  ;;  %v291_v43 = vld [vmem:[%s1058_s9 + $0x68] sm:$0xff]  ;;  %v306_v44 = vld [vmem:[%s1058_s9 + $0xe0] sm:$0xff]  ;;  %v315_v46 = vpack.c.bf16 %v289_v39, %v288_v38 }
  0x19   : > { %965 = vmatprep.subr.bf16.mxu1 %v989_v11  ;;  %v307_v45 = vld [vmem:[%s1058_s9 + $0xe8] sm:$0xff]  ;;  %v323_v47 = vpack.c.bf16 %v305_v41, %v304_v40  ;;  %v316_v48 = vpack.c.bf16 %v291_v43, %v290_v42  ;;  %v292_v50 = vld [vmem:[%s1058_s9 + $0x70] sm:$0xff]  ;;  %v293_v51 = vld [vmem:[%s1058_s9 + $0x78] sm:$0xff] }
  0x1a   : > { %v324_v49 = vpack.c.bf16 %v307_v45, %v306_v44  ;;  %v308_v52 = vld [vmem:[%s1058_s9 + $0xf0] sm:$0xff]  ;;  %v309_v53 = vld [vmem:[%s1058_s9 + $0xf8] sm:$0xff]  ;;  %v317_v54 = vpack.c.bf16 %v293_v51, %v292_v50  ;;  %v558_v59 = vld [vmem:[%s1111_s23] sm:$0xff]  ;;  %s1286_s9 = scalar_lea.vmem %s1447_s6, %s1052_s30 }
  0x1b   : > { %923 = vmatpush3.bf16.msra.mxu0 %v989_v11  ;;  %v325_v55 = vpack.c.bf16 %v309_v53, %v308_v52  ;;  %v560_v56 = vld [vmem:[%s1111_s23 + $0x10] sm:$0xff]  ;;  %v574_v60 = vld [vmem:[%s1111_s23 + $0x80] sm:$0xff]  ;;  %v561_v61 = vld [vmem:[%s1111_s23 + $0x18] sm:$0xff]  ;;  %v597_v4 = vmul.f32 %v1117_v57, %v558_v59 }
  0x1c   : > { %973 = vmatpush3.bf16.msra.mxu1 %v989_v11  ;;  %924 = vmatprep.subr.bf16.mxu0 %v990_v12  ;;  %v576_v58 = vld [vmem:[%s1111_s23 + $0x90] sm:$0xff]  ;;  %v577_v62 = vld [vmem:[%s1111_s23 + $0x98] sm:$0xff]  ;;  %v599_v63 = vmul.f32 %v1117_v57, %v560_v56  ;;  %v559_v0 = vld [vmem:[%s1111_s23 + $0x8] sm:$0xff]  ;;  %v613_v5 = vmul.f32 %v1117_v57, %v574_v60  ;;  %v600_v6 = vmul.f32 %v1117_v57, %v561_v61 }
  0x1d   : > { %966 = vmatprep.subr.bf16.mxu1 %v990_v12  ;;  %v575_v1 = vld [vmem:[%s1111_s23 + $0x88] sm:$0xff]  ;;  %v615_v3 = vmul.f32 %v1117_v57, %v576_v58  ;;  %v616_v7 = vmul.f32 %v1117_v57, %v577_v62  ;;  %v598_v8 = vmul.f32 %v1117_v57, %v559_v0  ;;  %v564_v18 = vld [vmem:[%s1111_s23 + $0x30] sm:$0xff]  ;;  %v562_v20 = vld [vmem:[%s1111_s23 + $0x20] sm:$0xff] }
  0x1e   : > { %v614_v9 = vmul.f32 %v1117_v57, %v575_v1  ;;  %v1140_v10 = vadd.f32 %v1130_v2, %v599_v63  ;;  %v1152_v14 = vadd.f32 %v1130_v2, %v600_v6  ;;  %v580_v19 = vld [vmem:[%s1111_s23 + $0xb0] sm:$0xff]  ;;  %v563_v28 = vld [vmem:[%s1111_s23 + $0x28] sm:$0xff]  ;;  %v603_v33 = vmul.f32 %v1117_v57, %v564_v18  ;;  %v569_v42 = vld [vmem:[%s1111_s23 + $0x58] sm:$0xff] }
  0x1f   : > { %925 = vmatpush3.bf16.msra.mxu0 %v990_v12  ;;  %v1143_v11 = vadd.f32 %v1130_v2, %v615_v3  ;;  %v1155_v15 = vadd.f32 %v1130_v2, %v616_v7  ;;  %v1158_v16 = vadd.f32 %v1130_v2, %v598_v8  ;;  %v579_v29 = vld [vmem:[%s1111_s23 + $0xa8] sm:$0xff]  ;;  %v568_v30 = vld [vmem:[%s1111_s23 + $0x50] sm:$0xff]  ;;  %v601_v40 = vmul.f32 %v1117_v57, %v562_v20  ;;  %v585_v43 = vld [vmem:[%s1111_s23 + $0xd8] sm:$0xff] }
  0x20   : > { %974 = vmatpush3.bf16.msra.mxu1 %v990_v12  ;;  %926 = vmatprep.subr.bf16.mxu0 %v991_v13  ;;  %v1146_v12 = vadd.f32 %v1130_v2, %v597_v4  ;;  %v1161_v17 = vadd.f32 %v1130_v2, %v614_v9  ;;  %v670_v21 = vmax.f32 %v1140_v10, 0.0  ;;  %v671_v31 = vmax.f32 %v1152_v14, 0.0  ;;  %v1250_v20 = vld [vmem:[%s1443_s2] ss:$0 sm:$0xff]  ;;  %v589_v14 = vld [vmem:[%s1111_s23 + $0xf8] sm:$0xff] }
  0x21   : > { %967 = vmatprep.subr.bf16.mxu1 %v991_v13  ;;  %v687_v32 = vmax.f32 %v1155_v15, 0.0  ;;  %v669_v38 = vmax.f32 %v1158_v16, 0.0  ;;  %v607_v50 = vmul.f32 %v1117_v57, %v568_v30  ;;  %v608_v56 = vmul.f32 %v1117_v57, %v569_v42 }
  0x22   : > { %v668_v26 = vmax.f32 %v1146_v12, 0.0  ;;  %v685_v39 = vmax.f32 %v1161_v17, 0.0  ;;  %v624_v58 = vmul.f32 %v1117_v57, %v585_v43  ;;  %v1208_v59 = vadd.f32 %v1130_v2, %v601_v40 }
  0x23   : > { %927 = vmatpush3.bf16.msra.mxu0 %v991_v13  ;;  %v1228_v4 = vadd.f32 %v1130_v2, %v607_v50  ;;  %v1242_v18 = vadd.f32 %v1130_v2, %v608_v56 }
  0x24   : > { %975 = vmatpush3.bf16.msra.mxu1 %v991_v13  ;;  %v1149_v13 = vadd.f32 %v1130_v2, %v613_v5 }
  0x26   : > { %929 = vmatmul.mubr.bf16.vlgmr.msra.gmra.mrb[0].mxu0 %v311_v22  ;;  %v578_v22 = vld [vmem:[%s1111_s23 + $0xa0] sm:$0xff]  ;;  %v684_v27 = vmax.f32 %v1149_v13, 0.0 }
  0x27   : > { %945 = vmatmul.mubr.bf16.vlgmr.msra.gmra.mrb[0].mxu1 %v319_v23  ;;  %932 = vmatprep.mubr.bf16.mxu0 %v312_v24  ;;  %v565_v23 = vld [vmem:[%s1111_s23 + $0x38] sm:$0xff]  ;;  %v617_v41 = vmul.f32 %v1117_v57, %v578_v22  ;;  %v672_v22 = vmax.f32 %v1208_v59, 0.0  ;;  %v570_v13 = vld [vmem:[%s1111_s23 + $0x60] sm:$0xff] }
  0x28   : > { %948 = vmatprep.mubr.bf16.mxu1 %v320_v25  ;;  %v581_v24 = vld [vmem:[%s1111_s23 + $0xb8] sm:$0xff]  ;;  %v686_v25 = vmax.f32 %v1143_v11, 0.0  ;;  %v604_v44 = vmul.f32 %v1117_v57, %v565_v23 }
  0x29   : > { %v620_v45 = vmul.f32 %v1117_v57, %v581_v24  ;;  %v1211_v60 = vadd.f32 %v1130_v2, %v617_v41 }
  0x2a   : > { %v1216_v63 = vadd.f32 %v1130_v2, %v604_v44 }
  0x2b   : > { %v1219_v0 = vadd.f32 %v1130_v2, %v620_v45  ;;  %v688_v23 = vmax.f32 %v1211_v60, 0.0 }
  0x2d   : > { %v691_v30 = vmax.f32 %v1219_v0, 0.0 }
  0x2e   : > { %933 = vmatmul.mubr.bf16.gmra.mrb[4].mxu0 %v313_v34  ;;  %v619_v34 = vmul.f32 %v1117_v57, %v580_v19  ;;  %v1245_v19 = vadd.f32 %v1130_v2, %v624_v58 }
  0x2f   : > { %949 = vmatmul.mubr.bf16.gmra.mrb[4].mxu1 %v321_v35  ;;  %936 = vmatprep.mubr.bf16.mxu0 %v314_v36  ;;  %v584_v35 = vld [vmem:[%s1111_s23 + $0xd0] sm:$0xff]  ;;  %v566_v36 = vld [vmem:[%s1111_s23 + $0x40] sm:$0xff] }
  0x30   : > { %952 = vmatprep.mubr.bf16.mxu1 %v322_v37  ;;  %v582_v37 = vld [vmem:[%s1111_s23 + $0xc0] sm:$0xff]  ;;  %v623_v51 = vmul.f32 %v1117_v57, %v584_v35  ;;  %v605_v52 = vmul.f32 %v1117_v57, %v566_v36 }
  0x31   : > { %v621_v53 = vmul.f32 %v1117_v57, %v582_v37  ;;  %v678_v37 = vmax.f32 %v1228_v4, 0.0 }
  0x32   : > { %v1231_v5 = vadd.f32 %v1130_v2, %v623_v51  ;;  %v1234_v6 = vadd.f32 %v1130_v2, %v605_v52 }
  0x33   : > { %v1237_v7 = vadd.f32 %v1130_v2, %v621_v53 }
  0x34   : > { %v694_v40 = vmax.f32 %v1231_v5, 0.0  ;;  %v676_v41 = vmax.f32 %v1234_v6, 0.0 }
  0x35   : > { %v692_v42 = vmax.f32 %v1237_v7, 0.0 }
  0x36   : > { %937 = vmatmul.mubr.bf16.gmra.mrb[8].mxu0 %v315_v46  ;;  %v602_v46 = vmul.f32 %v1117_v57, %v563_v28 }
  0x37   : > { %953 = vmatmul.mubr.bf16.gmra.mrb[8].mxu1 %v323_v47  ;;  %940 = vmatprep.mubr.bf16.mxu0 %v316_v48  ;;  %v618_v47 = vmul.f32 %v1117_v57, %v579_v29  ;;  %v567_v48 = vld [vmem:[%s1111_s23 + $0x48] sm:$0xff]  ;;  %v675_v29 = vmax.f32 %v1216_v63, 0.0 }
  0x38   : > { %956 = vmatprep.mubr.bf16.mxu1 %v324_v49  ;;  %v583_v49 = vld [vmem:[%s1111_s23 + $0xc8] sm:$0xff]  ;;  %v606_v61 = vmul.f32 %v1117_v57, %v567_v48  ;;  %v1222_v1 = vadd.f32 %v1130_v2, %v602_v46  ;;  %v695_v48 = vmax.f32 %v1245_v19, 0.0 }
  0x39   : > { %v622_v62 = vmul.f32 %v1117_v57, %v583_v49  ;;  %v1225_v3 = vadd.f32 %v1130_v2, %v618_v47  ;;  %v679_v47 = vmax.f32 %v1242_v18, 0.0 }
  0x3a   : > { %v1255_v24 = vadd.f32 %v1130_v2, %v606_v61 }
  0x3b   : > { %v1258_v28 = vadd.f32 %v1130_v2, %v622_v62 }
  0x3c   : > { %v677_v53 = vmax.f32 %v1255_v24, 0.0 }
  0x3d   : > { %v693_v56 = vmax.f32 %v1258_v28, 0.0 }
  0x3e   : > { %941 = vmatmul.mubr.bf16.gmra.mrb[12].mxu0 %v317_v54  ;;  %v1200_v54 = vadd.f32 %v1130_v2, %v603_v33  ;;  %v673_v33 = vmax.f32 %v1222_v1, 0.0 }
  0x3f   : > { %957 = vmatmul.mubr.bf16.gmra.mrb[12].mxu1 %v325_v55  ;;  %v1203_v55 = vadd.f32 %v1130_v2, %v619_v34  ;;  %v689_v34 = vmax.f32 %v1225_v3, 0.0 }
  0x40   : > { %v674_v8 = vmax.f32 %v1200_v54, 0.0 }
  0x41   : > { %v690_v9 = vmax.f32 %v1203_v55, 0.0 }
  0xf9   : > { %v930_v35 = vpop.f32.mrb[0].mxu0 }
  0xfa   : > { %v946_v36 = vpop.f32.mrb[0].mxu1  ;;  %v440_v43 = vadd.f32 %v930_v35, %v1250_v20  ;;  %v431_v45 = vpop.f32.mrb[1].mxu0 }
  0xfb   : > { %v504_v44 = vadd.f32 %v946_v36, %v1250_v20  ;;  %v495_v46 = vpop.f32.mrb[1].mxu1  ;;  %v432_v49 = vadd.f32 %v1250_v20, %v431_v45  ;;  %v931_v51 = vpop.f32.mrb[2].mxu0 }
  0xfc   : > { %v496_v50 = vadd.f32 %v1250_v20, %v495_v46  ;;  %v947_v52 = vpop.f32.mrb[2].mxu1  ;;  %v702_v58 = vadd.f32 %v670_v21, %v440_v43  ;;  %v443_v62 = vadd.f32 %v931_v51, %v1250_v20  ;;  %v434_v36 = vpop.f32.mrb[3].mxu0  ;;  %v572_v43 = vld [vmem:[%s1111_s23 + $0x70] sm:$0xff] }
  0xfd   : > { %v718_v61 = vadd.f32 %v686_v25, %v504_v44  ;;  %v507_v35 = vadd.f32 %v947_v52, %v1250_v20  ;;  %v498_v45 = vpop.f32.mrb[3].mxu1  ;;  %v700_v10 = vadd.f32 %v668_v26, %v432_v49  ;;  %v435_v21 = vadd.f32 %v1250_v20, %v434_v36  ;;  %v588_v44 = vld [vmem:[%s1111_s23 + $0xf0] sm:$0xff]  ;;  %v586_v26 = vld [vmem:[%s1111_s23 + $0xe0] sm:$0xff]  ;;  %v587_v36 = vld [vmem:[%s1111_s23 + $0xe8] sm:$0xff] }
  0xfe   : > { %v716_v11 = vadd.f32 %v684_v27, %v496_v50  ;;  %v499_v25 = vadd.f32 %v1250_v20, %v498_v45  ;;  %v734_v46 = vmax.f32 %v702_v58, 0.0  ;;  %v703_v52 = vadd.f32 %v671_v31, %v443_v62 }
  0xff   : > { %v750_v51 = vmax.f32 %v718_v61, 0.0  ;;  %v719_v12 = vadd.f32 %v687_v32, %v507_v35  ;;  %v732_v27 = vmax.f32 %v700_v10, 0.0  ;;  %v701_v50 = vadd.f32 %v669_v38, %v435_v21  ;;  %v573_v61 = vld [vmem:[%s1111_s23 + $0x78] sm:$0xff]  ;;  %v571_v35 = vld [vmem:[%s1111_s23 + $0x68] sm:$0xff] }
 0x100   : > { %v748_v49 = vmax.f32 %v716_v11, 0.0  ;;  %v717_v58 = vadd.f32 %v685_v39, %v499_v25  ;;  %766 = vst [vmem:[%s1286_s9 + $0x10] sm:$0xff] %v734_v46  ;;  %v735_v15 = vmax.f32 %v703_v52, 0.0  ;;  %v611_v32 = vmul.f32 %v1117_v57, %v572_v43 }
 0x101   : > { %782 = vst [vmem:[%s1286_s9 + $0x90] sm:$0xff] %v750_v51  ;;  %v751_v31 = vmax.f32 %v719_v12, 0.0  ;;  %v627_v62 = vmul.f32 %v1117_v57, %v588_v44  ;;  %764 = vst [vmem:[%s1286_s9] sm:$0xff] %v732_v27  ;;  %v733_v16 = vmax.f32 %v701_v50, 0.0  ;;  %v934_v38 = vpop.f32.mrb[4].mxu0  ;;  %v609_v45 = vmul.f32 %v1117_v57, %v570_v13 }
 0x102   : > { %780 = vst [vmem:[%s1286_s9 + $0x80] sm:$0xff] %v748_v49  ;;  %v749_v17 = vmax.f32 %v717_v58, 0.0  ;;  %v950_v39 = vpop.f32.mrb[4].mxu1  ;;  %v625_v10 = vmul.f32 %v1117_v57, %v586_v26  ;;  %767 = vst [vmem:[%s1286_s9 + $0x18] sm:$0xff] %v735_v15  ;;  %v456_v11 = vadd.f32 %v934_v38, %v1250_v20  ;;  %v447_v25 = vpop.f32.mrb[5].mxu0  ;;  %v612_v44 = vmul.f32 %v1117_v57, %v573_v61 }
 0x103   : > { %783 = vst [vmem:[%s1286_s9 + $0x98] sm:$0xff] %v751_v31  ;;  %v520_v21 = vadd.f32 %v950_v39, %v1250_v20  ;;  %v511_v43 = vpop.f32.mrb[5].mxu1  ;;  %v628_v46 = vmul.f32 %v1117_v57, %v589_v14  ;;  %765 = vst [vmem:[%s1286_s9 + $0x8] sm:$0xff] %v733_v16  ;;  %v448_v51 = vadd.f32 %v1250_v20, %v447_v25  ;;  %v935_v12 = vpop.f32.mrb[6].mxu0 }
 0x104   : > { %781 = vst [vmem:[%s1286_s9 + $0x88] sm:$0xff] %v749_v17  ;;  %v512_v52 = vadd.f32 %v1250_v20, %v511_v43  ;;  %v951_v13 = vpop.f32.mrb[6].mxu1  ;;  %v610_v26 = vmul.f32 %v1117_v57, %v571_v35  ;;  %v626_v27 = vmul.f32 %v1117_v57, %v587_v36  ;;  %v706_v49 = vadd.f32 %v674_v8, %v456_v11  ;;  %v450_v14 = vpop.f32.mrb[7].mxu0 }
 0x105   : > { %v722_v50 = vadd.f32 %v690_v9, %v520_v21  ;;  %v459_v58 = vadd.f32 %v935_v12, %v1250_v20  ;;  %v523_v61 = vadd.f32 %v951_v13, %v1250_v20  ;;  %v514_v15 = vpop.f32.mrb[7].mxu1  ;;  %v704_v31 = vadd.f32 %v672_v22, %v448_v51 }
 0x106   : > { %v720_v57 = vadd.f32 %v688_v23, %v512_v52  ;;  %v451_v54 = vadd.f32 %v1250_v20, %v450_v14  ;;  %v515_v55 = vadd.f32 %v1250_v20, %v514_v15  ;;  %v738_v8 = vmax.f32 %v706_v49, 0.0 }
 0x107   : > { %v754_v9 = vmax.f32 %v722_v50, 0.0  ;;  %v707_v35 = vadd.f32 %v675_v29, %v459_v58  ;;  %v723_v36 = vadd.f32 %v691_v30, %v523_v61  ;;  %v736_v16 = vmax.f32 %v704_v31, 0.0 }
 0x108   : > { %v752_v59 = vmax.f32 %v720_v57, 0.0  ;;  %v705_v60 = vadd.f32 %v673_v33, %v451_v54  ;;  %v721_v22 = vadd.f32 %v689_v34, %v515_v55  ;;  %770 = vst [vmem:[%s1286_s9 + $0x30] sm:$0xff] %v738_v8  ;;  %v1353_v63 = vadd.f32 %v1130_v2, %v611_v32 }
 0x109   : > { %786 = vst [vmem:[%s1286_s9 + $0xb0] sm:$0xff] %v754_v9  ;;  %v739_v23 = vmax.f32 %v707_v35, 0.0  ;;  %v755_v17 = vmax.f32 %v723_v36, 0.0  ;;  %v1356_v0 = vadd.f32 %v1130_v2, %v627_v62  ;;  %768 = vst [vmem:[%s1286_s9 + $0x20] sm:$0xff] %v736_v16  ;;  %v938_v3 = vpop.f32.mrb[8].mxu0  ;;  %v1361_v33 = vadd.f32 %v1130_v2, %v609_v45 }
 0x10a   : > { %784 = vst [vmem:[%s1286_s9 + $0xa0] sm:$0xff] %v752_v59  ;;  %v737_v1 = vmax.f32 %v705_v60, 0.0  ;;  %v753_v29 = vmax.f32 %v721_v22, 0.0  ;;  %v954_v30 = vpop.f32.mrb[8].mxu1  ;;  %v1364_v34 = vadd.f32 %v1130_v2, %v625_v10  ;;  %v472_v32 = vadd.f32 %v938_v3, %v1250_v20  ;;  %v463_v38 = vpop.f32.mrb[9].mxu0 }
 0x10b   : > { %771 = vst [vmem:[%s1286_s9 + $0x38] sm:$0xff] %v739_v23  ;;  %787 = vst [vmem:[%s1286_s9 + $0xb8] sm:$0xff] %v755_v17  ;;  %v536_v62 = vadd.f32 %v954_v30, %v1250_v20  ;;  %v527_v39 = vpop.f32.mrb[9].mxu1  ;;  %v1371_v11 = vadd.f32 %v1130_v2, %v612_v44  ;;  %v1374_v21 = vadd.f32 %v1130_v2, %v628_v46  ;;  %v939_v25 = vpop.f32.mrb[10].mxu0  ;;  %v682_v18 = vmax.f32 %v1353_v63, 0.0 }
 0x10c   : > { %769 = vst [vmem:[%s1286_s9 + $0x28] sm:$0xff] %v737_v1  ;;  %785 = vst [vmem:[%s1286_s9 + $0xa8] sm:$0xff] %v753_v29  ;;  %v464_v45 = vadd.f32 %v1250_v20, %v463_v38  ;;  %v528_v10 = vadd.f32 %v1250_v20, %v527_v39  ;;  %v955_v43 = vpop.f32.mrb[10].mxu1  ;;  %v1381_v51 = vadd.f32 %v1130_v2, %v610_v26  ;;  %v466_v49 = vpop.f32.mrb[11].mxu0  ;;  %v680_v28 = vmax.f32 %v1361_v33, 0.0 }
 0x10d   : > { %v1384_v52 = vadd.f32 %v1130_v2, %v626_v27  ;;  %v710_v44 = vadd.f32 %v678_v37, %v472_v32  ;;  %v726_v46 = vadd.f32 %v694_v40, %v536_v62  ;;  %v475_v12 = vadd.f32 %v939_v25, %v1250_v20  ;;  %v530_v50 = vpop.f32.mrb[11].mxu1 }
 0x10e   : > { %v539_v13 = vadd.f32 %v955_v43, %v1250_v20  ;;  %v708_v26 = vadd.f32 %v676_v41, %v464_v45  ;;  %v724_v2 = vadd.f32 %v692_v42, %v528_v10  ;;  %v467_v4 = vadd.f32 %v1250_v20, %v466_v49 }
 0x10f   : > { %v531_v5 = vadd.f32 %v1250_v20, %v530_v50  ;;  %v742_v37 = vmax.f32 %v710_v44, 0.0  ;;  %v758_v40 = vmax.f32 %v726_v46, 0.0  ;;  %v711_v27 = vadd.f32 %v679_v47, %v475_v12 }
 0x110   : > { %v727_v58 = vadd.f32 %v695_v48, %v539_v13  ;;  %v740_v61 = vmax.f32 %v708_v26, 0.0  ;;  %v756_v6 = vmax.f32 %v724_v2, 0.0  ;;  %v709_v7 = vadd.f32 %v677_v53, %v467_v4 }
 0x111   : > { %v725_v41 = vadd.f32 %v693_v56, %v531_v5  ;;  %774 = vst [vmem:[%s1286_s9 + $0x50] sm:$0xff] %v742_v37  ;;  %790 = vst [vmem:[%s1286_s9 + $0xd0] sm:$0xff] %v758_v40  ;;  %v743_v42 = vmax.f32 %v711_v27, 0.0  ;;  %v698_v47 = vmax.f32 %v1356_v0, 0.0  ;;  %v942_v48 = vpop.f32.mrb[12].mxu0  ;;  %v696_v56 = vmax.f32 %v1364_v34, 0.0 }
 0x112   : > { %v759_v14 = vmax.f32 %v727_v58, 0.0  ;;  %772 = vst [vmem:[%s1286_s9 + $0x40] sm:$0xff] %v740_v61  ;;  %788 = vst [vmem:[%s1286_s9 + $0xc0] sm:$0xff] %v756_v6  ;;  %v741_v19 = vmax.f32 %v709_v7, 0.0  ;;  %v958_v53 = vpop.f32.mrb[12].mxu1  ;;  %v488_v15 = vadd.f32 %v942_v48, %v1250_v20  ;;  %v479_v57 = vpop.f32.mrb[13].mxu0 }
 0x113   : > { %v757_v24 = vmax.f32 %v725_v41, 0.0  ;;  %775 = vst [vmem:[%s1286_s9 + $0x58] sm:$0xff] %v743_v42  ;;  %v552_v31 = vadd.f32 %v958_v53, %v1250_v20  ;;  %v543_v54 = vpop.f32.mrb[13].mxu1  ;;  %v683_v55 = vmax.f32 %v1371_v11, 0.0  ;;  %v699_v8 = vmax.f32 %v1374_v21, 0.0  ;;  %v943_v36 = vpop.f32.mrb[14].mxu0 }
 0x114   : > { %791 = vst [vmem:[%s1286_s9 + $0xd8] sm:$0xff] %v759_v14  ;;  %773 = vst [vmem:[%s1286_s9 + $0x48] sm:$0xff] %v741_v19  ;;  %v480_v9 = vadd.f32 %v1250_v20, %v479_v57  ;;  %v544_v35 = vadd.f32 %v1250_v20, %v543_v54  ;;  %v959_v16 = vpop.f32.mrb[14].mxu1  ;;  %v681_v59 = vmax.f32 %v1381_v51, 0.0  ;;  %v697_v60 = vmax.f32 %v1384_v52, 0.0  ;;  %v482_v0 = vpop.f32.mrb[15].mxu0 }
 0x115   : > { %789 = vst [vmem:[%s1286_s9 + $0xc8] sm:$0xff] %v757_v24  ;;  %v714_v22 = vadd.f32 %v682_v18, %v488_v15  ;;  %v730_v23 = vadd.f32 %v698_v47, %v552_v31  ;;  %v491_v17 = vadd.f32 %v943_v36, %v1250_v20  ;;  %v555_v63 = vadd.f32 %v959_v16, %v1250_v20  ;;  %v546_v1 = vpop.f32.mrb[15].mxu1 }
 0x116   : > { %v712_v29 = vadd.f32 %v680_v28, %v480_v9  ;;  %v728_v3 = vadd.f32 %v696_v56, %v544_v35  ;;  %v483_v30 = vadd.f32 %v1250_v20, %v482_v0  ;;  %v547_v33 = vadd.f32 %v1250_v20, %v546_v1 }
 0x117   : > { %v746_v34 = vmax.f32 %v714_v22, 0.0  ;;  %v762_v32 = vmax.f32 %v730_v23, 0.0  ;;  %v715_v62 = vadd.f32 %v683_v55, %v491_v17  ;;  %v731_v38 = vadd.f32 %v699_v8, %v555_v63 }
 0x118   : > { %v744_v39 = vmax.f32 %v712_v29, 0.0  ;;  %v760_v11 = vmax.f32 %v728_v3, 0.0  ;;  %v713_v21 = vadd.f32 %v681_v59, %v483_v30  ;;  %v729_v45 = vadd.f32 %v697_v60, %v547_v33 }
 0x119   : > { %778 = vst [vmem:[%s1286_s9 + $0x70] sm:$0xff] %v746_v34  ;;  %794 = vst [vmem:[%s1286_s9 + $0xf0] sm:$0xff] %v762_v32  ;;  %v747_v10 = vmax.f32 %v715_v62, 0.0  ;;  %v763_v25 = vmax.f32 %v731_v38, 0.0 }
 0x11a   : > { %776 = vst [vmem:[%s1286_s9 + $0x60] sm:$0xff] %v744_v39  ;;  %792 = vst [vmem:[%s1286_s9 + $0xe0] sm:$0xff] %v760_v11  ;;  %v745_v43 = vmax.f32 %v713_v21, 0.0  ;;  %v761_v20 = vmax.f32 %v729_v45, 0.0 }
 0x11b   : > { %779 = vst [vmem:[%s1286_s9 + $0x78] sm:$0xff] %v747_v10  ;;  %795 = vst [vmem:[%s1286_s9 + $0xf8] sm:$0xff] %v763_v25 }
 0x11c   : > { %777 = vst [vmem:[%s1286_s9 + $0x68] sm:$0xff] %v745_v43  ;;  %793 = vst [vmem:[%s1286_s9 + $0xe8] sm:$0xff] %v761_v20 }
 0x11d PF: > { %s16_s21 = sadd.s32 1, %s998_s21  }
 0x11e   : > { %p13_p4 = scmp.ge.s32.totalorder %s16_s21, 4  }
 0x120   :  { %15 = sbr.rel (!%p13_p4) target bundleno = 1 (0x1), region = 77 }

// kernel: densenet_forward.17
= control target key start
LH: loop header
LB: loop body
LE: loop exit
PB: predicated region body
PF: predicated region fallthrough
CT: control target
= control target key end

     0   :  { %v146_v49 = vlaneseq  ;;  %s9183_s2 = inlined_call_operand.vmem [shape: bf16[9,128,128], index: 2, kind: input, shape index: {}]   ;;  %s9184_s0 = inlined_call_operand.vmem [shape: f32[512,128], index: 0, kind: input, shape index: {}]   ;;  %s9185_s3 = inlined_call_operand.vmem [shape: f32[512,1], index: 3, kind: input, shape index: {}]   ;;  %s9186_s1 = inlined_call_operand.vmem [shape: f32[512,128], index: 1, kind: input, shape index: {}]   ;;  %s9187_s4 = inlined_call_operand.vmem [shape: f32[512,128], index: 4, kind: output, shape index: {}]  }
   0x1   :  { %v6526_v0 = vld [vmem:[%s9183_s2 + $0x40] sm:$0xff]   ;;  %v6528_v2 = vld [vmem:[%s9183_s2 + $0x48] sm:$0xff]   ;;  %v6530_v4 = vld [vmem:[%s9183_s2 + $0x50] sm:$0xff]  }
   0x2   :  { %v6527_v1 = vld [vmem:[%s9183_s2 + $0x100] sm:$0xff]   ;;  %5275 = vmatprep.subr.bf16.mxu1 %v6526_v0  ;;  %v6529_v3 = vld [vmem:[%s9183_s2 + $0x108] sm:$0xff]   ;;  %v6531_v5 = vld [vmem:[%s9183_s2 + $0x110] sm:$0xff]   ;;  %v6846_v54 = vshrl.u32 %v146_v49, 7 }
   0x3   :  { %5595 = vmatprep.subr.bf16.mxu0 %v6527_v1  ;;  %5276 = vmatpush3.bf16.msra.mxu1 %v6526_v0  ;;  %v6532_v6 = vld [vmem:[%s9183_s2 + $0x58] sm:$0xff]   ;;  %v6534_v8 = vld [vmem:[%s9183_s2 + $0x60] sm:$0xff]   ;;  %v6536_v10 = vld [vmem:[%s9183_s2 + $0x68] sm:$0xff]  }
   0x4   :  { %5596 = vmatpush3.bf16.msra.mxu0 %v6527_v1  ;;  %5277 = vmatprep.subr.bf16.mxu1 %v6528_v2  ;;  %v6533_v7 = vld [vmem:[%s9183_s2 + $0x118] sm:$0xff]   ;;  %v6535_v9 = vld [vmem:[%s9183_s2 + $0x120] sm:$0xff]   ;;  %v6668_v11 = vld [vmem:[%s9184_s0 + $0x1f0] sm:$0xff]  ;;  %vm148_vm0 = vcmp.lt.s32.totalorder %v6846_v54, 1  ;;  %vm1048_vm1 = vcmp.lt.s32.totalorder %v6846_v54, 7 }
   0x5   :  { %5597 = vmatprep.subr.bf16.mxu0 %v6529_v3  ;;  %v6673_v12 = vld [vmem:[%s9184_s0 + $0x1f8] sm:$0xff]  ;;  %v6678_v13 = vld [vmem:[%s9184_s0] sm:$0xff]  ;;  %v6537_v14 = vld [vmem:[%s9183_s2 + $0x128] sm:$0xff]   ;;  %v144_v55 = vrot.slane %v6668_v11, 7 }
   0x6   :  { %v6685_v15 = vpack.c.bf16 %v6673_v12, %v6668_v11  ;;  %v6690_v16 = vld [vmem:[%s9184_s0 + $0x8] sm:$0xff]  ;;  %v6538_v18 = vld [vmem:[%s9183_s2 + $0x70] sm:$0xff]   ;;  %v6540_v20 = vld [vmem:[%s9183_s2 + $0x78] sm:$0xff]   ;;  %v145_v56 = vrot.slane %v6673_v12, 7  ;;  %v82_v63 = vrot.slane %v6678_v13, 7 }
   0x7   :  { %5278 = vmatpush3.bf16.msra.mxu1 %v6528_v2  ;;  %v6694_v17 = vpack.c.bf16 %v6690_v16, %v6678_v13  ;;  %v6539_v19 = vld [vmem:[%s9183_s2 + $0x130] sm:$0xff]   ;;  %v6541_v21 = vld [vmem:[%s9183_s2 + $0x138] sm:$0xff]   ;;  %v6542_v22 = vld [vmem:[%s9183_s2] sm:$0xff]   ;;  %v9189_v0 = vrot.slane %v6690_v16, 7 }
   0x8   :  { %5598 = vmatpush3.bf16.msra.mxu0 %v6529_v3  ;;  %5279 = vmatprep.subr.bf16.mxu1 %v6530_v4  ;;  %9288 = vst [vmem:[#allocation2_spill] sm:$0xff] %v6685_v15  ;;  %v6716_v23 = vld [vmem:[%s9184_s0 + $0x10] sm:$0xff]  ;;  %v6721_v24 = vld [vmem:[%s9184_s0 + $0x18] sm:$0xff]  ;;  %v6543_v25 = vld [vmem:[%s9183_s2 + $0x140] sm:$0xff]  }
   0x9   :  { %5599 = vmatprep.subr.bf16.mxu0 %v6531_v5  ;;  %9289 = vst [vmem:[#allocation3_spill] sm:$0xff] %v6694_v17  ;;  %5291 = vmatprep.mubr.bf16.mxu1 %v6685_v15  ;;  %v6729_v26 = vld [vmem:[%s9184_s0 + $0x20] sm:$0xff]  ;;  %v6734_v27 = vld [vmem:[%s9184_s0 + $0x28] sm:$0xff]  ;;  %v6738_v28 = vpack.c.bf16 %v6721_v24, %v6716_v23  ;;  %v6755_v32 = vld [vmem:[%s9184_s0 + $0x30] sm:$0xff]  ;;  %v211_v3 = vsel %vm148_vm0, %v82_v63, %v9189_v0  ;;  %v9306_v15 = vrot.slane %v6690_v16, 7 }
   0xa   :  { %5611 = vmatprep.mubr.bf16.mxu0 %v6694_v17  ;;  %v6742_v29 = vpack.c.bf16 %v6734_v27, %v6729_v26  ;;  %v6544_v30 = vld [vmem:[%s9183_s2 + $0x148] sm:$0xff]   ;;  %v6760_v33 = vld [vmem:[%s9184_s0 + $0x38] sm:$0xff]  ;;  %v6766_v34 = vld [vmem:[%s9184_s0 + $0x40] sm:$0xff]  ;;  %v9308_v0 = vrot.slane %v6729_v26, 7 }
   0xb   :  { %5280 = vmatpush3.bf16.msra.mxu1 %v6530_v4  ;;  %9290 = vst [vmem:[#allocation4_spill] sm:$0xff] %v6738_v28  ;;  %v6545_v31 = vld [vmem:[%s9183_s2 + $0x8] sm:$0xff]   ;;  %v6548_v35 = vld [vmem:[%s9183_s2 + $0x10] sm:$0xff]   ;;  %v6782_v38 = vpack.c.bf16 %v6760_v33, %v6755_v32  ;;  %v6547_v40 = vld [vmem:[%s9183_s2 + $0x158] sm:$0xff]   ;;  %v9307_v4 = vrot.slane %v6734_v27, 7 }
   0xc   :  { %5600 = vmatpush3.bf16.msra.mxu0 %v6531_v5  ;;  %5281 = vmatprep.subr.bf16.mxu1 %v6532_v6  ;;  %9291 = vst [vmem:[#allocation5_spill] sm:$0xff] %v6742_v29  ;;  %v6775_v36 = vld [vmem:[%s9184_s0 + $0x48] sm:$0xff]  ;;  %v6546_v37 = vld [vmem:[%s9183_s2 + $0x150] sm:$0xff]   ;;  %v6551_v41 = vld [vmem:[%s9183_s2 + $0x18] sm:$0xff]  }
   0xd   :  { %5601 = vmatprep.subr.bf16.mxu0 %v6533_v7  ;;  %9292 = vst [vmem:[#allocation6_spill] sm:$0xff] %v6782_v38  ;;  %v6786_v39 = vpack.c.bf16 %v6775_v36, %v6766_v34  ;;  %v6800_v42 = vld [vmem:[%s9184_s0 + $0x50] sm:$0xff]  ;;  %v6806_v43 = vld [vmem:[%s9184_s0 + $0x58] sm:$0xff]  ;;  %v6811_v44 = vld [vmem:[%s9184_s0 + $0x60] sm:$0xff] }
   0xe   :  { %v6816_v45 = vld [vmem:[%s9184_s0 + $0x68] sm:$0xff]  ;;  %v6549_v46 = vld [vmem:[%s9183_s2 + $0x160] sm:$0xff]   ;;  %v6826_v48 = vpack.c.bf16 %v6806_v43, %v6800_v42  ;;  %v6844_v53 = vld [vmem:[%s9184_s0 + $0x70] sm:$0xff] }
   0xf   :  { %5282 = vmatpush3.bf16.msra.mxu1 %v6532_v6  ;;  %9293 = vst [vmem:[#allocation7_spill] sm:$0xff] %v6786_v39  ;;  %v6554_v47 = vld [vmem:[%s9183_s2 + $0x20] sm:$0xff]   ;;  %v6830_v50 = vpack.c.bf16 %v6816_v45, %v6811_v44  ;;  %v6550_v51 = vld [vmem:[%s9183_s2 + $0x168] sm:$0xff]   ;;  %v6854_v57 = vld [vmem:[%s9184_s0 + $0x78] sm:$0xff] }
  0x10   :  { %5602 = vmatpush3.bf16.msra.mxu0 %v6533_v7  ;;  %5283 = vmatprep.subr.bf16.mxu1 %v6534_v8  ;;  %9294 = vst [vmem:[#allocation8_spill] sm:$0xff] %v6826_v48  ;;  %v6556_v52 = vld [vmem:[%s9183_s2 + $0x28] sm:$0xff]   ;;  %v6859_v58 = vld [vmem:[%s9184_s0 + $0x80] sm:$0xff]  ;;  %v6552_v62 = vld [vmem:[%s9183_s2 + $0x170] sm:$0xff]   ;;  %v6880_v6 = vpack.c.bf16 %v6854_v57, %v6844_v53 }
  0x11   :  { %5603 = vmatprep.subr.bf16.mxu0 %v6535_v9  ;;  %9295 = vst [vmem:[#allocation9_spill] sm:$0xff] %v6830_v50  ;;  %v6866_v61 = vld [vmem:[%s9184_s0 + $0x88] sm:$0xff]  ;;  %v6915_v49 = vld [vmem:[%s9184_s0 + $0x90] sm:$0xff]  ;;  %v6928_v60 = vld [vmem:[%s9184_s0 + $0xa0] sm:$0xff] }
  0x12   :  { %9296 = vst [vmem:[#allocation10_spill] sm:$0xff] %v6880_v6  ;;  %v6933_v59 = vld [vmem:[%s9184_s0 + $0xa8] sm:$0xff]  ;;  %v6945_v7 = vld [vmem:[%s9184_s0 + $0xb0] sm:$0xff]  ;;  %v6992_v2 = vld [vmem:[%s9184_s0 + $0xe0] sm:$0xff] }
  0x13   :  { %5284 = vmatpush3.bf16.msra.mxu1 %v6534_v8  ;;  %v6969_v5 = vpack.c.bf16 %v6933_v59, %v6928_v60  ;;  %v7001_v1 = vld [vmem:[%s9184_s0 + $0xe8] sm:$0xff] }
  0x14   :  { %5604 = vmatpush3.bf16.msra.mxu0 %v6535_v9  ;;  %5285 = vmatprep.subr.bf16.mxu1 %v6536_v10  ;;  %v7058_v8 = vld [vmem:[%s9184_s0 + $0x108] sm:$0xff] }
  0x15   :  { %5605 = vmatprep.subr.bf16.mxu0 %v6537_v14  ;;  %9299 = vst [vmem:[#allocation13_spill] sm:$0xff] %v6969_v5  ;;  %v6573_v54 = vld [vmem:[%s9183_s2 + $0x1c8] sm:$0xff]  }
  0x17   :  { %5286 = vmatpush3.bf16.msra.mxu1 %v6536_v10  ;;  %v6887_v10 = vpack.c.bf16 %v6866_v61, %v6859_v58 }
  0x18   :  { %5606 = vmatpush3.bf16.msra.mxu0 %v6537_v14  ;;  %5287 = vmatprep.subr.bf16.mxu1 %v6538_v18  ;;  %v6558_v14 = vld [vmem:[%s9183_s2 + $0x30] sm:$0xff]  }
  0x19   :  { %5607 = vmatprep.subr.bf16.mxu0 %v6539_v19  ;;  %9297 = vst [vmem:[#allocation11_spill] sm:$0xff] %v6887_v10 }
  0x1b   :  { %5288 = vmatpush3.bf16.msra.mxu1 %v6538_v18  ;;  %v6950_v18 = vld [vmem:[%s9184_s0 + $0xb8] sm:$0xff] }
  0x1c   :  { %5608 = vmatpush3.bf16.msra.mxu0 %v6539_v19  ;;  %5289 = vmatprep.subr.bf16.mxu1 %v6540_v20  ;;  %v6560_v19 = vld [vmem:[%s9183_s2 + $0x38] sm:$0xff]  }
  0x1d   :  { %5609 = vmatprep.subr.bf16.mxu0 %v6541_v21 }
  0x1f   :  { %5290 = vmatpush3.bf16.msra.mxu1 %v6540_v20  ;;  %v7034_v20 = vld [vmem:[%s9184_s0 + $0x100] sm:$0xff] }
  0x20   :  { %5610 = vmatpush3.bf16.msra.mxu0 %v6541_v21  ;;  %5355 = vmatprep.subr.bf16.mxu1 %v6542_v22  ;;  %v6553_v21 = vld [vmem:[%s9183_s2 + $0x178] sm:$0xff]  }
  0x21   :  { %5675 = vmatprep.subr.bf16.mxu0 %v6543_v25 }
  0x22   :  { %5292 = vmatmul.mubr.bf16.vlgmr.msra.gmra.mrb[0].mxu1 %v6694_v17 }
  0x23   :  { %5612 = vmatmul.mubr.bf16.vlgmr.msra.gmra.mrb[0].mxu0 %v6738_v28  ;;  %5356 = vmatpush3.bf16.msra.mxu1 %v6542_v22 }
  0x24   :  { %5676 = vmatpush3.bf16.msra.mxu0 %v6543_v25  ;;  %5295 = vmatprep.mubr.bf16.mxu1 %v6738_v28  ;;  %v6961_v25 = vld [vmem:[%s9184_s0 + $0xc0] sm:$0xff]  ;;  %v9343_v28 = vrot.slane %v6716_v23, 1 }
  0x25   :  { %5615 = vmatprep.mubr.bf16.mxu0 %v6742_v29  ;;  %5677 = vmatprep.subr.bf16.mxu0 %v6544_v30 }
  0x26   :  { %5357 = vmatprep.subr.bf16.mxu1 %v6545_v31 }
  0x27   :  { %5358 = vmatpush3.bf16.msra.mxu1 %v6545_v31 }
  0x28   :  { %5678 = vmatpush3.bf16.msra.mxu0 %v6544_v30  ;;  %5359 = vmatprep.subr.bf16.mxu1 %v6548_v35  ;;  %v7015_v30 = vld [vmem:[%s9184_s0 + $0x1e8] sm:$0xff] }
  0x29   :  { %5679 = vmatprep.subr.bf16.mxu0 %v6546_v37 }
  0x2a   :  { %5296 = vmatmul.mubr.bf16.gmra.mrb[4].mxu1 %v6742_v29 }
  0x2b   :  { %5616 = vmatmul.mubr.bf16.gmra.mrb[4].mxu0 %v6782_v38  ;;  %5299 = vmatprep.mubr.bf16.mxu1 %v6782_v38 }
  0x2c   :  { %5619 = vmatprep.mubr.bf16.mxu0 %v6786_v39  ;;  %5680 = vmatpush3.bf16.msra.mxu0 %v6546_v37 }
  0x2d   :  { %5681 = vmatprep.subr.bf16.mxu0 %v6547_v40  ;;  %5360 = vmatpush3.bf16.msra.mxu1 %v6548_v35  ;;  %v9188_v35 = vrot.slane %v7015_v30, 7 }
  0x2e   :  { %5361 = vmatprep.subr.bf16.mxu1 %v6551_v41 }
  0x2f   :  { %v150_v31 = vsel %vm148_vm0, %v9188_v35, %v144_v55 }
  0x30   :  { %5682 = vmatpush3.bf16.msra.mxu0 %v6547_v40  ;;  %v149_v40 = vsel %vm148_vm0, %v144_v55, %v145_v56  ;;  %v212_v55 = vsel %vm148_vm0, %v145_v56, %v82_v63  ;;  %v9303_v56 = vrot.slane %v6721_v24, 7  ;;  %v9304_v63 = vrot.slane %v6716_v23, 7 }
  0x31   :  { %5683 = vmatprep.subr.bf16.mxu0 %v6549_v46  ;;  %5362 = vmatpush3.bf16.msra.mxu1 %v6551_v41  ;;  %v7020_v41 = vld [vmem:[%s9183_s2 + $0x80] sm:$0xff]   ;;  %v7060_v9 = vpack.c.bf16 %v149_v40, %v150_v31  ;;  %v7082_v40 = vld [vmem:[%s9184_s0 + $0x110] sm:$0xff]  ;;  %v7084_v22 = vpack.c.bf16 %v211_v3, %v212_v55 }
  0x32   :  { %5300 = vmatmul.mubr.bf16.gmra.mrb[8].mxu1 %v6786_v39  ;;  %5363 = vmatprep.subr.bf16.mxu1 %v6554_v47  ;;  %v209_v31 = vsel %vm148_vm0, %v9304_v63, %v9303_v56  ;;  %v9305_v17 = vmov %v9304_v63  ;;  %v9309_v56 = vmov %v9308_v0  ;;  %v9310_v63 = vrot.slane %v6721_v24, 7 }
  0x33   :  { %5620 = vmatmul.mubr.bf16.gmra.mrb[8].mxu0 %v6826_v48  ;;  %5303 = vmatprep.mubr.bf16.mxu1 %v6826_v48  ;;  %9301 = vst [vmem:[#allocation15_spill] sm:$0xff] %v7060_v9  ;;  %v210_v3 = vsel %vm148_vm0, %v9306_v15, %v9305_v17  ;;  %v9311_v17 = vrot.slane %v6760_v33, 7  ;;  %v9328_v48 = vrot.slane %v6811_v44, 7  ;;  %v9330_v39 = vrot.slane %v6806_v43, 7 }
  0x34   :  { %5623 = vmatprep.mubr.bf16.mxu0 %v6830_v50  ;;  %5684 = vmatpush3.bf16.msra.mxu0 %v6549_v46  ;;  %v6987_v46 = vld [vmem:[%s9184_s0 + $0xd8] sm:$0xff]  ;;  %v7102_v55 = vpack.c.bf16 %v209_v31, %v210_v3  ;;  %v9312_v31 = vrot.slane %v6755_v32, 7  ;;  %v9314_v3 = vrot.slane %v6734_v27, 7 }
  0x35   :  { %5685 = vmatprep.subr.bf16.mxu0 %v6550_v51  ;;  %5364 = vmatpush3.bf16.msra.mxu1 %v6554_v47  ;;  %v7006_v47 = vld [vmem:[%s9184_s0 + $0xf0] sm:$0xff] }
  0x36   :  { %5365 = vmatprep.subr.bf16.mxu1 %v6556_v52 }
  0x38   :  { %5686 = vmatpush3.bf16.msra.mxu0 %v6550_v51  ;;  %v6920_v51 = vld [vmem:[%s9184_s0 + $0x98] sm:$0xff] }
  0x39   :  { %5687 = vmatprep.subr.bf16.mxu0 %v6552_v62  ;;  %5366 = vmatpush3.bf16.msra.mxu1 %v6556_v52  ;;  %v6955_v37 = vpack.c.bf16 %v6920_v51, %v6915_v49  ;;  %v6980_v52 = vld [vmem:[%s9184_s0 + $0xd0] sm:$0xff] }
  0x3a   :  { %5304 = vmatmul.mubr.bf16.gmra.mrb[12].mxu1 %v6830_v50  ;;  %5367 = vmatprep.subr.bf16.mxu1 %v6558_v14  ;;  %v7172_v50 = vpack.c.bf16 %v7001_v1, %v6992_v2 }
  0x3b   :  { %5624 = vmatmul.mubr.bf16.gmra.mrb[12].mxu0 %v6880_v6  ;;  %5307 = vmatprep.mubr.bf16.mxu1 %v6880_v6  ;;  %9298 = vst [vmem:[#allocation12_spill] sm:$0xff] %v6955_v37  ;;  %v7149_v6 = vpack.c.bf16 %v6987_v46, %v6980_v52 }
  0x3c   :  { %5627 = vmatprep.mubr.bf16.mxu0 %v6887_v10  ;;  %5688 = vmatpush3.bf16.msra.mxu0 %v6552_v62  ;;  %v6938_v62 = vld [vmem:[%s9183_s2 + $0x180] sm:$0xff]   ;;  %9325 = vst [vmem:[#allocation20_spill] sm:$0xff] %v7172_v50 }
  0x3d   :  { %5689 = vmatprep.subr.bf16.mxu0 %v6553_v21  ;;  %5368 = vmatpush3.bf16.msra.mxu1 %v6558_v14  ;;  %v6975_v14 = vld [vmem:[%s9184_s0 + $0xc8] sm:$0xff]  ;;  %9319 = vst [vmem:[#allocation18_spill] sm:$0xff] %v7149_v6 }
  0x3e   :  { %5369 = vmatprep.subr.bf16.mxu1 %v6560_v19  ;;  %v7076_v35 = vpack.c.bf16 %v6975_v14, %v6961_v25 }
  0x40   :  { %5690 = vmatpush3.bf16.msra.mxu0 %v6553_v21  ;;  %v7028_v21 = vld [vmem:[%s9184_s0 + $0xf8] sm:$0xff]  ;;  %9302 = vst [vmem:[#allocation16_spill] sm:$0xff] %v7076_v35 }
  0x41   :  { %5755 = vmatprep.subr.bf16.mxu0 %v6938_v62  ;;  %5370 = vmatpush3.bf16.msra.mxu1 %v6560_v19  ;;  %v7040_v19 = vpack.c.bf16 %v6950_v18, %v6945_v7 }
  0x42   :  { %5308 = vmatmul.mubr.bf16.gmra.mrb[16].mxu1 %v6887_v10  ;;  %5435 = vmatprep.subr.bf16.mxu1 %v7020_v41  ;;  %v208_v10 = vsel %vm148_vm0, %v9310_v63, %v9309_v56 }
  0x43   :  { %5628 = vmatmul.mubr.bf16.gmra.mrb[16].mxu0 %v6955_v37  ;;  %5311 = vmatprep.mubr.bf16.mxu1 %v6955_v37  ;;  %9300 = vst [vmem:[#allocation14_spill] sm:$0xff] %v7040_v19  ;;  %v207_v37 = vsel %vm148_vm0, %v9308_v0, %v9307_v4  ;;  %v205_v0 = vsel %vm148_vm0, %v9312_v31, %v9311_v17  ;;  %v9313_v4 = vmov %v9312_v31 }
  0x44   :  { %5631 = vmatprep.mubr.bf16.mxu0 %v6969_v5  ;;  %v7118_v15 = vpack.c.bf16 %v207_v37, %v208_v10  ;;  %v206_v56 = vsel %vm148_vm0, %v9314_v3, %v9313_v4  ;;  %v9316_v10 = vrot.slane %v6775_v36, 7  ;;  %v9317_v37 = vrot.slane %v6766_v34, 7 }
  0x45   :  { %v7133_v63 = vpack.c.bf16 %v205_v0, %v206_v56  ;;  %v7154_v0 = vld [vmem:[%s9184_s0 + $0x118] sm:$0xff]  ;;  %v9321_v3 = vrot.slane %v6806_v43, 7  ;;  %v9322_v56 = vrot.slane %v6800_v42, 7 }
  0x47   :  { %9315 = vst [vmem:[#allocation17_spill] sm:$0xff] %v7133_v63 }
  0x4a   :  { %5312 = vmatmul.mubr.bf16.gmra.mrb[20].mxu1 %v6969_v5  ;;  %v9318_v5 = vmov %v9317_v37 }
  0x4b   :  { %5632 = vmatmul.mubr.bf16.gmra.mrb[20].mxu0 %v7040_v19  ;;  %5315 = vmatprep.mubr.bf16.mxu1 %v7040_v19  ;;  %v203_v19 = vsel %vm148_vm0, %v9317_v37, %v9316_v10  ;;  %v204_v31 = vsel %vm148_vm0, %v9311_v17, %v9318_v5  ;;  %v201_v10 = vsel %vm148_vm0, %v9322_v56, %v9321_v3  ;;  %v9324_v37 = vrot.slane %v6775_v36, 7 }
  0x4c   :  { %5635 = vmatprep.mubr.bf16.mxu0 %v7076_v35  ;;  %v7156_v4 = vpack.c.bf16 %v203_v19, %v204_v31  ;;  %v9323_v5 = vmov %v9322_v56  ;;  %v9327_v31 = vrot.slane %v6816_v45, 7  ;;  %v9329_v56 = vmov %v9328_v48 }
  0x4d   :  { %v202_v17 = vsel %vm148_vm0, %v9324_v37, %v9323_v5  ;;  %v200_v5 = vsel %vm148_vm0, %v9330_v39, %v9329_v56  ;;  %v9335_v56 = vrot.slane %v6816_v45, 7 }
  0x4e   :  { %9320 = vst [vmem:[#allocation19_spill] sm:$0xff] %v7156_v4  ;;  %v7174_v19 = vpack.c.bf16 %v201_v10, %v202_v17  ;;  %v199_v3 = vsel %vm148_vm0, %v9328_v48, %v9327_v31  ;;  %v7193_v10 = vld [vmem:[%s9184_s0 + $0x1e0] sm:$0xff]  ;;  %v9332_v48 = vrot.slane %v6854_v57, 7  ;;  %v9333_v31 = vrot.slane %v6844_v53, 7 }
  0x4f   :  { %v7195_v17 = vpack.c.bf16 %v199_v3, %v200_v5  ;;  %v1045_v5 = vrot.slane %v7015_v30, 1  ;;  %v7276_v4 = vpack.c.bf16 %v7028_v21, %v7006_v47 }
  0x50   :  { %9326 = vst [vmem:[#allocation21_spill] sm:$0xff] %v7174_v19  ;;  %v197_v38 = vsel %vm148_vm0, %v9333_v31, %v9332_v48  ;;  %v9334_v39 = vmov %v9333_v31  ;;  %v9337_v48 = vrot.slane %v6690_v16, 1  ;;  %v9338_v31 = vrot.slane %v6678_v13, 1 }
  0x51   :  { %9331 = vst [vmem:[#allocation22_spill] sm:$0xff] %v7195_v17  ;;  %v198_v37 = vsel %vm148_vm0, %v9335_v56, %v9334_v39  ;;  %v9339_v39 = vrot.slane %v6866_v61, 7  ;;  %v9340_v56 = vrot.slane %v6859_v58, 7  ;;  %v9346_v17 = vrot.slane %v6920_v51, 7  ;;  %9357 = vst [vmem:[#allocation26_spill] sm:$0xff] %v7276_v4 }
  0x52   :  { %5316 = vmatmul.mubr.bf16.gmra.mrb[24].mxu1 %v7076_v35  ;;  %v7213_v35 = vpack.c.bf16 %v197_v38, %v198_v37  ;;  %v1111_v29 = vsel %vm1048_vm1, %v9338_v31, %v9337_v48  ;;  %v9342_v38 = vrot.slane %v6854_v57, 7  ;;  %v9350_v16 = vrot.slane %v6729_v26, 1 }
  0x53   :  { %5636 = vmatmul.mubr.bf16.gmra.mrb[24].mxu0 %v7149_v6  ;;  %5319 = vmatprep.mubr.bf16.mxu1 %v7149_v6  ;;  %v195_v3 = vsel %vm148_vm0, %v9340_v56, %v9339_v39  ;;  %v9341_v6 = vmov %v9340_v56  ;;  %v9347_v39 = vrot.slane %v6915_v49, 7 }
  0x54   :  { %9336 = vst [vmem:[#allocation23_spill] sm:$0xff] %v7213_v35  ;;  %5639 = vmatprep.mubr.bf16.mxu0 %v7172_v50  ;;  %v196_v37 = vsel %vm148_vm0, %v9342_v38, %v9341_v6  ;;  %v9344_v35 = vmov %v9337_v48  ;;  %v9349_v6 = vrot.slane %v6866_v61, 7 }
  0x55   :  { %v1110_v48 = vsel %vm1048_vm1, %v9344_v35, %v9343_v28  ;;  %v7240_v31 = vpack.c.bf16 %v195_v3, %v196_v37  ;;  %v193_v56 = vsel %vm148_vm0, %v9347_v39, %v9346_v17  ;;  %v9348_v19 = vmov %v9347_v39 }
  0x56   :  { %v194_v38 = vsel %vm148_vm0, %v9349_v6, %v9348_v19  ;;  %v9351_v28 = vrot.slane %v6721_v24, 1  ;;  %v9353_v37 = vrot.slane %v6716_v23, 1  ;;  %v9354_v39 = vrot.slane %v6755_v32, 1 }
  0x57   :  { %9345 = vst [vmem:[#allocation24_spill] sm:$0xff] %v7240_v31  ;;  %v9355_v31 = vrot.slane %v6734_v27, 1  ;;  %v7272_v6 = vpack.c.bf16 %v193_v56, %v194_v38  ;;  %v9359_v23 = vmov %v9350_v16  ;;  %v9363_v38 = vrot.slane %v6920_v51, 7 }
  0x58   :  { %v1108_v35 = vsel %vm1048_vm1, %v9351_v28, %v9350_v16  ;;  %v9352_v3 = vmov %v9351_v28  ;;  %v9360_v28 = vrot.slane %v6933_v59, 7  ;;  %v7296_v27 = vpack.c.bf16 %v1110_v48, %v1111_v29 }
  0x59   :  { %v1109_v17 = vsel %vm1048_vm1, %v9353_v37, %v9352_v3  ;;  %v1106_v19 = vsel %vm1048_vm1, %v9355_v31, %v9354_v39  ;;  %9356 = vst [vmem:[#allocation25_spill] sm:$0xff] %v7272_v6  ;;  %v9358_v24 = vmov %v9355_v31  ;;  %v9361_v3 = vrot.slane %v6928_v60, 7 }
  0x5a   :  { %v1107_v16 = vsel %vm1048_vm1, %v9359_v23, %v9358_v24  ;;  %9364 = vst [vmem:[#allocation27_spill] sm:$0xff] %v7296_v27  ;;  %v9365_v39 = vrot.slane %v6950_v18, 7  ;;  %v9366_v24 = vrot.slane %v6945_v7, 7  ;;  %5320 = vmatmul.mubr.bf16.gmra.mrb[28].mxu1 %v7172_v50  ;;  %v7315_v29 = vpack.c.bf16 %v1108_v35, %v1109_v17 }
  0x5b   :  { %v191_v31 = vsel %vm148_vm0, %v9361_v3, %v9360_v28  ;;  %v9362_v56 = vmov %v9361_v3  ;;  %v9368_v3 = vrot.slane %v6933_v59, 7  ;;  %v7317_v48 = vpack.c.bf16 %v1106_v19, %v1107_v16  ;;  %5640 = vmatmul.mubr.bf16.gmra.mrb[28].mxu0 %v7276_v4  ;;  %5323 = vmatprep.mubr.bf16.mxu1 %v7276_v4 }
  0x5c   :  { %v192_v37 = vsel %vm148_vm0, %v9363_v38, %v9362_v56  ;;  %v189_v23 = vsel %vm148_vm0, %v9366_v24, %v9365_v39  ;;  %v9367_v28 = vmov %v9366_v24  ;;  %9369 = vst [vmem:[#allocation28_spill] sm:$0xff] %v7315_v29  ;;  %v9372_v56 = vrot.slane %v6961_v25, 7  ;;  %5691 = vmatprep.mubr.bf16.mxu0 %v7296_v27 }
  0x5d   :  { %v7298_v26 = vpack.c.bf16 %v191_v31, %v192_v37  ;;  %v190_v6 = vsel %vm148_vm0, %v9368_v3, %v9367_v28  ;;  %9370 = vst [vmem:[#allocation29_spill] sm:$0xff] %v7317_v48  ;;  %v9371_v31 = vrot.slane %v6975_v14, 7  ;;  %v7335_v35 = vpack.c.bf16 %v7058_v8, %v7034_v20 }
  0x5e   :  { %v7312_v63 = vpack.c.bf16 %v189_v23, %v190_v6  ;;  %v9373_v37 = vmov %v9372_v56  ;;  %v9375_v19 = vrot.slane %v6987_v46, 7  ;;  %v9376_v16 = vrot.slane %v6980_v52, 7 }
  0x5f   :  { %v187_v38 = vsel %vm148_vm0, %v9372_v56, %v9371_v31  ;;  %v188_v6 = vsel %vm148_vm0, %v9365_v39, %v9373_v37  ;;  %9374 = vst [vmem:[#allocation30_spill] sm:$0xff] %v7335_v35  ;;  %v7348_v23 = vpack.c.bf16 %v7154_v0, %v7082_v40  ;;  %v9379_v3 = vmov %v9371_v31 }
  0x60   :  { %v7337_v17 = vpack.c.bf16 %v187_v38, %v188_v6  ;;  %v185_v24 = vsel %vm148_vm0, %v9376_v16, %v9375_v19  ;;  %v9378_v28 = vmov %v9376_v16  ;;  %v9380_v56 = vrot.slane %v6668_v11, 1 }
  0x61   :  { %9377 = vst [vmem:[#allocation31_spill] sm:$0xff] %v7348_v23  ;;  %v186_v31 = vsel %vm148_vm0, %v9379_v3, %v9378_v28  ;;  %v9381_v37 = vrot.slane %v7193_v10, 1  ;;  %v9382_v16 = vrot.slane %v7001_v1, 7  ;;  %v9383_v4 = vrot.slane %v6992_v2, 7 }
  0x62   :  { %v1050_v38 = vsel %vm1048_vm1, %v1045_v5, %v9380_v56  ;;  %v7364_v6 = vpack.c.bf16 %v185_v24, %v186_v31  ;;  %v9385_v56 = vrot.slane %v6987_v46, 7  ;;  %v9388_v24 = vrot.slane %v6668_v11, 1  ;;  %v7403_v11 = vld [vmem:[%s9184_s0 + $0x120] sm:$0xff]  ;;  %5324 = vmatmul.mubr.bf16.gmra.mrb[32].mxu1 %v7335_v35 }
  0x63   :  { %v1051_v39 = vsel %vm1048_vm1, %v9381_v37, %v1045_v5  ;;  %v183_v28 = vsel %vm148_vm0, %v9383_v4, %v9382_v16  ;;  %v9384_v3 = vmov %v9383_v4  ;;  %v9387_v5 = vrot.slane %v6673_v12, 1  ;;  %5692 = vmatmul.mubr.bf16.vlgmr.msra.gmra.mrb[0].mxu0 %v7315_v29  ;;  %5327 = vmatprep.mubr.bf16.mxu1 %v7348_v23 }
  0x64   :  { %v7366_v19 = vpack.c.bf16 %v1050_v38, %v1051_v39  ;;  %v184_v50 = vsel %vm148_vm0, %v9385_v56, %v9384_v3  ;;  %v9389_v38 = vrot.slane %v6678_v13, 1  ;;  %v9391_v39 = vrot.slane %v7028_v21, 7  ;;  %v7408_v13 = vld [vmem:[%s9184_s0 + $0x128] sm:$0xff]  ;;  %5756 = vmatpush3.bf16.msra.mxu0 %v6938_v62  ;;  %5695 = vmatprep.mubr.bf16.mxu0 %v7317_v48 }
  0x65   :  { %v7380_v27 = vpack.c.bf16 %v183_v28, %v184_v50  ;;  %v1049_v31 = vsel %vm1048_vm1, %v9388_v24, %v9387_v5  ;;  %v9390_v4 = vmov %v9387_v5  ;;  %v9392_v16 = vrot.slane %v7006_v47, 7 }
  0x66   :  { %v1112_v37 = vsel %vm1048_vm1, %v9390_v4, %v9389_v38  ;;  %v9395_v3 = vrot.slane %v7001_v1, 7  ;;  %v9396_v5 = vrot.slane %v7058_v8, 7  ;;  %v9397_v24 = vrot.slane %v7034_v20, 7 }
  0x67   :  { %9386 = vst [vmem:[#allocation32_spill] sm:$0xff] %v7380_v27  ;;  %v181_v50 = vsel %vm148_vm0, %v9392_v16, %v9391_v39  ;;  %v7410_v12 = vpack.c.bf16 %v1112_v37, %v1049_v31  ;;  %v9394_v28 = vmov %v9392_v16  ;;  %v118_v37 = vrot.slane %v7403_v11, 7 }
  0x68   :  { %v182_v56 = vsel %vm148_vm0, %v9395_v3, %v9394_v28  ;;  %v179_v38 = vsel %vm148_vm0, %v9397_v24, %v9396_v5  ;;  %v9398_v4 = vmov %v9397_v24  ;;  %v119_v16 = vrot.slane %v7408_v13, 7  ;;  %v6557_v5 = vld [vmem:[%s9183_s2 + $0x188] sm:$0xff]  }
  0x69   :  { %9393 = vst [vmem:[#allocation33_spill] sm:$0xff] %v7410_v12  ;;  %v180_v31 = vsel %vm148_vm0, %v9391_v39, %v9398_v4  ;;  %v7432_v12 = vpack.c.bf16 %v181_v50, %v182_v56  ;;  %v993_v3 = vrot.slane %v6775_v36, 1  ;;  %v994_v27 = vrot.slane %v6800_v42, 1  ;;  %v7461_v4 = vld [vmem:[%s9184_s0 + $0x130] sm:$0xff]  ;;  %v7466_v39 = vld [vmem:[%s9184_s0 + $0x138] sm:$0xff]  ;;  %5757 = vmatprep.subr.bf16.mxu0 %v6557_v5 }
  0x6a   :  { %v7434_v28 = vpack.c.bf16 %v179_v38, %v180_v31  ;;  %v9399_v24 = vrot.slane %v6766_v34, 1  ;;  %v9400_v50 = vrot.slane %v6760_v33, 1  ;;  %v9402_v42 = vrot.slane %v6755_v32, 1  ;;  %5758 = vmatpush3.bf16.msra.mxu0 %v6557_v5 }
  0x6b   :  { %v9403_v33 = vrot.slane %v7154_v0, 7  ;;  %v9404_v32 = vrot.slane %v7082_v40, 7  ;;  %v9407_v23 = vrot.slane %v6766_v34, 1  ;;  %v995_v48 = vrot.slane %v6806_v43, 1  ;;  %v7516_v43 = vld [vmem:[%s9184_s0 + $0x140] sm:$0xff] }
  0x6c   :  { %v1104_v56 = vsel %vm1048_vm1, %v9400_v50, %v9399_v24  ;;  %v9401_v36 = vmov %v9400_v50  ;;  %v9406_v24 = vrot.slane %v7058_v8, 7  ;;  %v996_v29 = vrot.slane %v6811_v44, 1  ;;  %v7521_v44 = vld [vmem:[%s9184_s0 + $0x148] sm:$0xff] }
  0x6d   :  { %v1105_v38 = vsel %vm1048_vm1, %v9402_v42, %v9401_v36  ;;  %v177_v31 = vsel %vm148_vm0, %v9404_v32, %v9403_v33  ;;  %v9405_v62 = vmov %v9404_v32  ;;  %v175_v36 = vsel %vm148_vm0, %v118_v37, %v119_v16  ;;  %v6559_v33 = vld [vmem:[%s9183_s2 + $0x190] sm:$0xff]  }
  0x6e   :  { %v178_v50 = vsel %vm148_vm0, %v9406_v24, %v9405_v62  ;;  %v1102_v42 = vsel %vm1048_vm1, %v993_v3, %v994_v27  ;;  %v1103_v35 = vsel %vm1048_vm1, %v9407_v23, %v993_v3  ;;  %v9409_v62 = vrot.slane %v7154_v0, 7  ;;  %5759 = vmatprep.subr.bf16.mxu0 %v6559_v33 }
  0x6f   :  { %v7491_v32 = vpack.c.bf16 %v177_v31, %v178_v50  ;;  %v7501_v34 = vpack.c.bf16 %v7408_v13, %v7403_v11  ;;  %v7505_v3 = vpack.c.bf16 %v1104_v56, %v1105_v38  ;;  %v120_v31 = vrot.slane %v7461_v4, 7  ;;  %5760 = vmatpush3.bf16.msra.mxu0 %v6559_v33 }
  0x70   :  { %v176_v24 = vsel %vm148_vm0, %v9409_v62, %v118_v37  ;;  %v121_v50 = vrot.slane %v7466_v39, 7  ;;  %v7523_v37 = vpack.c.bf16 %v1102_v42, %v1103_v35  ;;  %v122_v56 = vrot.slane %v7516_v43, 7  ;;  %v7547_v42 = vld [vmem:[%s9184_s0 + $0x150] sm:$0xff] }
  0x71   :  { %9408 = vst [vmem:[#allocation34_spill] sm:$0xff] %v7491_v32  ;;  %9410 = vst [vmem:[#allocation35_spill] sm:$0xff] %v7501_v34  ;;  %v7503_v23 = vpack.c.bf16 %v175_v36, %v176_v24  ;;  %v7511_v32 = vpack.c.bf16 %v7466_v39, %v7461_v4  ;;  %v123_v38 = vrot.slane %v7521_v44, 7  ;;  %v997_v36 = vrot.slane %v6816_v45, 1  ;;  %v6561_v24 = vld [vmem:[%s9183_s2 + $0x198] sm:$0xff]   ;;  %5328 = vmatmul.mubr.bf16.gmra.mrb[36].mxu1 %v7501_v34 }
  0x72   :  { %9411 = vst [vmem:[#allocation36_spill] sm:$0xff] %v7505_v3  ;;  %9413 = vst [vmem:[#allocation38_spill] sm:$0xff] %v7523_v37  ;;  %v998_v62 = vrot.slane %v6844_v53, 1  ;;  %v1100_v35 = vsel %vm1048_vm1, %v995_v48, %v996_v29  ;;  %5696 = vmatmul.mubr.bf16.gmra.mrb[4].mxu0 %v7505_v3  ;;  %v1101_v5 = vsel %vm1048_vm1, %v994_v27, %v995_v48  ;;  %5761 = vmatprep.subr.bf16.mxu0 %v6561_v24 }
  0x73   :  { %9412 = vst [vmem:[#allocation37_spill] sm:$0xff] %v7511_v32  ;;  %5331 = vmatprep.mubr.bf16.mxu1 %v7511_v32  ;;  %v173_v45 = vsel %vm148_vm0, %v120_v31, %v121_v50  ;;  %v174_v53 = vsel %vm148_vm0, %v119_v16, %v120_v31  ;;  %5699 = vmatprep.mubr.bf16.mxu0 %v7523_v37  ;;  %v7552_v32 = vld [vmem:[%s9184_s0 + $0x158] sm:$0xff]  ;;  %v6563_v37 = vld [vmem:[%s9183_s2 + $0x1a0] sm:$0xff]   ;;  %v124_v3 = vrot.slane %v7547_v42, 7 }
  0x74   :  { %v7554_v27 = vpack.c.bf16 %v173_v45, %v174_v53  ;;  %v171_v48 = vsel %vm148_vm0, %v122_v56, %v123_v38  ;;  %v172_v16 = vsel %vm148_vm0, %v121_v50, %v122_v56  ;;  %v1098_v31 = vsel %vm1048_vm1, %v997_v36, %v998_v62  ;;  %5762 = vmatpush3.bf16.msra.mxu0 %v6561_v24 }
  0x75   :  { %v1099_v34 = vsel %vm1048_vm1, %v996_v29, %v997_v36  ;;  %v7567_v33 = vpack.c.bf16 %v171_v48, %v172_v16  ;;  %v999_v45 = vrot.slane %v6854_v57, 1  ;;  %v1000_v53 = vrot.slane %v6859_v58, 1  ;;  %v7586_v57 = vld [vmem:[%s9184_s0 + $0x160] sm:$0xff]  ;;  %v7591_v58 = vld [vmem:[%s9184_s0 + $0x168] sm:$0xff]  ;;  %5763 = vmatprep.subr.bf16.mxu0 %v6563_v37 }
  0x76   :  { %9414 = vst [vmem:[#allocation39_spill] sm:$0xff] %v7554_v27  ;;  %v7573_v50 = vpack.c.bf16 %v7521_v44, %v7516_v43  ;;  %v7575_v56 = vpack.c.bf16 %v1100_v35, %v1101_v5  ;;  %v125_v29 = vrot.slane %v7552_v32, 7  ;;  %v7581_v36 = vpack.c.bf16 %v7552_v32, %v7547_v42  ;;  %v6565_v27 = vld [vmem:[%s9183_s2 + $0x1a8] sm:$0xff]  }
  0x77   :  { %9415 = vst [vmem:[#allocation40_spill] sm:$0xff] %v7567_v33  ;;  %v7593_v35 = vpack.c.bf16 %v1098_v31, %v1099_v34  ;;  %v126_v5 = vrot.slane %v7586_v57, 7  ;;  %v127_v48 = vrot.slane %v7591_v58, 7  ;;  %v1001_v16 = vrot.slane %v6866_v61, 1  ;;  %v7617_v31 = vld [vmem:[%s9184_s0 + $0x170] sm:$0xff] }
  0x78   :  { %9416 = vst [vmem:[#allocation41_spill] sm:$0xff] %v7573_v50  ;;  %9417 = vst [vmem:[#allocation42_spill] sm:$0xff] %v7575_v56  ;;  %v1002_v33 = vrot.slane %v6915_v49, 1  ;;  %v1096_v34 = vsel %vm1048_vm1, %v999_v45, %v1000_v53  ;;  %v1097_v24 = vsel %vm1048_vm1, %v998_v62, %v999_v45  ;;  %v169_v61 = vsel %vm148_vm0, %v124_v3, %v125_v29 }
  0x79   :  { %9418 = vst [vmem:[#allocation43_spill] sm:$0xff] %v7581_v36  ;;  %9419 = vst [vmem:[#allocation44_spill] sm:$0xff] %v7593_v35  ;;  %5332 = vmatmul.mubr.bf16.gmra.mrb[40].mxu1 %v7573_v50  ;;  %v170_v49 = vsel %vm148_vm0, %v123_v38, %v124_v3  ;;  %5764 = vmatpush3.bf16.msra.mxu0 %v6563_v37  ;;  %v167_v45 = vsel %vm148_vm0, %v126_v5, %v127_v48 }
  0x7a   :  { %5700 = vmatmul.mubr.bf16.gmra.mrb[8].mxu0 %v7575_v56  ;;  %5335 = vmatprep.mubr.bf16.mxu1 %v7581_v36  ;;  %v7622_v36 = vld [vmem:[%s9184_s0 + $0x178] sm:$0xff]  ;;  %v7624_v62 = vpack.c.bf16 %v169_v61, %v170_v49  ;;  %v168_v3 = vsel %vm148_vm0, %v125_v29, %v126_v5  ;;  %v1094_v38 = vsel %vm1048_vm1, %v1001_v16, %v1002_v33  ;;  %v1003_v61 = vrot.slane %v6920_v51, 1  ;;  %v7656_v51 = vld [vmem:[%s9184_s0 + $0x180] sm:$0xff] }
  0x7b   :  { %5703 = vmatprep.mubr.bf16.mxu0 %v7593_v35  ;;  %v1095_v50 = vsel %vm1048_vm1, %v1000_v53, %v1001_v16  ;;  %5765 = vmatprep.subr.bf16.mxu0 %v6565_v27  ;;  %v6567_v35 = vld [vmem:[%s9183_s2 + $0x1b0] sm:$0xff]   ;;  %v7637_v37 = vpack.c.bf16 %v167_v45, %v168_v3  ;;  %v1004_v49 = vrot.slane %v6928_v60, 1  ;;  %v7643_v29 = vpack.c.bf16 %v7591_v58, %v7586_v57  ;;  %v7661_v60 = vld [vmem:[%s9184_s0 + $0x188] sm:$0xff] }
  0x7c   :  { %9420 = vst [vmem:[#allocation45_spill] sm:$0xff] %v7624_v62  ;;  %v7645_v5 = vpack.c.bf16 %v1096_v34, %v1097_v24  ;;  %v128_v56 = vrot.slane %v7617_v31, 7  ;;  %v129_v53 = vrot.slane %v7622_v36, 7  ;;  %v7651_v16 = vpack.c.bf16 %v7622_v36, %v7617_v31  ;;  %v6569_v62 = vld [vmem:[%s9183_s2 + $0x1b8] sm:$0xff]  }
  0x7d   :  { %9421 = vst [vmem:[#allocation46_spill] sm:$0xff] %v7637_v37  ;;  %9422 = vst [vmem:[#allocation47_spill] sm:$0xff] %v7643_v29  ;;  %v7663_v34 = vpack.c.bf16 %v1094_v38, %v1095_v50  ;;  %v130_v24 = vrot.slane %v7656_v51, 7  ;;  %v131_v45 = vrot.slane %v7661_v60, 7  ;;  %5766 = vmatpush3.bf16.msra.mxu0 %v6565_v27  ;;  %v1005_v3 = vrot.slane %v6933_v59, 1  ;;  %v7687_v38 = vld [vmem:[%s9184_s0 + $0x190] sm:$0xff] }
  0x7e   :  { %9423 = vst [vmem:[#allocation48_spill] sm:$0xff] %v7645_v5  ;;  %9424 = vst [vmem:[#allocation49_spill] sm:$0xff] %v7651_v16  ;;  %v1006_v37 = vrot.slane %v6945_v7, 1  ;;  %5767 = vmatprep.subr.bf16.mxu0 %v6567_v35  ;;  %v1092_v50 = vsel %vm1048_vm1, %v1003_v61, %v1004_v49  ;;  %v1093_v27 = vsel %vm1048_vm1, %v1002_v33, %v1003_v61 }
  0x7f   :  { %9425 = vst [vmem:[#allocation50_spill] sm:$0xff] %v7663_v34  ;;  %v165_v59 = vsel %vm148_vm0, %v128_v56, %v129_v53  ;;  %v166_v7 = vsel %vm148_vm0, %v127_v48, %v128_v56  ;;  %v163_v61 = vsel %vm148_vm0, %v130_v24, %v131_v45  ;;  %v164_v56 = vsel %vm148_vm0, %v129_v53, %v130_v24 }
  0x80   :  { %v7694_v33 = vpack.c.bf16 %v165_v59, %v166_v7  ;;  %v1090_v48 = vsel %vm1048_vm1, %v1005_v3, %v1006_v37  ;;  %v1007_v59 = vrot.slane %v6950_v18, 1  ;;  %v1008_v7 = vrot.slane %v6961_v25, 1  ;;  %v7728_v18 = vld [vmem:[%s9184_s0 + $0x1a0] sm:$0xff]  ;;  %v7733_v25 = vld [vmem:[%s9184_s0 + $0x1a8] sm:$0xff] }
  0x81   :  { %5336 = vmatmul.mubr.bf16.gmra.mrb[44].mxu1 %v7643_v29  ;;  %5768 = vmatpush3.bf16.msra.mxu0 %v6567_v35  ;;  %v1091_v29 = vsel %vm1048_vm1, %v1004_v49, %v1005_v3  ;;  %v7709_v35 = vpack.c.bf16 %v163_v61, %v164_v56  ;;  %v7715_v53 = vpack.c.bf16 %v7661_v60, %v7656_v51  ;;  %v132_v49 = vrot.slane %v7687_v38, 7 }
  0x82   :  { %5704 = vmatmul.mubr.bf16.gmra.mrb[12].mxu0 %v7645_v5  ;;  %5339 = vmatprep.mubr.bf16.mxu1 %v7651_v16  ;;  %v7692_v16 = vld [vmem:[%s9184_s0 + $0x198] sm:$0xff]  ;;  %9426 = vst [vmem:[#allocation51_spill] sm:$0xff] %v7694_v33  ;;  %v7717_v24 = vpack.c.bf16 %v1092_v50, %v1093_v27  ;;  %v7735_v50 = vpack.c.bf16 %v1090_v48, %v1091_v29  ;;  %v134_v27 = vrot.slane %v7728_v18, 7  ;;  %v135_v61 = vrot.slane %v7733_v25, 7 }
  0x83   :  { %5707 = vmatprep.mubr.bf16.mxu0 %v7663_v34  ;;  %5769 = vmatprep.subr.bf16.mxu0 %v6569_v62  ;;  %v7707_v34 = vld [vmem:[%s9183_s2 + $0x1c0] sm:$0xff]   ;;  %9427 = vst [vmem:[#allocation52_spill] sm:$0xff] %v7709_v35  ;;  %9428 = vst [vmem:[#allocation53_spill] sm:$0xff] %v7715_v53  ;;  %v133_v3 = vrot.slane %v7692_v16, 7  ;;  %v7723_v5 = vpack.c.bf16 %v7692_v16, %v7687_v38  ;;  %v1009_v56 = vrot.slane %v6975_v14, 1  ;;  %v1010_v35 = vrot.slane %v6980_v52, 1 }
  0x84   :  { %9429 = vst [vmem:[#allocation54_spill] sm:$0xff] %v7717_v24  ;;  %9431 = vst [vmem:[#allocation56_spill] sm:$0xff] %v7735_v50  ;;  %v1088_v29 = vsel %vm1048_vm1, %v1007_v59, %v1008_v7  ;;  %v1089_v52 = vsel %vm1048_vm1, %v1006_v37, %v1007_v59  ;;  %v7757_v14 = vld [vmem:[%s9184_s0 + $0x1b0] sm:$0xff]  ;;  %v1012_v33 = vrot.slane %v6992_v2, 1  ;;  %v7798_v2 = vld [vmem:[%s9184_s0 + $0x1c8] sm:$0xff] }
  0x85   :  { %9430 = vst [vmem:[#allocation55_spill] sm:$0xff] %v7723_v5  ;;  %5770 = vmatpush3.bf16.msra.mxu0 %v6569_v62  ;;  %v161_v48 = vsel %vm148_vm0, %v132_v49, %v133_v3  ;;  %v162_v62 = vsel %vm148_vm0, %v131_v45, %v132_v49  ;;  %v159_v45 = vsel %vm148_vm0, %v134_v27, %v135_v61 }
  0x86   :  { %5835 = vmatprep.subr.bf16.mxu0 %v7707_v34  ;;  %v160_v49 = vsel %vm148_vm0, %v133_v3, %v134_v27  ;;  %v1086_v37 = vsel %vm1048_vm1, %v1009_v56, %v1010_v35  ;;  %v1087_v59 = vsel %vm1048_vm1, %v1008_v7, %v1009_v56  ;;  %v136_v3 = vrot.slane %v7757_v14, 7 }
  0x87   :  { %v7800_v7 = vpack.c.bf16 %v1086_v37, %v1087_v59 }
  0x88   :  { %v158_v59 = vsel %vm148_vm0, %v135_v61, %v136_v3 }
  0x89   :  { %5340 = vmatmul.mubr.bf16.gmra.mrb[48].mxu1 %v7715_v53  ;;  %v7764_v53 = vpack.c.bf16 %v161_v48, %v162_v62  ;;  %v7780_v48 = vpack.c.bf16 %v7733_v25, %v7728_v18  ;;  %v7782_v62 = vpack.c.bf16 %v1088_v29, %v1089_v52  ;;  %9437 = vst [vmem:[#allocation62_spill] sm:$0xff] %v7800_v7  ;;  %v139_v29 = vrot.slane %v7798_v2, 7 }
  0x8a   :  { %5708 = vmatmul.mubr.bf16.gmra.mrb[16].mxu0 %v7717_v24  ;;  %5343 = vmatprep.mubr.bf16.mxu1 %v7723_v5  ;;  %v7762_v5 = vld [vmem:[%s9184_s0 + $0x1b8] sm:$0xff]  ;;  %v1011_v24 = vrot.slane %v6987_v46, 1  ;;  %v7793_v46 = vld [vmem:[%s9184_s0 + $0x1c0] sm:$0xff]  ;;  %v1013_v52 = vrot.slane %v7001_v1, 1 }
  0x8b   :  { %5711 = vmatprep.mubr.bf16.mxu0 %v7735_v50  ;;  %9432 = vst [vmem:[#allocation57_spill] sm:$0xff] %v7764_v53  ;;  %v7774_v50 = vpack.c.bf16 %v159_v45, %v160_v49  ;;  %9434 = vst [vmem:[#allocation59_spill] sm:$0xff] %v7780_v48  ;;  %v137_v27 = vrot.slane %v7762_v5, 7  ;;  %v7788_v53 = vpack.c.bf16 %v7762_v5, %v7757_v14  ;;  %v138_v56 = vrot.slane %v7793_v46, 7 }
  0x8c   :  { %9435 = vst [vmem:[#allocation60_spill] sm:$0xff] %v7782_v62  ;;  %v1014_v45 = vrot.slane %v7006_v47, 1  ;;  %v1084_v49 = vsel %vm1048_vm1, %v1011_v24, %v1012_v33  ;;  %v1085_v1 = vsel %vm1048_vm1, %v1010_v35, %v1011_v24  ;;  %v7821_v47 = vld [vmem:[%s9184_s0 + $0x1d0] sm:$0xff]  ;;  %v1083_v24 = vsel %vm1048_vm1, %v1012_v33, %v1013_v52 }
  0x8d   :  { %9433 = vst [vmem:[#allocation58_spill] sm:$0xff] %v7774_v50  ;;  %9436 = vst [vmem:[#allocation61_spill] sm:$0xff] %v7788_v53  ;;  %v157_v37 = vsel %vm148_vm0, %v136_v3, %v137_v27  ;;  %v155_v61 = vsel %vm148_vm0, %v138_v56, %v139_v29  ;;  %v156_v3 = vsel %vm148_vm0, %v137_v27, %v138_v56  ;;  %v1016_v50 = vrot.slane %v7034_v20, 1 }
  0x8e   :  { %v1082_v35 = vsel %vm1048_vm1, %v1013_v52, %v1014_v45  ;;  %v140_v27 = vrot.slane %v7821_v47, 7  ;;  %v1017_v20 = vrot.slane %v7058_v8, 1  ;;  %v1018_v52 = vrot.slane %v7082_v40, 1 }
  0x8f   :  { %v7854_v33 = vpack.c.bf16 %v1082_v35, %v1083_v24 }
  0x91   :  { %5344 = vmatmul.mubr.bf16.gmra.mrb[52].mxu1 %v7780_v48  ;;  %v7828_v48 = vpack.c.bf16 %v157_v37, %v158_v59  ;;  %v7844_v37 = vpack.c.bf16 %v7798_v2, %v7793_v46  ;;  %v7846_v59 = vpack.c.bf16 %v1084_v49, %v1085_v1 }
  0x92   :  { %5712 = vmatmul.mubr.bf16.gmra.mrb[20].mxu0 %v7782_v62  ;;  %5347 = vmatprep.mubr.bf16.mxu1 %v7788_v53  ;;  %v7826_v53 = vld [vmem:[%s9184_s0 + $0x1d8] sm:$0xff]  ;;  %v1015_v62 = vrot.slane %v7028_v21, 1  ;;  %v142_v21 = vrot.slane %v7193_v10, 7 }
  0x93   :  { %5715 = vmatprep.mubr.bf16.mxu0 %v7800_v7  ;;  %9438 = vst [vmem:[#allocation63_spill] sm:$0xff] %v7828_v48  ;;  %v7838_v7 = vpack.c.bf16 %v155_v61, %v156_v3  ;;  %v141_v56 = vrot.slane %v7826_v53, 7  ;;  %v7852_v48 = vpack.c.bf16 %v7826_v53, %v7821_v47  ;;  %v154_v61 = vsel %vm148_vm0, %v139_v29, %v140_v27 }
  0x94   :  { %v1080_v49 = vsel %vm1048_vm1, %v1015_v62, %v1016_v50  ;;  %v1081_v8 = vsel %vm1048_vm1, %v1014_v45, %v1015_v62  ;;  %v9441_v3 = vrot.slane %v7015_v30, 7  ;;  %v1079_v29 = vsel %vm1048_vm1, %v1016_v50, %v1017_v20 }
  0x95   :  { %9439 = vst [vmem:[#allocation64_spill] sm:$0xff] %v7838_v7  ;;  %9440 = vst [vmem:[#allocation65_spill] sm:$0xff] %v7852_v48  ;;  %v153_v1 = vsel %vm148_vm0, %v140_v27, %v141_v56  ;;  %v152_v24 = vsel %vm148_vm0, %v141_v56, %v142_v21  ;;  %v7887_v62 = vpack.c.bf16 %v7015_v30, %v7193_v10  ;;  %v1021_v56 = vrot.slane %v7408_v13, 1 }
  0x96   :  { %v7871_v40 = vpack.c.bf16 %v153_v1, %v154_v61  ;;  %v151_v35 = vsel %vm148_vm0, %v142_v21, %v9441_v3  ;;  %v7889_v45 = vpack.c.bf16 %v1080_v49, %v1081_v8  ;;  %v1019_v1 = vrot.slane %v7154_v0, 1 }
  0x97   :  { %v7883_v27 = vpack.c.bf16 %v151_v35, %v152_v24  ;;  %v1020_v61 = vrot.slane %v7403_v11, 1  ;;  %v1022_v21 = vrot.slane %v7461_v4, 1  ;;  %v1023_v50 = vrot.slane %v7466_v39, 1 }
  0x98   :  { %v1077_v0 = vsel %vm1048_vm1, %v1018_v52, %v1019_v1  ;;  %v1025_v49 = vrot.slane %v7521_v44, 1  ;;  %v1026_v8 = vrot.slane %v7547_v42, 1  ;;  %v6566_v44 = vld [vmem:[%s9183_s2 + $0x90] sm:$0xff]   ;;  %v1027_v24 = vrot.slane %v7552_v32, 1 }
  0x99   :  { %5348 = vmatmul.mubr.bf16.gmra.mrb[56].mxu1 %v7844_v37  ;;  %v1076_v30 = vsel %vm1048_vm1, %v1019_v1, %v1020_v61  ;;  %v1074_v11 = vsel %vm1048_vm1, %v1021_v56, %v1022_v21  ;;  %v1075_v13 = vsel %vm1048_vm1, %v1020_v61, %v1021_v56  ;;  %v1029_v61 = vrot.slane %v7591_v58, 1 }
  0x9a   :  { %5716 = vmatmul.mubr.bf16.gmra.mrb[24].mxu0 %v7846_v59  ;;  %5351 = vmatprep.mubr.bf16.mxu1 %v7852_v48  ;;  %v1078_v48 = vsel %vm1048_vm1, %v1017_v20, %v1018_v52  ;;  %v7909_v4 = vpack.c.bf16 %v1076_v30, %v1077_v0  ;;  %v7913_v20 = vpack.c.bf16 %v1074_v11, %v1075_v13  ;;  %v6564_v52 = vld [vmem:[%s9183_s2 + $0x88] sm:$0xff]   ;;  %v1030_v56 = vrot.slane %v7617_v31, 1  ;;  %v9443_v30 = vld [vmem:[#allocation17_spill] sm:$0xff]  ;;  %v6570_v0 = vld [vmem:[%s9183_s2 + $0xa0] sm:$0xff]  }
  0x9b   :  { %5719 = vmatprep.mubr.bf16.mxu0 %v7854_v33  ;;  %v7893_v3 = vpack.c.bf16 %v1078_v48, %v1079_v29  ;;  %v1024_v48 = vrot.slane %v7516_v43, 1  ;;  %v1073_v43 = vsel %vm1048_vm1, %v1022_v21, %v1023_v50  ;;  %v1070_v42 = vsel %vm1048_vm1, %v1025_v49, %v1026_v8  ;;  %v6568_v21 = vld [vmem:[%s9183_s2 + $0x98] sm:$0xff]  }
  0x9c   :  { %9442 = vst [vmem:[#allocation66_spill] sm:$0xff] %v7909_v4  ;;  %v1028_v29 = vrot.slane %v7586_v57, 1  ;;  %v1069_v57 = vsel %vm1048_vm1, %v1026_v8, %v1027_v24  ;;  %v1066_v58 = vsel %vm1048_vm1, %v1029_v61, %v1030_v56  ;;  %v1031_v13 = vrot.slane %v7622_v36, 1 }
  0x9d   :  { %v1072_v39 = vsel %vm1048_vm1, %v1023_v50, %v1024_v48  ;;  %v1032_v50 = vrot.slane %v7656_v51, 1  ;;  %v1034_v8 = vrot.slane %v7687_v38, 1 }
  0x9e   :  { %v7936_v35 = vpack.c.bf16 %v1072_v39, %v1073_v43  ;;  %v1068_v32 = vsel %vm1048_vm1, %v1027_v24, %v1028_v29  ;;  %v1067_v31 = vsel %vm1048_vm1, %v1028_v29, %v1029_v61  ;;  %v9444_v39 = vld [vmem:[#allocation19_spill] sm:$0xff]  ;;  %v9445_v43 = vld [vmem:[#allocation21_spill] sm:$0xff]  ;;  %v1065_v51 = vsel %vm1048_vm1, %v1030_v56, %v1031_v13 }
  0x9f   :  { %v7962_v11 = vpack.c.bf16 %v1068_v32, %v1069_v57  ;;  %v1064_v36 = vsel %vm1048_vm1, %v1031_v13, %v1032_v50  ;;  %v1036_v24 = vrot.slane %v7728_v18, 1  ;;  %v1037_v61 = vrot.slane %v7733_v25, 1  ;;  %v9446_v32 = vld [vmem:[#allocation22_spill] sm:$0xff]  ;;  %v9447_v57 = vld [vmem:[#allocation23_spill] sm:$0xff] }
  0xa0   :  { %v1038_v56 = vrot.slane %v7757_v14, 1  ;;  %v1040_v13 = vrot.slane %v7793_v46, 1 }
  0xa1   :  { %5352 = vmatmul.mubr.bf16.gmra.mrb[60].mxu1 %v7887_v62  ;;  %v1059_v14 = vsel %vm1048_vm1, %v1036_v24, %v1037_v61 }
  0xa2   :  { %5720 = vmatmul.mubr.bf16.gmra.mrb[28].mxu0 %v7889_v45  ;;  %5371 = vmatprep.mubr.bf16.mxu1 %v7060_v9  ;;  %v1058_v25 = vsel %vm1048_vm1, %v1037_v61, %v1038_v56 }
  0xa3   :  { %5723 = vmatprep.mubr.bf16.mxu0 %v7893_v3 }
  0xa9   :  { %5372 = vmatmul.mubr.bf16.vlgmr.msra.gmra.mrb[0].mxu1 %v7084_v22 }
  0xaa   :  { %5724 = vmatmul.mubr.bf16.gmra.mrb[32].mxu0 %v7909_v4  ;;  %5436 = vmatpush3.bf16.msra.mxu1 %v7020_v41  ;;  %v1071_v41 = vsel %vm1048_vm1, %v1024_v48, %v1025_v49  ;;  %v7966_v48 = vpack.c.bf16 %v1066_v58, %v1067_v31  ;;  %v1033_v49 = vrot.slane %v7661_v60, 1  ;;  %v8014_v58 = vld [vmem:[%s9183_s2 + $0xc0] sm:$0xff]  }
  0xab   :  { %5375 = vmatprep.mubr.bf16.mxu1 %v7102_v55  ;;  %5727 = vmatprep.mubr.bf16.mxu0 %v7913_v20  ;;  %v7940_v1 = vpack.c.bf16 %v1070_v42, %v1071_v41  ;;  %v7988_v42 = vpack.c.bf16 %v1064_v36, %v1065_v51  ;;  %v1035_v41 = vrot.slane %v7692_v16, 1  ;;  %v9449_v36 = vld [vmem:[#allocation25_spill] sm:$0xff] }
  0xac   :  { %5437 = vmatprep.subr.bf16.mxu1 %v6564_v52  ;;  %v1062_v60 = vsel %vm1048_vm1, %v1033_v49, %v1034_v8  ;;  %v1063_v38 = vsel %vm1048_vm1, %v1032_v50, %v1033_v49  ;;  %v8020_v50 = vpack.c.bf16 %v1058_v25, %v1059_v14  ;;  %v1041_v49 = vrot.slane %v7798_v2, 1  ;;  %v6581_v25 = vld [vmem:[%s9183_s2 + $0x1e8] sm:$0xff]   ;;  %v9455_v14 = vld [vmem:[#allocation40_spill] sm:$0xff] }
  0xad   :  { %v7992_v29 = vpack.c.bf16 %v1062_v60, %v1063_v38  ;;  %v1060_v16 = vsel %vm1048_vm1, %v1035_v41, %v1036_v24  ;;  %v1061_v18 = vsel %vm1048_vm1, %v1034_v8, %v1035_v41  ;;  %v1042_v8 = vrot.slane %v7821_v47, 1 }
  0xae   :  { %5438 = vmatpush3.bf16.msra.mxu1 %v6564_v52  ;;  %v6572_v52 = vld [vmem:[%s9183_s2 + $0xa8] sm:$0xff]   ;;  %v8016_v31 = vpack.c.bf16 %v1060_v16, %v1061_v18  ;;  %v1055_v47 = vsel %vm1048_vm1, %v1040_v13, %v1041_v49  ;;  %v1043_v60 = vrot.slane %v7826_v53, 1  ;;  %v9451_v53 = vld [vmem:[#allocation32_spill] sm:$0xff]  ;;  %v6577_v16 = vld [vmem:[%s9183_s2 + $0x1d8] sm:$0xff]  }
  0xaf   :  { %5439 = vmatprep.subr.bf16.mxu1 %v6566_v44  ;;  %v1054_v2 = vsel %vm1048_vm1, %v1041_v49, %v1042_v8  ;;  %v9454_v18 = vld [vmem:[#allocation39_spill] sm:$0xff]  ;;  %v6585_v49 = vld [vmem:[%s9183_s2 + $0x1f8] sm:$0xff]  }
  0xb0   :  { %v8040_v38 = vpack.c.bf16 %v1054_v2, %v1055_v47  ;;  %v1053_v24 = vsel %vm1048_vm1, %v1042_v8, %v1043_v60  ;;  %v9457_v8 = vld [vmem:[#allocation46_spill] sm:$0xff]  ;;  %v9459_v2 = vld [vmem:[#allocation52_spill] sm:$0xff]  ;;  %v9460_v47 = vld [vmem:[#allocation57_spill] sm:$0xff] }
  0xb1   :  { %5376 = vmatmul.mubr.bf16.gmra.mrb[4].mxu1 %v7118_v15 }
  0xb2   :  { %5728 = vmatmul.mubr.bf16.gmra.mrb[36].mxu0 %v7936_v35  ;;  %5379 = vmatprep.mubr.bf16.mxu1 %v9443_v30 }
  0xb3   :  { %5731 = vmatprep.mubr.bf16.mxu0 %v7940_v1  ;;  %5440 = vmatpush3.bf16.msra.mxu1 %v6566_v44  ;;  %v6574_v44 = vld [vmem:[%s9183_s2 + $0xb0] sm:$0xff]  }
  0xb4   :  { %5441 = vmatprep.subr.bf16.mxu1 %v6568_v21 }
  0xb7   :  { %5442 = vmatpush3.bf16.msra.mxu1 %v6568_v21  ;;  %v6576_v21 = vld [vmem:[%s9183_s2 + $0xb8] sm:$0xff]  }
  0xb8   :  { %5443 = vmatprep.subr.bf16.mxu1 %v6570_v0 }
  0xb9   :  { %5380 = vmatmul.mubr.bf16.gmra.mrb[8].mxu1 %v9444_v39 }
  0xba   :  { %5732 = vmatmul.mubr.bf16.gmra.mrb[40].mxu0 %v7962_v11  ;;  %5383 = vmatprep.mubr.bf16.mxu1 %v9445_v43 }
  0xbb   :  { %5735 = vmatprep.mubr.bf16.mxu0 %v7966_v48  ;;  %5444 = vmatpush3.bf16.msra.mxu1 %v6570_v0  ;;  %v1039_v0 = vrot.slane %v7762_v5, 1 }
  0xbc   :  { %5445 = vmatprep.subr.bf16.mxu1 %v6572_v52 }
  0xbd   :  { %v1056_v5 = vsel %vm1048_vm1, %v1039_v0, %v1040_v13  ;;  %v1057_v46 = vsel %vm1048_vm1, %v1038_v56, %v1039_v0  ;;  %v9452_v56 = vld [vmem:[#allocation33_spill] sm:$0xff]  ;;  %v6583_v13 = vld [vmem:[%s9183_s2 + $0x1f0] sm:$0xff]  }
  0xbe   :  { %v8037_v51 = vpack.c.bf16 %v1056_v5, %v1057_v46  ;;  %v9456_v0 = vld [vmem:[#allocation45_spill] sm:$0xff]  ;;  %v9458_v5 = vld [vmem:[#allocation51_spill] sm:$0xff]  ;;  %v8103_v46 = vld [vmem:[%s9183_s2 + $0x200] sm:$0xff]  }
  0xbf   :  { %5446 = vmatpush3.bf16.msra.mxu1 %v6572_v52  ;;  %v9448_v52 = vld [vmem:[#allocation24_spill] sm:$0xff] }
  0xc0   :  { %5447 = vmatprep.subr.bf16.mxu1 %v6574_v44 }
  0xc1   :  { %5384 = vmatmul.mubr.bf16.gmra.mrb[12].mxu1 %v9446_v32 }
  0xc2   :  { %5736 = vmatmul.mubr.bf16.gmra.mrb[44].mxu0 %v7988_v42  ;;  %5387 = vmatprep.mubr.bf16.mxu1 %v9447_v57 }
  0xc3   :  { %5739 = vmatprep.mubr.bf16.mxu0 %v7992_v29  ;;  %5448 = vmatpush3.bf16.msra.mxu1 %v6574_v44  ;;  %v9450_v44 = vrot.slane %v7193_v10, 1  ;;  %v9453_v10 = vld [vmem:[#allocation34_spill] sm:$0xff] }
  0xc4   :  { %5449 = vmatprep.subr.bf16.mxu1 %v6576_v21 }
  0xc5   :  { %v1052_v41 = vsel %vm1048_vm1, %v1043_v60, %v9450_v44  ;;  %v9461_v60 = vld [vmem:[#allocation58_spill] sm:$0xff]  ;;  %v9462_v44 = vld [vmem:[#allocation63_spill] sm:$0xff] }
  0xc6   :  { %v8052_v61 = vpack.c.bf16 %v1052_v41, %v1053_v24  ;;  %v6580_v41 = vld [vmem:[%s9183_s2 + $0xc8] sm:$0xff]  }
  0xc7   :  { %5450 = vmatpush3.bf16.msra.mxu1 %v6576_v21  ;;  %v6575_v21 = vld [vmem:[%s9183_s2 + $0x1d0] sm:$0xff]   ;;  %v9463_v24 = vld [vmem:[#allocation27_spill] sm:$0xff] }
  0xc8   :  { %5515 = vmatprep.subr.bf16.mxu1 %v8014_v58 }
  0xc9   :  { %5388 = vmatmul.mubr.bf16.gmra.mrb[16].mxu1 %v9448_v52 }
  0xca   :  { %5740 = vmatmul.mubr.bf16.gmra.mrb[48].mxu0 %v8016_v31  ;;  %5391 = vmatprep.mubr.bf16.mxu1 %v9449_v36 }
  0xcb   :  { %5743 = vmatprep.mubr.bf16.mxu0 %v8020_v50 }
  0xd1   :  { %5392 = vmatmul.mubr.bf16.gmra.mrb[20].mxu1 %v7298_v26 }
  0xd2   :  { %5744 = vmatmul.mubr.bf16.gmra.mrb[52].mxu0 %v8037_v51  ;;  %5395 = vmatprep.mubr.bf16.mxu1 %v7312_v63 }
  0xd3   :  { %5747 = vmatprep.mubr.bf16.mxu0 %v8040_v38 }
  0xd9   :  { %5396 = vmatmul.mubr.bf16.gmra.mrb[24].mxu1 %v7337_v17 }
  0xda   :  { %5748 = vmatmul.mubr.bf16.gmra.mrb[56].mxu0 %v8052_v61  ;;  %5399 = vmatprep.mubr.bf16.mxu1 %v7364_v6 }
  0xdb   :  { %5751 = vmatprep.mubr.bf16.mxu0 %v7366_v19 }
  0xe1   :  { %5400 = vmatmul.mubr.bf16.gmra.mrb[28].mxu1 %v9451_v53 }
  0xe2   :  { %5752 = vmatmul.mubr.bf16.gmra.mrb[60].mxu0 %v9452_v56  ;;  %5403 = vmatprep.mubr.bf16.mxu1 %v7432_v12 }
  0xe3   :  { %5771 = vmatprep.mubr.bf16.mxu0 %v7102_v55 }
  0xe9   :  { %5404 = vmatmul.mubr.bf16.gmra.mrb[32].mxu1 %v7434_v28 }
  0xea   :  { %5772 = vmatmul.mubr.bf16.vlgmr.msra.gmra.mrb[0].mxu0 %v7118_v15  ;;  %5407 = vmatprep.mubr.bf16.mxu1 %v9453_v10 }
  0xeb   :  { %5836 = vmatpush3.bf16.msra.mxu0 %v7707_v34  ;;  %5775 = vmatprep.mubr.bf16.mxu0 %v9443_v30  ;;  %v6579_v34 = vld [vmem:[%s9183_s2 + $0x1e0] sm:$0xff]  }
  0xec   :  { %5837 = vmatprep.subr.bf16.mxu0 %v6573_v54 }
  0xef   :  { %5838 = vmatpush3.bf16.msra.mxu0 %v6573_v54  ;;  %v9464_v54 = vld [vmem:[#allocation28_spill] sm:$0xff] }
  0xf0   :  { %5839 = vmatprep.subr.bf16.mxu0 %v6575_v21 }
  0xf1   :  { %5408 = vmatmul.mubr.bf16.gmra.mrb[36].mxu1 %v7503_v23 }
  0xf2   :  { %5776 = vmatmul.mubr.bf16.gmra.mrb[4].mxu0 %v9444_v39  ;;  %5411 = vmatprep.mubr.bf16.mxu1 %v9454_v18 }
  0xf3   :  { %5779 = vmatprep.mubr.bf16.mxu0 %v9445_v43  ;;  %5840 = vmatpush3.bf16.msra.mxu0 %v6575_v21  ;;  %v6582_v21 = vld [vmem:[%s9183_s2 + $0xd0] sm:$0xff]  }
  0xf4   :  { %5841 = vmatprep.subr.bf16.mxu0 %v6577_v16 }
  0xf7   :  { %5842 = vmatpush3.bf16.msra.mxu0 %v6577_v16  ;;  %v6584_v16 = vld [vmem:[%s9183_s2 + $0xd8] sm:$0xff]  }
  0xf8   :  { %5843 = vmatprep.subr.bf16.mxu0 %v6579_v34 }
  0xf9   :  { %5412 = vmatmul.mubr.bf16.gmra.mrb[40].mxu1 %v9455_v14 }
  0xfa   :  { %5780 = vmatmul.mubr.bf16.gmra.mrb[8].mxu0 %v9446_v32  ;;  %5415 = vmatprep.mubr.bf16.mxu1 %v9456_v0 }
  0xfb   :  { %5783 = vmatprep.mubr.bf16.mxu0 %v9447_v57  ;;  %5844 = vmatpush3.bf16.msra.mxu0 %v6579_v34  ;;  %v9465_v34 = vld [vmem:[#allocation29_spill] sm:$0xff] }
  0xfc   :  { %5845 = vmatprep.subr.bf16.mxu0 %v6581_v25 }
  0xff   :  { %5846 = vmatpush3.bf16.msra.mxu0 %v6581_v25  ;;  %v6586_v25 = vld [vmem:[%s9183_s2 + $0xe0] sm:$0xff]  }
 0x100   :  { %5847 = vmatprep.subr.bf16.mxu0 %v6583_v13 }
 0x101   :  { %5416 = vmatmul.mubr.bf16.gmra.mrb[44].mxu1 %v9457_v8 }
 0x102   :  { %5784 = vmatmul.mubr.bf16.gmra.mrb[12].mxu0 %v9448_v52  ;;  %5419 = vmatprep.mubr.bf16.mxu1 %v9458_v5 }
 0x103   :  { %5787 = vmatprep.mubr.bf16.mxu0 %v9449_v36  ;;  %5848 = vmatpush3.bf16.msra.mxu0 %v6583_v13  ;;  %v6588_v13 = vld [vmem:[%s9183_s2 + $0xe8] sm:$0xff]  }
 0x104   :  { %5849 = vmatprep.subr.bf16.mxu0 %v6585_v49 }
 0x107   :  { %5850 = vmatpush3.bf16.msra.mxu0 %v6585_v49  ;;  %v9467_v49 = vld [vmem:[#allocation38_spill] sm:$0xff] }
 0x108   :  { %5915 = vmatprep.subr.bf16.mxu0 %v8103_v46 }
 0x109   :  { %5420 = vmatmul.mubr.bf16.gmra.mrb[48].mxu1 %v9459_v2 }
 0x10a   :  { %5788 = vmatmul.mubr.bf16.gmra.mrb[16].mxu0 %v7298_v26  ;;  %5423 = vmatprep.mubr.bf16.mxu1 %v9460_v47 }
 0x10b   :  { %5791 = vmatprep.mubr.bf16.mxu0 %v7312_v63 }
 0x111   :  { %5424 = vmatmul.mubr.bf16.gmra.mrb[52].mxu1 %v9461_v60 }
 0x112   :  { %5792 = vmatmul.mubr.bf16.gmra.mrb[20].mxu0 %v7337_v17  ;;  %5427 = vmatprep.mubr.bf16.mxu1 %v9462_v44 }
 0x113   :  { %5795 = vmatprep.mubr.bf16.mxu0 %v7364_v6 }
 0x119   :  { %5428 = vmatmul.mubr.bf16.gmra.mrb[56].mxu1 %v7838_v7 }
 0x11a   :  { %5796 = vmatmul.mubr.bf16.gmra.mrb[24].mxu0 %v9451_v53  ;;  %5431 = vmatprep.mubr.bf16.mxu1 %v7871_v40 }
 0x11b   :  { %5799 = vmatprep.mubr.bf16.mxu0 %v7432_v12 }
 0x121   :  { %5432 = vmatmul.mubr.bf16.gmra.mrb[60].mxu1 %v7883_v27 }
 0x122   :  { %5800 = vmatmul.mubr.bf16.gmra.mrb[28].mxu0 %v7434_v28  ;;  %5451 = vmatprep.mubr.bf16.mxu1 %v9452_v56  ;;  %v9470_v56 = vld [vmem:[#allocation48_spill] sm:$0xff] }
 0x123   :  { %5803 = vmatprep.mubr.bf16.mxu0 %v9453_v10 }
 0x129   :  { %5452 = vmatmul.mubr.bf16.vlgmr.msra.gmra.mrb[0].mxu1 %v9463_v24  ;;  %v9469_v24 = vld [vmem:[#allocation44_spill] sm:$0xff] }
 0x12a   :  { %5804 = vmatmul.mubr.bf16.gmra.mrb[32].mxu0 %v7503_v23  ;;  %5516 = vmatpush3.bf16.msra.mxu1 %v8014_v58  ;;  %v9466_v58 = vld [vmem:[#allocation36_spill] sm:$0xff] }
 0x12b   :  { %5455 = vmatprep.mubr.bf16.mxu1 %v9464_v54  ;;  %5807 = vmatprep.mubr.bf16.mxu0 %v9454_v18 }
 0x12c   :  { %5517 = vmatprep.subr.bf16.mxu1 %v6580_v41 }
 0x12e   :  { %5518 = vmatpush3.bf16.msra.mxu1 %v6580_v41  ;;  %v9468_v41 = vld [vmem:[#allocation42_spill] sm:$0xff] }
 0x12f   :  { %5519 = vmatprep.subr.bf16.mxu1 %v6582_v21 }
 0x131   :  { %5456 = vmatmul.mubr.bf16.gmra.mrb[4].mxu1 %v9465_v34 }
 0x132   :  { %5808 = vmatmul.mubr.bf16.gmra.mrb[36].mxu0 %v9455_v14  ;;  %5459 = vmatprep.mubr.bf16.mxu1 %v9466_v58 }
 0x133   :  { %5811 = vmatprep.mubr.bf16.mxu0 %v9456_v0  ;;  %5520 = vmatpush3.bf16.msra.mxu1 %v6582_v21  ;;  %v6590_v21 = vld [vmem:[%s9183_s2 + $0xf0] sm:$0xff]  }
 0x134   :  { %5521 = vmatprep.subr.bf16.mxu1 %v6584_v16 }
 0x137   :  { %5522 = vmatpush3.bf16.msra.mxu1 %v6584_v16  ;;  %v6592_v16 = vld [vmem:[%s9183_s2 + $0xf8] sm:$0xff]  }
 0x138   :  { %5523 = vmatprep.subr.bf16.mxu1 %v6586_v25 }
 0x139   :  { %5460 = vmatmul.mubr.bf16.gmra.mrb[8].mxu1 %v9467_v49 }
 0x13a   :  { %5812 = vmatmul.mubr.bf16.gmra.mrb[40].mxu0 %v9457_v8  ;;  %5463 = vmatprep.mubr.bf16.mxu1 %v9468_v41 }
 0x13b   :  { %5815 = vmatprep.mubr.bf16.mxu0 %v9458_v5  ;;  %5524 = vmatpush3.bf16.msra.mxu1 %v6586_v25  ;;  %v4137_v25 = vld [vmem:[%s9185_s3 + $0x10] sm:$0xff]  ;;  %v6606_v5 = vmov 0  }
 0x13c   :  { %5525 = vmatprep.subr.bf16.mxu1 %v6588_v13  ;;  %6525 = vset.pattern.permute.xlu1 %v6606_v5 }
 0x13d   :  { %6524 = vset.pattern.permute.xlu0 %v6606_v5  ;;  %4211 = vperm.xlu1 %6525, %v4137_v25   ;;  %v9472_v5 = vld [vmem:[#allocation54_spill] sm:$0xff] }
 0x13e   :  { %v4139_v25 = vld [vmem:[%s9185_s3 + $0x20] sm:$0xff] }
 0x13f   :  { %5526 = vmatpush3.bf16.msra.mxu1 %v6588_v13  ;;  %v4135_v13 = vld [vmem:[%s9185_s3] sm:$0xff] }
 0x140   :  { %5527 = vmatprep.subr.bf16.mxu1 %v6590_v21  ;;  %4201 = vperm.xlu0 %6524, %v4135_v13   ;;  %v4141_v13 = vld [vmem:[%s9185_s3 + $0x30] sm:$0xff] }
 0x141   :  { %5464 = vmatmul.mubr.bf16.gmra.mrb[12].mxu1 %v9469_v24 }
 0x142   :  { %5816 = vmatmul.mubr.bf16.gmra.mrb[44].mxu0 %v9459_v2  ;;  %5467 = vmatprep.mubr.bf16.mxu1 %v9470_v56  ;;  %v4138_v2 = vld [vmem:[%s9185_s3 + $0x18] sm:$0xff]  ;;  %v9471_v56 = vld [vmem:[#allocation50_spill] sm:$0xff] }
 0x143   :  { %5819 = vmatprep.mubr.bf16.mxu0 %v9460_v47  ;;  %5528 = vmatpush3.bf16.msra.mxu1 %v6590_v21  ;;  %v8172_v47 = vld [vmem:[%s9183_s2 + $0x100] sm:$0xff]   ;;  %v4136_v21 = vld [vmem:[%s9185_s3 + $0x8] sm:$0xff] }
 0x144   :  { %5529 = vmatprep.subr.bf16.mxu1 %v6592_v16  ;;  %4216 = vperm.xlu1 %6525, %v4138_v2   ;;  %v4142_v2 = vld [vmem:[%s9185_s3 + $0x38] sm:$0xff] }
 0x145   :  { %4206 = vperm.xlu0 %6524, %v4136_v21   ;;  %v9474_v21 = vld [vmem:[#allocation60_spill] sm:$0xff] }
 0x147   :  { %5530 = vmatpush3.bf16.msra.mxu1 %v6592_v16  ;;  %v4140_v16 = vld [vmem:[%s9185_s3 + $0x28] sm:$0xff] }
 0x148   :  { %5995 = vmatprep.subr.bf16.mxu1 %v8172_v47  ;;  %4226 = vperm.xlu1 %6525, %v4140_v16   ;;  %v4144_v16 = vld [vmem:[%s9185_s3 + $0x48] sm:$0xff] }
 0x149   :  { %5468 = vmatmul.mubr.bf16.gmra.mrb[16].mxu1 %v9471_v56  ;;  %4221 = vperm.xlu0 %6524, %v4139_v25   ;;  %v4143_v25 = vld [vmem:[%s9185_s3 + $0x40] sm:$0xff] }
 0x14a   :  { %5820 = vmatmul.mubr.bf16.gmra.mrb[48].mxu0 %v9461_v60  ;;  %5471 = vmatprep.mubr.bf16.mxu1 %v9472_v5  ;;  %v9473_v60 = vld [vmem:[#allocation56_spill] sm:$0xff] }
 0x14b   :  { %5823 = vmatprep.mubr.bf16.mxu0 %v9462_v44  ;;  %v9475_v44 = vld [vmem:[#allocation62_spill] sm:$0xff] }
 0x14c   :  { %4236 = vperm.xlu1 %6525, %v4142_v2   ;;  %v4146_v2 = vld [vmem:[%s9185_s3 + $0x58] sm:$0xff] }
 0x14d   :  { %4231 = vperm.xlu0 %6524, %v4141_v13   ;;  %v4148_v13 = vld [vmem:[%s9185_s3 + $0x68] sm:$0xff] }
 0x150   :  { %4246 = vperm.xlu1 %6525, %v4144_v16   ;;  %v4147_v16 = vld [vmem:[%s9185_s3 + $0x60] sm:$0xff] }
 0x151   :  { %5472 = vmatmul.mubr.bf16.gmra.mrb[20].mxu1 %v9473_v60  ;;  %4241 = vperm.xlu0 %6524, %v4143_v25   ;;  %v4150_v25 = vld [vmem:[%s9185_s3 + $0x78] sm:$0xff] }
 0x152   :  { %5824 = vmatmul.mubr.bf16.gmra.mrb[52].mxu0 %v7838_v7  ;;  %5475 = vmatprep.mubr.bf16.mxu1 %v9474_v21  ;;  %v4145_v7 = vld [vmem:[%s9185_s3 + $0x50] sm:$0xff] }
 0x153   :  { %5827 = vmatprep.mubr.bf16.mxu0 %v7871_v40 }
 0x154   :  { %4256 = vperm.xlu1 %6525, %v4146_v2   ;;  %v4149_v2 = vld [vmem:[%s9185_s3 + $0x70] sm:$0xff] }
 0x155   :  { %4251 = vperm.xlu0 %6524, %v4145_v7   ;;  %v4152_v7 = vld [vmem:[%s9185_s3 + $0x88] sm:$0xff] }
 0x158   :  { %4266 = vperm.xlu1 %6525, %v4148_v13   ;;  %v9476_v13 = vld [vmem:[#allocation4_spill] sm:$0xff] }
 0x159   :  { %5476 = vmatmul.mubr.bf16.gmra.mrb[24].mxu1 %v9475_v44  ;;  %4261 = vperm.xlu0 %6524, %v4147_v16   ;;  %v4151_v16 = vld [vmem:[%s9185_s3 + $0x80] sm:$0xff] }
 0x15a   :  { %5828 = vmatmul.mubr.bf16.gmra.mrb[56].mxu0 %v7883_v27  ;;  %5479 = vmatprep.mubr.bf16.mxu1 %v7846_v59 }
 0x15b   :  { %5831 = vmatprep.mubr.bf16.mxu0 %v7060_v9  ;;  %v6589_v9 = vld [vmem:[%s9183_s2 + $0x208] sm:$0xff]  }
 0x15c   :  { %4276 = vperm.xlu1 %6525, %v4150_v25   ;;  %v4154_v25 = vld [vmem:[%s9185_s3 + $0x98] sm:$0xff] }
 0x15d   :  { %4271 = vperm.xlu0 %6524, %v4149_v2   ;;  %v4153_v2 = vld [vmem:[%s9185_s3 + $0x90] sm:$0xff] }
 0x160   :  { %4286 = vperm.xlu1 %6525, %v4152_v7   ;;  %v4156_v7 = vld [vmem:[%s9185_s3 + $0xa8] sm:$0xff] }
 0x161   :  { %5480 = vmatmul.mubr.bf16.gmra.mrb[28].mxu1 %v7854_v33  ;;  %4281 = vperm.xlu0 %6524, %v4151_v16   ;;  %v9478_v16 = vld [vmem:[#allocation6_spill] sm:$0xff] }
 0x162   :  { %5832 = vmatmul.mubr.bf16.gmra.mrb[60].mxu0 %v7084_v22  ;;  %5483 = vmatprep.mubr.bf16.mxu1 %v7889_v45 }
 0x163   :  { %5851 = vmatprep.mubr.bf16.mxu0 %v9476_v13  ;;  %v9477_v13 = vld [vmem:[#allocation5_spill] sm:$0xff] }
 0x164   :  { %4296 = vperm.xlu1 %6525, %v4154_v25   ;;  %v6591_v25 = vld [vmem:[%s9183_s2 + $0x210] sm:$0xff]  }
 0x165   :  { %4291 = vperm.xlu0 %6524, %v4153_v2   ;;  %v4157_v2 = vld [vmem:[%s9185_s3 + $0xb0] sm:$0xff] }
 0x168   :  { %4306 = vperm.xlu1 %6525, %v4156_v7   ;;  %v9479_v7 = vld [vmem:[#allocation7_spill] sm:$0xff] }
 0x169   :  { %5484 = vmatmul.mubr.bf16.gmra.mrb[32].mxu1 %v7893_v3 }
 0x16a   :  { %5852 = vmatmul.mubr.bf16.vlgmr.msra.gmra.mrb[0].mxu0 %v9477_v13  ;;  %5487 = vmatprep.mubr.bf16.mxu1 %v7909_v4  ;;  %v4155_v13 = vld [vmem:[%s9185_s3 + $0xa0] sm:$0xff]  ;;  %v4158_v4 = vld [vmem:[%s9185_s3 + $0xb8] sm:$0xff] }
 0x16b   :  { %5916 = vmatpush3.bf16.msra.mxu0 %v8103_v46  ;;  %5855 = vmatprep.mubr.bf16.mxu0 %v9478_v16  ;;  %v6593_v46 = vld [vmem:[%s9183_s2 + $0x218] sm:$0xff]   ;;  %v9480_v16 = vld [vmem:[#allocation8_spill] sm:$0xff] }
 0x16c   :  { %5917 = vmatprep.subr.bf16.mxu0 %v6589_v9  ;;  %4301 = vperm.xlu0 %6524, %v4155_v13   ;;  %v4159_v13 = vld [vmem:[%s9185_s3 + $0xc0] sm:$0xff] }
 0x16d   :  { %4316 = vperm.xlu1 %6525, %v4158_v4   ;;  %v6594_v4 = vld [vmem:[%s9183_s2 + $0x220] sm:$0xff]  }
 0x16f   :  { %5918 = vmatpush3.bf16.msra.mxu0 %v6589_v9  ;;  %v4160_v9 = vld [vmem:[%s9185_s3 + $0xc8] sm:$0xff] }
 0x170   :  { %5919 = vmatprep.subr.bf16.mxu0 %v6591_v25  ;;  %4311 = vperm.xlu0 %6524, %v4157_v2   ;;  %v4161_v2 = vld [vmem:[%s9185_s3 + $0xd0] sm:$0xff] }
 0x171   :  { %5488 = vmatmul.mubr.bf16.gmra.mrb[36].mxu1 %v7913_v20  ;;  %4326 = vperm.xlu1 %6525, %v4160_v9   ;;  %v9481_v9 = vld [vmem:[#allocation9_spill] sm:$0xff] }
 0x172   :  { %5856 = vmatmul.mubr.bf16.gmra.mrb[4].mxu0 %v9479_v7  ;;  %5491 = vmatprep.mubr.bf16.mxu1 %v7936_v35  ;;  %v4162_v7 = vld [vmem:[%s9185_s3 + $0xd8] sm:$0xff] }
 0x173   :  { %5859 = vmatprep.mubr.bf16.mxu0 %v9480_v16  ;;  %5920 = vmatpush3.bf16.msra.mxu0 %v6591_v25  ;;  %v6595_v25 = vld [vmem:[%s9183_s2 + $0x228] sm:$0xff]   ;;  %v9482_v16 = vld [vmem:[#allocation10_spill] sm:$0xff] }
 0x174   :  { %5921 = vmatprep.subr.bf16.mxu0 %v6593_v46  ;;  %4321 = vperm.xlu0 %6524, %v4159_v13   ;;  %v6596_v13 = vld [vmem:[%s9183_s2 + $0x230] sm:$0xff]  }
 0x175   :  { %4336 = vperm.xlu1 %6525, %v4162_v7   ;;  %v4163_v7 = vld [vmem:[%s9185_s3 + $0xe0] sm:$0xff] }
 0x177   :  { %5922 = vmatpush3.bf16.msra.mxu0 %v6593_v46  ;;  %v4164_v46 = vld [vmem:[%s9185_s3 + $0xe8] sm:$0xff] }
 0x178   :  { %5923 = vmatprep.subr.bf16.mxu0 %v6594_v4  ;;  %4331 = vperm.xlu0 %6524, %v4161_v2   ;;  %v4165_v2 = vld [vmem:[%s9185_s3 + $0xf0] sm:$0xff] }
 0x179   :  { %5492 = vmatmul.mubr.bf16.gmra.mrb[40].mxu1 %v7940_v1  ;;  %4346 = vperm.xlu1 %6525, %v4164_v46   ;;  %v9483_v46 = vld [vmem:[#allocation11_spill] sm:$0xff] }
 0x17a   :  { %5860 = vmatmul.mubr.bf16.gmra.mrb[8].mxu0 %v9481_v9  ;;  %5495 = vmatprep.mubr.bf16.mxu1 %v7962_v11  ;;  %v4166_v9 = vld [vmem:[%s9185_s3 + $0xf8] sm:$0xff] }
 0x17b   :  { %5863 = vmatprep.mubr.bf16.mxu0 %v9482_v16  ;;  %5924 = vmatpush3.bf16.msra.mxu0 %v6594_v4  ;;  %v6597_v4 = vld [vmem:[%s9183_s2 + $0x238] sm:$0xff]   ;;  %v9484_v16 = vld [vmem:[#allocation12_spill] sm:$0xff] }
 0x17c   :  { %5925 = vmatprep.subr.bf16.mxu0 %v6595_v25  ;;  %4341 = vperm.xlu0 %6524, %v4163_v7   ;;  %v4167_v7 = vld [vmem:[%s9185_s3 + $0x100] sm:$0xff] }
 0x17d   :  { %4356 = vperm.xlu1 %6525, %v4166_v9   ;;  %v4170_v9 = vld [vmem:[%s9185_s3 + $0x118] sm:$0xff] }
 0x17f   :  { %5926 = vmatpush3.bf16.msra.mxu0 %v6595_v25  ;;  %v4168_v25 = vld [vmem:[%s9185_s3 + $0x108] sm:$0xff] }
 0x180   :  { %5927 = vmatprep.subr.bf16.mxu0 %v6596_v13  ;;  %4351 = vperm.xlu0 %6524, %v4165_v2   ;;  %v4172_v2 = vld [vmem:[%s9185_s3 + $0x128] sm:$0xff] }
 0x181   :  { %5496 = vmatmul.mubr.bf16.gmra.mrb[44].mxu1 %v7966_v48  ;;  %4366 = vperm.xlu1 %6525, %v4168_v25   ;;  %v9486_v25 = vld [vmem:[#allocation14_spill] sm:$0xff] }
 0x182   :  { %5864 = vmatmul.mubr.bf16.gmra.mrb[12].mxu0 %v9483_v46  ;;  %5499 = vmatprep.mubr.bf16.mxu1 %v7988_v42  ;;  %v9485_v46 = vld [vmem:[#allocation13_spill] sm:$0xff] }
 0x183   :  { %5867 = vmatprep.mubr.bf16.mxu0 %v9484_v16  ;;  %5928 = vmatpush3.bf16.msra.mxu0 %v6596_v13  ;;  %v4169_v13 = vld [vmem:[%s9185_s3 + $0x110] sm:$0xff]  ;;  %v4174_v16 = vld [vmem:[%s9185_s3 + $0x138] sm:$0xff] }
 0x184   :  { %5929 = vmatprep.subr.bf16.mxu0 %v6597_v4  ;;  %4361 = vperm.xlu0 %6524, %v4167_v7   ;;  %v4173_v7 = vld [vmem:[%s9185_s3 + $0x130] sm:$0xff] }
 0x185   :  { %4376 = vperm.xlu1 %6525, %v4170_v9   ;;  %v9487_v9 = vld [vmem:[#allocation16_spill] sm:$0xff] }
 0x187   :  { %5930 = vmatpush3.bf16.msra.mxu0 %v6597_v4  ;;  %v4171_v4 = vld [vmem:[%s9185_s3 + $0x120] sm:$0xff] }
 0x188   :  { %4371 = vperm.xlu0 %6524, %v4169_v13   ;;  %v4176_v13 = vld [vmem:[%s9185_s3 + $0x148] sm:$0xff] }
 0x189   :  { %5500 = vmatmul.mubr.bf16.gmra.mrb[48].mxu1 %v7992_v29  ;;  %4386 = vperm.xlu1 %6525, %v4172_v2   ;;  %v4175_v2 = vld [vmem:[%s9185_s3 + $0x140] sm:$0xff] }
 0x18a   :  { %5868 = vmatmul.mubr.bf16.gmra.mrb[16].mxu0 %v9485_v46  ;;  %5503 = vmatprep.mubr.bf16.mxu1 %v8016_v31  ;;  %v9488_v46 = vld [vmem:[#allocation18_spill] sm:$0xff] }
 0x18b   :  { %5871 = vmatprep.mubr.bf16.mxu0 %v9486_v25  ;;  %v4178_v25 = vld [vmem:[%s9185_s3 + $0x158] sm:$0xff] }
 0x18c   :  { %4381 = vperm.xlu0 %6524, %v4171_v4   ;;  %v4177_v4 = vld [vmem:[%s9185_s3 + $0x150] sm:$0xff] }
 0x18d   :  { %4396 = vperm.xlu1 %6525, %v4174_v16   ;;  %v9489_v16 = vld [vmem:[#allocation20_spill] sm:$0xff] }
 0x190   :  { %4391 = vperm.xlu0 %6524, %v4173_v7   ;;  %v4180_v7 = vld [vmem:[%s9185_s3 + $0x168] sm:$0xff] }
 0x191   :  { %5504 = vmatmul.mubr.bf16.gmra.mrb[52].mxu1 %v8020_v50  ;;  %4406 = vperm.xlu1 %6525, %v4176_v13   ;;  %v4179_v13 = vld [vmem:[%s9185_s3 + $0x160] sm:$0xff] }
 0x192   :  { %5872 = vmatmul.mubr.bf16.gmra.mrb[20].mxu0 %v9487_v9  ;;  %5507 = vmatprep.mubr.bf16.mxu1 %v8037_v51  ;;  %v9490_v9 = vld [vmem:[#allocation26_spill] sm:$0xff] }
 0x193   :  { %5875 = vmatprep.mubr.bf16.mxu0 %v9488_v46  ;;  %v4182_v46 = vld [vmem:[%s9185_s3 + $0x178] sm:$0xff] }
 0x194   :  { %4401 = vperm.xlu0 %6524, %v4175_v2   ;;  %v4181_v2 = vld [vmem:[%s9185_s3 + $0x170] sm:$0xff] }
 0x195   :  { %4416 = vperm.xlu1 %6525, %v4178_v25   ;;  %v9491_v25 = vld [vmem:[#allocation30_spill] sm:$0xff] }
 0x198   :  { %4411 = vperm.xlu0 %6524, %v4177_v4   ;;  %v4184_v4 = vld [vmem:[%s9185_s3 + $0x188] sm:$0xff] }
 0x199   :  { %5508 = vmatmul.mubr.bf16.gmra.mrb[56].mxu1 %v8040_v38  ;;  %4426 = vperm.xlu1 %6525, %v4180_v7   ;;  %v4183_v7 = vld [vmem:[%s9185_s3 + $0x180] sm:$0xff] }
 0x19a   :  { %5876 = vmatmul.mubr.bf16.gmra.mrb[24].mxu0 %v9489_v16  ;;  %5511 = vmatprep.mubr.bf16.mxu1 %v8052_v61  ;;  %v9492_v16 = vld [vmem:[#allocation31_spill] sm:$0xff] }
 0x19b   :  { %5879 = vmatprep.mubr.bf16.mxu0 %v9490_v9  ;;  %v4186_v9 = vld [vmem:[%s9185_s3 + $0x198] sm:$0xff] }
 0x19c   :  { %4421 = vperm.xlu0 %6524, %v4179_v13   ;;  %v9493_v13 = vld [vmem:[#allocation35_spill] sm:$0xff] }
 0x19d   :  { %4436 = vperm.xlu1 %6525, %v4182_v46   ;;  %v4188_v46 = vld [vmem:[%s9185_s3 + $0x1a8] sm:$0xff] }
 0x1a0   :  { %4431 = vperm.xlu0 %6524, %v4181_v2   ;;  %v9494_v2 = vld [vmem:[#allocation37_spill] sm:$0xff] }
 0x1a1   :  { %5512 = vmatmul.mubr.bf16.gmra.mrb[60].mxu1 %v7366_v19  ;;  %4446 = vperm.xlu1 %6525, %v4184_v4   ;;  %v4187_v4 = vld [vmem:[%s9185_s3 + $0x1a0] sm:$0xff] }
 0x1a2   :  { %5880 = vmatmul.mubr.bf16.gmra.mrb[28].mxu0 %v9491_v25  ;;  %5531 = vmatprep.mubr.bf16.mxu1 %v7084_v22  ;;  %v4185_v22 = vld [vmem:[%s9185_s3 + $0x190] sm:$0xff] }
 0x1a3   :  { %5883 = vmatprep.mubr.bf16.mxu0 %v9492_v16 }
 0x1a4   :  { %4441 = vperm.xlu0 %6524, %v4183_v7   ;;  %v4189_v7 = vld [vmem:[%s9185_s3 + $0x1b0] sm:$0xff] }
 0x1a5   :  { %4456 = vperm.xlu1 %6525, %v4186_v9   ;;  %v9495_v9 = vld [vmem:[#allocation41_spill] sm:$0xff] }
 0x1a8   :  { %4451 = vperm.xlu0 %6524, %v4185_v22   ;;  %v4192_v22 = vld [vmem:[%s9185_s3 + $0x1c8] sm:$0xff] }
 0x1a9   :  { %5532 = vmatmul.mubr.bf16.vlgmr.msra.gmra.mrb[0].mxu1 %v7102_v55  ;;  %v6599_v55 = vld [vmem:[%s9183_s2 + $0x108] sm:$0xff]   ;;  %4466 = vperm.xlu1 %6525, %v4188_v46  }
 0x1aa   :  { %5884 = vmatmul.mubr.bf16.gmra.mrb[32].mxu0 %v9493_v13  ;;  %6003 = vmatpush3.bf16.msra.mxu1 %v8172_v47  ;;  %v4190_v47 = vld [vmem:[%s9185_s3 + $0x1b8] sm:$0xff]  ;;  %v9496_v46 = vld [vmem:[#allocation43_spill] sm:$0xff] }
 0x1ab   :  { %5535 = vmatprep.mubr.bf16.mxu1 %v7118_v15  ;;  %5887 = vmatprep.mubr.bf16.mxu0 %v9494_v2  ;;  %v6600_v15 = vld [vmem:[%s9183_s2 + $0x110] sm:$0xff]  }
 0x1ac   :  { %5996 = vmatprep.subr.bf16.mxu1 %v6599_v55  ;;  %4461 = vperm.xlu0 %6524, %v4187_v4   ;;  %v6602_v4 = vld [vmem:[%s9183_s2 + $0x120] sm:$0xff]  }
 0x1ad   :  { %4476 = vperm.xlu1 %6525, %v4190_v47   ;;  %v4193_v47 = vld [vmem:[%s9185_s3 + $0x1d0] sm:$0xff] }
 0x1ae   :  { %6004 = vmatpush3.bf16.msra.mxu1 %v6599_v55  ;;  %v4191_v55 = vld [vmem:[%s9185_s3 + $0x1c0] sm:$0xff] }
 0x1af   :  { %5997 = vmatprep.subr.bf16.mxu1 %v6600_v15 }
 0x1b0   :  { %4471 = vperm.xlu0 %6524, %v4189_v7   ;;  %v4196_v7 = vld [vmem:[%s9185_s3 + $0x1e8] sm:$0xff] }
 0x1b1   :  { %5536 = vmatmul.mubr.bf16.gmra.mrb[4].mxu1 %v9443_v30  ;;  %v6601_v30 = vld [vmem:[%s9183_s2 + $0x118] sm:$0xff]   ;;  %4486 = vperm.xlu1 %6525, %v4192_v22  }
 0x1b2   :  { %5888 = vmatmul.mubr.bf16.gmra.mrb[36].mxu0 %v9495_v9  ;;  %5539 = vmatprep.mubr.bf16.mxu1 %v9444_v39  ;;  %v4194_v39 = vld [vmem:[%s9185_s3 + $0x1d8] sm:$0xff] }
 0x1b3   :  { %5891 = vmatprep.mubr.bf16.mxu0 %v9496_v46  ;;  %6005 = vmatpush3.bf16.msra.mxu1 %v6600_v15  ;;  %v9497_v15 = vld [vmem:[#allocation47_spill] sm:$0xff]  ;;  %v9498_v22 = vld [vmem:[#allocation49_spill] sm:$0xff] }
 0x1b4   :  { %5998 = vmatprep.subr.bf16.mxu1 %v6601_v30  ;;  %4481 = vperm.xlu0 %6524, %v4191_v55   ;;  %v6604_v55 = vld [vmem:[%s9183_s2 + $0x130] sm:$0xff]  }
 0x1b5   :  { %4496 = vperm.xlu1 %6525, %v4194_v39   ;;  %v4197_v39 = vld [vmem:[%s9185_s3 + $0x1f0] sm:$0xff] }
 0x1b7   :  { %6006 = vmatpush3.bf16.msra.mxu1 %v6601_v30  ;;  %v4195_v30 = vld [vmem:[%s9185_s3 + $0x1e0] sm:$0xff] }
 0x1b8   :  { %5999 = vmatprep.subr.bf16.mxu1 %v6602_v4  ;;  %4491 = vperm.xlu0 %6524, %v4193_v47   ;;  %v9500_v47 = vld [vmem:[#allocation55_spill] sm:$0xff] }
 0x1b9   :  { %5540 = vmatmul.mubr.bf16.gmra.mrb[8].mxu1 %v9445_v43  ;;  %v6603_v43 = vld [vmem:[%s9183_s2 + $0x128] sm:$0xff]   ;;  %4506 = vperm.xlu1 %6525, %v4196_v7   ;;  %v6605_v7 = vld [vmem:[%s9183_s2 + $0x138] sm:$0xff]  }
 0x1ba   :  { %5892 = vmatmul.mubr.bf16.gmra.mrb[40].mxu0 %v9497_v15  ;;  %5543 = vmatprep.mubr.bf16.mxu1 %v9446_v32  ;;  %v4198_v32 = vld [vmem:[%s9185_s3 + $0x1f8] sm:$0xff] }
 0x1bb   :  { %5895 = vmatprep.mubr.bf16.mxu0 %v9498_v22  ;;  %6007 = vmatpush3.bf16.msra.mxu1 %v6602_v4  ;;  %v9499_v4 = vld [vmem:[#allocation53_spill] sm:$0xff] }
 0x1bc   :  { %6000 = vmatprep.subr.bf16.mxu1 %v6603_v43  ;;  %4501 = vperm.xlu0 %6524, %v4195_v30  }
 0x1bd   :  { %4516 = vperm.xlu1 %6525, %v4198_v32  }
 0x1bf   :  { %6008 = vmatpush3.bf16.msra.mxu1 %v6603_v43  ;;  %v9502_v43 = vld [vmem:[#allocation61_spill] sm:$0xff] }
 0x1c0   :  { %6001 = vmatprep.subr.bf16.mxu1 %v6604_v55  ;;  %4511 = vperm.xlu0 %6524, %v4197_v39  }
 0x1c1   :  { %5544 = vmatmul.mubr.bf16.gmra.mrb[12].mxu1 %v9447_v57  ;;  %v9501_v57 = vld [vmem:[#allocation59_spill] sm:$0xff] }
 0x1c2   :  { %5896 = vmatmul.mubr.bf16.gmra.mrb[44].mxu0 %v9499_v4  ;;  %5547 = vmatprep.mubr.bf16.mxu1 %v9448_v52  ;;  %v9503_v52 = vld [vmem:[#allocation65_spill] sm:$0xff] }
 0x1c3   :  { %5899 = vmatprep.mubr.bf16.mxu0 %v9500_v47  ;;  %6009 = vmatpush3.bf16.msra.mxu1 %v6604_v55 }
 0x1c4   :  { %6002 = vmatprep.subr.bf16.mxu1 %v6605_v7 }
 0x1c7   :  { %6010 = vmatpush3.bf16.msra.mxu1 %v6605_v7 }
 0x1c9   :  { %5548 = vmatmul.mubr.bf16.gmra.mrb[16].mxu1 %v9449_v36  ;;  %v9504_v36 = vld [vmem:[#allocation2_spill] sm:$0xff] }
 0x1ca   :  { %5900 = vmatmul.mubr.bf16.gmra.mrb[48].mxu0 %v9501_v57  ;;  %5551 = vmatprep.mubr.bf16.mxu1 %v7298_v26  ;;  %v9505_v26 = vld [vmem:[#allocation3_spill] sm:$0xff] }
 0x1cb   :  { %5903 = vmatprep.mubr.bf16.mxu0 %v9502_v43 }
 0x1d1   :  { %5552 = vmatmul.mubr.bf16.gmra.mrb[20].mxu1 %v7312_v63  ;;  %v9506_v63 = vld [vmem:[#allocation48_spill] sm:$0xff] }
 0x1d2   :  { %5904 = vmatmul.mubr.bf16.gmra.mrb[52].mxu0 %v7844_v37  ;;  %5555 = vmatprep.mubr.bf16.mxu1 %v7337_v17  ;;  %v9507_v17 = vld [vmem:[#allocation51_spill] sm:$0xff] }
 0x1d3   :  { %5907 = vmatprep.mubr.bf16.mxu0 %v9503_v52 }
 0x1d9   :  { %5556 = vmatmul.mubr.bf16.gmra.mrb[24].mxu1 %v7364_v6  ;;  %v9508_v6 = vld [vmem:[#allocation52_spill] sm:$0xff] }
 0x1da   :  { %5908 = vmatmul.mubr.bf16.gmra.mrb[56].mxu0 %v7887_v62  ;;  %5559 = vmatprep.mubr.bf16.mxu1 %v9451_v53  ;;  %v9512_v53 = vld [vmem:[#allocation64_spill] sm:$0xff] }
 0x1db   :  { %5911 = vmatprep.mubr.bf16.mxu0 %v9504_v36 }
 0x1e1   :  { %5560 = vmatmul.mubr.bf16.gmra.mrb[28].mxu1 %v7432_v12  ;;  %v9509_v12 = vld [vmem:[#allocation57_spill] sm:$0xff] }
 0x1e2   :  { %5912 = vmatmul.mubr.bf16.gmra.mrb[60].mxu0 %v9505_v26  ;;  %5563 = vmatprep.mubr.bf16.mxu1 %v7434_v28  ;;  %v9510_v28 = vld [vmem:[#allocation58_spill] sm:$0xff] }
 0x1e3   :  { %5931 = vmatprep.mubr.bf16.mxu0 %v9464_v54 }
 0x1e9   :  { %5564 = vmatmul.mubr.bf16.gmra.mrb[32].mxu1 %v9453_v10  ;;  %v9514_v10 = vld [vmem:[#allocation66_spill] sm:$0xff] }
 0x1ea   :  { %5932 = vmatmul.mubr.bf16.vlgmr.msra.gmra.mrb[0].mxu0 %v9465_v34  ;;  %5567 = vmatprep.mubr.bf16.mxu1 %v7503_v23  ;;  %v9511_v23 = vld [vmem:[#allocation63_spill] sm:$0xff] }
 0x1eb   :  { %5935 = vmatprep.mubr.bf16.mxu0 %v9466_v58 }
 0x1f1   :  { %5568 = vmatmul.mubr.bf16.gmra.mrb[36].mxu1 %v9454_v18 }
 0x1f2   :  { %5936 = vmatmul.mubr.bf16.gmra.mrb[4].mxu0 %v9467_v49  ;;  %5571 = vmatprep.mubr.bf16.mxu1 %v9455_v14 }
 0x1f3   :  { %5939 = vmatprep.mubr.bf16.mxu0 %v9468_v41 }
 0x1f9   :  { %5572 = vmatmul.mubr.bf16.gmra.mrb[40].mxu1 %v9456_v0 }
 0x1fa   :  { %5940 = vmatmul.mubr.bf16.gmra.mrb[8].mxu0 %v9469_v24  ;;  %5575 = vmatprep.mubr.bf16.mxu1 %v9457_v8 }
 0x1fb   :  { %5943 = vmatprep.mubr.bf16.mxu0 %v9506_v63 }
 0x201   :  { %5576 = vmatmul.mubr.bf16.gmra.mrb[44].mxu1 %v9507_v17 }
 0x202   :  { %5944 = vmatmul.mubr.bf16.gmra.mrb[12].mxu0 %v9471_v56  ;;  %5579 = vmatprep.mubr.bf16.mxu1 %v9508_v6  ;;  %v9513_v56 = vld [vmem:[#allocation15_spill] sm:$0xff] }
 0x203   :  { %5947 = vmatprep.mubr.bf16.mxu0 %v9472_v5 }
 0x209   :  { %5580 = vmatmul.mubr.bf16.gmra.mrb[48].mxu1 %v9509_v12 }
 0x20a   :  { %5948 = vmatmul.mubr.bf16.gmra.mrb[16].mxu0 %v9473_v60  ;;  %5583 = vmatprep.mubr.bf16.mxu1 %v9510_v28 }
 0x20b   :  { %5951 = vmatprep.mubr.bf16.mxu0 %v9474_v21 }
 0x211   :  { %5584 = vmatmul.mubr.bf16.gmra.mrb[52].mxu1 %v9511_v23 }
 0x212   :  { %5952 = vmatmul.mubr.bf16.gmra.mrb[20].mxu0 %v9475_v44  ;;  %5587 = vmatprep.mubr.bf16.mxu1 %v9512_v53 }
 0x213   :  { %5955 = vmatprep.mubr.bf16.mxu0 %v7846_v59  ;;  %v9515_v59 = vld [vmem:[#allocation33_spill] sm:$0xff] }
 0x219   :  { %5588 = vmatmul.mubr.bf16.gmra.mrb[56].mxu1 %v7871_v40  ;;  %v8544_v40 = vpop.permute.xlu0 %4201 }
 0x21a   :  { %5956 = vmatmul.mubr.bf16.gmra.mrb[24].mxu0 %v7854_v33  ;;  %5591 = vmatprep.mubr.bf16.mxu1 %v7883_v27  ;;  %v9516_v33 = vld [vmem:[#allocation27_spill] sm:$0xff]  ;;  %v8546_v27 = vpop.permute.xlu1 %4211 }
 0x21b   :  { %5959 = vmatprep.mubr.bf16.mxu0 %v7889_v45 }
 0x21d   :  { %v8548_v45 = vpop.permute.xlu0 %4206 }
 0x221   :  { %5592 = vmatmul.mubr.bf16.gmra.mrb[60].mxu1 %v9513_v56 }
 0x222   :  { %5960 = vmatmul.mubr.bf16.gmra.mrb[28].mxu0 %v7893_v3  ;;  %5643 = vmatprep.mubr.bf16.mxu1 %v9491_v25  ;;  %v8552_v3 = vpop.permute.xlu0 %4221 }
 0x223   :  { %5963 = vmatprep.mubr.bf16.mxu0 %v9514_v10 }
 0x229   :  { %5644 = vmatmul.mubr.bf16.vlgmr.msra.gmra.mrb[32].mxu1 %v9492_v16 }
 0x22a   :  { %5964 = vmatmul.mubr.bf16.gmra.mrb[32].mxu0 %v7913_v20  ;;  %5647 = vmatprep.mubr.bf16.mxu1 %v9493_v13 }
 0x22b   :  { %5967 = vmatprep.mubr.bf16.mxu0 %v7936_v35  ;;  %v8556_v35 = vpop.permute.xlu0 %4231 }
 0x231   :  { %5648 = vmatmul.mubr.bf16.gmra.mrb[36].mxu1 %v9494_v2 }
 0x232   :  { %5968 = vmatmul.mubr.bf16.gmra.mrb[36].mxu0 %v7940_v1  ;;  %5651 = vmatprep.mubr.bf16.mxu1 %v9495_v9 }
 0x233   :  { %5971 = vmatprep.mubr.bf16.mxu0 %v7962_v11 }
 0x239   :  { %5652 = vmatmul.mubr.bf16.gmra.mrb[40].mxu1 %v9496_v46 }
 0x23a   :  { %5972 = vmatmul.mubr.bf16.gmra.mrb[40].mxu0 %v7966_v48  ;;  %5655 = vmatprep.mubr.bf16.mxu1 %v9497_v15 }
 0x23b   :  { %5975 = vmatprep.mubr.bf16.mxu0 %v7988_v42  ;;  %v8562_v42 = vpop.permute.xlu0 %4241 }
 0x241   :  { %5656 = vmatmul.mubr.bf16.gmra.mrb[44].mxu1 %v9498_v22 }
 0x242   :  { %5976 = vmatmul.mubr.bf16.gmra.mrb[44].mxu0 %v7992_v29  ;;  %5659 = vmatprep.mubr.bf16.mxu1 %v9499_v4 }
 0x243   :  { %5979 = vmatprep.mubr.bf16.mxu0 %v8016_v31 }
 0x249   :  { %5660 = vmatmul.mubr.bf16.gmra.mrb[48].mxu1 %v9500_v47 }
 0x24a   :  { %5980 = vmatmul.mubr.bf16.gmra.mrb[48].mxu0 %v8020_v50  ;;  %5663 = vmatprep.mubr.bf16.mxu1 %v9501_v57 }
 0x24b   :  { %5983 = vmatprep.mubr.bf16.mxu0 %v8037_v51 }
 0x251   :  { %5664 = vmatmul.mubr.bf16.gmra.mrb[52].mxu1 %v9502_v43 }
 0x252   :  { %5984 = vmatmul.mubr.bf16.gmra.mrb[52].mxu0 %v8040_v38  ;;  %5667 = vmatprep.mubr.bf16.mxu1 %v7844_v37  ;;  %v8550_v37 = vpop.permute.xlu1 %4216 }
 0x253   :  { %5987 = vmatprep.mubr.bf16.mxu0 %v8052_v61  ;;  %v8574_v61 = vpop.permute.xlu0 %4251 }
 0x257   :  { %v8586_v44 = vpop.permute.xlu0 %4261 }
 0x259   :  { %5668 = vmatmul.mubr.bf16.gmra.mrb[56].mxu1 %v9503_v52 }
 0x25a   :  { %5988 = vmatmul.mubr.bf16.gmra.mrb[56].mxu0 %v7366_v19  ;;  %5671 = vmatprep.mubr.bf16.mxu1 %v7887_v62  ;;  %v8554_v19 = vpop.permute.xlu1 %4226 }
 0x25b   :  { %5991 = vmatprep.mubr.bf16.mxu0 %v9515_v59  ;;  %v8594_v58 = vpop.permute.xlu0 %4271 }
 0x25e   :  { %v8560_v48 = vpop.permute.xlu1 %4236 }
 0x25f   :  { %v8602_v21 = vpop.permute.xlu0 %4281 }
 0x261   :  { %5672 = vmatmul.mubr.bf16.gmra.mrb[60].mxu1 %v9504_v36 }
 0x262   :  { %5992 = vmatmul.mubr.bf16.gmra.mrb[60].mxu0 %v9516_v33  ;;  %v8572_v38 = vpop.permute.xlu1 %4246  ;;  %v4073_v33 = vld [vmem:[%s9186_s1 + $0x10] sm:$0xff] }
 0x263   :  { %v8614_v46 = vpop.permute.xlu0 %4291 }
 0x266   :  { %v8582_v8 = vpop.permute.xlu1 %4256 }
 0x267   :  { %v8626_v39 = vpop.permute.xlu0 %4301 }
 0x26a   :  { %v8590_v54 = vpop.permute.xlu1 %4266 }
 0x26b   :  { %v8634_v57 = vpop.permute.xlu0 %4311 }
 0x26e   :  { %v8600_v5 = vpop.permute.xlu1 %4276 }
 0x26f   :  { %v8642_v26 = vpop.permute.xlu0 %4321 }
 0x270   :  { %9518 = vst [vmem:[#allocation19_spill] sm:$0xff] %v8642_v26 }
 0x272   :  { %v8612_v9 = vpop.permute.xlu1 %4286 }
 0x273   :  { %v8654_v23 = vpop.permute.xlu0 %4331 }
 0x276   :  { %v8622_v32 = vpop.permute.xlu1 %4296 }
 0x27a   :  { %v8630_v47 = vpop.permute.xlu1 %4306 }
 0x27c   :  { %v5533_v20 = vpop.f32.mrb[0].mxu1 }
 0x27d   :  { %v1662_v62 = vpop.f32.mrb[1].mxu1 }
 0x27e   :  { %v5534_v1 = vpop.f32.mrb[2].mxu1  ;;  %v8640_v36 = vpop.permute.xlu1 %4316 }
 0x27f   :  { %v8558_v11 = vpop.f32.mrb[3].mxu1 }
 0x282   :  { %v8652_v28 = vpop.permute.xlu1 %4326 }
 0x283   :  { %9523 = vst [vmem:[#allocation25_spill] sm:$0xff] %v8652_v28 }
 0x284   :  { %v8564_v29 = vpop.f32.mrb[4].mxu1 }
 0x285   :  { %v8566_v31 = vpop.f32.mrb[5].mxu1 }
 0x286   :  { %v8568_v50 = vpop.f32.mrb[6].mxu1  ;;  %v8656_v59 = vpop.permute.xlu1 %4336 }
 0x287   :  { %v8570_v51 = vpop.f32.mrb[7].mxu1  ;;  %9524 = vst [vmem:[#allocation32_spill] sm:$0xff] %v8656_v59 }
 0x28c   :  { %v8576_v18 = vpop.f32.mrb[8].mxu1 }
 0x28d   :  { %v8578_v14 = vpop.f32.mrb[9].mxu1 }
 0x28e   :  { %v8580_v0 = vpop.f32.mrb[10].mxu1 }
 0x28f   :  { %v8584_v60 = vpop.f32.mrb[11].mxu1 }
 0x294   :  { %v8588_v24 = vpop.f32.mrb[12].mxu1 }
 0x295   :  { %v8592_v34 = vpop.f32.mrb[13].mxu1 }
 0x296   :  { %v8596_v49 = vpop.f32.mrb[14].mxu1 }
 0x297   :  { %v8598_v41 = vpop.f32.mrb[15].mxu1 }
 0x29c   :  { %v8604_v25 = vpop.f32.mrb[16].mxu1 }
 0x29d   :  { %v8606_v16 = vpop.f32.mrb[17].mxu1 }
 0x29e   :  { %v8608_v13 = vpop.f32.mrb[18].mxu1 }
 0x29f   :  { %v8610_v2 = vpop.f32.mrb[19].mxu1 }
 0x2a4   :  { %v8616_v15 = vpop.f32.mrb[20].mxu1 }
 0x2a5   :  { %v8618_v22 = vpop.f32.mrb[21].mxu1 }
 0x2a6   :  { %v8620_v30 = vpop.f32.mrb[22].mxu1 }
 0x2a7   :  { %v8624_v55 = vpop.f32.mrb[23].mxu1 }
 0x2ac   :  { %v8628_v4 = vpop.f32.mrb[24].mxu1 }
 0x2ad   :  { %v8632_v7 = vpop.f32.mrb[25].mxu1 }
 0x2ae   :  { %v8636_v43 = vpop.f32.mrb[26].mxu1 }
 0x2af   :  { %v8638_v52 = vpop.f32.mrb[27].mxu1 }
 0x2b0   :  { %9517 = vst [vmem:[#allocation17_spill] sm:$0xff] %v8638_v52 }
 0x2b4   :  { %v8644_v63 = vpop.f32.mrb[28].mxu1 }
 0x2b5   :  { %9519 = vst [vmem:[#allocation21_spill] sm:$0xff] %v8644_v63  ;;  %v8646_v17 = vpop.f32.mrb[29].mxu1 }
 0x2b6   :  { %9520 = vst [vmem:[#allocation22_spill] sm:$0xff] %v8646_v17  ;;  %v8648_v6 = vpop.f32.mrb[30].mxu1  ;;  %v8661_v17 = vpop.permute.xlu0 %4341 }
 0x2b7   :  { %9521 = vst [vmem:[#allocation23_spill] sm:$0xff] %v8648_v6  ;;  %v8650_v12 = vpop.f32.mrb[31].mxu1  ;;  %9525 = vst [vmem:[#allocation34_spill] sm:$0xff] %v8661_v17 }
 0x2b8   :  { %9522 = vst [vmem:[#allocation24_spill] sm:$0xff] %v8650_v12  ;;  %v4071_v12 = vld [vmem:[%s9186_s1] sm:$0xff] }
 0x2bd   :  { %v5933_v53 = vpop.f32.mrb[0].mxu0 }
 0x2be   :  { %v6011_v56 = vadd.f32 %v5933_v53, %v5533_v20  ;;  %v3752_v10 = vpop.f32.mrb[1].mxu0  ;;  %v4074_v53 = vld [vmem:[%s9186_s1 + $0x18] sm:$0xff] }
 0x2bf   :  { %v6012_v63 = vadd.f32 %v3752_v10, %v1662_v62  ;;  %v5934_v52 = vpop.f32.mrb[2].mxu0 }
 0x2c0   :  { %v4521_v6 = vmul.f32 %v6011_v56, %v8546_v27  ;;  %v6013_v28 = vadd.f32 %v5934_v52, %v5534_v1  ;;  %v3755_v26 = vpop.f32.mrb[3].mxu0  ;;  %v4072_v27 = vld [vmem:[%s9186_s1 + $0x8] sm:$0xff]  ;;  %v8680_v1 = vpop.permute.xlu1 %4346 }
 0x2c1   :  { %v4519_v20 = vmul.f32 %v6012_v63, %v8544_v40  ;;  %v6014_v59 = vadd.f32 %v3755_v26, %v8558_v11  ;;  %v8685_v52 = vpop.permute.xlu0 %4351  ;;  %v4077_v63 = vld [vmem:[%s9186_s1 + $0x30] sm:$0xff] }
 0x2c2   :  { %v4585_v62 = vadd.f32 %v4521_v6, %v4073_v33  ;;  %v4522_v10 = vmul.f32 %v6013_v28, %v8550_v37  ;;  %v4075_v28 = vld [vmem:[%s9186_s1 + $0x20] sm:$0xff] }
 0x2c3   :  { %v4583_v56 = vadd.f32 %v4519_v20, %v4071_v12  ;;  %v4520_v17 = vmul.f32 %v6014_v59, %v8548_v45  ;;  %v4078_v20 = vld [vmem:[%s9186_s1 + $0x38] sm:$0xff] }
 0x2c4   :  { %4649 = vst [vmem:[%s9187_s4 + $0x10] sm:$0xff] %v4585_v62  ;;  %v4586_v40 = vadd.f32 %v4522_v10, %v4074_v53  ;;  %v8712_v10 = vpop.permute.xlu1 %4356 }
 0x2c5   :  { %4647 = vst [vmem:[%s9187_s4] sm:$0xff] %v4583_v56  ;;  %v4584_v11 = vadd.f32 %v4520_v17, %v4072_v27  ;;  %v5937_v37 = vpop.f32.mrb[4].mxu0  ;;  %v8715_v56 = vpop.permute.xlu0 %4361 }
 0x2c6   :  { %4650 = vst [vmem:[%s9187_s4 + $0x18] sm:$0xff] %v4586_v40  ;;  %v6015_v45 = vadd.f32 %v5937_v37, %v8564_v29  ;;  %v3768_v26 = vpop.f32.mrb[5].mxu0 }
 0x2c7   :  { %4648 = vst [vmem:[%s9187_s4 + $0x8] sm:$0xff] %v4584_v11  ;;  %v6016_v17 = vadd.f32 %v3768_v26, %v8566_v31  ;;  %v5938_v6 = vpop.f32.mrb[6].mxu0  ;;  %v4081_v11 = vld [vmem:[%s9186_s1 + $0x50] sm:$0xff] }
 0x2c8   :  { %v4525_v12 = vmul.f32 %v6015_v45, %v8556_v35  ;;  %v6017_v29 = vadd.f32 %v5938_v6, %v8568_v50  ;;  %v3771_v59 = vpop.f32.mrb[7].mxu0  ;;  %v4076_v35 = vld [vmem:[%s9186_s1 + $0x28] sm:$0xff]  ;;  %v8739_v6 = vpop.permute.xlu1 %4366 }
 0x2c9   :  { %v4523_v33 = vmul.f32 %v6016_v17, %v8552_v3  ;;  %v6018_v53 = vadd.f32 %v3771_v59, %v8570_v51 }
 0x2ca   :  { %v4589_v62 = vadd.f32 %v4525_v12, %v4077_v63  ;;  %v4526_v31 = vmul.f32 %v6017_v29, %v8560_v48  ;;  %v4079_v63 = vld [vmem:[%s9186_s1 + $0x40] sm:$0xff]  ;;  %v8746_v29 = vpop.permute.xlu0 %4371 }
 0x2cb   :  { %v4587_v27 = vadd.f32 %v4523_v33, %v4075_v28  ;;  %v4524_v50 = vmul.f32 %v6018_v53, %v8554_v19  ;;  %v4082_v28 = vld [vmem:[%s9186_s1 + $0x58] sm:$0xff] }
 0x2cc   :  { %4653 = vst [vmem:[%s9187_s4 + $0x30] sm:$0xff] %v4589_v62  ;;  %v4590_v3 = vadd.f32 %v4526_v31, %v4078_v20  ;;  %v8763_v31 = vpop.permute.xlu1 %4376 }
 0x2cd   :  { %4651 = vst [vmem:[%s9187_s4 + $0x20] sm:$0xff] %v4587_v27  ;;  %v4588_v48 = vadd.f32 %v4524_v50, %v4076_v35  ;;  %v5941_v51 = vpop.f32.mrb[8].mxu0 }
 0x2ce   :  { %4654 = vst [vmem:[%s9187_s4 + $0x38] sm:$0xff] %v4590_v3  ;;  %v6019_v40 = vadd.f32 %v5941_v51, %v8576_v18  ;;  %v3784_v19 = vpop.f32.mrb[9].mxu0  ;;  %v8772_v50 = vpop.permute.xlu0 %4381 }
 0x2cf   :  { %4652 = vst [vmem:[%s9187_s4 + $0x28] sm:$0xff] %v4588_v48  ;;  %v6020_v37 = vadd.f32 %v3784_v19, %v8578_v14  ;;  %v5942_v45 = vpop.f32.mrb[10].mxu0  ;;  %v4086_v19 = vld [vmem:[%s9186_s1 + $0x78] sm:$0xff] }
 0x2d0   :  { %v4529_v26 = vmul.f32 %v6019_v40, %v8574_v61  ;;  %v6021_v18 = vadd.f32 %v5942_v45, %v8580_v0  ;;  %v3787_v17 = vpop.f32.mrb[11].mxu0  ;;  %v4080_v0 = vld [vmem:[%s9186_s1 + $0x48] sm:$0xff] }
 0x2d1   :  { %v4527_v12 = vmul.f32 %v6020_v37, %v8562_v42  ;;  %v6022_v14 = vadd.f32 %v3787_v17, %v8584_v60  ;;  %v4089_v17 = vld [vmem:[%s9186_s1 + $0x90] sm:$0xff] }
 0x2d2   :  { %v4593_v61 = vadd.f32 %v4529_v26, %v4081_v11  ;;  %v4530_v59 = vmul.f32 %v6021_v18, %v8582_v8 }
 0x2d3   :  { %v4591_v33 = vadd.f32 %v4527_v12, %v4079_v63  ;;  %v4528_v20 = vmul.f32 %v6022_v14, %v8572_v38  ;;  %v4085_v38 = vld [vmem:[%s9186_s1 + $0x70] sm:$0xff]  ;;  %v8797_v63 = vpop.permute.xlu0 %4391 }
 0x2d4   :  { %4657 = vst [vmem:[%s9187_s4 + $0x50] sm:$0xff] %v4593_v61  ;;  %v4594_v42 = vadd.f32 %v4530_v59, %v4082_v28  ;;  %v4087_v61 = vld [vmem:[%s9186_s1 + $0x80] sm:$0xff] }
 0x2d5   :  { %4655 = vst [vmem:[%s9187_s4 + $0x40] sm:$0xff] %v4591_v33  ;;  %v4592_v60 = vadd.f32 %v4528_v20, %v4080_v0  ;;  %v5945_v53 = vpop.f32.mrb[12].mxu0  ;;  %v4090_v33 = vld [vmem:[%s9186_s1 + $0x98] sm:$0xff] }
 0x2d6   :  { %4658 = vst [vmem:[%s9187_s4 + $0x58] sm:$0xff] %v4594_v42  ;;  %v6023_v8 = vadd.f32 %v5945_v53, %v8588_v24  ;;  %v3800_v62 = vpop.f32.mrb[13].mxu0  ;;  %v4083_v24 = vld [vmem:[%s9186_s1 + $0x60] sm:$0xff] }
 0x2d7   :  { %4656 = vst [vmem:[%s9187_s4 + $0x48] sm:$0xff] %v4592_v60  ;;  %v6024_v35 = vadd.f32 %v3800_v62, %v8592_v34  ;;  %v5946_v27 = vpop.f32.mrb[14].mxu0 }
 0x2d8   :  { %v4533_v3 = vmul.f32 %v6023_v8, %v8594_v58  ;;  %v6025_v48 = vadd.f32 %v5946_v27, %v8596_v49  ;;  %v3803_v51 = vpop.f32.mrb[15].mxu0  ;;  %v4084_v58 = vld [vmem:[%s9186_s1 + $0x68] sm:$0xff]  ;;  %v8792_v49 = vpop.permute.xlu1 %4386 }
 0x2d9   :  { %v4531_v40 = vmul.f32 %v6024_v35, %v8586_v44  ;;  %v6026_v34 = vadd.f32 %v3803_v51, %v8598_v41  ;;  %v8827_v8 = vpop.permute.xlu0 %4401 }
 0x2da   :  { %v4597_v11 = vadd.f32 %v4533_v3, %v4085_v38  ;;  %v4534_v37 = vmul.f32 %v6025_v48, %v8600_v5  ;;  %v4093_v38 = vld [vmem:[%s9186_s1 + $0xb0] sm:$0xff] }
 0x2db   :  { %v4595_v45 = vadd.f32 %v4531_v40, %v4083_v24  ;;  %v4532_v26 = vmul.f32 %v6026_v34, %v8590_v54  ;;  %v4091_v24 = vld [vmem:[%s9186_s1 + $0xa0] sm:$0xff] }
 0x2dc   :  { %4661 = vst [vmem:[%s9187_s4 + $0x70] sm:$0xff] %v4597_v11  ;;  %v4598_v44 = vadd.f32 %v4534_v37, %v4086_v19  ;;  %v8824_v60 = vpop.permute.xlu1 %4396  ;;  %v4094_v19 = vld [vmem:[%s9186_s1 + $0xb8] sm:$0xff] }
 0x2dd   :  { %4659 = vst [vmem:[%s9187_s4 + $0x60] sm:$0xff] %v4595_v45  ;;  %v4596_v41 = vadd.f32 %v4532_v26, %v4084_v58  ;;  %v5949_v5 = vpop.f32.mrb[16].mxu0  ;;  %v8858_v34 = vpop.permute.xlu0 %4411 }
 0x2de   :  { %4662 = vst [vmem:[%s9187_s4 + $0x78] sm:$0xff] %v4598_v44  ;;  %v6027_v54 = vadd.f32 %v5949_v5, %v8604_v25  ;;  %v3816_v18 = vpop.f32.mrb[17].mxu0 }
 0x2df   :  { %4660 = vst [vmem:[%s9187_s4 + $0x68] sm:$0xff] %v4596_v41  ;;  %v6028_v12 = vadd.f32 %v3816_v18, %v8606_v16  ;;  %v5950_v28 = vpop.f32.mrb[18].mxu0 }
 0x2e0   :  { %v4537_v14 = vmul.f32 %v6027_v54, %v8614_v46  ;;  %v6029_v25 = vadd.f32 %v5950_v28, %v8608_v13  ;;  %v3819_v59 = vpop.f32.mrb[19].mxu0  ;;  %v4088_v46 = vld [vmem:[%s9186_s1 + $0x88] sm:$0xff]  ;;  %v8851_v51 = vpop.permute.xlu1 %4406 }
 0x2e1   :  { %v4535_v0 = vmul.f32 %v6028_v12, %v8602_v21  ;;  %v6030_v20 = vadd.f32 %v3819_v59, %v8610_v2  ;;  %v8884_v54 = vpop.permute.xlu0 %4421  ;;  %v9526_v28 = vld [vmem:[#allocation19_spill] sm:$0xff] }
 0x2e2   :  { %v4601_v42 = vadd.f32 %v4537_v14, %v4089_v17  ;;  %v4538_v16 = vmul.f32 %v6029_v25, %v8622_v32  ;;  %v9527_v25 = vld [vmem:[#allocation17_spill] sm:$0xff] }
 0x2e3   :  { %v4599_v53 = vadd.f32 %v4535_v0, %v4087_v61  ;;  %v4536_v13 = vmul.f32 %v6030_v20, %v8612_v9  ;;  %v4098_v61 = vld [vmem:[%s9186_s1 + $0xd8] sm:$0xff]  ;;  %v9528_v0 = vld [vmem:[#allocation32_spill] sm:$0xff] }
 0x2e4   :  { %4665 = vst [vmem:[%s9187_s4 + $0x90] sm:$0xff] %v4601_v42  ;;  %v4602_v21 = vadd.f32 %v4538_v16, %v4090_v33  ;;  %v8875_v44 = vpop.permute.xlu1 %4416  ;;  %v9529_v42 = vld [vmem:[#allocation25_spill] sm:$0xff] }
 0x2e5   :  { %4663 = vst [vmem:[%s9187_s4 + $0x80] sm:$0xff] %v4599_v53  ;;  %v4600_v2 = vadd.f32 %v4536_v13, %v4088_v46  ;;  %v5953_v32 = vpop.f32.mrb[20].mxu0 }
 0x2e6   :  { %4666 = vst [vmem:[%s9187_s4 + $0x98] sm:$0xff] %v4602_v21  ;;  %v6031_v62 = vadd.f32 %v5953_v32, %v8616_v15  ;;  %v3832_v9 = vpop.f32.mrb[21].mxu0  ;;  %v8909_v21 = vpop.permute.xlu0 %4431 }
 0x2e7   :  { %4664 = vst [vmem:[%s9187_s4 + $0x88] sm:$0xff] %v4600_v2  ;;  %v6032_v35 = vadd.f32 %v3832_v9, %v8618_v22  ;;  %v5954_v27 = vpop.f32.mrb[22].mxu0  ;;  %v9530_v2 = vld [vmem:[#allocation21_spill] sm:$0xff]  ;;  %v4101_v9 = vld [vmem:[%s9186_s1 + $0xf0] sm:$0xff] }
 0x2e8   :  { %v4541_v3 = vmul.f32 %v6031_v62, %v8634_v57  ;;  %v6033_v15 = vadd.f32 %v5954_v27, %v8620_v30  ;;  %v3835_v48 = vpop.f32.mrb[23].mxu0  ;;  %v4092_v30 = vld [vmem:[%s9186_s1 + $0xa8] sm:$0xff]  ;;  %v8904_v46 = vpop.permute.xlu1 %4426 }
 0x2e9   :  { %v4539_v40 = vmul.f32 %v6032_v35, %v8626_v39  ;;  %v6034_v22 = vadd.f32 %v3835_v48, %v8624_v55 }
 0x2ea   :  { %v4605_v57 = vadd.f32 %v4541_v3, %v4093_v38  ;;  %v4542_v11 = vmul.f32 %v6033_v15, %v8640_v36  ;;  %v9531_v38 = vld [vmem:[#allocation22_spill] sm:$0xff]  ;;  %v9532_v15 = vld [vmem:[#allocation23_spill] sm:$0xff] }
 0x2eb   :  { %v4603_v37 = vadd.f32 %v4539_v40, %v4091_v24  ;;  %v4540_v58 = vmul.f32 %v6034_v22, %v8630_v47  ;;  %v4097_v47 = vld [vmem:[%s9186_s1 + $0xd0] sm:$0xff]  ;;  %v4099_v24 = vld [vmem:[%s9186_s1 + $0xe0] sm:$0xff] }
 0x2ec   :  { %4669 = vst [vmem:[%s9187_s4 + $0xb0] sm:$0xff] %v4605_v57  ;;  %v4606_v39 = vadd.f32 %v4542_v11, %v4094_v19  ;;  %v9533_v19 = vld [vmem:[#allocation34_spill] sm:$0xff]  ;;  %v4102_v57 = vld [vmem:[%s9186_s1 + $0xf8] sm:$0xff]  ;;  %v9534_v11 = vld [vmem:[#allocation24_spill] sm:$0xff] }
 0x2ed   :  { %4667 = vst [vmem:[%s9187_s4 + $0xa0] sm:$0xff] %v4603_v37  ;;  %v4604_v55 = vadd.f32 %v4540_v58, %v4092_v30  ;;  %v5957_v45 = vpop.f32.mrb[24].mxu0 }
 0x2ee   :  { %4670 = vst [vmem:[%s9187_s4 + $0xb8] sm:$0xff] %v4606_v39  ;;  %v6035_v36 = vadd.f32 %v5957_v45, %v8628_v4  ;;  %v3848_v26 = vpop.f32.mrb[25].mxu0  ;;  %v4095_v4 = vld [vmem:[%s9186_s1 + $0xc0] sm:$0xff]  ;;  %v8936_v39 = vpop.permute.xlu1 %4436 }
 0x2ef   :  { %4668 = vst [vmem:[%s9187_s4 + $0xa8] sm:$0xff] %v4604_v55  ;;  %v6036_v41 = vadd.f32 %v3848_v26, %v8632_v7  ;;  %v5958_v5 = vpop.f32.mrb[26].mxu0 }
 0x2f0   :  { %v4545_v18 = vmul.f32 %v6035_v36, %v8654_v23  ;;  %v6037_v17 = vadd.f32 %v5958_v5, %v8636_v43  ;;  %v3851_v12 = vpop.f32.mrb[27].mxu0  ;;  %v4096_v23 = vld [vmem:[%s9186_s1 + $0xc8] sm:$0xff]  ;;  %v8939_v36 = vpop.permute.xlu0 %4441 }
 0x2f1   :  { %v4543_v14 = vmul.f32 %v6036_v41, %v9526_v28  ;;  %v6038_v7 = vadd.f32 %v3851_v12, %v9527_v25  ;;  %v4103_v25 = vld [vmem:[%s9186_s1 + $0x100] sm:$0xff] }
 0x2f2   :  { %v4609_v59 = vadd.f32 %v4545_v18, %v4097_v47  ;;  %v4546_v33 = vmul.f32 %v6037_v17, %v9528_v0  ;;  %v4105_v17 = vld [vmem:[%s9186_s1 + $0x110] sm:$0xff] }
 0x2f3   :  { %v4607_v20 = vadd.f32 %v4543_v14, %v4095_v4  ;;  %v4544_v16 = vmul.f32 %v6038_v7, %v9529_v42 }
 0x2f4   :  { %4673 = vst [vmem:[%s9187_s4 + $0xd0] sm:$0xff] %v4609_v59  ;;  %v4610_v43 = vadd.f32 %v4546_v33, %v4098_v61  ;;  %v4106_v33 = vld [vmem:[%s9186_s1 + $0x118] sm:$0xff] }
 0x2f5   :  { %4671 = vst [vmem:[%s9187_s4 + $0xc0] sm:$0xff] %v4607_v20  ;;  %v4608_v53 = vadd.f32 %v4544_v16, %v4096_v23  ;;  %v5961_v13 = vpop.f32.mrb[28].mxu0  ;;  %v8968_v16 = vpop.permute.xlu1 %4446 }
 0x2f6   :  { %4674 = vst [vmem:[%s9187_s4 + $0xd8] sm:$0xff] %v4610_v43  ;;  %v6039_v32 = vadd.f32 %v5961_v13, %v9530_v2  ;;  %v3864_v62 = vpop.f32.mrb[29].mxu0  ;;  %v8971_v13 = vpop.permute.xlu0 %4451 }
 0x2f7   :  { %4672 = vst [vmem:[%s9187_s4 + $0xc8] sm:$0xff] %v4608_v53  ;;  %v6040_v35 = vadd.f32 %v3864_v62, %v9531_v38  ;;  %v5962_v27 = vpop.f32.mrb[30].mxu0 }
 0x2f8   :  { %v4549_v3 = vmul.f32 %v6039_v32, %v8685_v52  ;;  %v6041_v48 = vadd.f32 %v5962_v27, %v9532_v15  ;;  %v3867_v40 = vpop.f32.mrb[31].mxu0  ;;  %v4100_v52 = vld [vmem:[%s9186_s1 + $0xe8] sm:$0xff] }
 0x2f9   :  { %v4547_v22 = vmul.f32 %v6040_v35, %v9533_v19  ;;  %v6042_v30 = vadd.f32 %v3867_v40, %v9534_v11  ;;  %v4109_v35 = vld [vmem:[%s9186_s1 + $0x130] sm:$0xff] }
 0x2fa   :  { %v4613_v37 = vadd.f32 %v4549_v3, %v4101_v9  ;;  %v4550_v58 = vmul.f32 %v6041_v48, %v8712_v10  ;;  %v4107_v48 = vld [vmem:[%s9186_s1 + $0x120] sm:$0xff] }
 0x2fb   :  { %v4611_v55 = vadd.f32 %v4547_v22, %v4099_v24  ;;  %v4548_v45 = vmul.f32 %v6042_v30, %v8680_v1 }
 0x2fc   :  { %4677 = vst [vmem:[%s9187_s4 + $0xf0] sm:$0xff] %v4613_v37  ;;  %v4614_v26 = vadd.f32 %v4550_v58, %v4102_v57  ;;  %v5645_v47 = vpop.f32.mrb[32].mxu1  ;;  %v4110_v57 = vld [vmem:[%s9186_s1 + $0x138] sm:$0xff]  ;;  %v9000_v58 = vpop.permute.xlu1 %4456 }
 0x2fd   :  { %4675 = vst [vmem:[%s9187_s4 + $0xe0] sm:$0xff] %v4611_v55  ;;  %v4612_v10 = vadd.f32 %v4548_v45, %v4100_v52  ;;  %v5965_v41 = vpop.f32.mrb[32].mxu0  ;;  %v2208_v5 = vpop.f32.mrb[33].mxu1 }
 0x2fe   :  { %4678 = vst [vmem:[%s9187_s4 + $0xf8] sm:$0xff] %v4614_v26  ;;  %v6043_v1 = vadd.f32 %v5965_v41, %v5645_v47  ;;  %v3880_v18 = vpop.f32.mrb[33].mxu0  ;;  %v5646_v4 = vpop.f32.mrb[34].mxu1 }
 0x2ff   :  { %4676 = vst [vmem:[%s9187_s4 + $0xe8] sm:$0xff] %v4612_v10  ;;  %v6044_v12 = vadd.f32 %v3880_v18, %v2208_v5  ;;  %v5966_v28 = vpop.f32.mrb[34].mxu0  ;;  %v2211_v14 = vpop.f32.mrb[35].mxu1 }
 0x300   :  { %v4553_v61 = vmul.f32 %v6043_v1, %v8746_v29  ;;  %v6045_v7 = vadd.f32 %v5966_v28, %v5646_v4  ;;  %v3883_v59 = vpop.f32.mrb[35].mxu0  ;;  %v4104_v29 = vld [vmem:[%s9186_s1 + $0x108] sm:$0xff]  ;;  %v9003_v45 = vpop.permute.xlu0 %4461  ;;  %v4113_v1 = vld [vmem:[%s9186_s1 + $0x150] sm:$0xff]  ;;  %v4111_v28 = vld [vmem:[%s9186_s1 + $0x140] sm:$0xff] }
 0x301   :  { %v4551_v0 = vmul.f32 %v6044_v12, %v8715_v56  ;;  %v6046_v23 = vadd.f32 %v3883_v59, %v2211_v14 }
 0x302   :  { %v4617_v20 = vadd.f32 %v4553_v61, %v4105_v17  ;;  %v4554_v42 = vmul.f32 %v6045_v7, %v8763_v31  ;;  %v4114_v7 = vld [vmem:[%s9186_s1 + $0x158] sm:$0xff] }
 0x303   :  { %v4615_v43 = vadd.f32 %v4551_v0, %v4103_v25  ;;  %v4552_v53 = vmul.f32 %v6046_v23, %v8739_v6  ;;  %v9032_v23 = vpop.permute.xlu1 %4466 }
 0x304   :  { %4681 = vst [vmem:[%s9187_s4 + $0x110] sm:$0xff] %v4617_v20  ;;  %v4618_v56 = vadd.f32 %v4554_v42, %v4106_v33  ;;  %v5649_v2 = vpop.f32.mrb[36].mxu1 }
 0x305   :  { %4679 = vst [vmem:[%s9187_s4 + $0x100] sm:$0xff] %v4615_v43  ;;  %v4616_v31 = vadd.f32 %v4552_v53, %v4104_v29  ;;  %v5969_v32 = vpop.f32.mrb[36].mxu0  ;;  %v2224_v62 = vpop.f32.mrb[37].mxu1 }
 0x306   :  { %4682 = vst [vmem:[%s9187_s4 + $0x118] sm:$0xff] %v4618_v56  ;;  %v6047_v6 = vadd.f32 %v5969_v32, %v5649_v2  ;;  %v3896_v9 = vpop.f32.mrb[37].mxu0  ;;  %v5650_v38 = vpop.f32.mrb[38].mxu1  ;;  %v4117_v32 = vld [vmem:[%s9186_s1 + $0x170] sm:$0xff] }
 0x307   :  { %4680 = vst [vmem:[%s9187_s4 + $0x108] sm:$0xff] %v4616_v31  ;;  %v6048_v27 = vadd.f32 %v3896_v9, %v2224_v62  ;;  %v5970_v3 = vpop.f32.mrb[38].mxu0  ;;  %v2227_v24 = vpop.f32.mrb[39].mxu1 }
 0x308   :  { %v4557_v15 = vmul.f32 %v6047_v6, %v8797_v63  ;;  %v6049_v40 = vadd.f32 %v5970_v3, %v5650_v38  ;;  %v3899_v19 = vpop.f32.mrb[39].mxu0  ;;  %v4108_v63 = vld [vmem:[%s9186_s1 + $0x128] sm:$0xff]  ;;  %v9035_v29 = vpop.permute.xlu0 %4471 }
 0x309   :  { %v4555_v22 = vmul.f32 %v6048_v27, %v8772_v50  ;;  %v6050_v11 = vadd.f32 %v3899_v19, %v2227_v24 }
 0x30a   :  { %v4621_v30 = vadd.f32 %v4557_v15, %v4109_v35  ;;  %v4558_v37 = vmul.f32 %v6049_v40, %v8824_v60  ;;  %v4115_v35 = vld [vmem:[%s9186_s1 + $0x160] sm:$0xff]  ;;  %v4118_v15 = vld [vmem:[%s9186_s1 + $0x178] sm:$0xff] }
 0x30b   :  { %v4619_v52 = vadd.f32 %v4555_v22, %v4107_v48  ;;  %v4556_v55 = vmul.f32 %v6050_v11, %v8792_v49  ;;  %v4477_v22 = vpop.permute.xlu1 %4476 }
 0x30c   :  { %4685 = vst [vmem:[%s9187_s4 + $0x130] sm:$0xff] %v4621_v30  ;;  %v4622_v50 = vadd.f32 %v4558_v37, %v4110_v57  ;;  %v5653_v26 = vpop.f32.mrb[40].mxu1  ;;  %v9065_v30 = vpop.permute.xlu0 %4481 }
 0x30d   :  { %4683 = vst [vmem:[%s9187_s4 + $0x120] sm:$0xff] %v4619_v52  ;;  %v4620_v60 = vadd.f32 %v4556_v55, %v4108_v63  ;;  %v5973_v47 = vpop.f32.mrb[40].mxu0  ;;  %v2240_v10 = vpop.f32.mrb[41].mxu1 }
 0x30e   :  { %4686 = vst [vmem:[%s9187_s4 + $0x138] sm:$0xff] %v4622_v50  ;;  %v6051_v49 = vadd.f32 %v5973_v47, %v5653_v26  ;;  %v3912_v41 = vpop.f32.mrb[41].mxu0  ;;  %v5654_v5 = vpop.f32.mrb[42].mxu1  ;;  %v4121_v26 = vld [vmem:[%s9186_s1 + $0x190] sm:$0xff] }
 0x30f   :  { %4684 = vst [vmem:[%s9187_s4 + $0x128] sm:$0xff] %v4620_v60  ;;  %v6052_v18 = vadd.f32 %v3912_v41, %v2240_v10  ;;  %v5974_v4 = vpop.f32.mrb[42].mxu0  ;;  %v2243_v17 = vpop.f32.mrb[43].mxu1  ;;  %v4119_v41 = vld [vmem:[%s9186_s1 + $0x180] sm:$0xff] }
 0x310   :  { %v4561_v12 = vmul.f32 %v6051_v49, %v8858_v34  ;;  %v6053_v14 = vadd.f32 %v5974_v4, %v5654_v5  ;;  %v3915_v61 = vpop.f32.mrb[43].mxu0  ;;  %v4112_v34 = vld [vmem:[%s9186_s1 + $0x148] sm:$0xff]  ;;  %v4122_v4 = vld [vmem:[%s9186_s1 + $0x198] sm:$0xff] }
 0x311   :  { %v4559_v25 = vmul.f32 %v6052_v18, %v8827_v8  ;;  %v6054_v59 = vadd.f32 %v3915_v61, %v2243_v17 }
 0x312   :  { %v4625_v0 = vadd.f32 %v4561_v12, %v4113_v1  ;;  %v4562_v33 = vmul.f32 %v6053_v14, %v8875_v44  ;;  %v4487_v14 = vpop.permute.xlu1 %4486 }
 0x313   :  { %v4623_v20 = vadd.f32 %v4559_v25, %v4111_v28  ;;  %v4560_v42 = vmul.f32 %v6054_v59, %v8851_v51 }
 0x314   :  { %4689 = vst [vmem:[%s9187_s4 + $0x150] sm:$0xff] %v4625_v0  ;;  %v4626_v8 = vadd.f32 %v4562_v33, %v4114_v7  ;;  %v5657_v43 = vpop.f32.mrb[44].mxu1  ;;  %v4492_v7 = vpop.permute.xlu0 %4491 }
 0x315   :  { %4687 = vst [vmem:[%s9187_s4 + $0x140] sm:$0xff] %v4623_v20  ;;  %v4624_v44 = vadd.f32 %v4560_v42, %v4112_v34  ;;  %v5977_v53 = vpop.f32.mrb[44].mxu0  ;;  %v2256_v56 = vpop.f32.mrb[45].mxu1  ;;  %v4125_v42 = vld [vmem:[%s9186_s1 + $0x1b0] sm:$0xff] }
 0x316   :  { %4690 = vst [vmem:[%s9187_s4 + $0x158] sm:$0xff] %v4626_v8  ;;  %v6055_v51 = vadd.f32 %v5977_v53, %v5657_v43  ;;  %v3928_v2 = vpop.f32.mrb[45].mxu0  ;;  %v5658_v31 = vpop.f32.mrb[46].mxu1 }
 0x317   :  { %4688 = vst [vmem:[%s9187_s4 + $0x148] sm:$0xff] %v4624_v44  ;;  %v6056_v62 = vadd.f32 %v3928_v2, %v2256_v56  ;;  %v5978_v6 = vpop.f32.mrb[46].mxu0  ;;  %v2259_v9 = vpop.f32.mrb[47].mxu1  ;;  %v4123_v56 = vld [vmem:[%s9186_s1 + $0x1a0] sm:$0xff] }
 0x318   :  { %v4565_v38 = vmul.f32 %v6055_v51, %v8909_v21  ;;  %v6057_v27 = vadd.f32 %v5978_v6, %v5658_v31  ;;  %v3931_v3 = vpop.f32.mrb[47].mxu0  ;;  %v4116_v21 = vld [vmem:[%s9186_s1 + $0x168] sm:$0xff] }
 0x319   :  { %v4563_v24 = vmul.f32 %v6056_v62, %v8884_v54  ;;  %v6058_v48 = vadd.f32 %v3931_v3, %v2259_v9  ;;  %v4502_v3 = vpop.permute.xlu0 %4501 }
 0x31a   :  { %v4629_v40 = vadd.f32 %v4565_v38, %v4117_v32  ;;  %v4566_v19 = vmul.f32 %v6057_v27, %v8936_v39  ;;  %v4126_v32 = vld [vmem:[%s9186_s1 + $0x1b8] sm:$0xff]  ;;  %v4124_v38 = vld [vmem:[%s9186_s1 + $0x1a8] sm:$0xff] }
 0x31b   :  { %v4627_v57 = vadd.f32 %v4563_v24, %v4115_v35  ;;  %v4564_v11 = vmul.f32 %v6058_v48, %v8904_v46 }
 0x31c   :  { %4693 = vst [vmem:[%s9187_s4 + $0x170] sm:$0xff] %v4629_v40  ;;  %v4630_v54 = vadd.f32 %v4566_v19, %v4118_v15  ;;  %v5661_v37 = vpop.f32.mrb[48].mxu1 }
 0x31d   :  { %4691 = vst [vmem:[%s9187_s4 + $0x160] sm:$0xff] %v4627_v57  ;;  %v4628_v39 = vadd.f32 %v4564_v11, %v4116_v21  ;;  %v5981_v63 = vpop.f32.mrb[48].mxu0  ;;  %v2272_v52 = vpop.f32.mrb[49].mxu1 }
 0x31e   :  { %4694 = vst [vmem:[%s9187_s4 + $0x178] sm:$0xff] %v4630_v54  ;;  %v6059_v46 = vadd.f32 %v5981_v63, %v5661_v37  ;;  %v3944_v55 = vpop.f32.mrb[49].mxu0  ;;  %v5662_v50 = vpop.f32.mrb[50].mxu1 }
 0x31f   :  { %4692 = vst [vmem:[%s9187_s4 + $0x168] sm:$0xff] %v4628_v39  ;;  %v6060_v60 = vadd.f32 %v3944_v55, %v2272_v52  ;;  %v5982_v47 = vpop.f32.mrb[50].mxu0  ;;  %v2275_v10 = vpop.f32.mrb[51].mxu1  ;;  %v4127_v39 = vld [vmem:[%s9186_s1 + $0x1c0] sm:$0xff]  ;;  %v4130_v55 = vld [vmem:[%s9186_s1 + $0x1d8] sm:$0xff] }
 0x320   :  { %v4569_v49 = vmul.f32 %v6059_v46, %v8971_v13  ;;  %v6061_v5 = vadd.f32 %v5982_v47, %v5662_v50  ;;  %v3947_v1 = vpop.f32.mrb[51].mxu0  ;;  %v4120_v13 = vld [vmem:[%s9186_s1 + $0x188] sm:$0xff] }
 0x321   :  { %v4567_v18 = vmul.f32 %v6060_v60, %v8939_v36  ;;  %v6062_v17 = vadd.f32 %v3947_v1, %v2275_v10  ;;  %v4128_v47 = vld [vmem:[%s9186_s1 + $0x1c8] sm:$0xff] }
 0x322   :  { %v4633_v12 = vadd.f32 %v4569_v49, %v4121_v26  ;;  %v4570_v28 = vmul.f32 %v6061_v5, %v9000_v58  ;;  %v4512_v5 = vpop.permute.xlu0 %4511 }
 0x323   :  { %v4631_v61 = vadd.f32 %v4567_v18, %v4119_v41  ;;  %v4568_v25 = vmul.f32 %v6062_v17, %v8968_v16 }
 0x324   :  { %4697 = vst [vmem:[%s9187_s4 + $0x190] sm:$0xff] %v4633_v12  ;;  %v4634_v36 = vadd.f32 %v4570_v28, %v4122_v4  ;;  %v5665_v59 = vpop.f32.mrb[52].mxu1 }
 0x325   :  { %4695 = vst [vmem:[%s9187_s4 + $0x180] sm:$0xff] %v4631_v61  ;;  %v4632_v58 = vadd.f32 %v4568_v25, %v4120_v13  ;;  %v5985_v0 = vpop.f32.mrb[52].mxu0  ;;  %v2288_v33 = vpop.f32.mrb[53].mxu1 }
 0x326   :  { %4698 = vst [vmem:[%s9187_s4 + $0x198] sm:$0xff] %v4634_v36  ;;  %v6063_v34 = vadd.f32 %v5985_v0, %v5665_v59  ;;  %v3960_v16 = vpop.f32.mrb[53].mxu0  ;;  %v5666_v20 = vpop.f32.mrb[54].mxu1  ;;  %v4131_v59 = vld [vmem:[%s9186_s1 + $0x1e0] sm:$0xff] }
 0x327   :  { %4696 = vst [vmem:[%s9187_s4 + $0x188] sm:$0xff] %v4632_v58  ;;  %v6064_v8 = vadd.f32 %v3960_v16, %v2288_v33  ;;  %v5986_v43 = vpop.f32.mrb[54].mxu0  ;;  %v2291_v44 = vpop.f32.mrb[55].mxu1  ;;  %v4134_v16 = vld [vmem:[%s9186_s1 + $0x1f8] sm:$0xff] }
 0x328   :  { %v4573_v53 = vmul.f32 %v6063_v34, %v9035_v29  ;;  %v6065_v51 = vadd.f32 %v5986_v43, %v5666_v20  ;;  %v3963_v2 = vpop.f32.mrb[55].mxu0  ;;  %v4497_v29 = vpop.permute.xlu1 %4496  ;;  %v4132_v43 = vld [vmem:[%s9186_s1 + $0x1e8] sm:$0xff] }
 0x329   :  { %v4571_v31 = vmul.f32 %v6064_v8, %v9003_v45  ;;  %v6066_v62 = vadd.f32 %v3963_v2, %v2291_v44 }
 0x32a   :  { %v4637_v6 = vadd.f32 %v4573_v53, %v4125_v42  ;;  %v4574_v9 = vmul.f32 %v6065_v51, %v4477_v22  ;;  %v4129_v22 = vld [vmem:[%s9186_s1 + $0x1d0] sm:$0xff] }
 0x32b   :  { %v4635_v35 = vadd.f32 %v4571_v31, %v4123_v56  ;;  %v4572_v27 = vmul.f32 %v6066_v62, %v9032_v23 }
 0x32c   :  { %4701 = vst [vmem:[%s9187_s4 + $0x1b0] sm:$0xff] %v4637_v6  ;;  %v4638_v45 = vadd.f32 %v4574_v9, %v4126_v32  ;;  %v5669_v24 = vpop.f32.mrb[56].mxu1  ;;  %v4507_v10 = vpop.permute.xlu1 %4506 }
 0x32d   :  { %4699 = vst [vmem:[%s9187_s4 + $0x1a0] sm:$0xff] %v4635_v35  ;;  %v4636_v15 = vadd.f32 %v4572_v27, %v4124_v38  ;;  %v5989_v48 = vpop.f32.mrb[56].mxu0  ;;  %v2304_v40 = vpop.f32.mrb[57].mxu1 }
 0x32e   :  { %4702 = vst [vmem:[%s9187_s4 + $0x1b8] sm:$0xff] %v4638_v45  ;;  %v6067_v19 = vadd.f32 %v5989_v48, %v5669_v24  ;;  %v3976_v23 = vpop.f32.mrb[57].mxu0  ;;  %v5670_v21 = vpop.f32.mrb[58].mxu1 }
 0x32f   :  { %4700 = vst [vmem:[%s9187_s4 + $0x1a8] sm:$0xff] %v4636_v15  ;;  %v6068_v57 = vadd.f32 %v3976_v23, %v2304_v40  ;;  %v5990_v11 = vpop.f32.mrb[58].mxu0  ;;  %v2307_v54 = vpop.f32.mrb[59].mxu1 }
 0x330   :  { %v4577_v37 = vmul.f32 %v6067_v19, %v4492_v7  ;;  %v6069_v63 = vadd.f32 %v5990_v11, %v5670_v21  ;;  %v3979_v52 = vpop.f32.mrb[59].mxu0  ;;  %v4517_v33 = vpop.permute.xlu1 %4516 }
 0x331   :  { %v4575_v46 = vmul.f32 %v6068_v57, %v9065_v30  ;;  %v6070_v50 = vadd.f32 %v3979_v52, %v2307_v54 }
 0x332   :  { %v4641_v26 = vadd.f32 %v4577_v37, %v4129_v22  ;;  %v4578_v60 = vmul.f32 %v6069_v63, %v4497_v29 }
 0x333   :  { %v4639_v49 = vadd.f32 %v4575_v46, %v4127_v39  ;;  %v4576_v41 = vmul.f32 %v6070_v50, %v4487_v14  ;;  %v4133_v14 = vld [vmem:[%s9186_s1 + $0x1f0] sm:$0xff] }
 0x334   :  { %4705 = vst [vmem:[%s9187_s4 + $0x1d0] sm:$0xff] %v4641_v26  ;;  %v4642_v30 = vadd.f32 %v4578_v60, %v4130_v55  ;;  %v5673_v1 = vpop.f32.mrb[60].mxu1 }
 0x335   :  { %4703 = vst [vmem:[%s9187_s4 + $0x1c0] sm:$0xff] %v4639_v49  ;;  %v4640_v18 = vadd.f32 %v4576_v41, %v4128_v47  ;;  %v5993_v4 = vpop.f32.mrb[60].mxu0  ;;  %v2320_v17 = vpop.f32.mrb[61].mxu1 }
 0x336   :  { %4706 = vst [vmem:[%s9187_s4 + $0x1d8] sm:$0xff] %v4642_v30  ;;  %v6071_v12 = vadd.f32 %v5993_v4, %v5673_v1  ;;  %v3992_v28 = vpop.f32.mrb[61].mxu0  ;;  %v5674_v13 = vpop.f32.mrb[62].mxu1 }
 0x337   :  { %4704 = vst [vmem:[%s9187_s4 + $0x1c8] sm:$0xff] %v4640_v18  ;;  %v6072_v61 = vadd.f32 %v3992_v28, %v2320_v17  ;;  %v5994_v25 = vpop.f32.mrb[62].mxu0  ;;  %v2323_v7 = vpop.f32.mrb[63].mxu1 }
 0x338   :  { %v4581_v36 = vmul.f32 %v6071_v12, %v4512_v5  ;;  %v6073_v58 = vadd.f32 %v5994_v25, %v5674_v13  ;;  %v3995_v0 = vpop.f32.mrb[63].mxu0 }
 0x339   :  { %v4579_v34 = vmul.f32 %v6072_v61, %v4502_v3  ;;  %v6074_v20 = vadd.f32 %v3995_v0, %v2323_v7 }
 0x33a   :  { %v4645_v42 = vadd.f32 %v4581_v36, %v4133_v14  ;;  %v4582_v8 = vmul.f32 %v6073_v58, %v4517_v33 }
 0x33b   :  { %v4643_v44 = vadd.f32 %v4579_v34, %v4131_v59  ;;  %v4580_v53 = vmul.f32 %v6074_v20, %v4507_v10 }
 0x33c   :  { %4709 = vst [vmem:[%s9187_s4 + $0x1f0] sm:$0xff] %v4645_v42  ;;  %v4646_v56 = vadd.f32 %v4582_v8, %v4134_v16 }
 0x33d   :  { %4707 = vst [vmem:[%s9187_s4 + $0x1e0] sm:$0xff] %v4643_v44  ;;  %v4644_v51 = vadd.f32 %v4580_v53, %v4132_v43 }
 0x33e   :  { %4710 = vst [vmem:[%s9187_s4 + $0x1f8] sm:$0xff] %v4646_v56 }
 0x33f   :  { %4708 = vst [vmem:[%s9187_s4 + $0x1e8] sm:$0xff] %v4644_v51 }

// kernel: densenet_forward.22
= control target key start
LH: loop header
LB: loop body
LE: loop exit
PB: predicated region body
PF: predicated region fallthrough
CT: control target
= control target key end

     0   :  { %s1271_s24 = smov 0   ;;  %s1624_s0 = inlined_call_operand.vmem [shape: f32[512,128], index: 0, kind: input, shape index: {}]   ;;  %s1625_s1 = inlined_call_operand.vmem [shape: bf16[128,128], index: 1, kind: input, shape index: {}]   ;;  %s1626_s2 = inlined_call_operand.vmem [shape: f32[1,128], index: 2, kind: input, shape index: {}]   ;;  %s1627_s3 = inlined_call_operand.vmem [shape: f32[1,128], index: 3, kind: input, shape index: {}]   ;;  %s1628_s4 = inlined_call_operand.vmem [shape: f32[1,128], index: 4, kind: input, shape index: {}]   ;;  %s1629_s5 = inlined_call_operand.vmem [shape: f32[1,128], index: 5, kind: input, shape index: {}]   ;;  %s1630_s6 = inlined_call_operand.vmem [shape: f32[512,1], index: 6, kind: input, shape index: {}]   ;;  %s1631_s7 = inlined_call_operand.vmem [shape: f32[512,128], index: 7, kind: output, shape index: {}]  }
   0x1 LB: > { %s1090_s25 = sadd.s32 4294967295, %s1228_s24   ;;  %p1094_p0 = scmp.ge.s32.totalorder %s1228_s24, 1  ;;  %s1228_s24 = sphi %s1271_s24, %s17_s24  }
   0x2   : > { %p249_p1 = scmp.lt.s32.totalorder %s1228_s24, 3 }
   0x4   : > { %p250_p2 = pnand %p1094_p0, %p249_p1 }
   0x5   : > { %v1214_v0 = vld [vmem:[%s1625_s1] sm:$0xff] (!%p250_p2)   ;;  %v1215_v1 = vld [vmem:[%s1625_s1 + $0x8] sm:$0xff] (!%p250_p2)   ;;  %v1230_v2 = vmov (!%p250_p2), 0   ;;  %s1095_s30 = sshll.u32 (!%p250_p2), %s1090_s25, 5  ;;  %v1216_v3 = vld [vmem:[%s1625_s1 + $0x10] sm:$0xff] (!%p250_p2)  }
   0x6   : > { %253 = sbr.rel (%p250_p2) target bundleno = 287 (0x11f), region = 48  ;;  %1213 = vset.pattern.permute.xlu1 (!%p250_p2), %v1230_v2  ;;  %1212 = vset.pattern.permute.xlu0 (!%p250_p2), %v1230_v2  ;;  %p287_p3 = scmp.lt.s32.totalorder (!%p250_p2), %s1095_s30, 63  ;;  %v1217_v4 = vld [vmem:[%s1625_s1 + $0x18] sm:$0xff] (!%p250_p2)   ;;  %v1314_v11 = vld [vmem:[%s1626_s2] ss:$0 sm:$0xff] (!%p250_p2)  ;;  %v1219_v35 = vld [vmem:[%s1625_s1 + $0x28] sm:$0xff] (!%p250_p2)  }
   0x7   : > { %1139 = vmatprep.subr.bf16.mxu0 (!%p250_p2), %v1214_v0  ;;  %1187 = vmatprep.subr.bf16.mxu1 (!%p250_p2), %v1214_v0  ;;  %v1319_v12 = vld [vmem:[%s1627_s3] ss:$0 sm:$0xff] (!%p250_p2)  ;;  %v1220_v51 = vld [vmem:[%s1625_s1 + $0x30] sm:$0xff] (!%p250_p2)  }
   0x8   : > { %1140 = vmatpush3.bf16.msra.mxu0 (!%p250_p2), %v1214_v0  ;;  %1195 = vmatpush3.bf16.msra.mxu1 (!%p250_p2), %v1214_v0  ;;  %v1218_v18 = vld [vmem:[%s1625_s1 + $0x20] sm:$0xff] (!%p250_p2)  }
   0x9   : > { %1141 = vmatprep.subr.bf16.mxu0 (!%p250_p2), %v1215_v1  ;;  %1188 = vmatprep.subr.bf16.mxu1 (!%p250_p2), %v1215_v1 }
   0xc   : > { %1142 = vmatpush3.bf16.msra.mxu0 (!%p250_p2), %v1215_v1  ;;  %1196 = vmatpush3.bf16.msra.mxu1 (!%p250_p2), %v1215_v1 }
   0xd   : > { %s1633_s30 = smov (!%p287_p3, %s1095_s30), 63  ;;  %1143 = vmatprep.subr.bf16.mxu0 %v1216_v3  ;;  %1189 = vmatprep.subr.bf16.mxu1 %v1216_v3 }
   0xe   : > { %s1288_s10 = sshll.u32 %s1633_s30, 3 }
   0xf   : > { %s1297_s15 = scalar_lea.vmem %s1630_s6, %s1288_s10  ;;  %s1304_s18 = scalar_lea.vmem %s1624_s0, %s1288_s10 }
  0x10   : > { %v768_v5 = vld [vmem:[%s1297_s15 + $0x10] sm:$0xff]  ;;  %v766_v6 = vld [vmem:[%s1297_s15] sm:$0xff]  ;;  %v769_v7 = vld [vmem:[%s1297_s15 + $0x18] sm:$0xff]  ;;  %1144 = vmatpush3.bf16.msra.mxu0 %v1216_v3  ;;  %1197 = vmatpush3.bf16.msra.mxu1 %v1216_v3  ;;  %s1509_s16 = scalar_lea.vmem %s1631_s7, %s1288_s10 }
  0x11   : > { %810 = vperm.xlu1 %1213, %v768_v5   ;;  %800 = vperm.xlu0 %1212, %v766_v6   ;;  %v767_v8 = vld [vmem:[%s1297_s15 + $0x8] sm:$0xff]  ;;  %v305_v9 = vld [vmem:[%s1304_s18] sm:$0xff]  ;;  %v307_v23 = vld [vmem:[%s1304_s18 + $0x10] sm:$0xff] }
  0x12   : > { %v306_v10 = vld [vmem:[%s1304_s18 + $0x8] sm:$0xff]  ;;  %v321_v13 = vld [vmem:[%s1304_s18 + $0x80] sm:$0xff]  ;;  %v344_v14 = vmul.f32 %v1314_v11, %v305_v9  ;;  %1145 = vmatprep.subr.bf16.mxu0 %v1217_v4  ;;  %1190 = vmatprep.subr.bf16.mxu1 %v1217_v4  ;;  %v308_v24 = vld [vmem:[%s1304_s18 + $0x18] sm:$0xff]  ;;  %v346_v37 = vmul.f32 %v1314_v11, %v307_v23 }
  0x13   : > { %v345_v15 = vmul.f32 %v1314_v11, %v306_v10  ;;  %v322_v16 = vld [vmem:[%s1304_s18 + $0x88] sm:$0xff]  ;;  %v360_v17 = vmul.f32 %v1314_v11, %v321_v13  ;;  %v323_v25 = vld [vmem:[%s1304_s18 + $0x90] sm:$0xff]  ;;  %v324_v27 = vld [vmem:[%s1304_s18 + $0x98] sm:$0xff]  ;;  %v347_v38 = vmul.f32 %v1314_v11, %v308_v24 }
  0x14   : > { %v361_v19 = vmul.f32 %v1314_v11, %v322_v16  ;;  %v383_v20 = vadd.f32 %v1319_v12, %v344_v14  ;;  %v771_v28 = vld [vmem:[%s1297_s15 + $0x28] sm:$0xff]  ;;  %v770_v29 = vld [vmem:[%s1297_s15 + $0x20] sm:$0xff]  ;;  %1146 = vmatpush3.bf16.msra.mxu0 %v1217_v4  ;;  %1198 = vmatpush3.bf16.msra.mxu1 %v1217_v4  ;;  %v362_v42 = vmul.f32 %v1314_v11, %v323_v25  ;;  %v773_v47 = vld [vmem:[%s1297_s15 + $0x38] sm:$0xff] }
  0x15   : > { %815 = vperm.xlu1 %1213, %v769_v7   ;;  %805 = vperm.xlu0 %1212, %v767_v8   ;;  %v384_v21 = vadd.f32 %v1319_v12, %v345_v15  ;;  %v399_v22 = vadd.f32 %v1319_v12, %v360_v17  ;;  %v309_v33 = vld [vmem:[%s1304_s18 + $0x20] sm:$0xff]  ;;  %v310_v34 = vld [vmem:[%s1304_s18 + $0x28] sm:$0xff]  ;;  %v363_v43 = vmul.f32 %v1314_v11, %v324_v27  ;;  %v772_v48 = vld [vmem:[%s1297_s15 + $0x30] sm:$0xff] }
  0x16   : > { %v400_v26 = vadd.f32 %v1319_v12, %v361_v19  ;;  %v415_v30 = vmax.f32 %v383_v20, 0.0  ;;  %1147 = vmatprep.subr.bf16.mxu0 %v1218_v18  ;;  %1191 = vmatprep.subr.bf16.mxu1 %v1218_v18  ;;  %v325_v39 = vld [vmem:[%s1304_s18 + $0xa0] sm:$0xff]  ;;  %v326_v40 = vld [vmem:[%s1304_s18 + $0xa8] sm:$0xff]  ;;  %v348_v45 = vmul.f32 %v1314_v11, %v309_v33  ;;  %v349_v46 = vmul.f32 %v1314_v11, %v310_v34  ;;  %v311_v53 = vld [vmem:[%s1304_s18 + $0x30] sm:$0xff] }
  0x17   : > { %v416_v31 = vmax.f32 %v384_v21, 0.0  ;;  %v431_v32 = vmax.f32 %v399_v22, 0.0  ;;  %v364_v49 = vmul.f32 %v1314_v11, %v325_v39  ;;  %v365_v50 = vmul.f32 %v1314_v11, %v326_v40  ;;  %v312_v57 = vld [vmem:[%s1304_s18 + $0x38] sm:$0xff]  ;;  %v327_v58 = vld [vmem:[%s1304_s18 + $0xb0] sm:$0xff]  ;;  %v775_v62 = vld [vmem:[%s1297_s15 + $0x48] sm:$0xff] }
  0x18   : > { %v432_v36 = vmax.f32 %v400_v26, 0.0  ;;  %1148 = vmatpush3.bf16.msra.mxu0 %v1218_v18  ;;  %1199 = vmatpush3.bf16.msra.mxu1 %v1218_v18  ;;  %v385_v52 = vadd.f32 %v1319_v12, %v346_v37  ;;  %v386_v54 = vadd.f32 %v1319_v12, %v347_v38  ;;  %v401_v55 = vadd.f32 %v1319_v12, %v362_v42  ;;  %v328_v59 = vld [vmem:[%s1304_s18 + $0xb8] sm:$0xff]  ;;  %v774_v63 = vld [vmem:[%s1297_s15 + $0x40] sm:$0xff]  ;;  %v314_v4 = vld [vmem:[%s1304_s18 + $0x48] sm:$0xff] }
  0x19   : > { %v447_v41 = vpack.c.bf16 %v416_v31, %v415_v30  ;;  %825 = vperm.xlu1 %1213, %v771_v28   ;;  %820 = vperm.xlu0 %1212, %v770_v29   ;;  %v402_v56 = vadd.f32 %v1319_v12, %v363_v43  ;;  %v387_v60 = vadd.f32 %v1319_v12, %v348_v45  ;;  %v313_v0 = vld [vmem:[%s1304_s18 + $0x40] sm:$0xff]  ;;  %v330_v6 = vld [vmem:[%s1304_s18 + $0xc8] sm:$0xff]  ;;  %v1221_v7 = vld [vmem:[%s1625_s1 + $0x38] sm:$0xff]  }
  0x1a   : > { %v455_v44 = vpack.c.bf16 %v432_v36, %v431_v32  ;;  %1149 = vmatprep.subr.bf16.mxu0 %v1219_v35  ;;  %1192 = vmatprep.subr.bf16.mxu1 %v1219_v35  ;;  %v388_v61 = vadd.f32 %v1319_v12, %v349_v46  ;;  %v403_v1 = vadd.f32 %v1319_v12, %v364_v49  ;;  %v329_v5 = vld [vmem:[%s1304_s18 + $0xc0] sm:$0xff]  ;;  %v417_v8 = vmax.f32 %v385_v52, 0.0  ;;  %v777_v26 = vld [vmem:[%s1297_s15 + $0x58] sm:$0xff]  ;;  %v776_v27 = vld [vmem:[%s1297_s15 + $0x50] sm:$0xff] }
  0x1b   : > { %1155 = vmatprep.mubr.bf16.mxu0 %v447_v41  ;;  %v404_v2 = vadd.f32 %v1319_v12, %v365_v50  ;;  %v350_v3 = vmul.f32 %v1314_v11, %v311_v53  ;;  %v351_v9 = vmul.f32 %v1314_v11, %v312_v57  ;;  %v366_v10 = vmul.f32 %v1314_v11, %v327_v58  ;;  %v315_v34 = vld [vmem:[%s1304_s18 + $0x50] sm:$0xff]  ;;  %v316_v38 = vld [vmem:[%s1304_s18 + $0x58] sm:$0xff]  ;;  %v318_v49 = vld [vmem:[%s1304_s18 + $0x68] sm:$0xff] }
  0x1c   : > { %1171 = vmatprep.mubr.bf16.mxu1 %v455_v44  ;;  %1150 = vmatpush3.bf16.msra.mxu0 %v1219_v35  ;;  %v367_v13 = vmul.f32 %v1314_v11, %v328_v59  ;;  %v418_v14 = vmax.f32 %v386_v54, 0.0  ;;  %v433_v15 = vmax.f32 %v401_v55, 0.0  ;;  %v434_v16 = vmax.f32 %v402_v56, 0.0  ;;  %v331_v39 = vld [vmem:[%s1304_s18 + $0xd0] sm:$0xff]  ;;  %v332_v40 = vld [vmem:[%s1304_s18 + $0xd8] sm:$0xff]  ;;  %v317_v44 = vld [vmem:[%s1304_s18 + $0x60] sm:$0xff] }
  0x1d   : > { %835 = vperm.xlu1 %1213, %v773_v47   ;;  %830 = vperm.xlu0 %1212, %v772_v48   ;;  %v352_v17 = vmul.f32 %v1314_v11, %v313_v0  ;;  %v419_v18 = vmax.f32 %v387_v60, 0.0  ;;  %v353_v19 = vmul.f32 %v1314_v11, %v314_v4  ;;  %v368_v20 = vmul.f32 %v1314_v11, %v329_v5  ;;  %v333_v50 = vld [vmem:[%s1304_s18 + $0xe0] sm:$0xff]  ;;  %v779_v56 = vld [vmem:[%s1297_s15 + $0x68] sm:$0xff]  ;;  %v781_v5 = vld [vmem:[%s1297_s15 + $0x78] sm:$0xff] }
  0x1e   : > { %1200 = vmatpush3.bf16.msra.mxu1 %v1219_v35  ;;  %1151 = vmatprep.subr.bf16.mxu0 %v1220_v51  ;;  %v369_v21 = vmul.f32 %v1314_v11, %v330_v6  ;;  %v420_v22 = vmax.f32 %v388_v61, 0.0  ;;  %v435_v23 = vmax.f32 %v403_v1, 0.0  ;;  %v436_v24 = vmax.f32 %v404_v2, 0.0  ;;  %v778_v57 = vld [vmem:[%s1297_s15 + $0x60] sm:$0xff]  ;;  %v780_v6 = vld [vmem:[%s1297_s15 + $0x70] sm:$0xff] }
  0x1f   : > { %1193 = vmatprep.subr.bf16.mxu1 %v1220_v51  ;;  %v389_v25 = vadd.f32 %v1319_v12, %v350_v3  ;;  %v390_v28 = vadd.f32 %v1319_v12, %v351_v9  ;;  %v405_v29 = vadd.f32 %v1319_v12, %v366_v10  ;;  %v406_v30 = vadd.f32 %v1319_v12, %v367_v13  ;;  %v319_v13 = vld [vmem:[%s1304_s18 + $0x70] sm:$0xff] }
  0x20   : > { %1152 = vmatpush3.bf16.msra.mxu0 %v1220_v51  ;;  %v448_v31 = vpack.c.bf16 %v418_v14, %v417_v8  ;;  %v456_v32 = vpack.c.bf16 %v434_v16, %v433_v15  ;;  %v391_v33 = vadd.f32 %v1319_v12, %v352_v17  ;;  %v392_v35 = vadd.f32 %v1319_v12, %v353_v19  ;;  %v335_v19 = vld [vmem:[%s1304_s18 + $0xf0] sm:$0xff] }
  0x21   : > { %845 = vperm.xlu1 %1213, %v775_v62   ;;  %840 = vperm.xlu0 %1212, %v774_v63   ;;  %v407_v36 = vadd.f32 %v1319_v12, %v368_v20  ;;  %v408_v37 = vadd.f32 %v1319_v12, %v369_v21  ;;  %v449_v41 = vpack.c.bf16 %v420_v22, %v419_v18  ;;  %v421_v43 = vmax.f32 %v389_v25, 0.0  ;;  %v320_v18 = vld [vmem:[%s1304_s18 + $0x78] sm:$0xff] }
  0x22   : > { %1201 = vmatpush3.bf16.msra.mxu1 %v1220_v51  ;;  %1153 = vmatprep.subr.bf16.mxu0 %v1221_v7  ;;  %v457_v42 = vpack.c.bf16 %v436_v24, %v435_v23  ;;  %v422_v45 = vmax.f32 %v390_v28, 0.0  ;;  %v437_v46 = vmax.f32 %v405_v29, 0.0  ;;  %v438_v47 = vmax.f32 %v406_v30, 0.0  ;;  %v334_v51 = vld [vmem:[%s1304_s18 + $0xe8] sm:$0xff]  ;;  %v336_v20 = vld [vmem:[%s1304_s18 + $0xf8] sm:$0xff] }
  0x23   : > { %1194 = vmatprep.subr.bf16.mxu1 %v1221_v7  ;;  %v354_v48 = vmul.f32 %v1314_v11, %v315_v34  ;;  %v423_v52 = vmax.f32 %v391_v33, 0.0  ;;  %v355_v53 = vmul.f32 %v1314_v11, %v316_v38  ;;  %v370_v54 = vmul.f32 %v1314_v11, %v331_v39  ;;  %v784_v38 = vld [vmem:[%s1297_s15 + $0x90] sm:$0xff] }
  0x24   : > { %1154 = vmatpush3.bf16.msra.mxu0 %v1221_v7  ;;  %v371_v55 = vmul.f32 %v1314_v11, %v332_v40  ;;  %v424_v58 = vmax.f32 %v392_v35, 0.0  ;;  %v439_v59 = vmax.f32 %v407_v36, 0.0  ;;  %v440_v60 = vmax.f32 %v408_v37, 0.0  ;;  %v785_v37 = vld [vmem:[%s1297_s15 + $0x98] sm:$0xff] }
  0x25   : > { %855 = vperm.xlu1 %1213, %v777_v26   ;;  %850 = vperm.xlu0 %1212, %v776_v27   ;;  %v356_v61 = vmul.f32 %v1314_v11, %v317_v44  ;;  %v357_v62 = vmul.f32 %v1314_v11, %v318_v49  ;;  %v372_v63 = vmul.f32 %v1314_v11, %v333_v50  ;;  %v783_v26 = vld [vmem:[%s1297_s15 + $0x88] sm:$0xff]  ;;  %v782_v27 = vld [vmem:[%s1297_s15 + $0x80] sm:$0xff]  ;;  %v788_v50 = vld [vmem:[%s1297_s15 + $0xb0] sm:$0xff] }
  0x26   : > { %1202 = vmatpush3.bf16.msra.mxu1 %v1221_v7  ;;  %v373_v0 = vmul.f32 %v1314_v11, %v334_v51  ;;  %v393_v1 = vadd.f32 %v1319_v12, %v354_v48  ;;  %v394_v2 = vadd.f32 %v1319_v12, %v355_v53  ;;  %v409_v3 = vadd.f32 %v1319_v12, %v370_v54  ;;  %v787_v44 = vld [vmem:[%s1297_s15 + $0xa8] sm:$0xff]  ;;  %v790_v54 = vld [vmem:[%s1297_s15 + $0xc0] sm:$0xff] }
  0x27   : > { %1156 = vmatmul.mubr.bf16.vlgmr.msra.gmra.mrb[0].mxu0 %v448_v31  ;;  %v410_v4 = vadd.f32 %v1319_v12, %v371_v55  ;;  %v450_v7 = vpack.c.bf16 %v422_v45, %v421_v43  ;;  %v458_v8 = vpack.c.bf16 %v438_v47, %v437_v46  ;;  %v451_v9 = vpack.c.bf16 %v424_v58, %v423_v52  ;;  %v786_v45 = vld [vmem:[%s1297_s15 + $0xa0] sm:$0xff]  ;;  %v791_v53 = vld [vmem:[%s1297_s15 + $0xc8] sm:$0xff]  ;;  %v793_v55 = vld [vmem:[%s1297_s15 + $0xd8] sm:$0xff] }
  0x28   : > { %1159 = vmatprep.mubr.bf16.mxu0 %v449_v41  ;;  %v459_v10 = vpack.c.bf16 %v440_v60, %v439_v59  ;;  %v395_v14 = vadd.f32 %v1319_v12, %v356_v61  ;;  %v396_v15 = vadd.f32 %v1319_v12, %v357_v62  ;;  %v411_v16 = vadd.f32 %v1319_v12, %v372_v63  ;;  %v794_v58 = vld [vmem:[%s1297_s15 + $0xe0] sm:$0xff]  ;;  %v797_v59 = vld [vmem:[%s1297_s15 + $0xf8] sm:$0xff]  ;;  %v796_v60 = vld [vmem:[%s1297_s15 + $0xf0] sm:$0xff] }
  0x29   : > { %1172 = vmatmul.mubr.bf16.vlgmr.msra.gmra.mrb[0].mxu1 %v456_v32  ;;  %865 = vperm.xlu1 %1213, %v779_v56   ;;  %v412_v17 = vadd.f32 %v1319_v12, %v373_v0  ;;  %v425_v21 = vmax.f32 %v393_v1, 0.0  ;;  %v426_v22 = vmax.f32 %v394_v2, 0.0  ;;  %v441_v23 = vmax.f32 %v409_v3, 0.0  ;;  %v792_v56 = vld [vmem:[%s1297_s15 + $0xd0] sm:$0xff] }
  0x2a   : > { %1175 = vmatprep.mubr.bf16.mxu1 %v457_v42  ;;  %860 = vperm.xlu0 %1212, %v778_v57   ;;  %v442_v24 = vmax.f32 %v410_v4, 0.0  ;;  %v358_v25 = vmul.f32 %v1314_v11, %v319_v13  ;;  %v359_v28 = vmul.f32 %v1314_v11, %v320_v18  ;;  %v374_v29 = vmul.f32 %v1314_v11, %v335_v19  ;;  %v795_v57 = vld [vmem:[%s1297_s15 + $0xe8] sm:$0xff] }
  0x2b   : > { %v375_v30 = vmul.f32 %v1314_v11, %v336_v20  ;;  %v427_v31 = vmax.f32 %v395_v14, 0.0  ;;  %v428_v32 = vmax.f32 %v396_v15, 0.0  ;;  %v443_v33 = vmax.f32 %v411_v16, 0.0 }
  0x2c   : > { %v444_v34 = vmax.f32 %v412_v17, 0.0  ;;  %v452_v35 = vpack.c.bf16 %v426_v22, %v425_v21  ;;  %v460_v36 = vpack.c.bf16 %v442_v24, %v441_v23  ;;  %v397_v39 = vadd.f32 %v1319_v12, %v358_v25  ;;  %v1486_v21 = vld [vmem:[%s1628_s4] ss:$0 sm:$0xff] }
  0x2d   : > { %875 = vperm.xlu1 %1213, %v781_v5   ;;  %v398_v40 = vadd.f32 %v1319_v12, %v359_v28  ;;  %v413_v11 = vadd.f32 %v1319_v12, %v374_v29  ;;  %v414_v41 = vadd.f32 %v1319_v12, %v375_v30  ;;  %v453_v42 = vpack.c.bf16 %v428_v32, %v427_v31  ;;  %v789_v12 = vld [vmem:[%s1297_s15 + $0xb8] sm:$0xff]  ;;  %v1495_v25 = vld [vmem:[%s1629_s5] ss:$0 sm:$0xff] }
  0x2e   : > { %870 = vperm.xlu0 %1212, %v780_v6   ;;  %v461_v43 = vpack.c.bf16 %v444_v34, %v443_v33  ;;  %v429_v46 = vmax.f32 %v397_v39, 0.0 }
  0x2f   : > { %1160 = vmatmul.mubr.bf16.gmra.mrb[4].mxu0 %v450_v7  ;;  %v430_v47 = vmax.f32 %v398_v40, 0.0  ;;  %v445_v48 = vmax.f32 %v413_v11, 0.0  ;;  %v446_v49 = vmax.f32 %v414_v41, 0.0 }
  0x30   : > { %1163 = vmatprep.mubr.bf16.mxu0 %v451_v9 }
  0x31   : > { %1176 = vmatmul.mubr.bf16.gmra.mrb[4].mxu1 %v458_v8  ;;  %885 = vperm.xlu1 %1213, %v783_v26   ;;  %v454_v51 = vpack.c.bf16 %v430_v47, %v429_v46  ;;  %v462_v52 = vpack.c.bf16 %v446_v49, %v445_v48 }
  0x32   : > { %1179 = vmatprep.mubr.bf16.mxu1 %v459_v10  ;;  %880 = vperm.xlu0 %1212, %v782_v27  }
  0x35   : > { %895 = vperm.xlu1 %1213, %v785_v37  }
  0x36   : > { %890 = vperm.xlu0 %1212, %v784_v38  }
  0x37   : > { %1164 = vmatmul.mubr.bf16.gmra.mrb[8].mxu0 %v452_v35 }
  0x38   : > { %1167 = vmatprep.mubr.bf16.mxu0 %v453_v42 }
  0x39   : > { %1180 = vmatmul.mubr.bf16.gmra.mrb[8].mxu1 %v460_v36  ;;  %905 = vperm.xlu1 %1213, %v787_v44  }
  0x3a   : > { %1183 = vmatprep.mubr.bf16.mxu1 %v461_v43  ;;  %900 = vperm.xlu0 %1212, %v786_v45  }
  0x3d   : > { %915 = vperm.xlu1 %1213, %v789_v12  }
  0x3e   : > { %910 = vperm.xlu0 %1212, %v788_v50  }
  0x3f   : > { %1168 = vmatmul.mubr.bf16.gmra.mrb[12].mxu0 %v454_v51 }
  0x41   : > { %1184 = vmatmul.mubr.bf16.gmra.mrb[12].mxu1 %v462_v52  ;;  %925 = vperm.xlu1 %1213, %v791_v53  }
  0x42   : > { %920 = vperm.xlu0 %1212, %v790_v54  }
  0x45   : > { %935 = vperm.xlu1 %1213, %v793_v55  }
  0x46   : > { %930 = vperm.xlu0 %1212, %v792_v56  }
  0x49   : > { %945 = vperm.xlu1 %1213, %v795_v57  }
  0x4a   : > { %940 = vperm.xlu0 %1212, %v794_v58  }
  0x4d   : > { %955 = vperm.xlu1 %1213, %v797_v59  }
  0x4e   : > { %950 = vperm.xlu0 %1212, %v796_v60  }
  0x90   : > { %v811_v61 = vpop.permute.xlu1 %810  ;;  %v801_v62 = vpop.permute.xlu0 %800 }
  0x94   : > { %v816_v63 = vpop.permute.xlu1 %815  ;;  %v806_v0 = vpop.permute.xlu0 %805 }
  0x98   : > { %v1455_v1 = vpop.permute.xlu1 %825  ;;  %v1457_v2 = vpop.permute.xlu0 %820 }
  0x9c   : > { %v1459_v3 = vpop.permute.xlu1 %835  ;;  %v1461_v4 = vpop.permute.xlu0 %830 }
  0xa0   : > { %v1463_v5 = vpop.permute.xlu1 %845  ;;  %v1465_v6 = vpop.permute.xlu0 %840 }
  0xa4   : > { %v1467_v7 = vpop.permute.xlu1 %855  ;;  %v1469_v8 = vpop.permute.xlu0 %850 }
  0xa8   : > { %v1471_v9 = vpop.permute.xlu1 %865 }
  0xa9   : > { %v1473_v10 = vpop.permute.xlu0 %860 }
  0xac   : > { %v1475_v13 = vpop.permute.xlu1 %875 }
  0xad   : > { %v1477_v14 = vpop.permute.xlu0 %870 }
  0xb0   : > { %v886_v15 = vpop.permute.xlu1 %885 }
  0xb1   : > { %v881_v16 = vpop.permute.xlu0 %880 }
  0xb4   : > { %v896_v17 = vpop.permute.xlu1 %895 }
  0xb5   : > { %v891_v18 = vpop.permute.xlu0 %890 }
  0xb8   : > { %v1479_v19 = vpop.permute.xlu1 %905 }
  0xb9   : > { %v1481_v20 = vpop.permute.xlu0 %900 }
  0xbc   : > { %v1488_v22 = vpop.permute.xlu1 %915 }
  0xbd   : > { %v1490_v23 = vpop.permute.xlu0 %910 }
  0xc0   : > { %v1519_v51 = vpop.permute.xlu1 %925 }
  0xc1   : > { %v1521_v52 = vpop.permute.xlu0 %920 }
  0xfa   : > { %v1157_v24 = vpop.f32.mrb[0].mxu0 }
  0xfb   : > { %v697_v27 = vmul.f32 %v1157_v24, %v1486_v21  ;;  %v561_v29 = vpop.f32.mrb[1].mxu0 }
  0xfc   : > { %v1173_v26 = vpop.f32.mrb[0].mxu1  ;;  %v695_v31 = vmul.f32 %v1486_v21, %v561_v29  ;;  %v1158_v33 = vpop.f32.mrb[2].mxu0 }
  0xfd   : > { %v713_v28 = vmul.f32 %v1173_v26, %v1486_v21  ;;  %v625_v30 = vpop.f32.mrb[1].mxu1  ;;  %v736_v35 = vadd.f32 %v1495_v25, %v697_v27  ;;  %v698_v37 = vmul.f32 %v1158_v33, %v1486_v21  ;;  %v564_v39 = vpop.f32.mrb[3].mxu0 }
  0xfe   : > { %v711_v32 = vmul.f32 %v1486_v21, %v625_v30  ;;  %v1174_v34 = vpop.f32.mrb[2].mxu1  ;;  %v734_v11 = vadd.f32 %v1495_v25, %v695_v31  ;;  %v696_v42 = vmul.f32 %v1486_v21, %v564_v39 }
  0xff   : > { %v752_v36 = vadd.f32 %v1495_v25, %v713_v28  ;;  %v714_v38 = vmul.f32 %v1174_v34, %v1486_v21  ;;  %v628_v40 = vpop.f32.mrb[3].mxu1  ;;  %v960_v44 = vmul.f32 %v811_v61, %v736_v35  ;;  %v737_v46 = vadd.f32 %v1495_v25, %v698_v37 }
 0x100   : > { %v750_v41 = vadd.f32 %v1495_v25, %v711_v32  ;;  %v712_v43 = vmul.f32 %v1486_v21, %v628_v40  ;;  %v958_v48 = vmul.f32 %v801_v62, %v734_v11  ;;  %v735_v12 = vadd.f32 %v1495_v25, %v696_v42  ;;  %v936_v11 = vpop.permute.xlu1 %935 }
 0x101   : > { %v976_v45 = vmul.f32 %v891_v18, %v752_v36  ;;  %v753_v47 = vadd.f32 %v1495_v25, %v714_v38  ;;  %992 = vst [vmem:[%s1509_s16 + $0x10] sm:$0xff] %v960_v44  ;;  %v961_v53 = vmul.f32 %v816_v63, %v737_v46 }
 0x102   : > { %v974_v49 = vmul.f32 %v881_v16, %v750_v41  ;;  %v751_v50 = vadd.f32 %v1495_v25, %v712_v43  ;;  %990 = vst [vmem:[%s1509_s16] sm:$0xff] %v958_v48  ;;  %v959_v55 = vmul.f32 %v806_v0, %v735_v12  ;;  %v1161_v57 = vpop.f32.mrb[4].mxu0  ;;  %v931_v41 = vpop.permute.xlu0 %930 }
 0x103   : > { %1008 = vst [vmem:[%s1509_s16 + $0x90] sm:$0xff] %v976_v45  ;;  %v977_v54 = vmul.f32 %v896_v17, %v753_v47  ;;  %993 = vst [vmem:[%s1509_s16 + $0x18] sm:$0xff] %v961_v53  ;;  %v701_v59 = vmul.f32 %v1161_v57, %v1486_v21  ;;  %v577_v61 = vpop.f32.mrb[5].mxu0 }
 0x104   : > { %1006 = vst [vmem:[%s1509_s16 + $0x80] sm:$0xff] %v974_v49  ;;  %v975_v56 = vmul.f32 %v886_v15, %v751_v50  ;;  %v1177_v58 = vpop.f32.mrb[4].mxu1  ;;  %991 = vst [vmem:[%s1509_s16 + $0x8] sm:$0xff] %v959_v55  ;;  %v699_v16 = vmul.f32 %v1486_v21, %v577_v61  ;;  %v1162_v17 = vpop.f32.mrb[6].mxu0 }
 0x105   : > { %1009 = vst [vmem:[%s1509_s16 + $0x98] sm:$0xff] %v977_v54  ;;  %v717_v60 = vmul.f32 %v1177_v58, %v1486_v21  ;;  %v641_v62 = vpop.f32.mrb[5].mxu1  ;;  %v740_v0 = vadd.f32 %v1495_v25, %v701_v59  ;;  %v702_v24 = vmul.f32 %v1162_v17, %v1486_v21  ;;  %v580_v27 = vpop.f32.mrb[7].mxu0 }
 0x106   : > { %1007 = vst [vmem:[%s1509_s16 + $0x88] sm:$0xff] %v975_v56  ;;  %v715_v63 = vmul.f32 %v1486_v21, %v641_v62  ;;  %v1178_v18 = vpop.f32.mrb[6].mxu1  ;;  %v738_v29 = vadd.f32 %v1495_v25, %v699_v16  ;;  %v700_v31 = vmul.f32 %v1486_v21, %v580_v27  ;;  %v941_v16 = vpop.permute.xlu0 %940 }
 0x107   : > { %v756_v15 = vadd.f32 %v1495_v25, %v717_v60  ;;  %v718_v26 = vmul.f32 %v1178_v18, %v1486_v21  ;;  %v644_v28 = vpop.f32.mrb[7].mxu1  ;;  %v964_v33 = vmul.f32 %v1461_v4, %v740_v0  ;;  %v741_v35 = vadd.f32 %v1495_v25, %v702_v24 }
 0x108   : > { %v754_v30 = vadd.f32 %v1495_v25, %v715_v63  ;;  %v716_v32 = vmul.f32 %v1486_v21, %v644_v28  ;;  %v962_v37 = vmul.f32 %v1457_v2, %v738_v29  ;;  %v739_v39 = vadd.f32 %v1495_v25, %v700_v31 }
 0x109   : > { %v980_v34 = vmul.f32 %v1490_v23, %v756_v15  ;;  %v757_v36 = vadd.f32 %v1495_v25, %v718_v26  ;;  %996 = vst [vmem:[%s1509_s16 + $0x30] sm:$0xff] %v964_v33  ;;  %v965_v4 = vmul.f32 %v1459_v3, %v741_v35  ;;  %v946_v15 = vpop.permute.xlu1 %945 }
 0x10a   : > { %v978_v38 = vmul.f32 %v1481_v20, %v754_v30  ;;  %v755_v40 = vadd.f32 %v1495_v25, %v716_v32  ;;  %994 = vst [vmem:[%s1509_s16 + $0x20] sm:$0xff] %v962_v37  ;;  %v963_v2 = vmul.f32 %v1455_v1, %v739_v39  ;;  %v1165_v42 = vpop.f32.mrb[8].mxu0  ;;  %v951_v39 = vpop.permute.xlu0 %950 }
 0x10b   : > { %1012 = vst [vmem:[%s1509_s16 + $0xb0] sm:$0xff] %v980_v34  ;;  %v981_v23 = vmul.f32 %v1488_v22, %v757_v36  ;;  %997 = vst [vmem:[%s1509_s16 + $0x38] sm:$0xff] %v965_v4  ;;  %v705_v44 = vmul.f32 %v1165_v42, %v1486_v21  ;;  %v593_v46 = vpop.f32.mrb[9].mxu0 }
 0x10c   : > { %1010 = vst [vmem:[%s1509_s16 + $0xa0] sm:$0xff] %v978_v38  ;;  %v979_v20 = vmul.f32 %v1479_v19, %v755_v40  ;;  %v1181_v43 = vpop.f32.mrb[8].mxu1  ;;  %995 = vst [vmem:[%s1509_s16 + $0x28] sm:$0xff] %v963_v2  ;;  %v703_v3 = vmul.f32 %v1486_v21, %v593_v46  ;;  %v1166_v48 = vpop.f32.mrb[10].mxu0 }
 0x10d   : > { %1013 = vst [vmem:[%s1509_s16 + $0xb8] sm:$0xff] %v981_v23  ;;  %v721_v45 = vmul.f32 %v1181_v43, %v1486_v21  ;;  %v657_v47 = vpop.f32.mrb[9].mxu1  ;;  %v744_v19 = vadd.f32 %v1495_v25, %v705_v44  ;;  %v706_v12 = vmul.f32 %v1166_v48, %v1486_v21  ;;  %v596_v53 = vpop.f32.mrb[11].mxu0 }
 0x10e   : > { %1011 = vst [vmem:[%s1509_s16 + $0xa8] sm:$0xff] %v979_v20  ;;  %v719_v22 = vmul.f32 %v1486_v21, %v657_v47  ;;  %v1182_v1 = vpop.f32.mrb[10].mxu1  ;;  %v742_v55 = vadd.f32 %v1495_v25, %v703_v3  ;;  %v704_v57 = vmul.f32 %v1486_v21, %v596_v53  ;;  %v956_v43 = vpop.permute.xlu1 %955 }
 0x10f   : > { %v760_v49 = vadd.f32 %v1495_v25, %v721_v45  ;;  %v722_v50 = vmul.f32 %v1182_v1, %v1486_v21  ;;  %v660_v54 = vpop.f32.mrb[11].mxu1  ;;  %v968_v59 = vmul.f32 %v1469_v8, %v744_v19  ;;  %v745_v61 = vadd.f32 %v1495_v25, %v706_v12 }
 0x110   : > { %v758_v56 = vadd.f32 %v1495_v25, %v719_v22  ;;  %v720_v58 = vmul.f32 %v1486_v21, %v660_v54  ;;  %v966_v63 = vmul.f32 %v1465_v6, %v742_v55  ;;  %v743_v18 = vadd.f32 %v1495_v25, %v704_v57 }
 0x111   : > { %v984_v60 = vmul.f32 %v931_v41, %v760_v49  ;;  %v761_v62 = vadd.f32 %v1495_v25, %v722_v50  ;;  %1000 = vst [vmem:[%s1509_s16 + $0x50] sm:$0xff] %v968_v59  ;;  %v969_v8 = vmul.f32 %v1467_v7, %v745_v61 }
 0x112   : > { %v982_v17 = vmul.f32 %v1521_v52, %v758_v56  ;;  %v759_v0 = vadd.f32 %v1495_v25, %v720_v58  ;;  %998 = vst [vmem:[%s1509_s16 + $0x40] sm:$0xff] %v966_v63  ;;  %v967_v26 = vmul.f32 %v1463_v5, %v743_v18  ;;  %v1169_v27 = vpop.f32.mrb[12].mxu0 }
 0x113   : > { %1016 = vst [vmem:[%s1509_s16 + $0xd0] sm:$0xff] %v984_v60  ;;  %v985_v24 = vmul.f32 %v936_v11, %v761_v62  ;;  %1001 = vst [vmem:[%s1509_s16 + $0x58] sm:$0xff] %v969_v8  ;;  %v709_v28 = vmul.f32 %v1169_v27, %v1486_v21  ;;  %v609_v30 = vpop.f32.mrb[13].mxu0 }
 0x114   : > { %1014 = vst [vmem:[%s1509_s16 + $0xc0] sm:$0xff] %v982_v17  ;;  %v983_v6 = vmul.f32 %v1519_v51, %v759_v0  ;;  %v1185_v52 = vpop.f32.mrb[12].mxu1  ;;  %999 = vst [vmem:[%s1509_s16 + $0x48] sm:$0xff] %v967_v26  ;;  %v707_v7 = vmul.f32 %v1486_v21, %v609_v30  ;;  %v1170_v33 = vpop.f32.mrb[14].mxu0 }
 0x115   : > { %1017 = vst [vmem:[%s1509_s16 + $0xd8] sm:$0xff] %v985_v24  ;;  %v725_v29 = vmul.f32 %v1185_v52, %v1486_v21  ;;  %v673_v31 = vpop.f32.mrb[13].mxu1  ;;  %v748_v51 = vadd.f32 %v1495_v25, %v709_v28  ;;  %v710_v35 = vmul.f32 %v1170_v33, %v1486_v21  ;;  %v612_v37 = vpop.f32.mrb[15].mxu0 }
 0x116   : > { %1015 = vst [vmem:[%s1509_s16 + $0xc8] sm:$0xff] %v983_v6  ;;  %v723_v32 = vmul.f32 %v1486_v21, %v673_v31  ;;  %v1186_v5 = vpop.f32.mrb[14].mxu1  ;;  %v746_v40 = vadd.f32 %v1495_v25, %v707_v7  ;;  %v708_v41 = vmul.f32 %v1486_v21, %v612_v37 }
 0x117   : > { %v764_v34 = vadd.f32 %v1495_v25, %v725_v29  ;;  %v726_v36 = vmul.f32 %v1186_v5, %v1486_v21  ;;  %v676_v38 = vpop.f32.mrb[15].mxu1  ;;  %v972_v23 = vmul.f32 %v1477_v14, %v748_v51  ;;  %v749_v20 = vadd.f32 %v1495_v25, %v710_v35 }
 0x118   : > { %v762_v11 = vadd.f32 %v1495_v25, %v723_v32  ;;  %v724_v4 = vmul.f32 %v1486_v21, %v676_v38  ;;  %v970_v44 = vmul.f32 %v1473_v10, %v746_v40  ;;  %v747_v46 = vadd.f32 %v1495_v25, %v708_v41 }
 0x119   : > { %v988_v2 = vmul.f32 %v951_v39, %v764_v34  ;;  %v765_v42 = vadd.f32 %v1495_v25, %v726_v36  ;;  %1004 = vst [vmem:[%s1509_s16 + $0x70] sm:$0xff] %v972_v23  ;;  %v973_v14 = vmul.f32 %v1475_v13, %v749_v20 }
 0x11a   : > { %v986_v45 = vmul.f32 %v941_v16, %v762_v11  ;;  %v763_v47 = vadd.f32 %v1495_v25, %v724_v4  ;;  %1002 = vst [vmem:[%s1509_s16 + $0x60] sm:$0xff] %v970_v44  ;;  %v971_v3 = vmul.f32 %v1471_v9, %v747_v46 }
 0x11b   : > { %1020 = vst [vmem:[%s1509_s16 + $0xf0] sm:$0xff] %v988_v2  ;;  %v989_v21 = vmul.f32 %v956_v43, %v765_v42  ;;  %1005 = vst [vmem:[%s1509_s16 + $0x78] sm:$0xff] %v973_v14 }
 0x11c   : > { %1018 = vst [vmem:[%s1509_s16 + $0xe0] sm:$0xff] %v986_v45  ;;  %v987_v22 = vmul.f32 %v946_v15, %v763_v47  ;;  %1003 = vst [vmem:[%s1509_s16 + $0x68] sm:$0xff] %v971_v3 }
 0x11d   : > { %1021 = vst [vmem:[%s1509_s16 + $0xf8] sm:$0xff] %v989_v21 }
 0x11e   : > { %1019 = vst [vmem:[%s1509_s16 + $0xe8] sm:$0xff] %v987_v22 }
 0x11f PF: > { %s17_s24 = sadd.s32 1, %s1228_s24  }
 0x120   : > { %p14_p4 = scmp.ge.s32.totalorder %s17_s24, 4  }
 0x122   :  { %16 = sbr.rel (!%p14_p4) target bundleno = 1 (0x1), region = 81 }

// kernel: densenet_forward.28
= control target key start
LH: loop header
LB: loop body
LE: loop exit
PB: predicated region body
PF: predicated region fallthrough
CT: control target
= control target key end

     0   :  { %s1255_s1 = inlined_call_operand.vmem [shape: bf16[128,128], index: 1, kind: input, shape index: {}]   ;;  %s1256_s0 = inlined_call_operand.vmem [shape: f32[256,128], index: 0, kind: input, shape index: {}]   ;;  %s1257_s3 = inlined_call_operand.vmem [shape: f32[256,128], index: 3, kind: input, shape index: {}]   ;;  %s1258_s4 = inlined_call_operand.vmem [shape: f32[1,128], index: 4, kind: input, shape index: {}]   ;;  %s1259_s5 = inlined_call_operand.vmem [shape: f32[1,128], index: 5, kind: input, shape index: {}]   ;;  %s1260_s2 = inlined_call_operand.vmem [shape: f32[1,128], index: 2, kind: input, shape index: {}]   ;;  %s1261_s6 = inlined_call_operand.vmem [shape: f32[256,128], index: 6, kind: output, shape index: {}]  }
   0x1   :  { %v645_v0 = vld [vmem:[%s1255_s1] sm:$0xff]   ;;  %v646_v1 = vld [vmem:[%s1255_s1 + $0x8] sm:$0xff]   ;;  %v647_v2 = vld [vmem:[%s1255_s1 + $0x10] sm:$0xff]  }
   0x2   :  { %581 = vmatprep.subr.bf16.mxu0 %v645_v0  ;;  %629 = vmatprep.subr.bf16.mxu1 %v645_v0  ;;  %v648_v3 = vld [vmem:[%s1255_s1 + $0x18] sm:$0xff]   ;;  %v24_v4 = vld [vmem:[%s1256_s0] sm:$0xff]  ;;  %v25_v5 = vld [vmem:[%s1256_s0 + $0x8] sm:$0xff] }
   0x3   :  { %582 = vmatpush3.bf16.msra.mxu0 %v645_v0  ;;  %637 = vmatpush3.bf16.msra.mxu1 %v645_v0  ;;  %v40_v6 = vld [vmem:[%s1256_s0 + $0x80] sm:$0xff]  ;;  %v56_v7 = vpack.c.bf16 %v25_v5, %v24_v4  ;;  %v41_v8 = vld [vmem:[%s1256_s0 + $0x88] sm:$0xff]  ;;  %v651_v12 = vld [vmem:[%s1255_s1 + $0x30] sm:$0xff]  }
   0x4   :  { %583 = vmatprep.subr.bf16.mxu0 %v646_v1  ;;  %630 = vmatprep.subr.bf16.mxu1 %v646_v1  ;;  %v64_v9 = vpack.c.bf16 %v41_v8, %v40_v6  ;;  %v649_v10 = vld [vmem:[%s1255_s1 + $0x20] sm:$0xff]   ;;  %v650_v11 = vld [vmem:[%s1255_s1 + $0x28] sm:$0xff]   ;;  %v652_v13 = vld [vmem:[%s1255_s1 + $0x38] sm:$0xff]  }
   0x5   :  { %597 = vmatprep.mubr.bf16.mxu0 %v56_v7  ;;  %v26_v14 = vld [vmem:[%s1256_s0 + $0x10] sm:$0xff]  ;;  %v27_v15 = vld [vmem:[%s1256_s0 + $0x18] sm:$0xff]  ;;  %v28_v18 = vld [vmem:[%s1256_s0 + $0x20] sm:$0xff] }
   0x6   :  { %613 = vmatprep.mubr.bf16.mxu1 %v64_v9  ;;  %v42_v16 = vld [vmem:[%s1256_s0 + $0x90] sm:$0xff]  ;;  %v43_v17 = vld [vmem:[%s1256_s0 + $0x98] sm:$0xff]  ;;  %v29_v19 = vld [vmem:[%s1256_s0 + $0x28] sm:$0xff]  ;;  %v57_v22 = vpack.c.bf16 %v27_v15, %v26_v14 }
   0x7   :  { %584 = vmatpush3.bf16.msra.mxu0 %v646_v1  ;;  %638 = vmatpush3.bf16.msra.mxu1 %v646_v1  ;;  %v44_v20 = vld [vmem:[%s1256_s0 + $0xa0] sm:$0xff]  ;;  %v45_v21 = vld [vmem:[%s1256_s0 + $0xa8] sm:$0xff]  ;;  %v65_v23 = vpack.c.bf16 %v43_v17, %v42_v16  ;;  %v58_v24 = vpack.c.bf16 %v29_v19, %v28_v18  ;;  %v30_v26 = vld [vmem:[%s1256_s0 + $0x30] sm:$0xff] }
   0x8   :  { %585 = vmatprep.subr.bf16.mxu0 %v647_v2  ;;  %631 = vmatprep.subr.bf16.mxu1 %v647_v2  ;;  %v66_v25 = vpack.c.bf16 %v45_v21, %v44_v20  ;;  %v31_v27 = vld [vmem:[%s1256_s0 + $0x38] sm:$0xff]  ;;  %v46_v28 = vld [vmem:[%s1256_s0 + $0xb0] sm:$0xff]  ;;  %v32_v30 = vld [vmem:[%s1256_s0 + $0x40] sm:$0xff] }
   0x9   :  { %v47_v29 = vld [vmem:[%s1256_s0 + $0xb8] sm:$0xff]  ;;  %v33_v31 = vld [vmem:[%s1256_s0 + $0x48] sm:$0xff]  ;;  %v48_v32 = vld [vmem:[%s1256_s0 + $0xc0] sm:$0xff]  ;;  %v59_v34 = vpack.c.bf16 %v31_v27, %v30_v26 }
   0xa   :  { %v49_v33 = vld [vmem:[%s1256_s0 + $0xc8] sm:$0xff]  ;;  %v67_v35 = vpack.c.bf16 %v47_v29, %v46_v28  ;;  %v60_v36 = vpack.c.bf16 %v33_v31, %v32_v30  ;;  %v34_v38 = vld [vmem:[%s1256_s0 + $0x50] sm:$0xff]  ;;  %v35_v39 = vld [vmem:[%s1256_s0 + $0x58] sm:$0xff] }
   0xb   :  { %586 = vmatpush3.bf16.msra.mxu0 %v647_v2  ;;  %639 = vmatpush3.bf16.msra.mxu1 %v647_v2  ;;  %v68_v37 = vpack.c.bf16 %v49_v33, %v48_v32  ;;  %v50_v40 = vld [vmem:[%s1256_s0 + $0xd0] sm:$0xff]  ;;  %v51_v41 = vld [vmem:[%s1256_s0 + $0xd8] sm:$0xff]  ;;  %v36_v42 = vld [vmem:[%s1256_s0 + $0x60] sm:$0xff]  ;;  %v61_v46 = vpack.c.bf16 %v35_v39, %v34_v38 }
   0xc   :  { %587 = vmatprep.subr.bf16.mxu0 %v648_v3  ;;  %632 = vmatprep.subr.bf16.mxu1 %v648_v3  ;;  %v37_v43 = vld [vmem:[%s1256_s0 + $0x68] sm:$0xff]  ;;  %v52_v44 = vld [vmem:[%s1256_s0 + $0xe0] sm:$0xff]  ;;  %v69_v47 = vpack.c.bf16 %v51_v41, %v50_v40  ;;  %v38_v50 = vld [vmem:[%s1256_s0 + $0x70] sm:$0xff] }
   0xd   :  { %v53_v45 = vld [vmem:[%s1256_s0 + $0xe8] sm:$0xff]  ;;  %v62_v48 = vpack.c.bf16 %v37_v43, %v36_v42  ;;  %v39_v51 = vld [vmem:[%s1256_s0 + $0x78] sm:$0xff]  ;;  %v54_v52 = vld [vmem:[%s1256_s0 + $0xf0] sm:$0xff] }
   0xe   :  { %v70_v49 = vpack.c.bf16 %v53_v45, %v52_v44  ;;  %v55_v53 = vld [vmem:[%s1256_s0 + $0xf8] sm:$0xff]  ;;  %v63_v54 = vpack.c.bf16 %v39_v51, %v38_v50  ;;  %v306_v56 = vld [vmem:[%s1257_s3 + $0x10] sm:$0xff]  ;;  %v814_v57 = vld [vmem:[%s1258_s4] ss:$0 sm:$0xff] }
   0xf   :  { %588 = vmatpush3.bf16.msra.mxu0 %v648_v3  ;;  %640 = vmatpush3.bf16.msra.mxu1 %v648_v3  ;;  %v71_v55 = vpack.c.bf16 %v55_v53, %v54_v52  ;;  %v322_v58 = vld [vmem:[%s1257_s3 + $0x90] sm:$0xff]  ;;  %v304_v59 = vld [vmem:[%s1257_s3] sm:$0xff]  ;;  %v307_v61 = vld [vmem:[%s1257_s3 + $0x18] sm:$0xff]  ;;  %v345_v63 = vmul.f32 %v814_v57, %v306_v56 }
  0x10   :  { %589 = vmatprep.subr.bf16.mxu0 %v649_v10  ;;  %633 = vmatprep.subr.bf16.mxu1 %v649_v10  ;;  %v320_v60 = vld [vmem:[%s1257_s3 + $0x80] sm:$0xff]  ;;  %v323_v62 = vld [vmem:[%s1257_s3 + $0x98] sm:$0xff]  ;;  %v305_v0 = vld [vmem:[%s1257_s3 + $0x8] sm:$0xff]  ;;  %v361_v3 = vmul.f32 %v814_v57, %v322_v58  ;;  %v343_v4 = vmul.f32 %v814_v57, %v304_v59  ;;  %v346_v6 = vmul.f32 %v814_v57, %v307_v61 }
  0x11   :  { %v321_v1 = vld [vmem:[%s1257_s3 + $0x88] sm:$0xff]  ;;  %v841_v2 = vld [vmem:[%s1259_s5] ss:$0 sm:$0xff]  ;;  %v359_v5 = vmul.f32 %v814_v57, %v320_v60  ;;  %v362_v7 = vmul.f32 %v814_v57, %v323_v62  ;;  %v344_v8 = vmul.f32 %v814_v57, %v305_v0  ;;  %v310_v18 = vld [vmem:[%s1257_s3 + $0x30] sm:$0xff] }
  0x12   :  { %v360_v9 = vmul.f32 %v814_v57, %v321_v1  ;;  %v863_v14 = vadd.f32 %v841_v2, %v346_v6  ;;  %v326_v19 = vld [vmem:[%s1257_s3 + $0xb0] sm:$0xff]  ;;  %v308_v20 = vld [vmem:[%s1257_s3 + $0x20] sm:$0xff]  ;;  %v309_v28 = vld [vmem:[%s1257_s3 + $0x28] sm:$0xff]  ;;  %v349_v33 = vmul.f32 %v814_v57, %v310_v18 }
  0x13   :  { %590 = vmatpush3.bf16.msra.mxu0 %v649_v10  ;;  %641 = vmatpush3.bf16.msra.mxu1 %v649_v10  ;;  %v851_v10 = vadd.f32 %v841_v2, %v345_v63  ;;  %v866_v15 = vadd.f32 %v841_v2, %v362_v7  ;;  %v869_v16 = vadd.f32 %v841_v2, %v344_v8  ;;  %v325_v29 = vld [vmem:[%s1257_s3 + $0xa8] sm:$0xff]  ;;  %v314_v30 = vld [vmem:[%s1257_s3 + $0x50] sm:$0xff]  ;;  %v315_v42 = vld [vmem:[%s1257_s3 + $0x58] sm:$0xff] }
  0x14   :  { %591 = vmatprep.subr.bf16.mxu0 %v650_v11  ;;  %634 = vmatprep.subr.bf16.mxu1 %v650_v11  ;;  %v872_v17 = vadd.f32 %v841_v2, %v360_v9  ;;  %v417_v31 = vmax.f32 %v863_v14, 0.0  ;;  %v347_v40 = vmul.f32 %v814_v57, %v308_v20  ;;  %v331_v43 = vld [vmem:[%s1257_s3 + $0xd8] sm:$0xff]  ;;  %v353_v50 = vmul.f32 %v814_v57, %v314_v30  ;;  %v993_v20 = vld [vmem:[%s1260_s2] ss:$0 sm:$0xff] }
  0x15   :  { %v416_v21 = vmax.f32 %v851_v10, 0.0  ;;  %v433_v32 = vmax.f32 %v866_v15, 0.0  ;;  %v415_v38 = vmax.f32 %v869_v16, 0.0  ;;  %v354_v56 = vmul.f32 %v814_v57, %v315_v42  ;;  %v319_v15 = vld [vmem:[%s1257_s3 + $0x78] sm:$0xff] }
  0x16   :  { %v431_v39 = vmax.f32 %v872_v17, 0.0  ;;  %v370_v58 = vmul.f32 %v814_v57, %v331_v43  ;;  %v951_v59 = vadd.f32 %v841_v2, %v347_v40 }
  0x17   :  { %592 = vmatpush3.bf16.msra.mxu0 %v650_v11  ;;  %642 = vmatpush3.bf16.msra.mxu1 %v650_v11  ;;  %v854_v11 = vadd.f32 %v841_v2, %v361_v3  ;;  %v985_v18 = vadd.f32 %v841_v2, %v354_v56 }
  0x18   :  { %593 = vmatprep.subr.bf16.mxu0 %v651_v12  ;;  %635 = vmatprep.subr.bf16.mxu1 %v651_v12 }
  0x1b   :  { %594 = vmatpush3.bf16.msra.mxu0 %v651_v12  ;;  %643 = vmatpush3.bf16.msra.mxu1 %v651_v12  ;;  %v857_v12 = vadd.f32 %v841_v2, %v343_v4  ;;  %v971_v4 = vadd.f32 %v841_v2, %v353_v50 }
  0x1c   :  { %595 = vmatprep.subr.bf16.mxu0 %v652_v13  ;;  %636 = vmatprep.subr.bf16.mxu1 %v652_v13 }
  0x1d   :  { %v414_v26 = vmax.f32 %v857_v12, 0.0 }
  0x1f   :  { %596 = vmatpush3.bf16.msra.mxu0 %v652_v13  ;;  %644 = vmatpush3.bf16.msra.mxu1 %v652_v13  ;;  %v860_v13 = vadd.f32 %v841_v2, %v359_v5 }
  0x21   :  { %v430_v27 = vmax.f32 %v860_v13, 0.0 }
  0x22   :  { %598 = vmatmul.mubr.bf16.vlgmr.msra.gmra.mrb[0].mxu0 %v57_v22  ;;  %614 = vmatmul.mubr.bf16.vlgmr.msra.gmra.mrb[0].mxu1 %v65_v23  ;;  %v324_v22 = vld [vmem:[%s1257_s3 + $0xa0] sm:$0xff]  ;;  %v311_v23 = vld [vmem:[%s1257_s3 + $0x38] sm:$0xff] }
  0x23   :  { %601 = vmatprep.mubr.bf16.mxu0 %v58_v24  ;;  %617 = vmatprep.mubr.bf16.mxu1 %v66_v25  ;;  %v327_v24 = vld [vmem:[%s1257_s3 + $0xb8] sm:$0xff]  ;;  %v432_v25 = vmax.f32 %v854_v11, 0.0  ;;  %v363_v41 = vmul.f32 %v814_v57, %v324_v22  ;;  %v350_v44 = vmul.f32 %v814_v57, %v311_v23  ;;  %v418_v22 = vmax.f32 %v951_v59, 0.0  ;;  %v318_v11 = vld [vmem:[%s1257_s3 + $0x70] sm:$0xff] }
  0x24   :  { %v366_v45 = vmul.f32 %v814_v57, %v327_v24  ;;  %v357_v17 = vmul.f32 %v814_v57, %v318_v11 }
  0x25   :  { %v954_v60 = vadd.f32 %v841_v2, %v363_v41  ;;  %v959_v63 = vadd.f32 %v841_v2, %v350_v44 }
  0x26   :  { %v962_v0 = vadd.f32 %v841_v2, %v366_v45 }
  0x27   :  { %v434_v23 = vmax.f32 %v954_v60, 0.0 }
  0x28   :  { %v437_v30 = vmax.f32 %v962_v0, 0.0  ;;  %v1126_v0 = vadd.f32 %v841_v2, %v357_v17 }
  0x2a   :  { %602 = vmatmul.mubr.bf16.gmra.mrb[4].mxu0 %v59_v34  ;;  %618 = vmatmul.mubr.bf16.gmra.mrb[4].mxu1 %v67_v35  ;;  %v365_v34 = vmul.f32 %v814_v57, %v326_v19  ;;  %v330_v35 = vld [vmem:[%s1257_s3 + $0xd0] sm:$0xff]  ;;  %v988_v19 = vadd.f32 %v841_v2, %v370_v58 }
  0x2b   :  { %605 = vmatprep.mubr.bf16.mxu0 %v60_v36  ;;  %621 = vmatprep.mubr.bf16.mxu1 %v68_v37  ;;  %v312_v36 = vld [vmem:[%s1257_s3 + $0x40] sm:$0xff]  ;;  %v369_v51 = vmul.f32 %v814_v57, %v330_v35 }
  0x2c   :  { %v328_v37 = vld [vmem:[%s1257_s3 + $0xc0] sm:$0xff]  ;;  %v351_v52 = vmul.f32 %v814_v57, %v312_v36 }
  0x2d   :  { %v367_v53 = vmul.f32 %v814_v57, %v328_v37  ;;  %v974_v5 = vadd.f32 %v841_v2, %v369_v51  ;;  %v424_v37 = vmax.f32 %v971_v4, 0.0 }
  0x2e   :  { %v977_v6 = vadd.f32 %v841_v2, %v351_v52 }
  0x2f   :  { %v980_v7 = vadd.f32 %v841_v2, %v367_v53  ;;  %v440_v40 = vmax.f32 %v974_v5, 0.0 }
  0x30   :  { %v422_v41 = vmax.f32 %v977_v6, 0.0 }
  0x31   :  { %v438_v42 = vmax.f32 %v980_v7, 0.0 }
  0x32   :  { %606 = vmatmul.mubr.bf16.gmra.mrb[8].mxu0 %v61_v46  ;;  %622 = vmatmul.mubr.bf16.gmra.mrb[8].mxu1 %v69_v47  ;;  %v348_v46 = vmul.f32 %v814_v57, %v309_v28  ;;  %v364_v47 = vmul.f32 %v814_v57, %v325_v29  ;;  %v421_v29 = vmax.f32 %v959_v63, 0.0 }
  0x33   :  { %609 = vmatprep.mubr.bf16.mxu0 %v62_v48  ;;  %625 = vmatprep.mubr.bf16.mxu1 %v70_v49  ;;  %v313_v48 = vld [vmem:[%s1257_s3 + $0x48] sm:$0xff] }
  0x34   :  { %v329_v49 = vld [vmem:[%s1257_s3 + $0xc8] sm:$0xff]  ;;  %v352_v61 = vmul.f32 %v814_v57, %v313_v48  ;;  %v965_v1 = vadd.f32 %v841_v2, %v348_v46  ;;  %v968_v3 = vadd.f32 %v841_v2, %v364_v47  ;;  %v425_v47 = vmax.f32 %v985_v18, 0.0 }
  0x35   :  { %v368_v62 = vmul.f32 %v814_v57, %v329_v49  ;;  %v441_v48 = vmax.f32 %v988_v19, 0.0  ;;  %v428_v19 = vmax.f32 %v1126_v0, 0.0 }
  0x36   :  { %v998_v24 = vadd.f32 %v841_v2, %v352_v61 }
  0x37   :  { %v1001_v28 = vadd.f32 %v841_v2, %v368_v62 }
  0x38   :  { %v1262_v6 = vmax.f32 %v998_v24, 0.0 }
  0x39   :  { %v1263_v7 = vmax.f32 %v1001_v28, 0.0 }
  0x3a   :  { %610 = vmatmul.mubr.bf16.gmra.mrb[12].mxu0 %v63_v54  ;;  %626 = vmatmul.mubr.bf16.gmra.mrb[12].mxu1 %v71_v55  ;;  %v943_v54 = vadd.f32 %v841_v2, %v349_v33  ;;  %v946_v55 = vadd.f32 %v841_v2, %v365_v34  ;;  %v419_v33 = vmax.f32 %v965_v1, 0.0  ;;  %v435_v34 = vmax.f32 %v968_v3, 0.0 }
  0x3c   :  { %v420_v8 = vmax.f32 %v943_v54, 0.0  ;;  %v436_v9 = vmax.f32 %v946_v55, 0.0 }
  0xf5   :  { %v599_v35 = vpop.f32.mrb[0].mxu0  ;;  %v615_v36 = vpop.f32.mrb[0].mxu1 }
  0xf6   :  { %v186_v43 = vadd.f32 %v599_v35, %v993_v20  ;;  %v250_v44 = vadd.f32 %v615_v36, %v993_v20  ;;  %v177_v45 = vpop.f32.mrb[1].mxu0  ;;  %v241_v46 = vpop.f32.mrb[1].mxu1 }
  0xf7   :  { %v178_v49 = vadd.f32 %v993_v20, %v177_v45  ;;  %v242_v50 = vadd.f32 %v993_v20, %v241_v46  ;;  %v600_v51 = vpop.f32.mrb[2].mxu0  ;;  %v616_v52 = vpop.f32.mrb[2].mxu1 }
  0xf8   :  { %v448_v58 = vadd.f32 %v416_v21, %v186_v43  ;;  %v464_v61 = vadd.f32 %v432_v25, %v250_v44  ;;  %v189_v62 = vadd.f32 %v600_v51, %v993_v20  ;;  %v253_v35 = vadd.f32 %v616_v52, %v993_v20  ;;  %v180_v36 = vpop.f32.mrb[3].mxu0  ;;  %v244_v45 = vpop.f32.mrb[3].mxu1  ;;  %v334_v21 = vld [vmem:[%s1257_s3 + $0xf0] sm:$0xff]  ;;  %v333_v51 = vld [vmem:[%s1257_s3 + $0xe8] sm:$0xff] }
  0xf9   :  { %v446_v46 = vadd.f32 %v414_v26, %v178_v49  ;;  %v462_v53 = vadd.f32 %v430_v27, %v242_v50  ;;  %v181_v56 = vadd.f32 %v993_v20, %v180_v36  ;;  %v245_v10 = vadd.f32 %v993_v20, %v244_v45  ;;  %v316_v26 = vld [vmem:[%s1257_s3 + $0x60] sm:$0xff] }
  0xfa   :  { %v480_v25 = vmax.f32 %v448_v58, 0.0  ;;  %v496_v43 = vmax.f32 %v464_v61, 0.0  ;;  %v449_v12 = vadd.f32 %v417_v31, %v189_v62  ;;  %v465_v13 = vadd.f32 %v433_v32, %v253_v35  ;;  %v332_v27 = vld [vmem:[%s1257_s3 + $0xe0] sm:$0xff]  ;;  %v335_v31 = vld [vmem:[%s1257_s3 + $0xf8] sm:$0xff] }
  0xfb   :  { %v478_v44 = vmax.f32 %v446_v46, 0.0  ;;  %v494_v49 = vmax.f32 %v462_v53, 0.0  ;;  %v447_v50 = vadd.f32 %v415_v38, %v181_v56  ;;  %v463_v14 = vadd.f32 %v431_v39, %v245_v10  ;;  %v317_v39 = vld [vmem:[%s1257_s3 + $0x68] sm:$0xff] }
  0xfc   :  { %512 = vst [vmem:[%s1261_s6 + $0x10] sm:$0xff] %v480_v25  ;;  %528 = vst [vmem:[%s1261_s6 + $0x90] sm:$0xff] %v496_v43  ;;  %v481_v16 = vmax.f32 %v449_v12, 0.0  ;;  %v497_v32 = vmax.f32 %v465_v13, 0.0  ;;  %v373_v38 = vmul.f32 %v814_v57, %v334_v21  ;;  %v355_v61 = vmul.f32 %v814_v57, %v316_v26 }
  0xfd   :  { %510 = vst [vmem:[%s1261_s6] sm:$0xff] %v478_v44  ;;  %526 = vst [vmem:[%s1261_s6 + $0x80] sm:$0xff] %v494_v49  ;;  %v479_v52 = vmax.f32 %v447_v50, 0.0  ;;  %v495_v53 = vmax.f32 %v463_v14, 0.0  ;;  %v603_v56 = vpop.f32.mrb[4].mxu0  ;;  %v619_v58 = vpop.f32.mrb[4].mxu1  ;;  %v371_v62 = vmul.f32 %v814_v57, %v332_v27  ;;  %v358_v10 = vmul.f32 %v814_v57, %v319_v15 }
  0xfe   :  { %513 = vst [vmem:[%s1261_s6 + $0x18] sm:$0xff] %v481_v16  ;;  %529 = vst [vmem:[%s1261_s6 + $0x98] sm:$0xff] %v497_v32  ;;  %v202_v35 = vadd.f32 %v603_v56, %v993_v20  ;;  %v266_v36 = vadd.f32 %v619_v58, %v993_v20  ;;  %v193_v45 = vpop.f32.mrb[5].mxu0  ;;  %v257_v46 = vpop.f32.mrb[5].mxu1  ;;  %v374_v11 = vmul.f32 %v814_v57, %v335_v31 }
  0xff   :  { %511 = vst [vmem:[%s1261_s6 + $0x8] sm:$0xff] %v479_v52  ;;  %527 = vst [vmem:[%s1261_s6 + $0x88] sm:$0xff] %v495_v53  ;;  %v194_v21 = vadd.f32 %v993_v20, %v193_v45  ;;  %v258_v25 = vadd.f32 %v993_v20, %v257_v46  ;;  %v604_v43 = vpop.f32.mrb[6].mxu0  ;;  %v620_v12 = vpop.f32.mrb[6].mxu1  ;;  %v356_v13 = vmul.f32 %v814_v57, %v317_v39 }
 0x100   :  { %v372_v26 = vmul.f32 %v814_v57, %v333_v51  ;;  %v452_v27 = vadd.f32 %v420_v8, %v202_v35  ;;  %v468_v44 = vadd.f32 %v436_v9, %v266_v36  ;;  %v205_v49 = vadd.f32 %v604_v43, %v993_v20  ;;  %v196_v14 = vpop.f32.mrb[7].mxu0  ;;  %v260_v15 = vpop.f32.mrb[7].mxu1 }
 0x101   :  { %v269_v50 = vadd.f32 %v620_v12, %v993_v20  ;;  %v450_v31 = vadd.f32 %v418_v22, %v194_v21  ;;  %v466_v16 = vadd.f32 %v434_v23, %v258_v25  ;;  %v197_v57 = vadd.f32 %v993_v20, %v196_v14 }
 0x102   :  { %v261_v54 = vadd.f32 %v993_v20, %v260_v15  ;;  %v484_v8 = vmax.f32 %v452_v27, 0.0  ;;  %v500_v32 = vmax.f32 %v468_v44, 0.0  ;;  %v453_v55 = vadd.f32 %v421_v29, %v205_v49 }
 0x103   :  { %v469_v9 = vadd.f32 %v437_v30, %v269_v50  ;;  %v482_v39 = vmax.f32 %v450_v31, 0.0  ;;  %v498_v51 = vmax.f32 %v466_v16, 0.0  ;;  %v451_v59 = vadd.f32 %v419_v33, %v197_v57 }
 0x104   :  { %v467_v60 = vadd.f32 %v435_v34, %v261_v54  ;;  %516 = vst [vmem:[%s1261_s6 + $0x30] sm:$0xff] %v484_v8  ;;  %532 = vst [vmem:[%s1261_s6 + $0xb0] sm:$0xff] %v500_v32  ;;  %v485_v63 = vmax.f32 %v453_v55, 0.0  ;;  %v1129_v23 = vadd.f32 %v841_v2, %v373_v38  ;;  %v1138_v33 = vadd.f32 %v841_v2, %v355_v61 }
 0x105   :  { %v501_v22 = vmax.f32 %v469_v9, 0.0  ;;  %514 = vst [vmem:[%s1261_s6 + $0x20] sm:$0xff] %v482_v39  ;;  %530 = vst [vmem:[%s1261_s6 + $0xa0] sm:$0xff] %v498_v51  ;;  %v483_v1 = vmax.f32 %v451_v59, 0.0  ;;  %v607_v29 = vpop.f32.mrb[8].mxu0  ;;  %v623_v30 = vpop.f32.mrb[8].mxu1  ;;  %v1141_v34 = vadd.f32 %v841_v2, %v371_v62  ;;  %v1152_v56 = vadd.f32 %v841_v2, %v358_v10 }
 0x106   :  { %v499_v3 = vmax.f32 %v467_v60, 0.0  ;;  %517 = vst [vmem:[%s1261_s6 + $0x38] sm:$0xff] %v485_v63  ;;  %v218_v17 = vadd.f32 %v607_v29, %v993_v20  ;;  %v282_v38 = vadd.f32 %v623_v30, %v993_v20  ;;  %v209_v52 = vpop.f32.mrb[9].mxu0  ;;  %v273_v53 = vpop.f32.mrb[9].mxu1  ;;  %v1155_v58 = vadd.f32 %v841_v2, %v374_v11 }
 0x107   :  { %533 = vst [vmem:[%s1261_s6 + $0xb8] sm:$0xff] %v501_v22  ;;  %515 = vst [vmem:[%s1261_s6 + $0x28] sm:$0xff] %v483_v1  ;;  %v210_v61 = vadd.f32 %v993_v20, %v209_v52  ;;  %v274_v62 = vadd.f32 %v993_v20, %v273_v53  ;;  %v608_v35 = vpop.f32.mrb[10].mxu0  ;;  %v624_v36 = vpop.f32.mrb[10].mxu1  ;;  %v1166_v45 = vadd.f32 %v841_v2, %v356_v13  ;;  %v426_v15 = vmax.f32 %v1138_v33, 0.0 }
 0x108   :  { %531 = vst [vmem:[%s1261_s6 + $0xa8] sm:$0xff] %v499_v3  ;;  %v1169_v46 = vadd.f32 %v841_v2, %v372_v26  ;;  %v456_v10 = vadd.f32 %v424_v37, %v218_v17  ;;  %v472_v11 = vadd.f32 %v440_v40, %v282_v38  ;;  %v221_v21 = vadd.f32 %v608_v35, %v993_v20  ;;  %v212_v43 = vpop.f32.mrb[11].mxu0  ;;  %v276_v12 = vpop.f32.mrb[11].mxu1 }
 0x109   :  { %v285_v25 = vadd.f32 %v624_v36, %v993_v20  ;;  %v454_v27 = vadd.f32 %v422_v41, %v210_v61  ;;  %v470_v13 = vadd.f32 %v438_v42, %v274_v62  ;;  %v213_v2 = vadd.f32 %v993_v20, %v212_v43 }
 0x10a   :  { %v277_v4 = vadd.f32 %v993_v20, %v276_v12  ;;  %v488_v37 = vmax.f32 %v456_v10, 0.0  ;;  %v504_v26 = vmax.f32 %v472_v11, 0.0  ;;  %v457_v5 = vadd.f32 %v425_v47, %v221_v21 }
 0x10b   :  { %v473_v40 = vadd.f32 %v441_v48, %v285_v25  ;;  %v486_v44 = vmax.f32 %v454_v27, 0.0  ;;  %v502_v49 = vmax.f32 %v470_v13, 0.0  ;;  %v455_v41 = vadd.f32 %v1262_v6, %v213_v2 }
 0x10c   :  { %v471_v42 = vadd.f32 %v1263_v7, %v277_v4  ;;  %520 = vst [vmem:[%s1261_s6 + $0x50] sm:$0xff] %v488_v37  ;;  %536 = vst [vmem:[%s1261_s6 + $0xd0] sm:$0xff] %v504_v26  ;;  %v489_v18 = vmax.f32 %v457_v5, 0.0  ;;  %v444_v48 = vmax.f32 %v1129_v23, 0.0  ;;  %v442_v31 = vmax.f32 %v1141_v34, 0.0 }
 0x10d   :  { %v505_v47 = vmax.f32 %v473_v40, 0.0  ;;  %518 = vst [vmem:[%s1261_s6 + $0x40] sm:$0xff] %v486_v44  ;;  %534 = vst [vmem:[%s1261_s6 + $0xc0] sm:$0xff] %v502_v49  ;;  %v487_v24 = vmax.f32 %v455_v41, 0.0  ;;  %v611_v50 = vpop.f32.mrb[12].mxu0  ;;  %v627_v14 = vpop.f32.mrb[12].mxu1 }
 0x10e   :  { %v503_v28 = vmax.f32 %v471_v42, 0.0  ;;  %521 = vst [vmem:[%s1261_s6 + $0x58] sm:$0xff] %v489_v18  ;;  %v234_v16 = vadd.f32 %v611_v50, %v993_v20  ;;  %v298_v57 = vadd.f32 %v627_v14, %v993_v20  ;;  %v225_v54 = vpop.f32.mrb[13].mxu0  ;;  %v289_v8 = vpop.f32.mrb[13].mxu1  ;;  %v429_v32 = vmax.f32 %v1152_v56, 0.0 }
 0x10f   :  { %537 = vst [vmem:[%s1261_s6 + $0xd8] sm:$0xff] %v505_v47  ;;  %v445_v55 = vmax.f32 %v1155_v58, 0.0  ;;  %519 = vst [vmem:[%s1261_s6 + $0x48] sm:$0xff] %v487_v24  ;;  %v226_v9 = vadd.f32 %v993_v20, %v225_v54  ;;  %v290_v39 = vadd.f32 %v993_v20, %v289_v8  ;;  %v612_v51 = vpop.f32.mrb[14].mxu0  ;;  %v628_v59 = vpop.f32.mrb[14].mxu1  ;;  %v427_v60 = vmax.f32 %v1166_v45, 0.0 }
 0x110   :  { %535 = vst [vmem:[%s1261_s6 + $0xc8] sm:$0xff] %v503_v28  ;;  %v443_v63 = vmax.f32 %v1169_v46, 0.0  ;;  %v460_v22 = vadd.f32 %v428_v19, %v234_v16  ;;  %v476_v0 = vadd.f32 %v444_v48, %v298_v57  ;;  %v237_v23 = vadd.f32 %v612_v51, %v993_v20  ;;  %v228_v3 = vpop.f32.mrb[15].mxu0  ;;  %v292_v29 = vpop.f32.mrb[15].mxu1 }
 0x111   :  { %v301_v1 = vadd.f32 %v628_v59, %v993_v20  ;;  %v458_v30 = vadd.f32 %v426_v15, %v226_v9  ;;  %v474_v33 = vadd.f32 %v442_v31, %v290_v39  ;;  %v229_v34 = vadd.f32 %v993_v20, %v228_v3 }
 0x112   :  { %v293_v17 = vadd.f32 %v993_v20, %v292_v29  ;;  %v492_v38 = vmax.f32 %v460_v22, 0.0  ;;  %v508_v52 = vmax.f32 %v476_v0, 0.0  ;;  %v461_v53 = vadd.f32 %v429_v32, %v237_v23 }
 0x113   :  { %v477_v56 = vadd.f32 %v445_v55, %v301_v1  ;;  %v490_v58 = vmax.f32 %v458_v30, 0.0  ;;  %v506_v61 = vmax.f32 %v474_v33, 0.0  ;;  %v459_v62 = vadd.f32 %v427_v60, %v229_v34 }
 0x114   :  { %v475_v35 = vadd.f32 %v443_v63, %v293_v17  ;;  %524 = vst [vmem:[%s1261_s6 + $0x70] sm:$0xff] %v492_v38  ;;  %540 = vst [vmem:[%s1261_s6 + $0xf0] sm:$0xff] %v508_v52  ;;  %v493_v36 = vmax.f32 %v461_v53, 0.0 }
 0x115   :  { %v509_v45 = vmax.f32 %v477_v56, 0.0  ;;  %522 = vst [vmem:[%s1261_s6 + $0x60] sm:$0xff] %v490_v58  ;;  %538 = vst [vmem:[%s1261_s6 + $0xe0] sm:$0xff] %v506_v61  ;;  %v491_v20 = vmax.f32 %v459_v62, 0.0 }
 0x116   :  { %v507_v46 = vmax.f32 %v475_v35, 0.0  ;;  %525 = vst [vmem:[%s1261_s6 + $0x78] sm:$0xff] %v493_v36 }
 0x117   :  { %541 = vst [vmem:[%s1261_s6 + $0xf8] sm:$0xff] %v509_v45  ;;  %523 = vst [vmem:[%s1261_s6 + $0x68] sm:$0xff] %v491_v20 }
 0x118   :  { %539 = vst [vmem:[%s1261_s6 + $0xe8] sm:$0xff] %v507_v46 }

// kernel: densenet_forward.29
= control target key start
LH: loop header
LB: loop body
LE: loop exit
PB: predicated region body
PF: predicated region fallthrough
CT: control target
= control target key end

     0   :  { %v443_v3 = vmov 0.0|0.0   ;;  %vm444_vm0 = vmmov 0   ;;  %v445_v14 = vmov 0.0   ;;  %s640_s0 = inlined_call_operand.vmem [shape: f32[104,128], index: 0, kind: input, shape index: {}]   ;;  %s641_s1 = inlined_call_operand.vmem [shape: f32[1,128], index: 1, kind: input, shape index: {}]   ;;  %s642_s2 = inlined_call_operand.vmem [shape: f32[1,128], index: 2, kind: input, shape index: {}]   ;;  %s643_s3 = inlined_call_operand.vmem [shape: f32[2,104], index: 3, kind: input, shape index: {}]   ;;  %s644_s4 = inlined_call_operand.vmem [shape: f32[128,10], index: 4, kind: input, shape index: {}]   ;;  %s645_s5 = inlined_call_operand.vmem [shape: f32[1,10], index: 5, kind: input, shape index: {}]   ;;  %s646_s6 = inlined_call_operand.hbm [shape: f32[2,10], index: 6, kind: output, shape index: {}]  }
   0x1   :  { %v24_v0 = vld [vmem:[%s640_s0] sm:$0xff]  ;;  %v25_v1 = vld [vmem:[%s640_s0 + $0x8] sm:$0xff]  ;;  %373 = vmatprep.subr.bf16.mxu0 %v443_v3  ;;  %v26_v7 = vld [vmem:[%s640_s0 + $0x10] sm:$0xff]  ;;  %391 = vmatprep.subr.bf16.mxu1 %v443_v3 }
   0x2   :  { %v491_v2 = vld [vmem:[%s641_s1] ss:$0 sm:$0xff]  ;;  %v27_v8 = vld [vmem:[%s640_s0 + $0x18] sm:$0xff]  ;;  %v29_v12 = vld [vmem:[%s640_s0 + $0x28] sm:$0xff]  ;;  %335 = vmatprep.mubr.msk.f32.mxu0 %vm444_vm0, %v445_v14  ;;  %370 = vmatprep.mubr.msk.f32.mxu1 %vm444_vm0, %v445_v14 }
   0x3   :  { %v44_v4 = vmul.f32 %v491_v2, %v24_v0  ;;  %v45_v5 = vmul.f32 %v491_v2, %v25_v1  ;;  %v499_v6 = vld [vmem:[%s642_s2] ss:$0 sm:$0xff]  ;;  %v46_v9 = vmul.f32 %v491_v2, %v26_v7  ;;  %v47_v10 = vmul.f32 %v491_v2, %v27_v8  ;;  %v30_v13 = vld [vmem:[%s640_s0 + $0x30] sm:$0xff]  ;;  %v31_v19 = vld [vmem:[%s640_s0 + $0x38] sm:$0xff] }
   0x4   :  { %v28_v11 = vld [vmem:[%s640_s0 + $0x20] sm:$0xff]  ;;  %v49_v18 = vmul.f32 %v491_v2, %v29_v12  ;;  %v50_v22 = vmul.f32 %v491_v2, %v30_v13  ;;  %v51_v23 = vmul.f32 %v491_v2, %v31_v19  ;;  %v33_v31 = vld [vmem:[%s640_s0 + $0x48] sm:$0xff]  ;;  %v167_v42 = vld [vmem:[%s644_s4 + $0x10] sm:$0xff] }
   0x5   :  { %v64_v15 = vadd.f32 %v499_v6, %v44_v4  ;;  %v65_v16 = vadd.f32 %v499_v6, %v45_v5  ;;  %v48_v17 = vmul.f32 %v491_v2, %v28_v11  ;;  %v66_v20 = vadd.f32 %v499_v6, %v46_v9  ;;  %v32_v28 = vld [vmem:[%s640_s0 + $0x40] sm:$0xff]  ;;  %v166_v35 = vld [vmem:[%s644_s4 + $0x8] sm:$0xff]  ;;  %v168_v43 = vld [vmem:[%s644_s4 + $0x18] sm:$0xff] }
   0x6   :  { %v67_v21 = vadd.f32 %v499_v6, %v47_v10  ;;  %v69_v27 = vadd.f32 %v499_v6, %v49_v18  ;;  %v70_v33 = vadd.f32 %v499_v6, %v50_v22  ;;  %v165_v34 = vld [vmem:[%s644_s4] sm:$0xff]  ;;  %v71_v38 = vadd.f32 %v499_v6, %v51_v23  ;;  %v34_v44 = vld [vmem:[%s640_s0 + $0x50] sm:$0xff]  ;;  %v35_v45 = vld [vmem:[%s640_s0 + $0x58] sm:$0xff] }
   0x7   :  { %v77_v24 = vmax.f32 %v64_v15, 0.0  ;;  %v78_v25 = vmax.f32 %v65_v16, 0.0  ;;  %v68_v26 = vadd.f32 %v499_v6, %v48_v17  ;;  %v79_v29 = vmax.f32 %v66_v20, 0.0 }
   0x8   :  { %v80_v30 = vmax.f32 %v67_v21, 0.0  ;;  %v82_v37 = vmax.f32 %v69_v27, 0.0  ;;  %v52_v39 = vmul.f32 %v491_v2, %v32_v28  ;;  %v53_v41 = vmul.f32 %v491_v2, %v33_v31 }
   0x9   :  { %v374_v32 = vpack.c.bf16 %v78_v25, %v77_v24  ;;  %v81_v36 = vmax.f32 %v68_v26, 0.0  ;;  %v392_v46 = vpack.c.bf16 %v166_v35, %v165_v34 }
   0xa   :  { %v377_v40 = vpack.c.bf16 %v80_v30, %v79_v29 }
   0xb   :  { %375 = vmatpush3.bf16.msra.mxu0 %v374_v32 }
   0xc   :  { %376 = vmatprep.subr.bf16.mxu0 %v443_v3 }
   0xd   :  { %11 = vsyncpa [#allocation3], 0  ;;  %v83_v47 = vmax.f32 %v70_v33, 0.0  ;;  %v380_v48 = vpack.c.bf16 %v82_v37, %v81_v36  ;;  %v84_v49 = vmax.f32 %v71_v38, 0.0  ;;  %v72_v50 = vadd.f32 %v499_v6, %v52_v39  ;;  %393 = vmatpush3.bf16.msra.mxu1 %v392_v46  ;;  %v169_v55 = vld [vmem:[%s644_s4 + $0x20] sm:$0xff]  ;;  %v170_v56 = vld [vmem:[%s644_s4 + $0x28] sm:$0xff] }
   0xe   :  { %v395_v51 = vpack.c.bf16 %v168_v43, %v167_v42  ;;  %v73_v52 = vadd.f32 %v499_v6, %v53_v41  ;;  %v54_v53 = vmul.f32 %v491_v2, %v34_v44  ;;  %v55_v54 = vmul.f32 %v491_v2, %v35_v45  ;;  %394 = vmatprep.subr.bf16.mxu1 %v443_v3  ;;  %v171_v63 = vld [vmem:[%s644_s4 + $0x30] sm:$0xff]  ;;  %v172_v0 = vld [vmem:[%s644_s4 + $0x38] sm:$0xff]  ;;  %v36_v1 = vld [vmem:[%s640_s0 + $0x60] sm:$0xff]  ;;  %s446_s1 = smov [#allocation2]  }
   0xf   :  { %378 = vmatpush3.bf16.msra.mxu0 %v377_v40  ;;  %v383_v57 = vpack.c.bf16 %v84_v49, %v83_v47  ;;  %v398_v58 = vpack.c.bf16 %v170_v56, %v169_v55  ;;  %v85_v59 = vmax.f32 %v72_v50, 0.0  ;;  %v401_v4 = vpack.c.bf16 %v172_v0, %v171_v63  ;;  %v173_v10 = vld [vmem:[%s644_s4 + $0x40] sm:$0xff]  ;;  %v174_v11 = vld [vmem:[%s644_s4 + $0x48] sm:$0xff]  ;;  %v176_v16 = vld [vmem:[%s644_s4 + $0x58] sm:$0xff]  ;;  %s266_s9 = sshll.u32 %s446_s1, 4  ;;  %s267_s9 = int_to_ptr.vmem [resolvable:$true] %s266_s9 }
  0x10   :  { %379 = vmatprep.subr.bf16.mxu0 %v443_v3  ;;  %v86_v60 = vmax.f32 %v73_v52, 0.0  ;;  %v74_v61 = vadd.f32 %v499_v6, %v54_v53  ;;  %v75_v62 = vadd.f32 %v499_v6, %v55_v54  ;;  %v56_v9 = vmul.f32 %v491_v2, %v36_v1  ;;  %v175_v2 = vld [vmem:[%s644_s4 + $0x50] sm:$0xff]  ;;  %v178_v19 = vld [vmem:[%s644_s4 + $0x68] sm:$0xff]  ;;  %v90_v20 = vld [vmem:[%s643_s3] sm:$0x3]  ;;  %p424_p1 = scmp.lt.s32.totalorder %s267_s9, %s267_s9 }
  0x11   :  { %396 = vmatpush3.bf16.msra.mxu1 %v395_v51  ;;  %v404_v12 = vpack.c.bf16 %v174_v11, %v173_v10  ;;  %v407_v17 = vpack.c.bf16 %v176_v16, %v175_v2  ;;  %vm91_vm1 = vcmask 850944   ;;  %v179_v22 = vld [vmem:[%s644_s4 + $0x70] sm:$0xff]  ;;  %v180_v23 = vld [vmem:[%s644_s4 + $0x78] sm:$0xff]  ;;  %v277_v26 = vld [vmem:[%s645_s5] ss:$0 sm:$0xff]  ;;  %vm258_vm2 = vcmask 74752  }
  0x12   :  { %397 = vmatprep.subr.bf16.mxu1 %v443_v3  ;;  %v386_v5 = vpack.c.bf16 %v86_v60, %v85_v59  ;;  %v87_v7 = vmax.f32 %v74_v61, 0.0  ;;  %v88_v8 = vmax.f32 %v75_v62, 0.0  ;;  %v76_v15 = vadd.f32 %v499_v6, %v56_v9  ;;  %v177_v6 = vld [vmem:[%s644_s4 + $0x60] sm:$0xff]  ;;  %s419_s4 = scalar_lea.vmem %s267_s9, 32 }
  0x13   :  { %381 = vmatpush3.bf16.msra.mxu0 %v380_v48  ;;  %v410_v21 = vpack.c.bf16 %v178_v19, %v177_v6  ;;  %p420_p0 = scmp.ne.s32.totalorder %s267_s9, %s419_s4  ;;  %p425_p2 = scmp.lt.s32.totalorder %s419_s4, %s419_s4 }
  0x14   :  { %382 = vmatprep.subr.bf16.mxu0 %v443_v3  ;;  %v389_v13 = vpack.c.bf16 %v88_v8, %v87_v7  ;;  %v89_v18 = vmax.f32 %v76_v15, 0.0 }
  0x15   :  { %399 = vmatpush3.bf16.msra.mxu1 %v398_v58  ;;  %p426_p3 = por %p425_p2, %p424_p1 }
  0x16   :  { %400 = vmatprep.subr.bf16.mxu1 %v443_v3 }
  0x17   :  { %384 = vmatpush3.bf16.msra.mxu0 %v383_v57  ;;  %p427_p4 = pnand %p426_p3, %p420_p0 }
  0x18   :  { %385 = vmatprep.subr.bf16.mxu0 %v443_v3 }
  0x19   :  { %402 = vmatpush3.bf16.msra.mxu1 %v401_v4 }
  0x1a   :  { %403 = vmatprep.subr.bf16.mxu1 %v443_v3 }
  0x1b   :  { %387 = vmatpush3.bf16.msra.mxu0 %v386_v5 }
  0x1c   :  { %388 = vmatprep.subr.bf16.mxu0 %v443_v3 }
  0x1d   :  { %405 = vmatpush3.bf16.msra.mxu1 %v404_v12 }
  0x1e   :  { %406 = vmatprep.subr.bf16.mxu1 %v443_v3 }
  0x1f   :  { %390 = vmatpush3.bf16.msra.mxu0 %v389_v13 }
  0x20   :  { %333 = vmatprep.subr.mxu0 %v445_v14  ;;  %v413_v14 = vpack.c.bf16 %v180_v23, %v179_v22 }
  0x21   :  { %408 = vmatpush3.bf16.msra.mxu1 %v407_v17 }
  0x22   :  { %409 = vmatprep.subr.bf16.mxu1 %v443_v3 }
  0x23   :  { %334 = vmatpush3.msra.mxu0 %v89_v18 }
  0x24   :  { %336 = vmatmul.mubr.msk.f32.vlgmr.msra.gmra.mrb[0].mxu0 %vm91_vm1, %v90_v20 }
  0x25   :  { %411 = vmatpush3.bf16.msra.mxu1 %v410_v21 }
  0x26   :  { %412 = vmatprep.subr.bf16.mxu1 %v443_v3 }
  0x29   :  { %414 = vmatpush3.bf16.msra.mxu1 %v413_v14 }
  0xf7   :  { %v161_v24 = vpop.f32.mrb[0].mxu0 }
  0xf8   :  { %v337_v25 = vpop.f32.mrb[1].mxu0  ;;  %371 = vmatmul.mubr.f32.vlgmr.msra.gmra.mrb[0].mxu1 %v161_v24 }
 0x1cb   :  { %v254_v27 = vpop.f32.mrb[0].mxu1 }
 0x1cc   :  { %v255_v28 = vadd.f32 %v277_v26, %v254_v27  ;;  %v372_v29 = vpop.f32.mrb[1].mxu1 }
 0x1ce   :  { %259 = vst.msk [vmem:[#allocation2] sm:$0x3] %vm258_vm2, %v255_v28 }
 0x1cf   :  { %430 = shalt.err (!%p427_p4)
}
 0x1d0   :  { %s431_s11 = scalar_lea.hbm %s646_s6, 32 }
 0x1d1   :  { %p432_p5 = scmp.ne.s32.totalorder %s646_s6, %s431_s11  ;;  %p435_p6 = scmp.lt.u32.totalorder %s431_s11, %s646_s6 }
 0x1d3   :  { %p437_p7 = pnand %p435_p6, %p432_p5 }
 0x1d5   :  { %440 = shalt.err (!%p437_p7)
}
 0x1d6   :  { %269 = dma.vmem_to_hbm [thread:$0]  %s267_s9, 32, %s646_s6, [#allocation3]  }
 0x1d7   :  { %441 = dma.done.wait [#allocation3], 32  }
 0x1d8   :  { %442 = vsyncadd [#allocation3], 4294967264 }
 0x1d9   :  { %273 = vsyncpa [#allocation3], 1 }

// kernel: densenet_forward.23
= control target key start
LH: loop header
LB: loop body
LE: loop exit
PB: predicated region body
PF: predicated region fallthrough
CT: control target
= control target key end

     0   :  { %v891_v1 = vmov 0   ;;  %s1461_s1 = inlined_call_operand.vmem [shape: bf16[128,128], index: 1, kind: input, shape index: {}]   ;;  %s1462_s6 = inlined_call_operand.vmem [shape: f32[256,1], index: 6, kind: input, shape index: {}]   ;;  %s1463_s0 = inlined_call_operand.vmem [shape: f32[256,128], index: 0, kind: input, shape index: {}]   ;;  %s1464_s2 = inlined_call_operand.vmem [shape: f32[1,128], index: 2, kind: input, shape index: {}]   ;;  %s1465_s3 = inlined_call_operand.vmem [shape: f32[1,128], index: 3, kind: input, shape index: {}]   ;;  %s1466_s4 = inlined_call_operand.vmem [shape: f32[1,128], index: 4, kind: input, shape index: {}]   ;;  %s1467_s5 = inlined_call_operand.vmem [shape: f32[1,128], index: 5, kind: input, shape index: {}]   ;;  %s1468_s7 = inlined_call_operand.vmem [shape: f32[256,128], index: 7, kind: output, shape index: {}]  }
   0x1   :  { %v883_v0 = vld [vmem:[%s1461_s1] sm:$0xff]   ;;  %882 = vset.pattern.permute.xlu1 %v891_v1  ;;  %881 = vset.pattern.permute.xlu0 %v891_v1  ;;  %v884_v2 = vld [vmem:[%s1461_s1 + $0x8] sm:$0xff]   ;;  %v885_v3 = vld [vmem:[%s1461_s1 + $0x10] sm:$0xff]  }
   0x2   :  { %816 = vmatprep.subr.bf16.mxu0 %v883_v0  ;;  %864 = vmatprep.subr.bf16.mxu1 %v883_v0  ;;  %v886_v4 = vld [vmem:[%s1461_s1 + $0x18] sm:$0xff]   ;;  %v522_v5 = vld [vmem:[%s1462_s6 + $0x10] sm:$0xff]  ;;  %v520_v6 = vld [vmem:[%s1462_s6] sm:$0xff] }
   0x3   :  { %817 = vmatpush3.bf16.msra.mxu0 %v883_v0  ;;  %872 = vmatpush3.bf16.msra.mxu1 %v883_v0  ;;  %v27_v7 = vld [vmem:[%s1463_s0] sm:$0xff]  ;;  %v28_v8 = vld [vmem:[%s1463_s0 + $0x8] sm:$0xff]  ;;  %v523_v20 = vld [vmem:[%s1462_s6 + $0x18] sm:$0xff] }
   0x4   :  { %818 = vmatprep.subr.bf16.mxu0 %v884_v2  ;;  %865 = vmatprep.subr.bf16.mxu1 %v884_v2  ;;  %v959_v9 = vld [vmem:[%s1464_s2] ss:$0 sm:$0xff]  ;;  %v44_v14 = vld [vmem:[%s1463_s0 + $0x88] sm:$0xff]  ;;  %v29_v24 = vld [vmem:[%s1463_s0 + $0x10] sm:$0xff] }
   0x5   :  { %564 = vperm.xlu1 %882, %v522_v5   ;;  %554 = vperm.xlu0 %881, %v520_v6   ;;  %v964_v10 = vld [vmem:[%s1465_s3] ss:$0 sm:$0xff]  ;;  %v66_v11 = vmul.f32 %v959_v9, %v27_v7  ;;  %v67_v12 = vmul.f32 %v959_v9, %v28_v8  ;;  %v83_v16 = vmul.f32 %v959_v9, %v44_v14  ;;  %v521_v21 = vld [vmem:[%s1462_s6 + $0x8] sm:$0xff]  ;;  %v30_v25 = vld [vmem:[%s1463_s0 + $0x18] sm:$0xff] }
   0x6   :  { %v43_v13 = vld [vmem:[%s1463_s0 + $0x80] sm:$0xff]  ;;  %v45_v26 = vld [vmem:[%s1463_s0 + $0x90] sm:$0xff]  ;;  %v46_v29 = vld [vmem:[%s1463_s0 + $0x98] sm:$0xff]  ;;  %v68_v39 = vmul.f32 %v959_v9, %v29_v24  ;;  %v69_v42 = vmul.f32 %v959_v9, %v30_v25 }
   0x7   :  { %819 = vmatpush3.bf16.msra.mxu0 %v884_v2  ;;  %873 = vmatpush3.bf16.msra.mxu1 %v884_v2  ;;  %v82_v15 = vmul.f32 %v959_v9, %v43_v13  ;;  %v887_v17 = vld [vmem:[%s1461_s1 + $0x20] sm:$0xff]   ;;  %v105_v18 = vadd.f32 %v964_v10, %v66_v11  ;;  %v106_v19 = vadd.f32 %v964_v10, %v67_v12  ;;  %v525_v30 = vld [vmem:[%s1462_s6 + $0x28] sm:$0xff]  ;;  %v527_v48 = vld [vmem:[%s1462_s6 + $0x38] sm:$0xff] }
   0x8   :  { %820 = vmatprep.subr.bf16.mxu0 %v885_v3  ;;  %866 = vmatprep.subr.bf16.mxu1 %v885_v3  ;;  %v122_v23 = vadd.f32 %v964_v10, %v83_v16  ;;  %v524_v31 = vld [vmem:[%s1462_s6 + $0x20] sm:$0xff]  ;;  %v32_v35 = vld [vmem:[%s1463_s0 + $0x28] sm:$0xff]  ;;  %v84_v43 = vmul.f32 %v959_v9, %v45_v26  ;;  %v85_v44 = vmul.f32 %v959_v9, %v46_v29  ;;  %v526_v50 = vld [vmem:[%s1462_s6 + $0x30] sm:$0xff] }
   0x9   :  { %v121_v22 = vadd.f32 %v964_v10, %v82_v15  ;;  %569 = vperm.xlu1 %882, %v523_v20   ;;  %v137_v27 = vmax.f32 %v105_v18, 0.0  ;;  %v138_v28 = vmax.f32 %v106_v19, 0.0  ;;  %559 = vperm.xlu0 %881, %v521_v21   ;;  %v31_v34 = vld [vmem:[%s1463_s0 + $0x20] sm:$0xff]  ;;  %v888_v37 = vld [vmem:[%s1461_s1 + $0x28] sm:$0xff]   ;;  %v71_v46 = vmul.f32 %v959_v9, %v32_v35  ;;  %v889_v51 = vld [vmem:[%s1461_s1 + $0x30] sm:$0xff]  }
   0xa   :  { %v154_v33 = vmax.f32 %v122_v23, 0.0  ;;  %v47_v36 = vld [vmem:[%s1463_s0 + $0xa0] sm:$0xff]  ;;  %v48_v40 = vld [vmem:[%s1463_s0 + $0xa8] sm:$0xff]  ;;  %v70_v45 = vmul.f32 %v959_v9, %v31_v34  ;;  %v107_v52 = vadd.f32 %v964_v10, %v68_v39  ;;  %v33_v53 = vld [vmem:[%s1463_s0 + $0x30] sm:$0xff]  ;;  %v108_v55 = vadd.f32 %v964_v10, %v69_v42 }
   0xb   :  { %821 = vmatpush3.bf16.msra.mxu0 %v885_v3  ;;  %874 = vmatpush3.bf16.msra.mxu1 %v885_v3  ;;  %v153_v32 = vmax.f32 %v121_v22, 0.0  ;;  %v169_v38 = vpack.c.bf16 %v138_v28, %v137_v27  ;;  %v86_v47 = vmul.f32 %v959_v9, %v47_v36  ;;  %v87_v49 = vmul.f32 %v959_v9, %v48_v40  ;;  %v34_v54 = vld [vmem:[%s1463_s0 + $0x38] sm:$0xff]  ;;  %v49_v58 = vld [vmem:[%s1463_s0 + $0xb0] sm:$0xff]  ;;  %v35_v60 = vld [vmem:[%s1463_s0 + $0x40] sm:$0xff] }
   0xc   :  { %822 = vmatprep.subr.bf16.mxu0 %v886_v4  ;;  %867 = vmatprep.subr.bf16.mxu1 %v886_v4  ;;  %v123_v56 = vadd.f32 %v964_v10, %v84_v43  ;;  %v124_v57 = vadd.f32 %v964_v10, %v85_v44  ;;  %v50_v59 = vld [vmem:[%s1463_s0 + $0xb8] sm:$0xff]  ;;  %v109_v61 = vadd.f32 %v964_v10, %v70_v45  ;;  %v529_v0 = vld [vmem:[%s1462_s6 + $0x48] sm:$0xff]  ;;  %v528_v5 = vld [vmem:[%s1462_s6 + $0x40] sm:$0xff]  ;;  %v139_v11 = vmax.f32 %v107_v52, 0.0 }
   0xd   :  { %v177_v41 = vpack.c.bf16 %v154_v33, %v153_v32  ;;  %579 = vperm.xlu1 %882, %v525_v30   ;;  %832 = vmatprep.mubr.bf16.mxu0 %v169_v38  ;;  %v110_v62 = vadd.f32 %v964_v10, %v71_v46  ;;  %v125_v63 = vadd.f32 %v964_v10, %v86_v47  ;;  %v36_v1 = vld [vmem:[%s1463_s0 + $0x48] sm:$0xff]  ;;  %v51_v6 = vld [vmem:[%s1463_s0 + $0xc0] sm:$0xff]  ;;  %v890_v8 = vld [vmem:[%s1461_s1 + $0x38] sm:$0xff]   ;;  %v140_v15 = vmax.f32 %v108_v55, 0.0 }
   0xe   :  { %574 = vperm.xlu0 %881, %v524_v31   ;;  %v126_v2 = vadd.f32 %v964_v10, %v87_v49  ;;  %v72_v3 = vmul.f32 %v959_v9, %v33_v53  ;;  %v52_v7 = vld [vmem:[%s1463_s0 + $0xc8] sm:$0xff]  ;;  %v88_v12 = vmul.f32 %v959_v9, %v49_v58  ;;  %v89_v13 = vmul.f32 %v959_v9, %v50_v59  ;;  %v531_v23 = vld [vmem:[%s1462_s6 + $0x58] sm:$0xff]  ;;  %v530_v28 = vld [vmem:[%s1462_s6 + $0x50] sm:$0xff] }
   0xf   :  { %823 = vmatpush3.bf16.msra.mxu0 %v886_v4  ;;  %875 = vmatpush3.bf16.msra.mxu1 %v886_v4  ;;  %v73_v4 = vmul.f32 %v959_v9, %v34_v54  ;;  %v74_v14 = vmul.f32 %v959_v9, %v35_v60  ;;  %v155_v16 = vmax.f32 %v123_v56, 0.0  ;;  %v75_v18 = vmul.f32 %v959_v9, %v36_v1  ;;  %v37_v33 = vld [vmem:[%s1463_s0 + $0x50] sm:$0xff]  ;;  %v38_v38 = vld [vmem:[%s1463_s0 + $0x58] sm:$0xff]  ;;  %v533_v40 = vld [vmem:[%s1462_s6 + $0x68] sm:$0xff] }
  0x10   :  { %824 = vmatprep.subr.bf16.mxu0 %v887_v17  ;;  %868 = vmatprep.subr.bf16.mxu1 %v887_v17  ;;  %v141_v19 = vmax.f32 %v109_v61, 0.0  ;;  %v142_v20 = vmax.f32 %v110_v62, 0.0  ;;  %v90_v21 = vmul.f32 %v959_v9, %v51_v6  ;;  %v91_v22 = vmul.f32 %v959_v9, %v52_v7  ;;  %v53_v39 = vld [vmem:[%s1463_s0 + $0xd0] sm:$0xff]  ;;  %v54_v44 = vld [vmem:[%s1463_s0 + $0xd8] sm:$0xff]  ;;  %v39_v45 = vld [vmem:[%s1463_s0 + $0x60] sm:$0xff] }
  0x11   :  { %848 = vmatprep.mubr.bf16.mxu1 %v177_v41  ;;  %589 = vperm.xlu1 %882, %v527_v48   ;;  %v157_v24 = vmax.f32 %v125_v63, 0.0  ;;  %v158_v25 = vmax.f32 %v126_v2, 0.0  ;;  %v111_v26 = vadd.f32 %v964_v10, %v72_v3  ;;  %v112_v27 = vadd.f32 %v964_v10, %v73_v4  ;;  %v40_v46 = vld [vmem:[%s1463_s0 + $0x68] sm:$0xff]  ;;  %v535_v62 = vld [vmem:[%s1462_s6 + $0x78] sm:$0xff]  ;;  %v534_v6 = vld [vmem:[%s1462_s6 + $0x70] sm:$0xff] }
  0x12   :  { %584 = vperm.xlu0 %881, %v526_v50   ;;  %v127_v29 = vadd.f32 %v964_v10, %v88_v12  ;;  %v128_v30 = vadd.f32 %v964_v10, %v89_v13  ;;  %v113_v31 = vadd.f32 %v964_v10, %v74_v14  ;;  %v114_v32 = vadd.f32 %v964_v10, %v75_v18  ;;  %v56_v52 = vld [vmem:[%s1463_s0 + $0xe8] sm:$0xff]  ;;  %v41_v13 = vld [vmem:[%s1463_s0 + $0x70] sm:$0xff] }
  0x13   :  { %825 = vmatpush3.bf16.msra.mxu0 %v887_v17  ;;  %876 = vmatpush3.bf16.msra.mxu1 %v887_v17  ;;  %v156_v17 = vmax.f32 %v124_v57, 0.0  ;;  %v170_v34 = vpack.c.bf16 %v140_v15, %v139_v11  ;;  %v129_v36 = vadd.f32 %v964_v10, %v90_v21  ;;  %v171_v41 = vpack.c.bf16 %v142_v20, %v141_v19  ;;  %v532_v57 = vld [vmem:[%s1462_s6 + $0x60] sm:$0xff]  ;;  %v537_v14 = vld [vmem:[%s1462_s6 + $0x88] sm:$0xff]  ;;  %v42_v19 = vld [vmem:[%s1463_s0 + $0x78] sm:$0xff] }
  0x14   :  { %826 = vmatprep.subr.bf16.mxu0 %v888_v37  ;;  %869 = vmatprep.subr.bf16.mxu1 %v888_v37  ;;  %v179_v42 = vpack.c.bf16 %v158_v25, %v157_v24  ;;  %v143_v43 = vmax.f32 %v111_v26, 0.0  ;;  %v144_v47 = vmax.f32 %v112_v27, 0.0  ;;  %v159_v48 = vmax.f32 %v127_v29, 0.0  ;;  %v57_v20 = vld [vmem:[%s1463_s0 + $0xf0] sm:$0xff]  ;;  %v58_v21 = vld [vmem:[%s1463_s0 + $0xf8] sm:$0xff]  ;;  %v536_v26 = vld [vmem:[%s1462_s6 + $0x80] sm:$0xff] }
  0x15   :  { %599 = vperm.xlu1 %882, %v529_v0   ;;  %v178_v35 = vpack.c.bf16 %v156_v17, %v155_v16  ;;  %v160_v49 = vmax.f32 %v128_v30, 0.0  ;;  %v145_v50 = vmax.f32 %v113_v31, 0.0  ;;  %v146_v53 = vmax.f32 %v114_v32, 0.0  ;;  %v539_v31 = vld [vmem:[%s1462_s6 + $0x98] sm:$0xff] }
  0x16   :  { %594 = vperm.xlu0 %881, %v528_v5   ;;  %v76_v54 = vmul.f32 %v959_v9, %v37_v33  ;;  %v77_v55 = vmul.f32 %v959_v9, %v38_v38  ;;  %v92_v56 = vmul.f32 %v959_v9, %v53_v39  ;;  %v161_v58 = vmax.f32 %v129_v36, 0.0  ;;  %v538_v38 = vld [vmem:[%s1462_s6 + $0x90] sm:$0xff] }
  0x17   :  { %827 = vmatpush3.bf16.msra.mxu0 %v888_v37  ;;  %877 = vmatpush3.bf16.msra.mxu1 %v888_v37  ;;  %v130_v37 = vadd.f32 %v964_v10, %v91_v22  ;;  %v93_v60 = vmul.f32 %v959_v9, %v54_v44  ;;  %v78_v61 = vmul.f32 %v959_v9, %v39_v45  ;;  %v540_v45 = vld [vmem:[%s1462_s6 + $0xa0] sm:$0xff] }
  0x18   :  { %828 = vmatprep.subr.bf16.mxu0 %v889_v51  ;;  %870 = vmatprep.subr.bf16.mxu1 %v889_v51  ;;  %v79_v63 = vmul.f32 %v959_v9, %v40_v46  ;;  %v95_v1 = vmul.f32 %v959_v9, %v56_v52  ;;  %v172_v2 = vpack.c.bf16 %v144_v47, %v143_v43 }
  0x19   :  { %609 = vperm.xlu1 %882, %v531_v23   ;;  %v162_v59 = vmax.f32 %v130_v37, 0.0  ;;  %v115_v3 = vadd.f32 %v964_v10, %v76_v54  ;;  %v116_v4 = vadd.f32 %v964_v10, %v77_v55  ;;  %v131_v5 = vadd.f32 %v964_v10, %v92_v56  ;;  %v544_v54 = vld [vmem:[%s1462_s6 + $0xc0] sm:$0xff]  ;;  %v547_v55 = vld [vmem:[%s1462_s6 + $0xd8] sm:$0xff]  ;;  %v546_v56 = vld [vmem:[%s1462_s6 + $0xd0] sm:$0xff] }
  0x1a   :  { %604 = vperm.xlu0 %881, %v530_v28   ;;  %v180_v7 = vpack.c.bf16 %v160_v49, %v159_v48  ;;  %v132_v12 = vadd.f32 %v964_v10, %v93_v60  ;;  %v117_v15 = vadd.f32 %v964_v10, %v78_v61  ;;  %v118_v16 = vadd.f32 %v964_v10, %v79_v63  ;;  %v550_v60 = vld [vmem:[%s1462_s6 + $0xf0] sm:$0xff] }
  0x1b   :  { %829 = vmatpush3.bf16.msra.mxu0 %v889_v51  ;;  %878 = vmatpush3.bf16.msra.mxu1 %v889_v51  ;;  %v55_v51 = vld [vmem:[%s1463_s0 + $0xe0] sm:$0xff]  ;;  %v181_v11 = vpack.c.bf16 %v162_v59, %v161_v58  ;;  %v134_v18 = vadd.f32 %v964_v10, %v95_v1  ;;  %v147_v22 = vmax.f32 %v115_v3, 0.0  ;;  %v148_v23 = vmax.f32 %v116_v4, 0.0  ;;  %v551_v59 = vld [vmem:[%s1462_s6 + $0xf8] sm:$0xff] }
  0x1c   :  { %830 = vmatprep.subr.bf16.mxu0 %v890_v8  ;;  %871 = vmatprep.subr.bf16.mxu1 %v890_v8  ;;  %v94_v0 = vmul.f32 %v959_v9, %v55_v51  ;;  %v163_v24 = vmax.f32 %v131_v5, 0.0  ;;  %v80_v25 = vmul.f32 %v959_v9, %v41_v13  ;;  %v164_v27 = vmax.f32 %v132_v12, 0.0  ;;  %v548_v58 = vld [vmem:[%s1462_s6 + $0xe0] sm:$0xff] }
  0x1d   :  { %619 = vperm.xlu1 %882, %v533_v40   ;;  %v81_v28 = vmul.f32 %v959_v9, %v42_v19  ;;  %v96_v29 = vmul.f32 %v959_v9, %v57_v20  ;;  %v97_v30 = vmul.f32 %v959_v9, %v58_v21  ;;  %v149_v32 = vmax.f32 %v117_v15, 0.0  ;;  %v1259_v21 = vld [vmem:[%s1466_s4] ss:$0 sm:$0xff] }
  0x1e   :  { %614 = vperm.xlu0 %881, %v532_v57   ;;  %v133_v17 = vadd.f32 %v964_v10, %v94_v0  ;;  %v150_v33 = vmax.f32 %v118_v16, 0.0  ;;  %v174_v36 = vpack.c.bf16 %v148_v23, %v147_v22  ;;  %v119_v37 = vadd.f32 %v964_v10, %v80_v25  ;;  %v549_v57 = vld [vmem:[%s1462_s6 + $0xe8] sm:$0xff]  ;;  %v1268_v25 = vld [vmem:[%s1467_s5] ss:$0 sm:$0xff] }
  0x1f   :  { %831 = vmatpush3.bf16.msra.mxu0 %v890_v8  ;;  %879 = vmatpush3.bf16.msra.mxu1 %v890_v8  ;;  %v173_v8 = vpack.c.bf16 %v146_v53, %v145_v50  ;;  %v182_v9 = vpack.c.bf16 %v164_v27, %v163_v24  ;;  %v120_v39 = vadd.f32 %v964_v10, %v81_v28  ;;  %v542_v50 = vld [vmem:[%s1462_s6 + $0xb0] sm:$0xff]  ;;  %v545_v53 = vld [vmem:[%s1462_s6 + $0xc8] sm:$0xff] }
  0x20   :  { %v135_v40 = vadd.f32 %v964_v10, %v96_v29  ;;  %v175_v43 = vpack.c.bf16 %v150_v33, %v149_v32  ;;  %v151_v46 = vmax.f32 %v119_v37, 0.0 }
  0x21   :  { %629 = vperm.xlu1 %882, %v535_v62   ;;  %v152_v47 = vmax.f32 %v120_v39, 0.0 }
  0x22   :  { %833 = vmatmul.mubr.bf16.vlgmr.msra.gmra.mrb[0].mxu0 %v170_v34  ;;  %849 = vmatmul.mubr.bf16.vlgmr.msra.gmra.mrb[0].mxu1 %v178_v35  ;;  %v165_v34 = vmax.f32 %v133_v17, 0.0  ;;  %v166_v35 = vmax.f32 %v134_v18, 0.0  ;;  %v167_v48 = vmax.f32 %v135_v40, 0.0 }
  0x23   :  { %836 = vmatprep.mubr.bf16.mxu0 %v171_v41  ;;  %852 = vmatprep.mubr.bf16.mxu1 %v179_v42  ;;  %v136_v41 = vadd.f32 %v964_v10, %v97_v30  ;;  %v541_v42 = vld [vmem:[%s1462_s6 + $0xa8] sm:$0xff]  ;;  %v543_v10 = vld [vmem:[%s1462_s6 + $0xb8] sm:$0xff]  ;;  %v176_v51 = vpack.c.bf16 %v152_v47, %v151_v46 }
  0x24   :  { %624 = vperm.xlu0 %881, %v534_v6   ;;  %v183_v44 = vpack.c.bf16 %v166_v35, %v165_v34 }
  0x25   :  { %639 = vperm.xlu1 %882, %v537_v14   ;;  %v168_v49 = vmax.f32 %v136_v41, 0.0 }
  0x27   :  { %v184_v52 = vpack.c.bf16 %v168_v49, %v167_v48 }
  0x28   :  { %634 = vperm.xlu0 %881, %v536_v26  }
  0x29   :  { %649 = vperm.xlu1 %882, %v539_v31  }
  0x2a   :  { %837 = vmatmul.mubr.bf16.gmra.mrb[4].mxu0 %v172_v2  ;;  %853 = vmatmul.mubr.bf16.gmra.mrb[4].mxu1 %v180_v7 }
  0x2b   :  { %840 = vmatprep.mubr.bf16.mxu0 %v173_v8  ;;  %856 = vmatprep.mubr.bf16.mxu1 %v181_v11 }
  0x2c   :  { %644 = vperm.xlu0 %881, %v538_v38  }
  0x2d   :  { %659 = vperm.xlu1 %882, %v541_v42  }
  0x30   :  { %654 = vperm.xlu0 %881, %v540_v45  }
  0x31   :  { %669 = vperm.xlu1 %882, %v543_v10  }
  0x32   :  { %841 = vmatmul.mubr.bf16.gmra.mrb[8].mxu0 %v174_v36  ;;  %857 = vmatmul.mubr.bf16.gmra.mrb[8].mxu1 %v182_v9 }
  0x33   :  { %844 = vmatprep.mubr.bf16.mxu0 %v175_v43  ;;  %860 = vmatprep.mubr.bf16.mxu1 %v183_v44 }
  0x34   :  { %664 = vperm.xlu0 %881, %v542_v50  }
  0x35   :  { %679 = vperm.xlu1 %882, %v545_v53  }
  0x38   :  { %674 = vperm.xlu0 %881, %v544_v54  }
  0x39   :  { %689 = vperm.xlu1 %882, %v547_v55  }
  0x3a   :  { %845 = vmatmul.mubr.bf16.gmra.mrb[12].mxu0 %v176_v51  ;;  %861 = vmatmul.mubr.bf16.gmra.mrb[12].mxu1 %v184_v52 }
  0x3c   :  { %684 = vperm.xlu0 %881, %v546_v56  }
  0x3d   :  { %699 = vperm.xlu1 %882, %v549_v57  }
  0x40   :  { %694 = vperm.xlu0 %881, %v548_v58  }
  0x41   :  { %709 = vperm.xlu1 %882, %v551_v59  }
  0x44   :  { %704 = vperm.xlu0 %881, %v550_v60  }
  0x84   :  { %v565_v61 = vpop.permute.xlu1 %564  ;;  %v555_v62 = vpop.permute.xlu0 %554 }
  0x88   :  { %v1222_v63 = vpop.permute.xlu1 %569  ;;  %v1224_v0 = vpop.permute.xlu0 %559 }
  0x8c   :  { %v1226_v1 = vpop.permute.xlu1 %579 }
  0x8d   :  { %v1228_v2 = vpop.permute.xlu0 %574 }
  0x90   :  { %v1230_v3 = vpop.permute.xlu1 %589 }
  0x91   :  { %v1232_v4 = vpop.permute.xlu0 %584 }
  0x94   :  { %v1234_v5 = vpop.permute.xlu1 %599 }
  0x95   :  { %v1236_v6 = vpop.permute.xlu0 %594 }
  0x98   :  { %v1238_v7 = vpop.permute.xlu1 %609 }
  0x99   :  { %v1240_v8 = vpop.permute.xlu0 %604 }
  0x9c   :  { %v1242_v11 = vpop.permute.xlu1 %619 }
  0x9d   :  { %v1244_v12 = vpop.permute.xlu0 %614 }
  0xa0   :  { %v1246_v13 = vpop.permute.xlu1 %629 }
  0xa3   :  { %v1248_v14 = vpop.permute.xlu0 %624 }
  0xa4   :  { %v1250_v15 = vpop.permute.xlu1 %639 }
  0xa7   :  { %v635_v16 = vpop.permute.xlu0 %634 }
  0xa8   :  { %v650_v17 = vpop.permute.xlu1 %649 }
  0xab   :  { %v645_v18 = vpop.permute.xlu0 %644 }
  0xac   :  { %v1252_v19 = vpop.permute.xlu1 %659 }
  0xaf   :  { %v1254_v20 = vpop.permute.xlu0 %654 }
  0xb0   :  { %v1261_v22 = vpop.permute.xlu1 %669 }
  0xb3   :  { %v1263_v23 = vpop.permute.xlu0 %664 }
  0xb4   :  { %v1286_v51 = vpop.permute.xlu1 %679 }
  0xb7   :  { %v1288_v52 = vpop.permute.xlu0 %674 }
  0xf5   :  { %v834_v24 = vpop.f32.mrb[0].mxu0  ;;  %v850_v26 = vpop.f32.mrb[0].mxu1 }
  0xf6   :  { %v419_v27 = vmul.f32 %v834_v24, %v1259_v21  ;;  %v435_v28 = vmul.f32 %v850_v26, %v1259_v21  ;;  %v283_v29 = vpop.f32.mrb[1].mxu0  ;;  %v347_v30 = vpop.f32.mrb[1].mxu1 }
  0xf7   :  { %v417_v31 = vmul.f32 %v1259_v21, %v283_v29  ;;  %v433_v32 = vmul.f32 %v1259_v21, %v347_v30  ;;  %v835_v33 = vpop.f32.mrb[2].mxu0  ;;  %v851_v34 = vpop.f32.mrb[2].mxu1 }
  0xf8   :  { %v458_v35 = vadd.f32 %v1268_v25, %v419_v27  ;;  %v474_v36 = vadd.f32 %v1268_v25, %v435_v28  ;;  %v420_v37 = vmul.f32 %v835_v33, %v1259_v21  ;;  %v436_v38 = vmul.f32 %v851_v34, %v1259_v21  ;;  %v286_v9 = vpop.f32.mrb[3].mxu0  ;;  %v350_v39 = vpop.f32.mrb[3].mxu1 }
  0xf9   :  { %v456_v40 = vadd.f32 %v1268_v25, %v417_v31  ;;  %v472_v41 = vadd.f32 %v1268_v25, %v433_v32  ;;  %v418_v42 = vmul.f32 %v1259_v21, %v286_v9  ;;  %v434_v43 = vmul.f32 %v1259_v21, %v350_v39 }
  0xfa   :  { %v490_v44 = vmax.f32 %v458_v35, 0.0  ;;  %v506_v45 = vmax.f32 %v474_v36, 0.0  ;;  %v459_v46 = vadd.f32 %v1268_v25, %v420_v37  ;;  %v475_v47 = vadd.f32 %v1268_v25, %v436_v38 }
  0xfb   :  { %v488_v48 = vmax.f32 %v456_v40, 0.0  ;;  %v504_v49 = vmax.f32 %v472_v41, 0.0  ;;  %v457_v10 = vadd.f32 %v1268_v25, %v418_v42  ;;  %v473_v50 = vadd.f32 %v1268_v25, %v434_v43 }
  0xfc   :  { %v714_v53 = vmul.f32 %v565_v61, %v490_v44  ;;  %v730_v54 = vmul.f32 %v645_v18, %v506_v45  ;;  %v491_v55 = vmax.f32 %v459_v46, 0.0  ;;  %v507_v56 = vmax.f32 %v475_v47, 0.0 }
  0xfd   :  { %v712_v57 = vmul.f32 %v555_v62, %v488_v48  ;;  %v728_v58 = vmul.f32 %v635_v16, %v504_v49  ;;  %v489_v59 = vmax.f32 %v457_v10, 0.0  ;;  %v505_v60 = vmax.f32 %v473_v50, 0.0  ;;  %v838_v24 = vpop.f32.mrb[4].mxu0  ;;  %v854_v26 = vpop.f32.mrb[4].mxu1 }
  0xfe   :  { %746 = vst [vmem:[%s1468_s7 + $0x10] sm:$0xff] %v714_v53  ;;  %762 = vst [vmem:[%s1468_s7 + $0x90] sm:$0xff] %v730_v54  ;;  %v715_v27 = vmul.f32 %v1222_v63, %v491_v55  ;;  %v731_v61 = vmul.f32 %v650_v17, %v507_v56  ;;  %v423_v18 = vmul.f32 %v838_v24, %v1259_v21  ;;  %v299_v16 = vpop.f32.mrb[5].mxu0  ;;  %v363_v28 = vpop.f32.mrb[5].mxu1 }
  0xff   :  { %v439_v62 = vmul.f32 %v854_v26, %v1259_v21  ;;  %744 = vst [vmem:[%s1468_s7] sm:$0xff] %v712_v57  ;;  %760 = vst [vmem:[%s1468_s7 + $0x80] sm:$0xff] %v728_v58  ;;  %v713_v29 = vmul.f32 %v1224_v0, %v489_v59  ;;  %v729_v30 = vmul.f32 %v1250_v15, %v505_v60  ;;  %v839_v31 = vpop.f32.mrb[6].mxu0  ;;  %v855_v32 = vpop.f32.mrb[6].mxu1 }
 0x100   :  { %v421_v63 = vmul.f32 %v1259_v21, %v299_v16  ;;  %v437_v17 = vmul.f32 %v1259_v21, %v363_v28  ;;  %747 = vst [vmem:[%s1468_s7 + $0x18] sm:$0xff] %v715_v27  ;;  %763 = vst [vmem:[%s1468_s7 + $0x98] sm:$0xff] %v731_v61  ;;  %v462_v33 = vadd.f32 %v1268_v25, %v423_v18  ;;  %v302_v35 = vpop.f32.mrb[7].mxu0  ;;  %v366_v36 = vpop.f32.mrb[7].mxu1 }
 0x101   :  { %v478_v0 = vadd.f32 %v1268_v25, %v439_v62  ;;  %v424_v15 = vmul.f32 %v839_v31, %v1259_v21  ;;  %v440_v34 = vmul.f32 %v855_v32, %v1259_v21  ;;  %745 = vst [vmem:[%s1468_s7 + $0x8] sm:$0xff] %v713_v29  ;;  %761 = vst [vmem:[%s1468_s7 + $0x88] sm:$0xff] %v729_v30  ;;  %v1333_v48 = vpop.permute.xlu1 %689  ;;  %v685_v49 = vpop.permute.xlu0 %684 }
 0x102   :  { %v460_v37 = vadd.f32 %v1268_v25, %v421_v63  ;;  %v476_v38 = vadd.f32 %v1268_v25, %v437_v17  ;;  %v422_v9 = vmul.f32 %v1259_v21, %v302_v35  ;;  %v438_v39 = vmul.f32 %v1259_v21, %v366_v36 }
 0x103   :  { %v494_v40 = vmax.f32 %v462_v33, 0.0  ;;  %v510_v41 = vmax.f32 %v478_v0, 0.0  ;;  %v463_v42 = vadd.f32 %v1268_v25, %v424_v15  ;;  %v479_v43 = vadd.f32 %v1268_v25, %v440_v34 }
 0x104   :  { %v492_v44 = vmax.f32 %v460_v37, 0.0  ;;  %v508_v45 = vmax.f32 %v476_v38, 0.0  ;;  %v461_v46 = vadd.f32 %v1268_v25, %v422_v9  ;;  %v477_v47 = vadd.f32 %v1268_v25, %v438_v39 }
 0x105   :  { %v718_v10 = vmul.f32 %v1232_v4, %v494_v40  ;;  %v734_v50 = vmul.f32 %v1263_v23, %v510_v41  ;;  %v495_v53 = vmax.f32 %v463_v42, 0.0  ;;  %v511_v54 = vmax.f32 %v479_v43, 0.0  ;;  %v842_v59 = vpop.f32.mrb[8].mxu0  ;;  %v858_v60 = vpop.f32.mrb[8].mxu1 }
 0x106   :  { %v716_v55 = vmul.f32 %v1228_v2, %v492_v44  ;;  %v732_v56 = vmul.f32 %v1254_v20, %v508_v45  ;;  %v493_v57 = vmax.f32 %v461_v46, 0.0  ;;  %v509_v58 = vmax.f32 %v477_v47, 0.0  ;;  %v315_v24 = vpop.f32.mrb[9].mxu0  ;;  %v379_v26 = vpop.f32.mrb[9].mxu1 }
 0x107   :  { %750 = vst [vmem:[%s1468_s7 + $0x30] sm:$0xff] %v718_v10  ;;  %766 = vst [vmem:[%s1468_s7 + $0xb0] sm:$0xff] %v734_v50  ;;  %v719_v4 = vmul.f32 %v1230_v3, %v495_v53  ;;  %v735_v23 = vmul.f32 %v1261_v22, %v511_v54  ;;  %v427_v2 = vmul.f32 %v842_v59, %v1259_v21  ;;  %v843_v18 = vpop.f32.mrb[10].mxu0  ;;  %v859_v62 = vpop.f32.mrb[10].mxu1 }
 0x108   :  { %v443_v20 = vmul.f32 %v858_v60, %v1259_v21  ;;  %748 = vst [vmem:[%s1468_s7 + $0x20] sm:$0xff] %v716_v55  ;;  %764 = vst [vmem:[%s1468_s7 + $0xa0] sm:$0xff] %v732_v56  ;;  %v717_v27 = vmul.f32 %v1226_v1, %v493_v57  ;;  %v733_v3 = vmul.f32 %v1252_v19, %v509_v58  ;;  %v318_v29 = vpop.f32.mrb[11].mxu0  ;;  %v382_v30 = vpop.f32.mrb[11].mxu1 }
 0x109   :  { %v425_v22 = vmul.f32 %v1259_v21, %v315_v24  ;;  %v441_v61 = vmul.f32 %v1259_v21, %v379_v26  ;;  %751 = vst [vmem:[%s1468_s7 + $0x38] sm:$0xff] %v719_v4  ;;  %767 = vst [vmem:[%s1468_s7 + $0xb8] sm:$0xff] %v735_v23  ;;  %v466_v16 = vadd.f32 %v1268_v25, %v427_v2  ;;  %v1383_v9 = vpop.permute.xlu1 %699  ;;  %v695_v39 = vpop.permute.xlu0 %694 }
 0x10a   :  { %v482_v1 = vadd.f32 %v1268_v25, %v443_v20  ;;  %v428_v19 = vmul.f32 %v843_v18, %v1259_v21  ;;  %v444_v28 = vmul.f32 %v859_v62, %v1259_v21  ;;  %749 = vst [vmem:[%s1468_s7 + $0x28] sm:$0xff] %v717_v27  ;;  %765 = vst [vmem:[%s1468_s7 + $0xa8] sm:$0xff] %v733_v3 }
 0x10b   :  { %v464_v63 = vadd.f32 %v1268_v25, %v425_v22  ;;  %v480_v17 = vadd.f32 %v1268_v25, %v441_v61  ;;  %v426_v31 = vmul.f32 %v1259_v21, %v318_v29  ;;  %v442_v32 = vmul.f32 %v1259_v21, %v382_v30 }
 0x10c   :  { %v498_v33 = vmax.f32 %v466_v16, 0.0  ;;  %v514_v0 = vmax.f32 %v482_v1, 0.0  ;;  %v467_v15 = vadd.f32 %v1268_v25, %v428_v19  ;;  %v483_v34 = vadd.f32 %v1268_v25, %v444_v28 }
 0x10d   :  { %v496_v35 = vmax.f32 %v464_v63, 0.0  ;;  %v512_v36 = vmax.f32 %v480_v17, 0.0  ;;  %v465_v37 = vadd.f32 %v1268_v25, %v426_v31  ;;  %v481_v38 = vadd.f32 %v1268_v25, %v442_v32  ;;  %v846_v10 = vpop.f32.mrb[12].mxu0  ;;  %v862_v50 = vpop.f32.mrb[12].mxu1 }
 0x10e   :  { %v722_v40 = vmul.f32 %v1240_v8, %v498_v33  ;;  %v738_v41 = vmul.f32 %v685_v49, %v514_v0  ;;  %v499_v42 = vmax.f32 %v467_v15, 0.0  ;;  %v515_v43 = vmax.f32 %v483_v34, 0.0  ;;  %v331_v53 = vpop.f32.mrb[13].mxu0  ;;  %v395_v54 = vpop.f32.mrb[13].mxu1 }
 0x10f   :  { %v720_v44 = vmul.f32 %v1236_v6, %v496_v35  ;;  %v736_v45 = vmul.f32 %v1288_v52, %v512_v36  ;;  %v497_v46 = vmax.f32 %v465_v37, 0.0  ;;  %v513_v47 = vmax.f32 %v481_v38, 0.0  ;;  %v847_v57 = vpop.f32.mrb[14].mxu0  ;;  %v863_v58 = vpop.f32.mrb[14].mxu1 }
 0x110   :  { %754 = vst [vmem:[%s1468_s7 + $0x50] sm:$0xff] %v722_v40  ;;  %770 = vst [vmem:[%s1468_s7 + $0xd0] sm:$0xff] %v738_v41  ;;  %v723_v8 = vmul.f32 %v1238_v7, %v499_v42  ;;  %v739_v49 = vmul.f32 %v1333_v48, %v515_v43  ;;  %v431_v6 = vmul.f32 %v846_v10, %v1259_v21  ;;  %v334_v4 = vpop.f32.mrb[15].mxu0  ;;  %v398_v23 = vpop.f32.mrb[15].mxu1 }
 0x111   :  { %v447_v52 = vmul.f32 %v862_v50, %v1259_v21  ;;  %752 = vst [vmem:[%s1468_s7 + $0x40] sm:$0xff] %v720_v44  ;;  %768 = vst [vmem:[%s1468_s7 + $0xc0] sm:$0xff] %v736_v45  ;;  %v721_v55 = vmul.f32 %v1234_v5, %v497_v46  ;;  %v737_v7 = vmul.f32 %v1286_v51, %v513_v47  ;;  %v705_v18 = vpop.permute.xlu0 %704  ;;  %v710_v17 = vpop.permute.xlu1 %709 }
 0x112   :  { %v429_v48 = vmul.f32 %v1259_v21, %v331_v53  ;;  %v445_v56 = vmul.f32 %v1259_v21, %v395_v54  ;;  %755 = vst [vmem:[%s1468_s7 + $0x58] sm:$0xff] %v723_v8  ;;  %771 = vst [vmem:[%s1468_s7 + $0xd8] sm:$0xff] %v739_v49  ;;  %v470_v59 = vadd.f32 %v1268_v25, %v431_v6 }
 0x113   :  { %v486_v5 = vadd.f32 %v1268_v25, %v447_v52  ;;  %v432_v51 = vmul.f32 %v847_v57, %v1259_v21  ;;  %v448_v60 = vmul.f32 %v863_v58, %v1259_v21  ;;  %753 = vst [vmem:[%s1468_s7 + $0x48] sm:$0xff] %v721_v55  ;;  %769 = vst [vmem:[%s1468_s7 + $0xc8] sm:$0xff] %v737_v7 }
 0x114   :  { %v468_v2 = vadd.f32 %v1268_v25, %v429_v48  ;;  %v484_v20 = vadd.f32 %v1268_v25, %v445_v56  ;;  %v430_v24 = vmul.f32 %v1259_v21, %v334_v4  ;;  %v446_v26 = vmul.f32 %v1259_v21, %v398_v23 }
 0x115   :  { %v502_v27 = vmax.f32 %v470_v59, 0.0  ;;  %v518_v3 = vmax.f32 %v486_v5, 0.0  ;;  %v471_v22 = vadd.f32 %v1268_v25, %v432_v51  ;;  %v487_v61 = vadd.f32 %v1268_v25, %v448_v60 }
 0x116   :  { %v500_v62 = vmax.f32 %v468_v2, 0.0  ;;  %v516_v16 = vmax.f32 %v484_v20, 0.0  ;;  %v469_v1 = vadd.f32 %v1268_v25, %v430_v24  ;;  %v485_v19 = vadd.f32 %v1268_v25, %v446_v26 }
 0x117   :  { %v726_v28 = vmul.f32 %v1248_v14, %v502_v27  ;;  %v742_v29 = vmul.f32 %v705_v18, %v518_v3  ;;  %v503_v30 = vmax.f32 %v471_v22, 0.0  ;;  %v519_v63 = vmax.f32 %v487_v61, 0.0 }
 0x118   :  { %v724_v21 = vmul.f32 %v1244_v12, %v500_v62  ;;  %v740_v31 = vmul.f32 %v695_v39, %v516_v16  ;;  %v501_v32 = vmax.f32 %v469_v1, 0.0  ;;  %v517_v33 = vmax.f32 %v485_v19, 0.0 }
 0x119   :  { %758 = vst [vmem:[%s1468_s7 + $0x70] sm:$0xff] %v726_v28  ;;  %774 = vst [vmem:[%s1468_s7 + $0xf0] sm:$0xff] %v742_v29  ;;  %v727_v25 = vmul.f32 %v1246_v13, %v503_v30  ;;  %v743_v14 = vmul.f32 %v710_v17, %v519_v63 }
 0x11a   :  { %756 = vst [vmem:[%s1468_s7 + $0x60] sm:$0xff] %v724_v21  ;;  %772 = vst [vmem:[%s1468_s7 + $0xe0] sm:$0xff] %v740_v31  ;;  %v725_v12 = vmul.f32 %v1242_v11, %v501_v32  ;;  %v741_v0 = vmul.f32 %v1383_v9, %v517_v33 }
 0x11b   :  { %759 = vst [vmem:[%s1468_s7 + $0x78] sm:$0xff] %v727_v25  ;;  %775 = vst [vmem:[%s1468_s7 + $0xf8] sm:$0xff] %v743_v14 }
 0x11c   :  { %757 = vst [vmem:[%s1468_s7 + $0x68] sm:$0xff] %v725_v12  ;;  %773 = vst [vmem:[%s1468_s7 + $0xe8] sm:$0xff] %v741_v0 }

// kernel: densenet_forward.24
= control target key start
LH: loop header
LB: loop body
LE: loop exit
PB: predicated region body
PF: predicated region fallthrough
CT: control target
= control target key end

     0   :  { %v82_v7 = vlaneseq  ;;  %s5992_s2 = inlined_call_operand.vmem [shape: bf16[9,128,128], index: 2, kind: input, shape index: {}]   ;;  %s5993_s0 = inlined_call_operand.vmem [shape: f32[256,128], index: 0, kind: input, shape index: {}]   ;;  %s5994_s3 = inlined_call_operand.vmem [shape: f32[256,1], index: 3, kind: input, shape index: {}]   ;;  %s5995_s1 = inlined_call_operand.vmem [shape: f32[256,128], index: 1, kind: input, shape index: {}]   ;;  %s5996_s4 = inlined_call_operand.vmem [shape: f32[256,128], index: 4, kind: output, shape index: {}]  }
   0x1   :  { %v4144_v0 = vld [vmem:[%s5992_s2 + $0x40] sm:$0xff]   ;;  %v4146_v2 = vld [vmem:[%s5992_s2 + $0x48] sm:$0xff]   ;;  %v4148_v4 = vld [vmem:[%s5992_s2 + $0x50] sm:$0xff]  }
   0x2   :  { %v4145_v1 = vld [vmem:[%s5992_s2 + $0x100] sm:$0xff]   ;;  %3437 = vmatprep.subr.bf16.mxu1 %v4144_v0  ;;  %v4147_v3 = vld [vmem:[%s5992_s2 + $0x108] sm:$0xff]   ;;  %v4149_v5 = vld [vmem:[%s5992_s2 + $0x110] sm:$0xff]   ;;  %v4309_v10 = vshrl.u32 %v82_v7, 7 }
   0x3   :  { %3629 = vmatprep.subr.bf16.mxu0 %v4145_v1  ;;  %3438 = vmatpush3.bf16.msra.mxu1 %v4144_v0  ;;  %v4150_v6 = vld [vmem:[%s5992_s2 + $0x58] sm:$0xff]   ;;  %v4152_v9 = vld [vmem:[%s5992_s2 + $0x60] sm:$0xff]   ;;  %v4154_v12 = vld [vmem:[%s5992_s2 + $0x68] sm:$0xff]  }
   0x4   :  { %3630 = vmatpush3.bf16.msra.mxu0 %v4145_v1  ;;  %3439 = vmatprep.subr.bf16.mxu1 %v4146_v2  ;;  %v4151_v8 = vld [vmem:[%s5992_s2 + $0x118] sm:$0xff]   ;;  %v4153_v11 = vld [vmem:[%s5992_s2 + $0x120] sm:$0xff]   ;;  %v4155_v13 = vld [vmem:[%s5992_s2 + $0x128] sm:$0xff]   ;;  %vm181_vm0 = vcmp.lt.s32.totalorder %v4309_v10, 1  ;;  %vm1519_vm1 = vcmp.lt.s32.totalorder %v4309_v10, 7  ;;  %vm84_vm2 = vcmp.lt.s32.totalorder %v4309_v10, 2 }
   0x5   :  { %3631 = vmatprep.subr.bf16.mxu0 %v4147_v3  ;;  %v4323_v14 = vld [vmem:[%s5993_s0] sm:$0xff]  ;;  %v4328_v15 = vld [vmem:[%s5993_s0 + $0x8] sm:$0xff]  ;;  %v4339_v17 = vld [vmem:[%s5993_s0 + $0xf0] sm:$0xff]  ;;  %vm2390_vm3 = vcmp.lt.s32.totalorder %v4309_v10, 6 }
   0x6   :  { %6049 = vst [vmem:[#allocation2_spill] sm:$0xff] %v4323_v14  ;;  %v4333_v16 = vld [vmem:[%s5993_s0 + $0xe8] sm:$0xff]  ;;  %v4344_v18 = vld [vmem:[%s5993_s0 + $0xf8] sm:$0xff]  ;;  %v149_v19 = vrot.slane %v4323_v14, 7  ;;  %v150_v20 = vrot.slane %v4328_v15, 7  ;;  %v1213_v22 = vpack.c.bf16 %v4328_v15, %v4323_v14  ;;  %v4354_v23 = vld [vmem:[%s5993_s0 + $0x10] sm:$0xff] }
   0x7   :  { %3440 = vmatpush3.bf16.msra.mxu1 %v4146_v2  ;;  %v5998_v21 = vrot.slane %v4333_v16, 7  ;;  %v179_v24 = vrot.slane %v4339_v17, 7  ;;  %v180_v25 = vrot.slane %v4344_v18, 7  ;;  %v151_v26 = vrot.slane %v4354_v23, 7  ;;  %v4366_v28 = vld [vmem:[%s5993_s0 + $0x18] sm:$0xff]  ;;  %v4156_v29 = vld [vmem:[%s5992_s2 + $0x70] sm:$0xff]  }
   0x8   :  { %3632 = vmatpush3.bf16.msra.mxu0 %v4147_v3  ;;  %3441 = vmatprep.subr.bf16.mxu1 %v4148_v4  ;;  %v4361_v27 = vsel %vm181_vm0, %v149_v19, %v150_v20  ;;  %v152_v33 = vrot.slane %v4366_v28, 7  ;;  %v4157_v34 = vld [vmem:[%s5992_s2 + $0x130] sm:$0xff]   ;;  %v4398_v38 = vld [vmem:[%s5993_s0 + $0x20] sm:$0xff]  ;;  %v4158_v42 = vld [vmem:[%s5992_s2 + $0x78] sm:$0xff]   ;;  %v1214_v52 = vpack.c.bf16 %v4366_v28, %v4354_v23  ;;  %v6000_v59 = vrot.slane %v4366_v28, 1 }
   0x9   :  { %3633 = vmatprep.subr.bf16.mxu0 %v4149_v5  ;;  %6050 = vst [vmem:[#allocation3_spill] sm:$0xff] %v4361_v27  ;;  %3645 = vmatprep.mubr.bf16.mxu0 %v1213_v22  ;;  %v4373_v30 = vsel %vm181_vm0, %v179_v24, %v180_v25  ;;  %v4379_v31 = vsel %vm181_vm0, %v5998_v21, %v179_v24  ;;  %v153_v43 = vrot.slane %v4398_v38, 7  ;;  %v4159_v44 = vld [vmem:[%s5992_s2 + $0x138] sm:$0xff]   ;;  %v4160_v45 = vld [vmem:[%s5992_s2] sm:$0xff]   ;;  %v4426_v47 = vld [vmem:[%s5993_s0 + $0x28] sm:$0xff]  ;;  %v1491_v60 = vrot.slane %v4398_v38, 1 }
   0xa   :  { %6051 = vst [vmem:[#allocation4_spill] sm:$0xff] %v4373_v30  ;;  %6052 = vst [vmem:[#allocation5_spill] sm:$0xff] %v4379_v31  ;;  %v4383_v32 = vsel %vm181_vm0, %v180_v25, %v149_v19  ;;  %v4402_v39 = vsel %vm181_vm0, %v150_v20, %v151_v26  ;;  %v4406_v40 = vsel %vm181_vm0, %v151_v26, %v152_v33  ;;  %v4161_v46 = vld [vmem:[%s5992_s2 + $0x140] sm:$0xff]   ;;  %v4435_v49 = vld [vmem:[%s5993_s0 + $0x30] sm:$0xff]  ;;  %v154_v55 = vrot.slane %v4426_v47, 7 }
   0xb   :  { %3442 = vmatpush3.bf16.msra.mxu1 %v4148_v4  ;;  %6053 = vst [vmem:[#allocation6_spill] sm:$0xff] %v4383_v32  ;;  %v214_v35 = vpack.c.bf16 %v4383_v32, %v4373_v30  ;;  %6054 = vst [vmem:[#allocation7_spill] sm:$0xff] %v4402_v39  ;;  %v4430_v48 = vsel %vm181_vm0, %v152_v33, %v153_v43  ;;  %v4440_v50 = vld [vmem:[%s5993_s0 + $0x40] sm:$0xff]  ;;  %v215_v51 = vpack.c.bf16 %v4402_v39, %v4361_v27  ;;  %v4449_v53 = vld [vmem:[%s5993_s0 + $0x38] sm:$0xff] }
   0xc   :  { %3634 = vmatpush3.bf16.msra.mxu0 %v4149_v5  ;;  %3443 = vmatprep.subr.bf16.mxu1 %v4150_v6  ;;  %6055 = vst [vmem:[#allocation8_spill] sm:$0xff] %v4406_v40  ;;  %6056 = vst [vmem:[#allocation9_spill] sm:$0xff] %v4430_v48  ;;  %v216_v54 = vpack.c.bf16 %v4430_v48, %v4406_v40  ;;  %v155_v56 = vrot.slane %v4435_v49, 7  ;;  %v156_v57 = vrot.slane %v4449_v53, 7  ;;  %v157_v58 = vrot.slane %v4440_v50, 7  ;;  %v4162_v62 = vld [vmem:[%s5992_s2 + $0x148] sm:$0xff]  }
   0xd   :  { %3635 = vmatprep.subr.bf16.mxu0 %v4151_v8  ;;  %3453 = vmatprep.mubr.bf16.mxu1 %v214_v35  ;;  %v5999_v61 = vrot.slane %v4426_v47, 1  ;;  %v1215_v63 = vpack.c.bf16 %v4426_v47, %v4398_v38  ;;  %v4163_v0 = vld [vmem:[%s5992_s2 + $0x8] sm:$0xff]   ;;  %v4475_v2 = vsel %vm181_vm0, %v153_v43, %v154_v55  ;;  %v4164_v3 = vld [vmem:[%s5992_s2 + $0x150] sm:$0xff]   ;;  %v1216_v20 = vpack.c.bf16 %v4449_v53, %v4435_v49  ;;  %v4531_v26 = vld [vmem:[%s5993_s0 + $0x58] sm:$0xff] }
   0xe   :  { %v4471_v1 = vsel %vm181_vm0, %v154_v55, %v155_v56  ;;  %6058 = vst [vmem:[#allocation11_spill] sm:$0xff] %v4475_v2  ;;  %v4482_v4 = vsel %vm181_vm0, %v155_v56, %v156_v57  ;;  %v4487_v5 = vld [vmem:[%s5993_s0 + $0x48] sm:$0xff]  ;;  %v4496_v7 = vsel %vm181_vm0, %v156_v57, %v157_v58  ;;  %v160_v33 = vrot.slane %v4531_v26, 7  ;;  %v4165_v35 = vld [vmem:[%s5992_s2 + $0x158] sm:$0xff]   ;;  %v4575_v55 = vld [vmem:[%s5993_s0 + $0x80] sm:$0xff] }
   0xf   :  { %3444 = vmatpush3.bf16.msra.mxu1 %v4150_v6  ;;  %6057 = vst [vmem:[#allocation10_spill] sm:$0xff] %v4471_v1  ;;  %6059 = vst [vmem:[#allocation12_spill] sm:$0xff] %v4482_v4  ;;  %v4492_v6 = vld [vmem:[%s5993_s0 + $0x50] sm:$0xff]  ;;  %v217_v19 = vpack.c.bf16 %v4471_v1, %v4475_v2  ;;  %v218_v22 = vpack.c.bf16 %v4496_v7, %v4482_v4  ;;  %v158_v24 = vrot.slane %v4487_v5, 7  ;;  %v4677_v30 = vld [vmem:[%s5993_s0 + $0xa8] sm:$0xff]  ;;  %v1498_v39 = vrot.slane %v4531_v26, 1 }
  0x10   :  { %3636 = vmatpush3.bf16.msra.mxu0 %v4151_v8  ;;  %3445 = vmatprep.subr.bf16.mxu1 %v4152_v9  ;;  %6060 = vst [vmem:[#allocation13_spill] sm:$0xff] %v4496_v7  ;;  %v4166_v8 = vld [vmem:[%s5992_s2 + $0x10] sm:$0xff]   ;;  %v159_v25 = vrot.slane %v4492_v6, 7  ;;  %v1497_v7 = vrot.slane %v4492_v6, 1  ;;  %v4179_v32 = vld [vmem:[%s5992_s2 + $0x198] sm:$0xff]  }
  0x11   :  { %3637 = vmatprep.subr.bf16.mxu0 %v4153_v11  ;;  %v4625_v37 = vld [vmem:[%s5993_s0 + $0x90] sm:$0xff] }
  0x12   :  { %v4545_v43 = vsel %vm181_vm0, %v158_v24, %v159_v25  ;;  %v167_v36 = vrot.slane %v4625_v37, 7 }
  0x13   :  { %3446 = vmatpush3.bf16.msra.mxu1 %v4152_v9  ;;  %v4504_v9 = vld [vmem:[%s5993_s0 + $0x60] sm:$0xff]  ;;  %6063 = vst [vmem:[#allocation16_spill] sm:$0xff] %v4545_v43 }
  0x14   :  { %3638 = vmatpush3.bf16.msra.mxu0 %v4153_v11  ;;  %3447 = vmatprep.subr.bf16.mxu1 %v4154_v12  ;;  %v4510_v11 = vsel %vm1519_vm1, %v6000_v59, %v1491_v60  ;;  %v1493_v59 = vrot.slane %v4435_v49, 1  ;;  %v1499_v40 = vrot.slane %v4504_v9, 1 }
  0x15   :  { %3639 = vmatprep.subr.bf16.mxu0 %v4155_v13  ;;  %6061 = vst [vmem:[#allocation14_spill] sm:$0xff] %v4510_v11 }
  0x17   :  { %3448 = vmatpush3.bf16.msra.mxu1 %v4154_v12  ;;  %v4516_v12 = vsel %vm1519_vm1, %v1491_v60, %v5999_v61  ;;  %v1218_v60 = vpack.c.bf16 %v4531_v26, %v4492_v6 }
  0x18   :  { %3640 = vmatpush3.bf16.msra.mxu0 %v4155_v13  ;;  %3449 = vmatprep.subr.bf16.mxu1 %v4156_v29  ;;  %6062 = vst [vmem:[#allocation15_spill] sm:$0xff] %v4516_v12  ;;  %v4171_v13 = vld [vmem:[%s5992_s2 + $0x178] sm:$0xff]  }
  0x19   :  { %3641 = vmatprep.subr.bf16.mxu0 %v4157_v34 }
  0x1b   :  { %3450 = vmatpush3.bf16.msra.mxu1 %v4156_v29  ;;  %v1217_v29 = vpack.c.bf16 %v4487_v5, %v4440_v50 }
  0x1c   :  { %3642 = vmatpush3.bf16.msra.mxu0 %v4157_v34  ;;  %3451 = vmatprep.subr.bf16.mxu1 %v4158_v42  ;;  %v161_v34 = vrot.slane %v4504_v9, 7 }
  0x1d   :  { %3643 = vmatprep.subr.bf16.mxu0 %v4159_v44 }
  0x1f   :  { %3452 = vmatpush3.bf16.msra.mxu1 %v4158_v42  ;;  %v4169_v42 = vld [vmem:[%s5992_s2 + $0x18] sm:$0xff]  }
  0x20   :  { %3644 = vmatpush3.bf16.msra.mxu0 %v4159_v44  ;;  %3485 = vmatprep.subr.bf16.mxu1 %v4160_v45  ;;  %v4549_v44 = vsel %vm181_vm0, %v157_v58, %v158_v24  ;;  %v4172_v58 = vld [vmem:[%s5992_s2 + $0x20] sm:$0xff]   ;;  %v1488_v24 = vrot.slane %v4328_v15, 1 }
  0x21   :  { %3677 = vmatprep.subr.bf16.mxu0 %v4161_v46  ;;  %6064 = vst [vmem:[#allocation17_spill] sm:$0xff] %v4549_v44  ;;  %v219_v56 = vpack.c.bf16 %v4545_v43, %v4549_v44  ;;  %v4175_v43 = vld [vmem:[%s5992_s2 + $0x188] sm:$0xff]   ;;  %v1496_v44 = vrot.slane %v4487_v5, 1 }
  0x22   :  { %3454 = vmatmul.mubr.bf16.vlgmr.msra.gmra.mrb[0].mxu1 %v215_v51  ;;  %v4562_v51 = vsel %vm181_vm0, %v159_v25, %v160_v33  ;;  %v1489_v25 = vrot.slane %v4354_v23, 1 }
  0x23   :  { %3646 = vmatmul.mubr.bf16.vlgmr.msra.gmra.mrb[0].mxu0 %v1214_v52  ;;  %3486 = vmatpush3.bf16.msra.mxu1 %v4160_v45  ;;  %v4554_v45 = vld [vmem:[%s5993_s0 + $0x68] sm:$0xff]  ;;  %6066 = vst [vmem:[#allocation19_spill] sm:$0xff] %v4562_v51  ;;  %v4567_v52 = vld [vmem:[%s5993_s0 + $0x70] sm:$0xff] }
  0x24   :  { %3678 = vmatpush3.bf16.msra.mxu0 %v4161_v46  ;;  %3457 = vmatprep.mubr.bf16.mxu1 %v216_v54  ;;  %v4558_v46 = vsel %vm181_vm0, %v160_v33, %v161_v34  ;;  %v4167_v54 = vld [vmem:[%s5992_s2 + $0x160] sm:$0xff]   ;;  %v162_v57 = vrot.slane %v4554_v45, 7  ;;  %v4174_v33 = vld [vmem:[%s5992_s2 + $0x28] sm:$0xff]   ;;  %v1500_v48 = vrot.slane %v4554_v45, 1 }
  0x25   :  { %3679 = vmatprep.subr.bf16.mxu0 %v4162_v62  ;;  %3649 = vmatprep.mubr.bf16.mxu0 %v1215_v63  ;;  %6065 = vst [vmem:[#allocation18_spill] sm:$0xff] %v4558_v46  ;;  %v163_v63 = vrot.slane %v4567_v52, 7 }
  0x26   :  { %3487 = vmatprep.subr.bf16.mxu1 %v4163_v0 }
  0x27   :  { %3488 = vmatpush3.bf16.msra.mxu1 %v4163_v0  ;;  %v4591_v0 = vld [vmem:[%s5993_s0 + $0x78] sm:$0xff] }
  0x28   :  { %3680 = vmatpush3.bf16.msra.mxu0 %v4162_v62  ;;  %3489 = vmatprep.subr.bf16.mxu1 %v4166_v8  ;;  %v220_v62 = vpack.c.bf16 %v4558_v46, %v4562_v51  ;;  %v1220_v41 = vpack.c.bf16 %v4591_v0, %v4567_v52 }
  0x29   :  { %3681 = vmatprep.subr.bf16.mxu0 %v4164_v3 }
  0x2a   :  { %3458 = vmatmul.mubr.bf16.gmra.mrb[4].mxu1 %v217_v19  ;;  %v165_v19 = vrot.slane %v4575_v55, 7 }
  0x2b   :  { %3650 = vmatmul.mubr.bf16.gmra.mrb[4].mxu0 %v1216_v20  ;;  %3461 = vmatprep.mubr.bf16.mxu1 %v218_v22  ;;  %v4168_v20 = vld [vmem:[%s5992_s2 + $0x168] sm:$0xff]   ;;  %v5997_v22 = vrot.slane %v4323_v14, 1 }
  0x2c   :  { %3682 = vmatpush3.bf16.msra.mxu0 %v4164_v3  ;;  %3653 = vmatprep.mubr.bf16.mxu0 %v1217_v29  ;;  %v1219_v3 = vpack.c.bf16 %v4554_v45, %v4504_v9  ;;  %v4606_v29 = vld [vmem:[%s5993_s0 + $0x88] sm:$0xff] }
  0x2d   :  { %3683 = vmatprep.subr.bf16.mxu0 %v4165_v35  ;;  %3490 = vmatpush3.bf16.msra.mxu1 %v4166_v8  ;;  %v164_v8 = vrot.slane %v4591_v0, 7 }
  0x2e   :  { %3491 = vmatprep.subr.bf16.mxu1 %v4169_v42 }
  0x30   :  { %3684 = vmatpush3.bf16.msra.mxu0 %v4165_v35  ;;  %v4613_v35 = vsel %vm181_vm0, %v162_v57, %v163_v63 }
  0x31   :  { %3685 = vmatprep.subr.bf16.mxu0 %v4167_v54  ;;  %3492 = vmatpush3.bf16.msra.mxu1 %v4169_v42  ;;  %6067 = vst [vmem:[#allocation20_spill] sm:$0xff] %v4613_v35  ;;  %v4617_v42 = vsel %vm181_vm0, %v161_v34, %v162_v57  ;;  %v4638_v34 = vld [vmem:[%s5993_s0 + $0x98] sm:$0xff]  ;;  %v4642_v57 = vsel %vm1519_vm1, %v1488_v24, %v1489_v25 }
  0x32   :  { %3462 = vmatmul.mubr.bf16.gmra.mrb[8].mxu1 %v219_v56  ;;  %3493 = vmatprep.subr.bf16.mxu1 %v4172_v58  ;;  %6068 = vst [vmem:[#allocation21_spill] sm:$0xff] %v4617_v42  ;;  %v4170_v56 = vld [vmem:[%s5992_s2 + $0x170] sm:$0xff]   ;;  %v168_v21 = vrot.slane %v4638_v34, 7 }
  0x33   :  { %3654 = vmatmul.mubr.bf16.gmra.mrb[8].mxu0 %v1218_v60  ;;  %3465 = vmatprep.mubr.bf16.mxu1 %v220_v62  ;;  %v4629_v60 = vsel %vm181_vm0, %v164_v8, %v165_v19  ;;  %v4633_v62 = vsel %vm181_vm0, %v163_v63, %v164_v8  ;;  %v4653_v63 = vld [vmem:[%s5993_s0 + $0xa0] sm:$0xff]  ;;  %v4176_v8 = vld [vmem:[%s5992_s2 + $0x30] sm:$0xff]  }
  0x34   :  { %3686 = vmatpush3.bf16.msra.mxu0 %v4167_v54  ;;  %3657 = vmatprep.mubr.bf16.mxu0 %v1219_v3  ;;  %6069 = vst [vmem:[#allocation22_spill] sm:$0xff] %v4629_v60  ;;  %6070 = vst [vmem:[#allocation23_spill] sm:$0xff] %v4633_v62  ;;  %v4648_v54 = vsel %vm1519_vm1, %v5997_v22, %v1488_v24  ;;  %v221_v3 = vpack.c.bf16 %v4613_v35, %v4617_v42  ;;  %v169_v61 = vrot.slane %v4653_v63, 7  ;;  %v4724_v35 = vld [vmem:[%s5993_s0 + $0xb8] sm:$0xff]  ;;  %v4737_v42 = vld [vmem:[%s5992_s2 + $0x80] sm:$0xff]  }
  0x35   :  { %3687 = vmatprep.subr.bf16.mxu0 %v4168_v20  ;;  %6071 = vst [vmem:[#allocation24_spill] sm:$0xff] %v4648_v54  ;;  %3494 = vmatpush3.bf16.msra.mxu1 %v4172_v58  ;;  %v222_v24 = vpack.c.bf16 %v4629_v60, %v4633_v62  ;;  %v166_v58 = vrot.slane %v4606_v29, 7  ;;  %v1552_v22 = vpack.c.bf16 %v4642_v57, %v4648_v54  ;;  %v1495_v62 = vrot.slane %v4440_v50, 1 }
  0x36   :  { %3495 = vmatprep.subr.bf16.mxu1 %v4174_v33 }
  0x37   :  { %v4684_v60 = vsel %vm181_vm0, %v166_v58, %v167_v36  ;;  %v4688_v54 = vsel %vm181_vm0, %v165_v19, %v166_v58  ;;  %v4706_v19 = vsel %vm181_vm0, %v168_v21, %v169_v61  ;;  %v4710_v58 = vsel %vm181_vm0, %v167_v36, %v168_v21  ;;  %v4729_v21 = vld [vmem:[%s5993_s0 + $0xc0] sm:$0xff] }
  0x38   :  { %3688 = vmatpush3.bf16.msra.mxu0 %v4168_v20  ;;  %v4178_v20 = vld [vmem:[%s5992_s2 + $0x38] sm:$0xff]   ;;  %6072 = vst [vmem:[#allocation25_spill] sm:$0xff] %v4684_v60  ;;  %6073 = vst [vmem:[#allocation26_spill] sm:$0xff] %v4688_v54  ;;  %v223_v36 = vpack.c.bf16 %v4684_v60, %v4688_v54  ;;  %v224_v51 = vpack.c.bf16 %v4706_v19, %v4710_v58  ;;  %v172_v60 = vrot.slane %v4724_v35, 7  ;;  %v173_v54 = vrot.slane %v4729_v21, 7 }
  0x39   :  { %3689 = vmatprep.subr.bf16.mxu0 %v4170_v56  ;;  %3496 = vmatpush3.bf16.msra.mxu1 %v4174_v33  ;;  %v4693_v33 = vld [vmem:[%s5993_s0 + $0xb0] sm:$0xff]  ;;  %6075 = vst [vmem:[#allocation27_spill] sm:$0xff] %v4706_v19  ;;  %6076 = vst [vmem:[#allocation28_spill] sm:$0xff] %v4710_v58 }
  0x3a   :  { %3466 = vmatmul.mubr.bf16.gmra.mrb[12].mxu1 %v221_v3  ;;  %3497 = vmatprep.subr.bf16.mxu1 %v4176_v8  ;;  %v6074_v3 = vrot.slane %v4366_v28, 1  ;;  %v4764_v58 = vld [vmem:[%s5993_s0 + $0xd0] sm:$0xff] }
  0x3b   :  { %3658 = vmatmul.mubr.bf16.gmra.mrb[12].mxu0 %v1220_v41  ;;  %3469 = vmatprep.mubr.bf16.mxu1 %v222_v24  ;;  %v4173_v24 = vld [vmem:[%s5992_s2 + $0x180] sm:$0xff]  }
  0x3c   :  { %3690 = vmatpush3.bf16.msra.mxu0 %v4170_v56  ;;  %3693 = vmatprep.mubr.bf16.mxu0 %v1552_v22  ;;  %v4699_v41 = vsel %vm1519_vm1, %v1489_v25, %v6074_v3  ;;  %v1494_v22 = vrot.slane %v4449_v53, 1  ;;  %v6077_v56 = vrot.slane %v4426_v47, 1  ;;  %v170_v3 = vrot.slane %v4677_v30, 7 }
  0x3d   :  { %3691 = vmatprep.subr.bf16.mxu0 %v4171_v13  ;;  %3498 = vmatpush3.bf16.msra.mxu1 %v4176_v8  ;;  %v1553_v46 = vpack.c.bf16 %v4510_v11, %v4699_v41  ;;  %v4183_v11 = vld [vmem:[%s5992_s2 + $0x1a8] sm:$0xff]  }
  0x3e   :  { %v4717_v25 = vsel %vm1519_vm1, %v6077_v56, %v1493_v59  ;;  %v171_v56 = vrot.slane %v4693_v33, 7  ;;  %3499 = vmatprep.subr.bf16.mxu1 %v4178_v20  ;;  %v4759_v19 = vsel %vm1519_vm1, %v1493_v59, %v1494_v22  ;;  %v4777_v59 = vsel %vm1519_vm1, %v1494_v22, %v1495_v62  ;;  %v4796_v22 = vld [vmem:[%s5993_s0 + $0xe0] sm:$0xff] }
  0x3f   :  { %v1554_v8 = vpack.c.bf16 %v4717_v25, %v4516_v12  ;;  %6080 = vst [vmem:[#allocation31_spill] sm:$0xff] %v4777_v59  ;;  %v1555_v1 = vpack.c.bf16 %v4777_v59, %v4759_v19  ;;  %v177_v2 = vrot.slane %v4796_v22, 7  ;;  %v1507_v59 = vrot.slane %v4653_v63, 1 }
  0x40   :  { %3692 = vmatpush3.bf16.msra.mxu0 %v4171_v13  ;;  %v4755_v13 = vld [vmem:[%s5993_s0 + $0xc8] sm:$0xff]  ;;  %v4769_v4 = vsel %vm181_vm0, %v170_v3, %v171_v56 }
  0x41   :  { %3725 = vmatprep.subr.bf16.mxu0 %v4173_v24  ;;  %3500 = vmatpush3.bf16.msra.mxu1 %v4178_v20  ;;  %6078 = vst [vmem:[#allocation29_spill] sm:$0xff] %v4769_v4  ;;  %v4773_v20 = vsel %vm181_vm0, %v169_v61, %v170_v3  ;;  %v174_v61 = vrot.slane %v4755_v13, 7  ;;  %v4804_v3 = vsel %vm1519_vm1, %v1495_v62, %v1496_v44 }
  0x42   :  { %3470 = vmatmul.mubr.bf16.gmra.mrb[16].mxu1 %v223_v36  ;;  %3533 = vmatprep.subr.bf16.mxu1 %v4737_v42  ;;  %6079 = vst [vmem:[#allocation30_spill] sm:$0xff] %v4773_v20  ;;  %v4782_v36 = vld [vmem:[%s5993_s0 + $0xd8] sm:$0xff] }
  0x43   :  { %3694 = vmatmul.mubr.bf16.vlgmr.msra.gmra.mrb[0].mxu0 %v1553_v46  ;;  %3473 = vmatprep.mubr.bf16.mxu1 %v224_v51  ;;  %v4786_v46 = vsel %vm181_vm0, %v172_v60, %v173_v54  ;;  %v4790_v51 = vsel %vm181_vm0, %v171_v56, %v172_v60  ;;  %v4177_v60 = vld [vmem:[%s5992_s2 + $0x190] sm:$0xff]   ;;  %v225_v56 = vpack.c.bf16 %v4769_v4, %v4773_v20  ;;  %v176_v62 = vrot.slane %v4782_v36, 7 }
  0x44   :  { %3726 = vmatpush3.bf16.msra.mxu0 %v4173_v24  ;;  %3697 = vmatprep.mubr.bf16.mxu0 %v1554_v8  ;;  %6081 = vst [vmem:[#allocation32_spill] sm:$0xff] %v4786_v46  ;;  %6082 = vst [vmem:[#allocation33_spill] sm:$0xff] %v4790_v51  ;;  %v4800_v24 = vsel %vm1519_vm1, %v1496_v44, %v1497_v7  ;;  %v175_v8 = vrot.slane %v4764_v58, 7  ;;  %v226_v44 = vpack.c.bf16 %v4786_v46, %v4790_v51 }
  0x45   :  { %3727 = vmatprep.subr.bf16.mxu0 %v4175_v43  ;;  %v1556_v4 = vpack.c.bf16 %v4800_v24, %v4804_v3  ;;  %v1501_v20 = vrot.slane %v4567_v52, 1  ;;  %v4837_v51 = vsel %vm1519_vm1, %v1498_v39, %v1499_v40 }
  0x46   :  { %v4829_v46 = vsel %vm181_vm0, %v174_v61, %v175_v8 }
  0x47   :  { %6083 = vst [vmem:[#allocation34_spill] sm:$0xff] %v4829_v46 }
  0x48   :  { %3728 = vmatpush3.bf16.msra.mxu0 %v4175_v43  ;;  %v4833_v43 = vsel %vm181_vm0, %v173_v54, %v174_v61  ;;  %v4850_v54 = vsel %vm181_vm0, %v175_v8, %v176_v62  ;;  %v1502_v61 = vrot.slane %v4591_v0, 1 }
  0x49   :  { %3729 = vmatprep.subr.bf16.mxu0 %v4177_v60  ;;  %6084 = vst [vmem:[#allocation35_spill] sm:$0xff] %v4833_v43  ;;  %6086 = vst [vmem:[#allocation37_spill] sm:$0xff] %v4850_v54  ;;  %v227_v8 = vpack.c.bf16 %v4829_v46, %v4833_v43  ;;  %v6088_v46 = vrot.slane %v4333_v16, 7  ;;  %v1504_v43 = vrot.slane %v4606_v29, 1 }
  0x4a   :  { %3474 = vmatmul.mubr.bf16.gmra.mrb[20].mxu1 %v225_v56  ;;  %v4842_v56 = vsel %vm1519_vm1, %v1497_v7, %v1498_v39  ;;  %v1503_v39 = vrot.slane %v4575_v55, 1  ;;  %v4181_v7 = vld [vmem:[%s5992_s2 + $0x1a0] sm:$0xff]  }
  0x4b   :  { %3698 = vmatmul.mubr.bf16.gmra.mrb[4].mxu0 %v1555_v1  ;;  %3477 = vmatprep.mubr.bf16.mxu1 %v226_v44  ;;  %v4846_v1 = vsel %vm181_vm0, %v176_v62, %v177_v2  ;;  %v4855_v44 = vsel %vm1519_vm1, %v1500_v48, %v1501_v20  ;;  %v1557_v27 = vpack.c.bf16 %v4837_v51, %v4842_v56 }
  0x4c   :  { %3701 = vmatprep.mubr.bf16.mxu0 %v1556_v4  ;;  %3730 = vmatpush3.bf16.msra.mxu0 %v4177_v60  ;;  %6085 = vst [vmem:[#allocation36_spill] sm:$0xff] %v4846_v1  ;;  %6087 = vst [vmem:[#allocation38_spill] sm:$0xff] %v4855_v44  ;;  %v4859_v4 = vsel %vm1519_vm1, %v1499_v40, %v1500_v48  ;;  %v50_v60 = vrot.slane %v4323_v14, 6  ;;  %v228_v40 = vpack.c.bf16 %v4846_v1, %v4850_v54 }
  0x4d   :  { %3731 = vmatprep.subr.bf16.mxu0 %v4179_v32  ;;  %v81_v48 = vrot.slane %v4344_v18, 6  ;;  %v1558_v12 = vpack.c.bf16 %v4855_v44, %v4859_v4  ;;  %v4883_v62 = vsel %vm181_vm0, %v177_v2, %v6088_v46  ;;  %v1505_v1 = vrot.slane %v4625_v37, 1 }
  0x4e   :  { %6089 = vst [vmem:[#allocation39_spill] sm:$0xff] %v4883_v62  ;;  %v229_v54 = vpack.c.bf16 %v4379_v31, %v4883_v62  ;;  %v4891_v14 = vsel %vm1519_vm1, %v1502_v61, %v1503_v39  ;;  %v4895_v2 = vsel %vm1519_vm1, %v1501_v20, %v1502_v61  ;;  %v6091_v46 = vrot.slane %v4339_v17, 6 }
  0x4f   :  { %6090 = vst [vmem:[#allocation40_spill] sm:$0xff] %v4891_v14  ;;  %v4912_v20 = vsel %vm1519_vm1, %v1503_v39, %v1504_v43  ;;  %v1559_v39 = vpack.c.bf16 %v4891_v14, %v4895_v2  ;;  %v51_v61 = vrot.slane %v4328_v15, 6  ;;  %v52_v62 = vrot.slane %v4354_v23, 6  ;;  %v4187_v15 = vld [vmem:[%s5992_s2 + $0x1b8] sm:$0xff]  }
  0x50   :  { %3732 = vmatpush3.bf16.msra.mxu0 %v4179_v32  ;;  %v4185_v32 = vld [vmem:[%s5992_s2 + $0x1b0] sm:$0xff]   ;;  %v53_v31 = vrot.slane %v4366_v28, 6  ;;  %v1509_v44 = vrot.slane %v4693_v33, 1  ;;  %v58_v23 = vrot.slane %v4440_v50, 6 }
  0x51   :  { %3733 = vmatprep.subr.bf16.mxu0 %v4181_v7  ;;  %v114_v28 = vsel %vm84_vm2, %v51_v61, %v52_v62 }
  0x52   :  { %3478 = vmatmul.mubr.bf16.gmra.mrb[24].mxu1 %v227_v8  ;;  %v116_v8 = vsel %vm84_vm2, %v81_v48, %v50_v60 }
  0x53   :  { %3702 = vmatmul.mubr.bf16.gmra.mrb[8].mxu0 %v1557_v27  ;;  %3481 = vmatprep.mubr.bf16.mxu1 %v228_v40  ;;  %v85_v27 = vsel %vm84_vm2, %v6091_v46, %v81_v48  ;;  %v4908_v40 = vsel %vm1519_vm1, %v1504_v43, %v1505_v1  ;;  %v1506_v48 = vrot.slane %v4638_v34, 1  ;;  %v1508_v43 = vrot.slane %v4677_v30, 1 }
  0x54   :  { %3705 = vmatprep.mubr.bf16.mxu0 %v1558_v12  ;;  %6092 = vst [vmem:[#allocation41_spill] sm:$0xff] %v4908_v40  ;;  %3734 = vmatpush3.bf16.msra.mxu0 %v4181_v7  ;;  %v117_v12 = vpack.c.bf16 %v116_v8, %v85_v27  ;;  %v1560_v46 = vpack.c.bf16 %v4908_v40, %v4912_v20  ;;  %v54_v7 = vrot.slane %v4398_v38, 6  ;;  %v1513_v40 = vrot.slane %v4764_v58, 1 }
  0x55   :  { %3735 = vmatprep.subr.bf16.mxu0 %v4183_v11  ;;  %v4945_v27 = vsel %vm1519_vm1, %v1505_v1, %v1506_v48  ;;  %v115_v38 = vsel %vm84_vm2, %v50_v60, %v51_v61  ;;  %v4955_v8 = vsel %vm1519_vm1, %v1506_v48, %v1507_v59  ;;  %v4967_v60 = vsel %vm1519_vm1, %v1507_v59, %v1508_v43  ;;  %v4972_v61 = vld [vmem:[%s5992_s2 + $0x1c0] sm:$0xff]  }
  0x56   :  { %6093 = vst [vmem:[#allocation42_spill] sm:$0xff] %v4945_v27  ;;  %6094 = vst [vmem:[#allocation43_spill] sm:$0xff] %v4955_v8  ;;  %v112_v1 = vsel %vm84_vm2, %v53_v31, %v54_v7  ;;  %v1510_v48 = vrot.slane %v4724_v35, 1 }
  0x58   :  { %3736 = vmatpush3.bf16.msra.mxu0 %v4183_v11  ;;  %v57_v11 = vrot.slane %v4449_v53, 6  ;;  %v5003_v14 = vsel %vm1519_vm1, %v1509_v44, %v1510_v48 }
  0x59   :  { %3737 = vmatprep.subr.bf16.mxu0 %v4185_v32  ;;  %6096 = vst [vmem:[#allocation45_spill] sm:$0xff] %v5003_v14 }
  0x5a   :  { %3482 = vmatmul.mubr.bf16.gmra.mrb[28].mxu1 %v229_v54  ;;  %v113_v54 = vsel %vm84_vm2, %v52_v62, %v53_v31  ;;  %v1561_v31 = vpack.c.bf16 %v4955_v8, %v4945_v27  ;;  %v56_v62 = vrot.slane %v4435_v49, 6  ;;  %v66_v8 = vrot.slane %v4575_v55, 6 }
  0x5b   :  { %3706 = vmatmul.mubr.bf16.gmra.mrb[12].mxu0 %v1559_v39  ;;  %3501 = vmatprep.mubr.bf16.mxu1 %v117_v12  ;;  %v4963_v12 = vsel %vm1519_vm1, %v1508_v43, %v1509_v44  ;;  %v1511_v39 = vrot.slane %v4729_v21, 1  ;;  %v119_v59 = vpack.c.bf16 %v112_v1, %v113_v54 }
  0x5c   :  { %3709 = vmatprep.mubr.bf16.mxu0 %v1560_v46  ;;  %3738 = vmatpush3.bf16.msra.mxu0 %v4185_v32  ;;  %6095 = vst [vmem:[#allocation44_spill] sm:$0xff] %v4963_v12  ;;  %v118_v32 = vpack.c.bf16 %v114_v28, %v115_v38  ;;  %v55_v46 = vrot.slane %v4426_v47, 6  ;;  %v1562_v43 = vpack.c.bf16 %v4963_v12, %v4967_v60  ;;  %v4182_v28 = vld [vmem:[%s5992_s2 + $0x88] sm:$0xff]   ;;  %v1512_v38 = vrot.slane %v4755_v13, 1 }
  0x5d   :  { %3739 = vmatprep.subr.bf16.mxu0 %v4187_v15  ;;  %v4999_v27 = vsel %vm1519_vm1, %v1510_v48, %v1511_v39  ;;  %v1515_v12 = vrot.slane %v4796_v22, 1 }
  0x5e   :  { %v111_v54 = vsel %vm84_vm2, %v54_v7, %v55_v46  ;;  %v109_v7 = vsel %vm84_vm2, %v56_v62, %v57_v11  ;;  %v5016_v44 = vsel %vm1519_vm1, %v1512_v38, %v1513_v40 }
  0x5f   :  { %6097 = vst [vmem:[#allocation46_spill] sm:$0xff] %v5016_v44 }
  0x60   :  { %3740 = vmatpush3.bf16.msra.mxu0 %v4187_v15  ;;  %v110_v15 = vsel %vm84_vm2, %v55_v46, %v56_v62  ;;  %v60_v46 = vrot.slane %v4492_v6, 6 }
  0x61   :  { %3773 = vmatprep.subr.bf16.mxu0 %v4972_v61  ;;  %v120_v48 = vpack.c.bf16 %v110_v15, %v111_v54  ;;  %v1516_v54 = vrot.slane %v4333_v16, 1  ;;  %v1517_v15 = vrot.slane %v4339_v17, 1 }
  0x62   :  { %3502 = vmatmul.mubr.bf16.vlgmr.msra.gmra.mrb[0].mxu1 %v118_v32  ;;  %v108_v32 = vsel %vm84_vm2, %v57_v11, %v58_v23  ;;  %v1563_v11 = vpack.c.bf16 %v4999_v27, %v5003_v14 }
  0x63   :  { %3710 = vmatmul.mubr.bf16.gmra.mrb[16].mxu0 %v1561_v31  ;;  %3534 = vmatpush3.bf16.msra.mxu1 %v4737_v42  ;;  %v4184_v42 = vld [vmem:[%s5992_s2 + $0x90] sm:$0xff]   ;;  %v5020_v31 = vsel %vm1519_vm1, %v1511_v39, %v1512_v38  ;;  %v121_v62 = vpack.c.bf16 %v108_v32, %v109_v7  ;;  %v61_v39 = vrot.slane %v4531_v26, 6  ;;  %v62_v38 = vrot.slane %v4504_v9, 6 }
  0x64   :  { %3505 = vmatprep.mubr.bf16.mxu1 %v119_v59  ;;  %3713 = vmatprep.mubr.bf16.mxu0 %v1562_v43  ;;  %v1514_v59 = vrot.slane %v4782_v36, 1  ;;  %v59_v43 = vrot.slane %v4487_v5, 6  ;;  %v1564_v1 = vpack.c.bf16 %v5016_v44, %v5020_v31  ;;  %v6099_v44 = vld [vmem:[#allocation2_spill] sm:$0xff] }
  0x65   :  { %3535 = vmatprep.subr.bf16.mxu1 %v4182_v28 }
  0x66   :  { %v5041_v7 = vsel %vm1519_vm1, %v1513_v40, %v1514_v59  ;;  %v106_v14 = vsel %vm84_vm2, %v59_v43, %v60_v46  ;;  %v107_v16 = vsel %vm84_vm2, %v58_v23, %v59_v43  ;;  %v5051_v32 = vsel %vm1519_vm1, %v1514_v59, %v1515_v12 }
  0x67   :  { %3536 = vmatpush3.bf16.msra.mxu1 %v4182_v28  ;;  %v4186_v28 = vld [vmem:[%s5992_s2 + $0x98] sm:$0xff]   ;;  %6098 = vst [vmem:[#allocation47_spill] sm:$0xff] %v5041_v7  ;;  %v104_v40 = vsel %vm84_vm2, %v61_v39, %v62_v38  ;;  %v5063_v23 = vsel %vm1519_vm1, %v1515_v12, %v1516_v54  ;;  %v1518_v59 = vrot.slane %v4344_v18, 1  ;;  %v63_v43 = vrot.slane %v4554_v45, 6 }
  0x68   :  { %3537 = vmatprep.subr.bf16.mxu1 %v4184_v42  ;;  %v74_v18 = vrot.slane %v4729_v21, 6 }
  0x6a   :  { %3506 = vmatmul.mubr.bf16.gmra.mrb[4].mxu1 %v120_v48  ;;  %v105_v48 = vsel %vm84_vm2, %v60_v46, %v61_v39  ;;  %v64_v39 = vrot.slane %v4567_v52, 6 }
  0x6b   :  { %3714 = vmatmul.mubr.bf16.gmra.mrb[20].mxu0 %v1563_v11  ;;  %3509 = vmatprep.mubr.bf16.mxu1 %v121_v62  ;;  %v5059_v11 = vsel %vm1519_vm1, %v1516_v54, %v1517_v15  ;;  %v1565_v62 = vpack.c.bf16 %v5051_v32, %v5041_v7  ;;  %v123_v46 = vpack.c.bf16 %v104_v40, %v105_v48  ;;  %v65_v54 = vrot.slane %v4591_v0, 6 }
  0x6c   :  { %3717 = vmatprep.mubr.bf16.mxu0 %v1564_v1  ;;  %3538 = vmatpush3.bf16.msra.mxu1 %v4184_v42  ;;  %v4188_v1 = vld [vmem:[%s5992_s2 + $0xa0] sm:$0xff]   ;;  %v122_v42 = vpack.c.bf16 %v106_v14, %v107_v16  ;;  %v1566_v12 = vpack.c.bf16 %v5059_v11, %v5063_v23  ;;  %v4190_v14 = vld [vmem:[%s5992_s2 + $0xa8] sm:$0xff]   ;;  %v5084_v16 = vsel %vm1519_vm1, %v1517_v15, %v1518_v59  ;;  %v6100_v7 = vrot.slane %v6099_v44, 1 }
  0x6d   :  { %3539 = vmatprep.subr.bf16.mxu1 %v4186_v28  ;;  %v103_v40 = vsel %vm84_vm2, %v62_v38, %v63_v43  ;;  %v100_v15 = vsel %vm84_vm2, %v65_v54, %v66_v8  ;;  %v4192_v38 = vld [vmem:[%s5992_s2 + $0xb0] sm:$0xff]  }
  0x70   :  { %3540 = vmatpush3.bf16.msra.mxu1 %v4186_v28  ;;  %v102_v28 = vsel %vm84_vm2, %v63_v43, %v64_v39 }
  0x71   :  { %3541 = vmatprep.subr.bf16.mxu1 %v4188_v1 }
  0x72   :  { %3510 = vmatmul.mubr.bf16.gmra.mrb[8].mxu1 %v122_v42  ;;  %v5096_v42 = vsel %vm1519_vm1, %v1518_v59, %v6100_v7  ;;  %v67_v7 = vrot.slane %v4606_v29, 6  ;;  %v68_v59 = vrot.slane %v4625_v37, 6 }
  0x73   :  { %3718 = vmatmul.mubr.bf16.gmra.mrb[24].mxu0 %v1565_v62  ;;  %3513 = vmatprep.mubr.bf16.mxu1 %v123_v46  ;;  %6101 = vst [vmem:[#allocation2_spill] sm:$0xff] %v5096_v42  ;;  %v101_v62 = vsel %vm84_vm2, %v64_v39, %v65_v54  ;;  %v124_v46 = vpack.c.bf16 %v102_v28, %v103_v40  ;;  %v69_v54 = vrot.slane %v4638_v34, 6  ;;  %v70_v28 = vrot.slane %v4653_v63, 6  ;;  %v4194_v40 = vld [vmem:[%s5992_s2 + $0xb8] sm:$0xff]  }
  0x74   :  { %3721 = vmatprep.mubr.bf16.mxu0 %v1566_v12  ;;  %3542 = vmatpush3.bf16.msra.mxu1 %v4188_v1  ;;  %v1567_v44 = vpack.c.bf16 %v5096_v42, %v5084_v16  ;;  %v125_v43 = vpack.c.bf16 %v100_v15, %v101_v62  ;;  %v5112_v12 = vld [vmem:[%s5993_s0 + $0x8] sm:$0xff]  ;;  %v5117_v1 = vld [vmem:[%s5993_s0 + $0x10] sm:$0xff]  ;;  %v98_v15 = vsel %vm84_vm2, %v67_v7, %v68_v59 }
  0x75   :  { %3543 = vmatprep.subr.bf16.mxu1 %v4190_v14  ;;  %v5121_v39 = vpack.c.bf16 %v5117_v1, %v5112_v12  ;;  %v99_v62 = vsel %vm84_vm2, %v66_v8, %v67_v7  ;;  %v96_v48 = vsel %vm84_vm2, %v69_v54, %v70_v28  ;;  %v5145_v8 = vld [vmem:[%s5993_s0 + $0x18] sm:$0xff]  ;;  %v4191_v42 = vld [vmem:[%s5992_s2 + $0x1c8] sm:$0xff]  }
  0x78   :  { %3544 = vmatpush3.bf16.msra.mxu1 %v4190_v14  ;;  %v97_v14 = vsel %vm84_vm2, %v68_v59, %v69_v54  ;;  %v71_v59 = vrot.slane %v4677_v30, 6  ;;  %v72_v54 = vrot.slane %v4693_v33, 6 }
  0x79   :  { %3545 = vmatprep.subr.bf16.mxu1 %v4192_v38  ;;  %v127_v7 = vpack.c.bf16 %v96_v48, %v97_v14  ;;  %v4193_v14 = vld [vmem:[%s5992_s2 + $0x1d0] sm:$0xff]  }
  0x7a   :  { %3514 = vmatmul.mubr.bf16.gmra.mrb[12].mxu1 %v124_v46  ;;  %v5140_v46 = vld [vmem:[%s5992_s2 + $0xc0] sm:$0xff]   ;;  %v94_v48 = vsel %vm84_vm2, %v71_v59, %v72_v54 }
  0x7b   :  { %3722 = vmatmul.mubr.bf16.gmra.mrb[28].mxu0 %v1567_v44  ;;  %3517 = vmatprep.mubr.bf16.mxu1 %v125_v43  ;;  %v126_v44 = vpack.c.bf16 %v98_v15, %v99_v62  ;;  %v5150_v43 = vld [vmem:[%s5993_s0 + $0x20] sm:$0xff]  ;;  %v5160_v15 = vpack.c.bf16 %v4435_v49, %v4426_v47  ;;  %v73_v62 = vrot.slane %v4724_v35, 6  ;;  %v95_v47 = vsel %vm84_vm2, %v70_v28, %v71_v59 }
  0x7c   :  { %3741 = vmatprep.mubr.bf16.mxu0 %v5121_v39  ;;  %3546 = vmatpush3.bf16.msra.mxu1 %v4192_v38  ;;  %6102 = vst [vmem:[#allocation48_spill] sm:$0xff] %v5150_v43  ;;  %v5154_v38 = vpack.c.bf16 %v5150_v43, %v5145_v8  ;;  %v76_v59 = vrot.slane %v4764_v58, 6  ;;  %v5190_v43 = vpack.c.bf16 %v4492_v6, %v4487_v5 }
  0x7d   :  { %3547 = vmatprep.subr.bf16.mxu1 %v4194_v40  ;;  %v92_v49 = vsel %vm84_vm2, %v73_v62, %v74_v18 }
  0x80   :  { %3548 = vmatpush3.bf16.msra.mxu1 %v4194_v40  ;;  %v93_v40 = vsel %vm84_vm2, %v72_v54, %v73_v62  ;;  %v77_v54 = vrot.slane %v4782_v36, 6  ;;  %v78_v62 = vrot.slane %v4796_v22, 6 }
  0x81   :  { %3581 = vmatprep.subr.bf16.mxu1 %v5140_v46  ;;  %v129_v28 = vpack.c.bf16 %v92_v49, %v93_v40  ;;  %v5212_v49 = vpack.c.bf16 %v4504_v9, %v4531_v26  ;;  %v5217_v40 = vld [vmem:[%s5993_s0 + $0xe8] sm:$0xff]  ;;  %v6103_v9 = vrot.slane %v4339_v17, 6  ;;  %v5245_v17 = vld [vmem:[%s5993_s0] sm:$0xff] }
  0x82   :  { %3518 = vmatmul.mubr.bf16.gmra.mrb[16].mxu1 %v126_v44  ;;  %v128_v44 = vpack.c.bf16 %v94_v48, %v95_v47  ;;  %v88_v6 = vsel %vm84_vm2, %v77_v54, %v78_v62  ;;  %v4197_v48 = vld [vmem:[%s5992_s2 + $0x1e0] sm:$0xff]  }
  0x83   :  { %3742 = vmatmul.mubr.bf16.vlgmr.msra.gmra.mrb[0].mxu0 %v5154_v38  ;;  %3521 = vmatprep.mubr.bf16.mxu1 %v127_v7  ;;  %v5184_v7 = vpack.c.bf16 %v4440_v50, %v4449_v53  ;;  %v4195_v50 = vld [vmem:[%s5992_s2 + $0x1d8] sm:$0xff]  }
  0x84   :  { %3774 = vmatpush3.bf16.msra.mxu0 %v4972_v61  ;;  %3745 = vmatprep.mubr.bf16.mxu0 %v5160_v15  ;;  %v75_v61 = vrot.slane %v4755_v13, 6 }
  0x85   :  { %3775 = vmatprep.subr.bf16.mxu0 %v4191_v42 }
  0x86   :  { %v90_v53 = vsel %vm84_vm2, %v75_v61, %v76_v59  ;;  %v91_v5 = vsel %vm84_vm2, %v74_v18, %v75_v61 }
  0x87   :  { %v130_v47 = vpack.c.bf16 %v90_v53, %v91_v5  ;;  %v4256_v53 = vmov 0   ;;  %v5279_v5 = vpack.c.bf16 %v4653_v63, %v4638_v34  ;;  %v2730_v34 = vld [vmem:[%s5994_s3 + $0x8] sm:$0xff]  ;;  %v4200_v63 = vld [vmem:[%s5992_s2 + $0xd0] sm:$0xff]  }
  0x88   :  { %3776 = vmatpush3.bf16.msra.mxu0 %v4191_v42  ;;  %v89_v42 = vsel %vm84_vm2, %v76_v59, %v77_v54  ;;  %v5240_v59 = vpack.c.bf16 %v4575_v55, %v4591_v0  ;;  %v5250_v54 = vld [vmem:[%s5993_s0 + $0xf8] sm:$0xff]  ;;  %v2731_v0 = vld [vmem:[%s5994_s3 + $0x10] sm:$0xff]  ;;  %4143 = vset.pattern.permute.xlu1 %v4256_v53 }
  0x89   :  { %3777 = vmatprep.subr.bf16.mxu0 %v4193_v14  ;;  %v131_v18 = vpack.c.bf16 %v88_v6, %v89_v42  ;;  %v4203_v55 = vld [vmem:[%s5992_s2 + $0x1f8] sm:$0xff]   ;;  %4142 = vset.pattern.permute.xlu0 %v4256_v53  ;;  %v5286_v42 = vpack.c.bf16 %v4693_v33, %v4677_v30  ;;  %v2734_v30 = vld [vmem:[%s5994_s3 + $0x28] sm:$0xff]  ;;  %v2733_v33 = vld [vmem:[%s5994_s3 + $0x20] sm:$0xff] }
  0x8a   :  { %3522 = vmatmul.mubr.bf16.gmra.mrb[20].mxu1 %v128_v44  ;;  %v5222_v44 = vpack.c.bf16 %v4567_v52, %v4554_v45  ;;  %v4201_v45 = vld [vmem:[%s5992_s2 + $0x1f0] sm:$0xff]   ;;  %2773 = vperm.xlu1 %4143, %v2731_v0   ;;  %v2732_v6 = vld [vmem:[%s5994_s3 + $0x18] sm:$0xff]  ;;  %v6106_v0 = vld [vmem:[#allocation14_spill] sm:$0xff] }
  0x8b   :  { %3746 = vmatmul.mubr.bf16.gmra.mrb[4].mxu0 %v5184_v7  ;;  %3525 = vmatprep.mubr.bf16.mxu1 %v129_v28  ;;  %v4199_v28 = vld [vmem:[%s5992_s2 + $0x1e8] sm:$0xff]  }
  0x8c   :  { %3749 = vmatprep.mubr.bf16.mxu0 %v5190_v43  ;;  %3778 = vmatpush3.bf16.msra.mxu0 %v4193_v14  ;;  %v79_v14 = vrot.slane %v5217_v40, 6  ;;  %v2750_v53 = vld [vmem:[%s5994_s3 + $0xa8] sm:$0xff] }
  0x8d   :  { %3779 = vmatprep.subr.bf16.mxu0 %v4195_v50 }
  0x8e   :  { %v86_v26 = vsel %vm84_vm2, %v79_v14, %v6103_v9  ;;  %v87_v61 = vsel %vm84_vm2, %v78_v62, %v79_v14  ;;  %v5254_v62 = vpack.c.bf16 %v5245_v17, %v5250_v54  ;;  %2778 = vperm.xlu1 %4143, %v2732_v6   ;;  %v2741_v9 = vld [vmem:[%s5994_s3 + $0x60] sm:$0xff]  ;;  %v4209_v6 = vld [vmem:[%s5992_s2 + $0x210] sm:$0xff]  }
  0x8f   :  { %v132_v52 = vpack.c.bf16 %v86_v26, %v87_v61  ;;  %v4210_v26 = vld [vmem:[%s5992_s2 + $0xf8] sm:$0xff]   ;;  %v2743_v61 = vld [vmem:[%s5994_s3 + $0x70] sm:$0xff] }
  0x90   :  { %3780 = vmatpush3.bf16.msra.mxu0 %v4195_v50  ;;  %v5258_v50 = vpack.c.bf16 %v4625_v37, %v4606_v29  ;;  %v2729_v37 = vld [vmem:[%s5994_s3] sm:$0xff] }
  0x91   :  { %3781 = vmatprep.subr.bf16.mxu0 %v4197_v48  ;;  %v5275_v29 = vld [vmem:[%s5992_s2 + $0x200] sm:$0xff]   ;;  %2763 = vperm.xlu0 %4142, %v2729_v37  }
  0x92   :  { %3526 = vmatmul.mubr.bf16.gmra.mrb[24].mxu1 %v130_v47  ;;  %2788 = vperm.xlu1 %4143, %v2734_v30   ;;  %v4202_v47 = vld [vmem:[%s5992_s2 + $0xd8] sm:$0xff]   ;;  %v2754_v30 = vld [vmem:[%s5994_s3 + $0xc8] sm:$0xff] }
  0x93   :  { %3750 = vmatmul.mubr.bf16.gmra.mrb[8].mxu0 %v5212_v49  ;;  %3529 = vmatprep.mubr.bf16.mxu1 %v131_v18  ;;  %v5349_v18 = vld [vmem:[%s5993_s0 + $0xf0] sm:$0xff] }
  0x94   :  { %3753 = vmatprep.mubr.bf16.mxu0 %v5222_v44  ;;  %3782 = vmatpush3.bf16.msra.mxu0 %v4197_v48  ;;  %v4198_v48 = vld [vmem:[%s5992_s2 + $0xc8] sm:$0xff]   ;;  %v5353_v14 = vpack.c.bf16 %v5349_v18, %v5217_v40 }
  0x95   :  { %3783 = vmatprep.subr.bf16.mxu0 %v4199_v28  ;;  %2768 = vperm.xlu0 %4142, %v2730_v34  }
  0x98   :  { %3784 = vmatpush3.bf16.msra.mxu0 %v4199_v28  ;;  %v2742_v28 = vld [vmem:[%s5994_s3 + $0x68] sm:$0xff] }
  0x99   :  { %3785 = vmatprep.subr.bf16.mxu0 %v4201_v45  ;;  %2783 = vperm.xlu0 %4142, %v2733_v33   ;;  %v2756_v33 = vld [vmem:[%s5994_s3 + $0xd8] sm:$0xff] }
  0x9a   :  { %3530 = vmatmul.mubr.bf16.gmra.mrb[28].mxu1 %v132_v52  ;;  %v6104_v52 = vpack.c.bf16 %v4699_v41, %v4642_v57  ;;  %v5404_v57 = vld [vmem:[%s5992_s2 + $0x100] sm:$0xff]   ;;  %v2747_v41 = vld [vmem:[%s5994_s3 + $0x90] sm:$0xff] }
  0x9b   :  { %3754 = vmatmul.mubr.bf16.gmra.mrb[12].mxu0 %v5240_v59  ;;  %3549 = vmatprep.mubr.bf16.mxu1 %v5254_v62 }
  0x9c   :  { %3757 = vmatprep.mubr.bf16.mxu0 %v5258_v50  ;;  %3786 = vmatpush3.bf16.msra.mxu0 %v4201_v45  ;;  %v2746_v45 = vld [vmem:[%s5994_s3 + $0x88] sm:$0xff] }
  0x9d   :  { %3787 = vmatprep.subr.bf16.mxu0 %v4203_v55 }
  0xa0   :  { %3788 = vmatpush3.bf16.msra.mxu0 %v4203_v55  ;;  %v6105_v55 = vld [vmem:[#allocation15_spill] sm:$0xff] }
  0xa1   :  { %3821 = vmatprep.subr.bf16.mxu0 %v5275_v29  ;;  %v6107_v37 = vpack.c.bf16 %v6105_v55, %v6106_v0  ;;  %v6133_v55 = vld [vmem:[#allocation10_spill] sm:$0xff]  ;;  %v6134_v0 = vld [vmem:[#allocation12_spill] sm:$0xff] }
  0xa2   :  { %3550 = vmatmul.mubr.bf16.vlgmr.msra.gmra.mrb[0].mxu1 %v5121_v39  ;;  %v5311_v39 = vpack.c.bf16 %v4729_v21, %v4724_v35  ;;  %v2735_v35 = vld [vmem:[%s5994_s3 + $0x30] sm:$0xff]  ;;  %v4204_v21 = vld [vmem:[%s5992_s2 + $0xe0] sm:$0xff]  }
  0xa3   :  { %3758 = vmatmul.mubr.bf16.gmra.mrb[16].mxu0 %v5279_v5  ;;  %3582 = vmatpush3.bf16.msra.mxu1 %v5140_v46  ;;  %v2736_v46 = vld [vmem:[%s5994_s3 + $0x38] sm:$0xff] }
  0xa4   :  { %3553 = vmatprep.mubr.bf16.mxu1 %v5154_v38  ;;  %3761 = vmatprep.mubr.bf16.mxu0 %v5286_v42  ;;  %v5318_v38 = vpack.c.bf16 %v4764_v58, %v4755_v13  ;;  %v2738_v58 = vld [vmem:[%s5994_s3 + $0x48] sm:$0xff]  ;;  %v2737_v13 = vld [vmem:[%s5994_s3 + $0x40] sm:$0xff] }
  0xa5   :  { %3583 = vmatprep.subr.bf16.mxu1 %v4198_v48  ;;  %2798 = vperm.xlu1 %4143, %v2736_v46   ;;  %v2758_v46 = vld [vmem:[%s5994_s3 + $0xe8] sm:$0xff] }
  0xa6   :  { %2793 = vperm.xlu0 %4142, %v2735_v35  }
  0xa7   :  { %3584 = vmatpush3.bf16.msra.mxu1 %v4198_v48  ;;  %v2752_v48 = vld [vmem:[%s5994_s3 + $0xb8] sm:$0xff] }
  0xa8   :  { %3585 = vmatprep.subr.bf16.mxu1 %v4200_v63 }
  0xa9   :  { %2808 = vperm.xlu1 %4143, %v2738_v58   ;;  %v2759_v58 = vld [vmem:[%s5994_s3 + $0xf0] sm:$0xff] }
  0xaa   :  { %3554 = vmatmul.mubr.bf16.gmra.mrb[4].mxu1 %v5160_v15  ;;  %v5341_v15 = vpack.c.bf16 %v4796_v22, %v4782_v36  ;;  %v4206_v36 = vld [vmem:[%s5992_s2 + $0xe8] sm:$0xff]   ;;  %2803 = vperm.xlu0 %4142, %v2737_v13   ;;  %v2739_v22 = vld [vmem:[%s5994_s3 + $0x50] sm:$0xff] }
  0xab   :  { %3762 = vmatmul.mubr.bf16.gmra.mrb[20].mxu0 %v5311_v39  ;;  %3557 = vmatprep.mubr.bf16.mxu1 %v5184_v7  ;;  %v2740_v7 = vld [vmem:[%s5994_s3 + $0x58] sm:$0xff] }
  0xac   :  { %3765 = vmatprep.mubr.bf16.mxu0 %v5318_v38  ;;  %3586 = vmatpush3.bf16.msra.mxu1 %v4200_v63  ;;  %v6111_v63 = vpack.c.bf16 %v4842_v56, %v4800_v24  ;;  %v4213_v24 = vld [vmem:[%s5992_s2 + $0x228] sm:$0xff]   ;;  %v2755_v56 = vld [vmem:[%s5994_s3 + $0xd0] sm:$0xff] }
  0xad   :  { %3587 = vmatprep.subr.bf16.mxu1 %v4202_v47  ;;  %2818 = vperm.xlu1 %4143, %v2740_v7   ;;  %v6118_v7 = vld [vmem:[#allocation6_spill] sm:$0xff] }
  0xae   :  { %2813 = vperm.xlu0 %4142, %v2739_v22   ;;  %v6120_v22 = vld [vmem:[#allocation42_spill] sm:$0xff] }
  0xb0   :  { %3588 = vmatpush3.bf16.msra.mxu1 %v4202_v47  ;;  %v6113_v47 = vld [vmem:[#allocation38_spill] sm:$0xff] }
  0xb1   :  { %3589 = vmatprep.subr.bf16.mxu1 %v4204_v21  ;;  %2828 = vperm.xlu1 %4143, %v2742_v28   ;;  %v6114_v35 = vpack.c.bf16 %v4895_v2, %v6113_v47  ;;  %v4215_v2 = vld [vmem:[%s5992_s2 + $0x238] sm:$0xff]  }
  0xb2   :  { %3558 = vmatmul.mubr.bf16.gmra.mrb[8].mxu1 %v5190_v43  ;;  %v4208_v43 = vld [vmem:[%s5992_s2 + $0xf0] sm:$0xff]   ;;  %2823 = vperm.xlu0 %4142, %v2741_v9   ;;  %v6121_v28 = vld [vmem:[#allocation41_spill] sm:$0xff]  ;;  %v6124_v9 = vld [vmem:[#allocation11_spill] sm:$0xff] }
  0xb3   :  { %3766 = vmatmul.mubr.bf16.gmra.mrb[24].mxu0 %v5341_v15  ;;  %3561 = vmatprep.mubr.bf16.mxu1 %v5212_v49  ;;  %v2744_v49 = vld [vmem:[%s5994_s3 + $0x78] sm:$0xff] }
  0xb4   :  { %3769 = vmatprep.mubr.bf16.mxu0 %v5353_v14  ;;  %3590 = vmatpush3.bf16.msra.mxu1 %v4204_v21  ;;  %v6115_v21 = vld [vmem:[#allocation40_spill] sm:$0xff] }
  0xb5   :  { %3591 = vmatprep.subr.bf16.mxu1 %v4206_v36  ;;  %2838 = vperm.xlu1 %4143, %v2744_v49   ;;  %v6116_v13 = vpack.c.bf16 %v4912_v20, %v6115_v21  ;;  %v6128_v20 = vld [vmem:[#allocation43_spill] sm:$0xff] }
  0xb6   :  { %2833 = vperm.xlu0 %4142, %v2743_v61   ;;  %v6126_v61 = vld [vmem:[#allocation7_spill] sm:$0xff] }
  0xb8   :  { %3592 = vmatpush3.bf16.msra.mxu1 %v4206_v36 }
  0xb9   :  { %3593 = vmatprep.subr.bf16.mxu1 %v4208_v43  ;;  %2848 = vperm.xlu1 %4143, %v2746_v45  }
  0xba   :  { %3562 = vmatmul.mubr.bf16.gmra.mrb[12].mxu1 %v5222_v44  ;;  %v2745_v44 = vld [vmem:[%s5994_s3 + $0x80] sm:$0xff] }
  0xbb   :  { %3770 = vmatmul.mubr.bf16.gmra.mrb[28].mxu0 %v5254_v62  ;;  %3565 = vmatprep.mubr.bf16.mxu1 %v5240_v59  ;;  %v2748_v59 = vld [vmem:[%s5994_s3 + $0x98] sm:$0xff]  ;;  %v4207_v62 = vld [vmem:[%s5992_s2 + $0x208] sm:$0xff]  }
  0xbc   :  { %3789 = vmatprep.mubr.bf16.mxu0 %v6104_v52  ;;  %3594 = vmatpush3.bf16.msra.mxu1 %v4208_v43  ;;  %v6122_v43 = vpack.c.bf16 %v6120_v22, %v6121_v28  ;;  %v6129_v52 = vpack.c.bf16 %v4967_v60, %v6128_v20  ;;  %v4232_v22 = vld [vmem:[%s5993_s0 + $0x38] sm:$0xff]  ;;  %v6155_v20 = vld [vmem:[#allocation28_spill] sm:$0xff] }
  0xbd   :  { %3595 = vmatprep.subr.bf16.mxu1 %v4210_v26  ;;  %2843 = vperm.xlu0 %4142, %v2745_v44   ;;  %v6130_v44 = vld [vmem:[#allocation45_spill] sm:$0xff]  ;;  %v2365_v28 = vrot.slane %v4232_v22, 2 }
  0xbe   :  { %2858 = vperm.xlu1 %4143, %v2748_v59   ;;  %v6131_v59 = vld [vmem:[#allocation44_spill] sm:$0xff] }
  0xc0   :  { %3596 = vmatpush3.bf16.msra.mxu1 %v4210_v26  ;;  %v6125_v26 = vld [vmem:[#allocation8_spill] sm:$0xff] }
  0xc1   :  { %3869 = vmatprep.subr.bf16.mxu1 %v5404_v57  ;;  %2853 = vperm.xlu0 %4142, %v2747_v41   ;;  %v6127_v45 = vpack.c.bf16 %v6125_v26, %v6126_v61  ;;  %v4225_v41 = vld [vmem:[%s5992_s2 + $0x108] sm:$0xff]   ;;  %v4234_v61 = vld [vmem:[%s5992_s2 + $0x138] sm:$0xff]  }
  0xc2   :  { %3566 = vmatmul.mubr.bf16.gmra.mrb[16].mxu1 %v5258_v50  ;;  %v6108_v50 = vpack.c.bf16 %v4759_v19, %v4717_v25  ;;  %2868 = vperm.xlu1 %4143, %v2750_v53   ;;  %v4211_v19 = vld [vmem:[%s5992_s2 + $0x218] sm:$0xff]   ;;  %v2751_v25 = vld [vmem:[%s5994_s3 + $0xb0] sm:$0xff] }
  0xc3   :  { %3790 = vmatmul.mubr.bf16.vlgmr.msra.gmra.mrb[0].mxu0 %v6107_v37  ;;  %3569 = vmatprep.mubr.bf16.mxu1 %v5279_v5  ;;  %v2749_v5 = vld [vmem:[%s5994_s3 + $0xa0] sm:$0xff]  ;;  %v942_v37 = vpack.c.bf16 %v6134_v0, %v6133_v55  ;;  %v6135_v53 = vld [vmem:[#allocation13_spill] sm:$0xff] }
  0xc4   :  { %3822 = vmatpush3.bf16.msra.mxu0 %v5275_v29  ;;  %3793 = vmatprep.mubr.bf16.mxu0 %v6108_v50  ;;  %v6109_v29 = vld [vmem:[#allocation31_spill] sm:$0xff]  ;;  %v6136_v50 = vld [vmem:[#allocation17_spill] sm:$0xff]  ;;  %v4235_v0 = vld [vmem:[%s5993_s0 + $0x40] sm:$0xff] }
  0xc5   :  { %3823 = vmatprep.subr.bf16.mxu0 %v4207_v62  ;;  %2863 = vperm.xlu0 %4142, %v2749_v5   ;;  %v6110_v34 = vpack.c.bf16 %v4804_v3, %v6109_v29  ;;  %v2753_v3 = vld [vmem:[%s5994_s3 + $0xc0] sm:$0xff]  ;;  %v943_v60 = vpack.c.bf16 %v6136_v50, %v6135_v53  ;;  %v6138_v5 = vld [vmem:[#allocation47_spill] sm:$0xff]  ;;  %v6141_v29 = vld [vmem:[#allocation16_spill] sm:$0xff] }
  0xc6   :  { %2878 = vperm.xlu1 %4143, %v2752_v48   ;;  %v6139_v48 = vld [vmem:[#allocation46_spill] sm:$0xff]  ;;  %v4236_v53 = vld [vmem:[%s5993_s0 + $0x48] sm:$0xff] }
  0xc7   :  { %v2367_v50 = vrot.slane %v4236_v53, 2  ;;  %v4249_v53 = vld [vmem:[%s5993_s0 + $0xb0] sm:$0xff] }
  0xc8   :  { %3824 = vmatpush3.bf16.msra.mxu0 %v4207_v62  ;;  %v6132_v62 = vpack.c.bf16 %v6130_v44, %v6131_v59  ;;  %v6156_v59 = vld [vmem:[#allocation27_spill] sm:$0xff] }
  0xc9   :  { %3825 = vmatprep.subr.bf16.mxu0 %v4209_v6  ;;  %2873 = vperm.xlu0 %4142, %v2751_v25   ;;  %v4227_v25 = vld [vmem:[%s5992_s2 + $0x118] sm:$0xff]  }
  0xca   :  { %3570 = vmatmul.mubr.bf16.gmra.mrb[20].mxu1 %v5286_v42  ;;  %v4212_v42 = vld [vmem:[%s5992_s2 + $0x220] sm:$0xff]   ;;  %2888 = vperm.xlu1 %4143, %v2754_v30  }
  0xcb   :  { %3794 = vmatmul.mubr.bf16.gmra.mrb[4].mxu0 %v6110_v34  ;;  %3573 = vmatprep.mubr.bf16.mxu1 %v5311_v39  ;;  %v6112_v39 = vpack.c.bf16 %v4859_v4, %v4837_v51  ;;  %v2757_v51 = vld [vmem:[%s5994_s3 + $0xe0] sm:$0xff]  ;;  %v2760_v4 = vld [vmem:[%s5994_s3 + $0xf8] sm:$0xff]  ;;  %v6142_v34 = vld [vmem:[#allocation19_spill] sm:$0xff] }
  0xcc   :  { %3797 = vmatprep.mubr.bf16.mxu0 %v6111_v63  ;;  %3826 = vmatpush3.bf16.msra.mxu0 %v4209_v6  ;;  %v6137_v6 = vpack.c.bf16 %v5020_v31, %v4999_v27  ;;  %v944_v30 = vpack.c.bf16 %v6142_v34, %v6141_v29  ;;  %v6143_v63 = vld [vmem:[#allocation18_spill] sm:$0xff]  ;;  %v2359_v27 = vrot.slane %v5112_v12, 2  ;;  %v2360_v31 = vrot.slane %v5117_v1, 2  ;;  %v6158_v34 = vld [vmem:[#allocation29_spill] sm:$0xff] }
  0xcd   :  { %3827 = vmatprep.subr.bf16.mxu0 %v4211_v19  ;;  %2883 = vperm.xlu0 %4142, %v2753_v3  }
  0xce   :  { %2898 = vperm.xlu1 %4143, %v2756_v33   ;;  %v2361_v33 = vrot.slane %v5145_v8, 2  ;;  %v2420_v8 = vsel %vm2390_vm3, %v2359_v27, %v2360_v31 }
  0xd0   :  { %3828 = vmatpush3.bf16.msra.mxu0 %v4211_v19  ;;  %v6140_v19 = vpack.c.bf16 %v6138_v5, %v6139_v48  ;;  %v2419_v1 = vsel %vm2390_vm3, %v2360_v31, %v2361_v33  ;;  %v6161_v31 = vld [vmem:[#allocation35_spill] sm:$0xff] }
  0xd1   :  { %3829 = vmatprep.subr.bf16.mxu0 %v4212_v42  ;;  %2893 = vperm.xlu0 %4142, %v2755_v56   ;;  %v6145_v56 = vpack.c.bf16 %v5063_v23, %v5051_v32  ;;  %v6147_v32 = vld [vmem:[#allocation20_spill] sm:$0xff]  ;;  %v6148_v23 = vld [vmem:[#allocation23_spill] sm:$0xff] }
  0xd2   :  { %3574 = vmatmul.mubr.bf16.gmra.mrb[24].mxu1 %v5318_v38  ;;  %v4214_v38 = vld [vmem:[%s5992_s2 + $0x230] sm:$0xff]   ;;  %2908 = vperm.xlu1 %4143, %v2758_v46   ;;  %v4229_v46 = vld [vmem:[%s5992_s2 + $0x128] sm:$0xff]   ;;  %v946_v47 = vpack.c.bf16 %v6148_v23, %v6147_v32  ;;  %v4242_v23 = vld [vmem:[%s5993_s0 + $0x78] sm:$0xff] }
  0xd3   :  { %3798 = vmatmul.mubr.bf16.gmra.mrb[8].mxu0 %v6112_v39  ;;  %3577 = vmatprep.mubr.bf16.mxu1 %v5341_v15  ;;  %v6117_v15 = vld [vmem:[#allocation3_spill] sm:$0xff]  ;;  %v6146_v39 = vpack.c.bf16 %v5084_v16, %v5059_v11  ;;  %v6150_v11 = vld [vmem:[#allocation24_spill] sm:$0xff] }
  0xd4   :  { %3801 = vmatprep.mubr.bf16.mxu0 %v6114_v35  ;;  %3830 = vmatpush3.bf16.msra.mxu0 %v4212_v42  ;;  %v6119_v36 = vpack.c.bf16 %v6117_v15, %v6118_v7  ;;  %v6144_v42 = vld [vmem:[#allocation21_spill] sm:$0xff]  ;;  %v6149_v35 = vld [vmem:[#allocation2_spill] sm:$0xff]  ;;  %v4231_v7 = vld [vmem:[%s5993_s0 + $0x30] sm:$0xff] }
  0xd5   :  { %3831 = vmatprep.subr.bf16.mxu0 %v4213_v24  ;;  %2903 = vperm.xlu0 %4142, %v2757_v51   ;;  %v945_v3 = vpack.c.bf16 %v6144_v42, %v6143_v63  ;;  %v2099_v16 = vpack.c.bf16 %v6150_v11, %v6149_v35  ;;  %v6152_v51 = vld [vmem:[#allocation26_spill] sm:$0xff] }
  0xd6   :  { %2918 = vperm.xlu1 %4143, %v2760_v4  }
  0xd8   :  { %3832 = vmatpush3.bf16.msra.mxu0 %v4213_v24  ;;  %v4228_v24 = vld [vmem:[%s5992_s2 + $0x120] sm:$0xff]  }
  0xd9   :  { %3833 = vmatprep.subr.bf16.mxu0 %v4214_v38  ;;  %2913 = vperm.xlu0 %4142, %v2759_v58   ;;  %v6153_v58 = vld [vmem:[#allocation48_spill] sm:$0xff] }
  0xda   :  { %3578 = vmatmul.mubr.bf16.gmra.mrb[28].mxu1 %v5353_v14  ;;  %v6123_v14 = vld [vmem:[#allocation9_spill] sm:$0xff]  ;;  %v2362_v21 = vrot.slane %v6153_v58, 2 }
  0xdb   :  { %3802 = vmatmul.mubr.bf16.gmra.mrb[12].mxu0 %v6116_v13  ;;  %3597 = vmatprep.mubr.bf16.mxu1 %v6119_v36  ;;  %v941_v49 = vpack.c.bf16 %v6124_v9, %v6123_v14  ;;  %v4230_v13 = vld [vmem:[%s5993_s0 + $0x28] sm:$0xff]  ;;  %v2364_v36 = vrot.slane %v4231_v7, 2 }
  0xdc   :  { %3805 = vmatprep.mubr.bf16.mxu0 %v6122_v43  ;;  %3834 = vmatpush3.bf16.msra.mxu0 %v4214_v38  ;;  %v6151_v38 = vld [vmem:[#allocation22_spill] sm:$0xff]  ;;  %v2363_v15 = vrot.slane %v4230_v13, 2  ;;  %v4233_v43 = vld [vmem:[%s5992_s2 + $0x130] sm:$0xff]   ;;  %v2418_v9 = vsel %vm2390_vm3, %v2361_v33, %v2362_v21  ;;  %v6165_v13 = vld [vmem:[#allocation39_spill] sm:$0xff] }
  0xdd   :  { %3835 = vmatprep.subr.bf16.mxu0 %v4215_v2  ;;  %v947_v4 = vpack.c.bf16 %v6152_v51, %v6151_v38  ;;  %v6162_v51 = vld [vmem:[#allocation34_spill] sm:$0xff] }
  0xde   :  { %v2417_v14 = vsel %vm2390_vm3, %v2362_v21, %v2363_v15  ;;  %v2416_v26 = vsel %vm2390_vm3, %v2363_v15, %v2364_v36  ;;  %v6164_v21 = vld [vmem:[#allocation36_spill] sm:$0xff] }
  0xdf   :  { %v2424_v44 = vpack.c.bf16 %v2417_v14, %v2418_v9  ;;  %v953_v15 = vpack.c.bf16 %v6165_v13, %v6164_v21  ;;  %v4245_v14 = vld [vmem:[%s5993_s0 + $0x90] sm:$0xff]  ;;  %v2388_v21 = vrot.slane %v5349_v18, 2  ;;  %v2389_v13 = vrot.slane %v5250_v54, 2 }
  0xe0   :  { %3836 = vmatpush3.bf16.msra.mxu0 %v4215_v2  ;;  %v2423_v2 = vpack.c.bf16 %v2419_v1, %v2420_v8  ;;  %v4240_v1 = vld [vmem:[%s5993_s0 + $0x68] sm:$0xff]  ;;  %v2376_v9 = vrot.slane %v4245_v14, 2 }
  0xe1   :  { %v2371_v8 = vrot.slane %v4240_v1, 2 }
  0xe2   :  { %3598 = vmatmul.mubr.bf16.vlgmr.msra.gmra.mrb[0].mxu1 %v6127_v45  ;;  %v6154_v45 = vld [vmem:[#allocation25_spill] sm:$0xff] }
  0xe3   :  { %3806 = vmatmul.mubr.bf16.gmra.mrb[16].mxu0 %v6129_v52  ;;  %3877 = vmatpush3.bf16.msra.mxu1 %v5404_v57  ;;  %v4226_v57 = vld [vmem:[%s5992_s2 + $0x110] sm:$0xff]   ;;  %v948_v52 = vpack.c.bf16 %v6155_v20, %v6154_v45 }
  0xe4   :  { %3601 = vmatprep.mubr.bf16.mxu1 %v941_v49  ;;  %3809 = vmatprep.mubr.bf16.mxu0 %v6132_v62  ;;  %v2415_v49 = vsel %vm2390_vm3, %v2364_v36, %v2365_v28  ;;  %v6157_v62 = vld [vmem:[#allocation30_spill] sm:$0xff] }
  0xe5   :  { %3870 = vmatprep.subr.bf16.mxu1 %v4225_v41  ;;  %v2425_v55 = vpack.c.bf16 %v2415_v49, %v2416_v26  ;;  %v4243_v36 = vld [vmem:[%s5993_s0 + $0x80] sm:$0xff]  ;;  %v4246_v49 = vld [vmem:[%s5993_s0 + $0x98] sm:$0xff] }
  0xe6   :  { %v2374_v22 = vrot.slane %v4243_v36, 2  ;;  %v2377_v26 = vrot.slane %v4246_v49, 2 }
  0xe7   :  { %3878 = vmatpush3.bf16.msra.mxu1 %v4225_v41  ;;  %v949_v41 = vpack.c.bf16 %v6157_v62, %v6156_v59 }
  0xe8   :  { %3871 = vmatprep.subr.bf16.mxu1 %v4226_v57  ;;  %v2403_v20 = vsel %vm2390_vm3, %v2376_v9, %v2377_v26 }
  0xea   :  { %3602 = vmatmul.mubr.bf16.gmra.mrb[4].mxu1 %v942_v37  ;;  %v2366_v37 = vrot.slane %v4235_v0, 2  ;;  %v4248_v0 = vld [vmem:[%s5993_s0 + $0xa8] sm:$0xff] }
  0xeb   :  { %3810 = vmatmul.mubr.bf16.gmra.mrb[20].mxu0 %v6137_v6  ;;  %3605 = vmatprep.mubr.bf16.mxu1 %v943_v60  ;;  %v4237_v60 = vld [vmem:[%s5993_s0 + $0x50] sm:$0xff]  ;;  %v4238_v6 = vld [vmem:[%s5993_s0 + $0x58] sm:$0xff] }
  0xec   :  { %3813 = vmatprep.mubr.bf16.mxu0 %v6140_v19  ;;  %3879 = vmatpush3.bf16.msra.mxu1 %v4226_v57  ;;  %v2368_v57 = vrot.slane %v4237_v60, 2  ;;  %v2369_v5 = vrot.slane %v4238_v6, 2  ;;  %v2413_v48 = vsel %vm2390_vm3, %v2366_v37, %v2367_v50  ;;  %v2414_v19 = vsel %vm2390_vm3, %v2365_v28, %v2366_v37  ;;  %v4244_v28 = vld [vmem:[%s5993_s0 + $0x88] sm:$0xff]  ;;  %v4250_v60 = vld [vmem:[%s5993_s0 + $0xb8] sm:$0xff]  ;;  %v6166_v6 = vld [vmem:[#allocation4_spill] sm:$0xff] }
  0xed   :  { %3872 = vmatprep.subr.bf16.mxu1 %v4227_v25  ;;  %v2426_v42 = vpack.c.bf16 %v2413_v48, %v2414_v19  ;;  %v1221_v59 = vpack.c.bf16 %v4244_v28, %v4243_v36  ;;  %v2379_v37 = vrot.slane %v4248_v0, 2  ;;  %v2391_v36 = vsel %vm2390_vm3, %v2388_v21, %v2389_v13 }
  0xee   :  { %v2412_v29 = vsel %vm2390_vm3, %v2367_v50, %v2368_v57  ;;  %v2380_v50 = vrot.slane %v4249_v53, 2 }
  0xf0   :  { %3880 = vmatpush3.bf16.msra.mxu1 %v4227_v25  ;;  %v2411_v25 = vsel %vm2390_vm3, %v2368_v57, %v2369_v5  ;;  %v2381_v57 = vrot.slane %v4250_v60, 2 }
  0xf1   :  { %3873 = vmatprep.subr.bf16.mxu1 %v4228_v24 }
  0xf2   :  { %3606 = vmatmul.mubr.bf16.gmra.mrb[8].mxu1 %v944_v30  ;;  %v6159_v30 = vld [vmem:[#allocation33_spill] sm:$0xff] }
  0xf3   :  { %3814 = vmatmul.mubr.bf16.gmra.mrb[24].mxu0 %v6145_v56  ;;  %3609 = vmatprep.mubr.bf16.mxu1 %v945_v3  ;;  %v950_v63 = vpack.c.bf16 %v6159_v30, %v6158_v34  ;;  %v6160_v3 = vld [vmem:[#allocation32_spill] sm:$0xff]  ;;  %v4239_v56 = vld [vmem:[%s5993_s0 + $0x60] sm:$0xff]  ;;  %v2400_v34 = vsel %vm2390_vm3, %v2379_v37, %v2380_v50  ;;  %v1222_v30 = vpack.c.bf16 %v4246_v49, %v4245_v14  ;;  %v2358_v49 = vrot.slane %v5245_v17, 2 }
  0xf4   :  { %3817 = vmatprep.mubr.bf16.mxu0 %v6146_v39  ;;  %3881 = vmatpush3.bf16.msra.mxu1 %v4228_v24  ;;  %v951_v33 = vpack.c.bf16 %v6161_v31, %v6160_v3  ;;  %v2427_v24 = vpack.c.bf16 %v2411_v25, %v2412_v29  ;;  %v2370_v39 = vrot.slane %v4239_v56, 2  ;;  %v2399_v29 = vsel %vm2390_vm3, %v2380_v50, %v2381_v57  ;;  %v4251_v31 = vld [vmem:[%s5993_s0 + $0xc0] sm:$0xff] }
  0xf5   :  { %3874 = vmatprep.subr.bf16.mxu1 %v4229_v46  ;;  %v2433_v3 = vpack.c.bf16 %v2399_v29, %v2400_v34 }
  0xf6   :  { %v2409_v35 = vsel %vm2390_vm3, %v2370_v39, %v2371_v8  ;;  %v2410_v11 = vsel %vm2390_vm3, %v2369_v5, %v2370_v39  ;;  %v6167_v5 = vld [vmem:[#allocation5_spill] sm:$0xff]  ;;  %v4253_v39 = vld [vmem:[%s5993_s0 + $0xd0] sm:$0xff] }
  0xf7   :  { %v2428_v58 = vpack.c.bf16 %v2409_v35, %v2410_v11  ;;  %v6168_v48 = vpack.c.bf16 %v6166_v6, %v6167_v5  ;;  %v2384_v1 = vrot.slane %v4253_v39, 2  ;;  %v1224_v11 = vpack.c.bf16 %v4250_v60, %v4249_v53 }
  0xf8   :  { %3882 = vmatpush3.bf16.msra.mxu1 %v4229_v46  ;;  %v4241_v46 = vld [vmem:[%s5993_s0 + $0x70] sm:$0xff] }
  0xf9   :  { %3875 = vmatprep.subr.bf16.mxu1 %v4233_v43  ;;  %v2372_v32 = vrot.slane %v4241_v46, 2 }
  0xfa   :  { %3610 = vmatmul.mubr.bf16.gmra.mrb[12].mxu1 %v946_v47  ;;  %v2373_v47 = vrot.slane %v4242_v23, 2 }
  0xfb   :  { %3818 = vmatmul.mubr.bf16.gmra.mrb[28].mxu0 %v2099_v16  ;;  %3613 = vmatprep.mubr.bf16.mxu1 %v947_v4  ;;  %v2408_v38 = vsel %vm2390_vm3, %v2371_v8, %v2372_v32  ;;  %v6163_v4 = vld [vmem:[#allocation37_spill] sm:$0xff] }
  0xfc   :  { %3837 = vmatprep.mubr.bf16.mxu0 %v2423_v2  ;;  %3883 = vmatpush3.bf16.msra.mxu1 %v4233_v43  ;;  %v2407_v16 = vsel %vm2390_vm3, %v2372_v32, %v2373_v47  ;;  %v952_v2 = vpack.c.bf16 %v6163_v4, %v6162_v51  ;;  %v2375_v43 = vrot.slane %v4244_v28, 2  ;;  %v2406_v45 = vsel %vm2390_vm3, %v2373_v47, %v2374_v22  ;;  %v4254_v8 = vld [vmem:[%s5993_s0 + $0xd8] sm:$0xff]  ;;  %v4255_v4 = vld [vmem:[%s5993_s0 + $0xe0] sm:$0xff] }
  0xfd   :  { %3876 = vmatprep.subr.bf16.mxu1 %v4234_v61  ;;  %v2429_v7 = vpack.c.bf16 %v2407_v16, %v2408_v38  ;;  %v2385_v46 = vrot.slane %v4254_v8, 2  ;;  %v1226_v28 = vpack.c.bf16 %v4254_v8, %v4253_v39  ;;  %v1227_v14 = vpack.c.bf16 %v5217_v40, %v4255_v4  ;;  %v2699_v39 = vld [vmem:[%s5995_s1 + $0x10] sm:$0xff] }
  0xff   :  { %v2395_v47 = vsel %vm2390_vm3, %v2384_v1, %v2385_v46 }
 0x100   :  { %3884 = vmatpush3.bf16.msra.mxu1 %v4234_v61  ;;  %v2405_v61 = vsel %vm2390_vm3, %v2374_v22, %v2375_v43 }
 0x102   :  { %3614 = vmatmul.mubr.bf16.gmra.mrb[16].mxu1 %v948_v52  ;;  %v2404_v52 = vsel %vm2390_vm3, %v2375_v43, %v2376_v9 }
 0x103   :  { %3838 = vmatmul.mubr.bf16.vlgmr.msra.gmra.mrb[0].mxu0 %v2424_v44  ;;  %3617 = vmatprep.mubr.bf16.mxu1 %v949_v41  ;;  %v2430_v44 = vpack.c.bf16 %v2405_v61, %v2406_v45  ;;  %v2431_v62 = vpack.c.bf16 %v2403_v20, %v2404_v52  ;;  %v4247_v41 = vld [vmem:[%s5993_s0 + $0xa0] sm:$0xff]  ;;  %v2422_v61 = vsel %vm2390_vm3, %v2389_v13, %v2358_v49 }
 0x104   :  { %3841 = vmatprep.mubr.bf16.mxu0 %v2425_v55  ;;  %v2378_v55 = vrot.slane %v4247_v41, 2  ;;  %v1228_v45 = vpack.c.bf16 %v5250_v54, %v5349_v18 }
 0x106   :  { %v2401_v19 = vsel %vm2390_vm3, %v2378_v55, %v2379_v37  ;;  %v2402_v25 = vsel %vm2390_vm3, %v2377_v26, %v2378_v55  ;;  %v2421_v26 = vsel %vm2390_vm3, %v2358_v49, %v2359_v27 }
 0x107   :  { %v2438_v20 = vpack.c.bf16 %v2421_v26, %v2422_v61  ;;  %v2701_v26 = vld [vmem:[%s5995_s1 + $0x20] sm:$0xff] }
 0x109   :  { %v2774_v17 = vpop.permute.xlu1 %2773 }
 0x10a   :  { %3618 = vmatmul.mubr.bf16.gmra.mrb[20].mxu1 %v950_v63  ;;  %v2432_v63 = vpack.c.bf16 %v2401_v19, %v2402_v25 }
 0x10b   :  { %3842 = vmatmul.mubr.bf16.gmra.mrb[4].mxu0 %v2426_v42  ;;  %3621 = vmatprep.mubr.bf16.mxu1 %v951_v33  ;;  %v1223_v42 = vpack.c.bf16 %v4248_v0, %v4247_v41  ;;  %v2382_v33 = vrot.slane %v4251_v31, 2 }
 0x10c   :  { %3845 = vmatprep.mubr.bf16.mxu0 %v2427_v24  ;;  %v4252_v24 = vld [vmem:[%s5993_s0 + $0xc8] sm:$0xff] }
 0x10d   :  { %v2383_v56 = vrot.slane %v4252_v24, 2  ;;  %v2398_v23 = vsel %vm2390_vm3, %v2381_v57, %v2382_v33  ;;  %v1225_v38 = vpack.c.bf16 %v4252_v24, %v4251_v31  ;;  %v2779_v41 = vpop.permute.xlu1 %2778 }
 0x10f   :  { %v2397_v32 = vsel %vm2390_vm3, %v2382_v33, %v2383_v56  ;;  %v2396_v35 = vsel %vm2390_vm3, %v2383_v56, %v2384_v1 }
 0x110   :  { %v2434_v16 = vpack.c.bf16 %v2397_v32, %v2398_v23  ;;  %v2435_v51 = vpack.c.bf16 %v2395_v47, %v2396_v35  ;;  %v2697_v32 = vld [vmem:[%s5995_s1] sm:$0xff] }
 0x111   :  { %v5725_v27 = vpop.permute.xlu1 %2788 }
 0x112   :  { %3622 = vmatmul.mubr.bf16.gmra.mrb[24].mxu1 %v952_v2  ;;  %v2386_v2 = vrot.slane %v4255_v4, 2  ;;  %v2698_v4 = vld [vmem:[%s5995_s1 + $0x8] sm:$0xff] }
 0x113   :  { %3846 = vmatmul.mubr.bf16.gmra.mrb[8].mxu0 %v2428_v58  ;;  %3625 = vmatprep.mubr.bf16.mxu1 %v953_v15  ;;  %v2387_v58 = vrot.slane %v5217_v40, 2  ;;  %v2764_v40 = vpop.permute.xlu0 %2763 }
 0x114   :  { %3849 = vmatprep.mubr.bf16.mxu0 %v2429_v7  ;;  %v2394_v7 = vsel %vm2390_vm3, %v2385_v46, %v2386_v2 }
 0x115   :  { %v2393_v15 = vsel %vm2390_vm3, %v2386_v2, %v2387_v58  ;;  %v2392_v22 = vsel %vm2390_vm3, %v2387_v58, %v2388_v21 }
 0x116   :  { %v2436_v43 = vpack.c.bf16 %v2393_v15, %v2394_v7  ;;  %v2437_v9 = vpack.c.bf16 %v2391_v36, %v2392_v22 }
 0x117   :  { %v2769_v52 = vpop.permute.xlu0 %2768 }
 0x11a   :  { %3626 = vmatmul.mubr.bf16.gmra.mrb[28].mxu1 %v6168_v48 }
 0x11b   :  { %3850 = vmatmul.mubr.bf16.gmra.mrb[12].mxu0 %v2430_v44  ;;  %3661 = vmatprep.mubr.bf16.mxu1 %v1221_v59  ;;  %v2784_v55 = vpop.permute.xlu0 %2783 }
 0x11c   :  { %3853 = vmatprep.mubr.bf16.mxu0 %v2431_v62 }
 0x122   :  { %3662 = vmatmul.mubr.bf16.vlgmr.msra.gmra.mrb[16].mxu1 %v1222_v30 }
 0x123   :  { %3854 = vmatmul.mubr.bf16.gmra.mrb[16].mxu0 %v2432_v63  ;;  %3665 = vmatprep.mubr.bf16.mxu1 %v1223_v42 }
 0x124   :  { %3857 = vmatprep.mubr.bf16.mxu0 %v2433_v3  ;;  %v2799_v54 = vpop.permute.xlu1 %2798 }
 0x125   :  { %v2794_v37 = vpop.permute.xlu0 %2793 }
 0x128   :  { %v5737_v48 = vpop.permute.xlu1 %2808 }
 0x129   :  { %v5727_v18 = vpop.permute.xlu0 %2803 }
 0x12a   :  { %3666 = vmatmul.mubr.bf16.gmra.mrb[20].mxu1 %v1224_v11  ;;  %v2700_v11 = vld [vmem:[%s5995_s1 + $0x18] sm:$0xff] }
 0x12b   :  { %3858 = vmatmul.mubr.bf16.gmra.mrb[20].mxu0 %v2434_v16  ;;  %3669 = vmatprep.mubr.bf16.mxu1 %v1225_v38 }
 0x12c   :  { %3861 = vmatprep.mubr.bf16.mxu0 %v2435_v51  ;;  %v5747_v30 = vpop.permute.xlu1 %2818 }
 0x12d   :  { %v5739_v19 = vpop.permute.xlu0 %2813 }
 0x130   :  { %v5753_v3 = vpop.permute.xlu1 %2828 }
 0x131   :  { %v5751_v42 = vpop.permute.xlu0 %2823 }
 0x132   :  { %3670 = vmatmul.mubr.bf16.gmra.mrb[24].mxu1 %v1226_v28 }
 0x133   :  { %3862 = vmatmul.mubr.bf16.gmra.mrb[24].mxu0 %v2436_v43  ;;  %3673 = vmatprep.mubr.bf16.mxu1 %v1227_v14  ;;  %v2703_v43 = vld [vmem:[%s5995_s1 + $0x30] sm:$0xff] }
 0x134   :  { %3865 = vmatprep.mubr.bf16.mxu0 %v2437_v9  ;;  %v5769_v2 = vpop.permute.xlu1 %2838 }
 0x135   :  { %v5755_v33 = vpop.permute.xlu0 %2833 }
 0x13a   :  { %3674 = vmatmul.mubr.bf16.gmra.mrb[28].mxu1 %v1228_v45 }
 0x13b   :  { %3866 = vmatmul.mubr.bf16.gmra.mrb[28].mxu0 %v2438_v20  ;;  %v5791_v20 = vpop.permute.xlu1 %2848 }
 0x13c   :  { %v5771_v13 = vpop.permute.xlu0 %2843 }
 0x1b5   :  { %v3599_v44 = vpop.f32.mrb[0].mxu1 }
 0x1b6   :  { %v1054_v59 = vpop.f32.mrb[1].mxu1 }
 0x1b7   :  { %v3600_v62 = vpop.f32.mrb[2].mxu1 }
 0x1b8   :  { %v1057_v12 = vpop.f32.mrb[3].mxu1 }
 0x1bd   :  { %v3603_v0 = vpop.f32.mrb[4].mxu1 }
 0x1be   :  { %v1070_v10 = vpop.f32.mrb[5].mxu1 }
 0x1bf   :  { %v3604_v53 = vpop.f32.mrb[6].mxu1 }
 0x1c0   :  { %v1073_v50 = vpop.f32.mrb[7].mxu1 }
 0x1c5   :  { %v5729_v60 = vpop.f32.mrb[8].mxu1 }
 0x1c6   :  { %v5731_v57 = vpop.f32.mrb[9].mxu1 }
 0x1c7   :  { %v5733_v6 = vpop.f32.mrb[10].mxu1 }
 0x1c8   :  { %v5735_v5 = vpop.f32.mrb[11].mxu1 }
 0x1cd   :  { %v5741_v25 = vpop.f32.mrb[12].mxu1 }
 0x1ce   :  { %v5743_v29 = vpop.f32.mrb[13].mxu1 }
 0x1cf   :  { %v5745_v34 = vpop.f32.mrb[14].mxu1 }
 0x1d0   :  { %v5749_v63 = vpop.f32.mrb[15].mxu1 }
 0x1d6   :  { %v3839_v31 = vpop.f32.mrb[0].mxu0 }
 0x1d7   :  { %v3885_v24 = vadd.f32 %v3839_v31, %v3599_v44  ;;  %v2538_v56 = vpop.f32.mrb[1].mxu0  ;;  %v5796_v44 = vpop.permute.xlu0 %2853 }
 0x1d8   :  { %v3886_v1 = vadd.f32 %v2538_v56, %v1054_v59  ;;  %v3840_v8 = vpop.f32.mrb[2].mxu0 }
 0x1d9   :  { %v2923_v46 = vmul.f32 %v3885_v24, %v2774_v17  ;;  %v3887_v23 = vadd.f32 %v3840_v8, %v3600_v62  ;;  %v2541_v47 = vpop.f32.mrb[3].mxu0  ;;  %v2704_v17 = vld [vmem:[%s5995_s1 + $0x38] sm:$0xff] }
 0x1da   :  { %v2921_v35 = vmul.f32 %v3886_v1, %v2764_v40  ;;  %v3888_v16 = vadd.f32 %v2541_v47, %v1057_v12 }
 0x1db   :  { %v2955_v38 = vadd.f32 %v2923_v46, %v2699_v39  ;;  %v2924_v51 = vmul.f32 %v3887_v23, %v2779_v41  ;;  %v2702_v41 = vld [vmem:[%s5995_s1 + $0x28] sm:$0xff]  ;;  %v5821_v56 = vpop.permute.xlu0 %2863 }
 0x1dc   :  { %v2953_v58 = vadd.f32 %v2921_v35, %v2697_v32  ;;  %v2922_v21 = vmul.f32 %v3888_v16, %v2769_v52  ;;  %v2708_v32 = vld [vmem:[%s5995_s1 + $0x58] sm:$0xff] }
 0x1dd   :  { %2987 = vst [vmem:[%s5996_s4 + $0x10] sm:$0xff] %v2955_v38  ;;  %v2956_v15 = vadd.f32 %v2924_v51, %v2700_v11  ;;  %v2711_v51 = vld [vmem:[%s5995_s1 + $0x70] sm:$0xff] }
 0x1de   :  { %2985 = vst [vmem:[%s5996_s4] sm:$0xff] %v2953_v58  ;;  %v2954_v7 = vadd.f32 %v2922_v21, %v2698_v4  ;;  %v3843_v36 = vpop.f32.mrb[4].mxu0 }
 0x1df   :  { %2988 = vst [vmem:[%s5996_s4 + $0x18] sm:$0xff] %v2956_v15  ;;  %v3889_v22 = vadd.f32 %v3843_v36, %v3603_v0  ;;  %v2554_v28 = vpop.f32.mrb[5].mxu0  ;;  %v5846_v16 = vpop.permute.xlu0 %2873  ;;  %v2709_v15 = vld [vmem:[%s5995_s1 + $0x60] sm:$0xff] }
 0x1e0   :  { %2986 = vst [vmem:[%s5996_s4 + $0x8] sm:$0xff] %v2954_v7  ;;  %v3890_v14 = vadd.f32 %v2554_v28, %v1070_v10  ;;  %v3844_v9 = vpop.f32.mrb[6].mxu0 }
 0x1e1   :  { %v2927_v49 = vmul.f32 %v3889_v22, %v2794_v37  ;;  %v3891_v61 = vadd.f32 %v3844_v9, %v3604_v53  ;;  %v2557_v45 = vpop.f32.mrb[7].mxu0  ;;  %v2712_v22 = vld [vmem:[%s5995_s1 + $0x78] sm:$0xff] }
 0x1e2   :  { %v2925_v40 = vmul.f32 %v3890_v14, %v2784_v55  ;;  %v3892_v52 = vadd.f32 %v2557_v45, %v1073_v50 }
 0x1e3   :  { %v2959_v59 = vadd.f32 %v2927_v49, %v2703_v43  ;;  %v2928_v62 = vmul.f32 %v3891_v61, %v2799_v54  ;;  %v5812_v54 = vpop.permute.xlu1 %2858  ;;  %v5874_v49 = vpop.permute.xlu0 %2883 }
 0x1e4   :  { %v2957_v12 = vadd.f32 %v2925_v40, %v2701_v26  ;;  %v2926_v0 = vmul.f32 %v3892_v52, %v5725_v27  ;;  %v2707_v27 = vld [vmem:[%s5995_s1 + $0x50] sm:$0xff] }
 0x1e5   :  { %2991 = vst [vmem:[%s5996_s4 + $0x30] sm:$0xff] %v2959_v59  ;;  %v2960_v55 = vadd.f32 %v2928_v62, %v2704_v17  ;;  %v2715_v17 = vld [vmem:[%s5995_s1 + $0x90] sm:$0xff] }
 0x1e6   :  { %2989 = vst [vmem:[%s5996_s4 + $0x20] sm:$0xff] %v2957_v12  ;;  %v2958_v10 = vadd.f32 %v2926_v0, %v2702_v41  ;;  %v3847_v37 = vpop.f32.mrb[8].mxu0  ;;  %v2713_v12 = vld [vmem:[%s5995_s1 + $0x80] sm:$0xff] }
 0x1e7   :  { %2992 = vst [vmem:[%s5996_s4 + $0x38] sm:$0xff] %v2960_v55  ;;  %v3893_v53 = vadd.f32 %v3847_v37, %v5729_v60  ;;  %v2570_v50 = vpop.f32.mrb[9].mxu0  ;;  %v2705_v60 = vld [vmem:[%s5995_s1 + $0x40] sm:$0xff]  ;;  %v2716_v37 = vld [vmem:[%s5995_s1 + $0x98] sm:$0xff] }
 0x1e8   :  { %2990 = vst [vmem:[%s5996_s4 + $0x28] sm:$0xff] %v2958_v10  ;;  %v3894_v31 = vadd.f32 %v2570_v50, %v5731_v57  ;;  %v3848_v24 = vpop.f32.mrb[10].mxu0 }
 0x1e9   :  { %v2931_v39 = vmul.f32 %v3893_v53, %v5739_v19  ;;  %v3895_v1 = vadd.f32 %v3848_v24, %v5733_v6  ;;  %v2573_v8 = vpop.f32.mrb[11].mxu0  ;;  %v2706_v19 = vld [vmem:[%s5995_s1 + $0x48] sm:$0xff]  ;;  %v5841_v6 = vpop.permute.xlu1 %2868 }
 0x1ea   :  { %v2929_v46 = vmul.f32 %v3894_v31, %v5727_v18  ;;  %v3896_v57 = vadd.f32 %v2573_v8, %v5735_v5 }
 0x1eb   :  { %v2963_v23 = vadd.f32 %v2931_v39, %v2707_v27  ;;  %v2932_v47 = vmul.f32 %v3895_v1, %v5747_v30 }
 0x1ec   :  { %v2961_v35 = vadd.f32 %v2929_v46, %v2705_v60  ;;  %v2930_v11 = vmul.f32 %v3896_v57, %v5737_v48  ;;  %v2894_v60 = vpop.permute.xlu0 %2893 }
 0x1ed   :  { %2995 = vst [vmem:[%s5996_s4 + $0x50] sm:$0xff] %v2963_v23  ;;  %v2964_v18 = vadd.f32 %v2932_v47, %v2708_v32  ;;  %v2879_v14 = vpop.permute.xlu1 %2878  ;;  %v2719_v23 = vld [vmem:[%s5995_s1 + $0xb0] sm:$0xff] }
 0x1ee   :  { %2993 = vst [vmem:[%s5996_s4 + $0x40] sm:$0xff] %v2961_v35  ;;  %v2962_v5 = vadd.f32 %v2930_v11, %v2706_v19  ;;  %v3851_v30 = vpop.f32.mrb[12].mxu0 }
 0x1ef   :  { %2996 = vst [vmem:[%s5996_s4 + $0x58] sm:$0xff] %v2964_v18  ;;  %v3897_v48 = vadd.f32 %v3851_v30, %v5741_v25  ;;  %v2586_v38 = vpop.f32.mrb[13].mxu0  ;;  %v2717_v18 = vld [vmem:[%s5995_s1 + $0xa0] sm:$0xff] }
 0x1f0   :  { %2994 = vst [vmem:[%s5996_s4 + $0x48] sm:$0xff] %v2962_v5  ;;  %v3898_v4 = vadd.f32 %v2586_v38, %v5743_v29  ;;  %v3852_v58 = vpop.f32.mrb[14].mxu0  ;;  %v2720_v38 = vld [vmem:[%s5995_s1 + $0xb8] sm:$0xff] }
 0x1f1   :  { %v2935_v21 = vmul.f32 %v3897_v48, %v5755_v33  ;;  %v3899_v25 = vadd.f32 %v3852_v58, %v5745_v34  ;;  %v2589_v7 = vpop.f32.mrb[15].mxu0  ;;  %v2710_v33 = vld [vmem:[%s5995_s1 + $0x68] sm:$0xff]  ;;  %v2889_v31 = vpop.permute.xlu1 %2888 }
 0x1f2   :  { %v2933_v36 = vmul.f32 %v3898_v4, %v5751_v42  ;;  %v3900_v28 = vadd.f32 %v2589_v7, %v5749_v63  ;;  %v2904_v7 = vpop.permute.xlu0 %2903 }
 0x1f3   :  { %v2967_v43 = vadd.f32 %v2935_v21, %v2711_v51  ;;  %v2936_v29 = vmul.f32 %v3899_v25, %v5769_v2  ;;  %v2718_v21 = vld [vmem:[%s5995_s1 + $0xa8] sm:$0xff] }
 0x1f4   :  { %v2965_v9 = vadd.f32 %v2933_v36, %v2709_v15  ;;  %v2934_v34 = vmul.f32 %v3900_v28, %v5753_v3 }
 0x1f5   :  { %2999 = vst [vmem:[%s5996_s4 + $0x70] sm:$0xff] %v2967_v43  ;;  %v2968_v42 = vadd.f32 %v2936_v29, %v2712_v22  ;;  %v3663_v26 = vpop.f32.mrb[16].mxu1 }
 0x1f6   :  { %2997 = vst [vmem:[%s5996_s4 + $0x60] sm:$0xff] %v2965_v9  ;;  %v2966_v63 = vadd.f32 %v2934_v34, %v2710_v33  ;;  %v3855_v2 = vpop.f32.mrb[16].mxu0  ;;  %v1392_v61 = vpop.f32.mrb[17].mxu1 }
 0x1f7   :  { %3000 = vst [vmem:[%s5996_s4 + $0x78] sm:$0xff] %v2968_v42  ;;  %v3901_v3 = vadd.f32 %v3855_v2, %v3663_v26  ;;  %v2602_v45 = vpop.f32.mrb[17].mxu0  ;;  %v3664_v40 = vpop.f32.mrb[18].mxu1 }
 0x1f8   :  { %2998 = vst [vmem:[%s5996_s4 + $0x68] sm:$0xff] %v2966_v63  ;;  %v3902_v52 = vadd.f32 %v2602_v45, %v1392_v61  ;;  %v3856_v59 = vpop.f32.mrb[18].mxu0  ;;  %v1395_v62 = vpop.f32.mrb[19].mxu1  ;;  %v2721_v63 = vld [vmem:[%s5995_s1 + $0xc0] sm:$0xff]  ;;  %v2724_v45 = vld [vmem:[%s5995_s1 + $0xd8] sm:$0xff] }
 0x1f9   :  { %v2939_v41 = vmul.f32 %v3901_v3, %v5796_v44  ;;  %v3903_v0 = vadd.f32 %v3856_v59, %v3664_v40  ;;  %v2605_v55 = vpop.f32.mrb[19].mxu0  ;;  %v2714_v44 = vld [vmem:[%s5995_s1 + $0x88] sm:$0xff] }
 0x1fa   :  { %v2937_v10 = vmul.f32 %v3902_v52, %v5771_v13  ;;  %v3904_v53 = vadd.f32 %v2605_v55, %v1395_v62  ;;  %v2722_v59 = vld [vmem:[%s5995_s1 + $0xc8] sm:$0xff] }
 0x1fb   :  { %v2971_v50 = vadd.f32 %v2939_v41, %v2715_v17  ;;  %v2940_v27 = vmul.f32 %v3903_v0, %v5812_v54  ;;  %v2914_v0 = vpop.permute.xlu0 %2913 }
 0x1fc   :  { %v2969_v24 = vadd.f32 %v2937_v10, %v2713_v12  ;;  %v2938_v39 = vmul.f32 %v3904_v53, %v5791_v20 }
 0x1fd   :  { %3003 = vst [vmem:[%s5996_s4 + $0x90] sm:$0xff] %v2971_v50  ;;  %v2972_v13 = vadd.f32 %v2940_v27, %v2716_v37  ;;  %v3667_v1 = vpop.f32.mrb[20].mxu1 }
 0x1fe   :  { %3001 = vst [vmem:[%s5996_s4 + $0x80] sm:$0xff] %v2969_v24  ;;  %v2970_v54 = vadd.f32 %v2938_v39, %v2714_v44  ;;  %v3859_v8 = vpop.f32.mrb[20].mxu0  ;;  %v1408_v46 = vpop.f32.mrb[21].mxu1 }
 0x1ff   :  { %3004 = vst [vmem:[%s5996_s4 + $0x98] sm:$0xff] %v2972_v13  ;;  %v3905_v32 = vadd.f32 %v3859_v8, %v3667_v1  ;;  %v2618_v20 = vpop.f32.mrb[21].mxu0  ;;  %v3668_v57 = vpop.f32.mrb[22].mxu1  ;;  %v2725_v1 = vld [vmem:[%s5995_s1 + $0xe0] sm:$0xff] }
 0x200   :  { %3002 = vst [vmem:[%s5996_s4 + $0x88] sm:$0xff] %v2970_v54  ;;  %v3906_v47 = vadd.f32 %v2618_v20, %v1408_v46  ;;  %v3860_v19 = vpop.f32.mrb[22].mxu0  ;;  %v1411_v35 = vpop.f32.mrb[23].mxu1  ;;  %v2728_v20 = vld [vmem:[%s5995_s1 + $0xf8] sm:$0xff] }
 0x201   :  { %v2943_v11 = vmul.f32 %v3905_v32, %v5846_v16  ;;  %v3907_v5 = vadd.f32 %v3860_v19, %v3668_v57  ;;  %v2621_v30 = vpop.f32.mrb[23].mxu0  ;;  %v2899_v16 = vpop.permute.xlu1 %2898  ;;  %v2726_v19 = vld [vmem:[%s5995_s1 + $0xe8] sm:$0xff] }
 0x202   :  { %v2941_v48 = vmul.f32 %v3906_v47, %v5821_v56  ;;  %v3908_v51 = vadd.f32 %v2621_v30, %v1411_v35 }
 0x203   :  { %v2975_v4 = vadd.f32 %v2943_v11, %v2719_v23  ;;  %v2944_v58 = vmul.f32 %v3907_v5, %v2879_v14  ;;  %v2723_v14 = vld [vmem:[%s5995_s1 + $0xd0] sm:$0xff] }
 0x204   :  { %v2973_v15 = vadd.f32 %v2941_v48, %v2717_v18  ;;  %v2942_v25 = vmul.f32 %v3908_v51, %v5841_v6 }
 0x205   :  { %3007 = vst [vmem:[%s5996_s4 + $0xb0] sm:$0xff] %v2975_v4  ;;  %v2976_v56 = vadd.f32 %v2944_v58, %v2720_v38  ;;  %v3671_v36 = vpop.f32.mrb[24].mxu1  ;;  %v2909_v62 = vpop.permute.xlu1 %2908 }
 0x206   :  { %3005 = vst [vmem:[%s5996_s4 + $0xa0] sm:$0xff] %v2973_v15  ;;  %v2974_v22 = vadd.f32 %v2942_v25, %v2718_v21  ;;  %v3863_v28 = vpop.f32.mrb[24].mxu0  ;;  %v1424_v43 = vpop.f32.mrb[25].mxu1 }
 0x207   :  { %3008 = vst [vmem:[%s5996_s4 + $0xb8] sm:$0xff] %v2976_v56  ;;  %v3909_v29 = vadd.f32 %v3863_v28, %v3671_v36  ;;  %v2634_v6 = vpop.f32.mrb[25].mxu0  ;;  %v3672_v33 = vpop.f32.mrb[26].mxu1 }
 0x208   :  { %3006 = vst [vmem:[%s5996_s4 + $0xa8] sm:$0xff] %v2974_v22  ;;  %v3910_v9 = vadd.f32 %v2634_v6, %v1424_v43  ;;  %v3864_v34 = vpop.f32.mrb[26].mxu0  ;;  %v1427_v42 = vpop.f32.mrb[27].mxu1 }
 0x209   :  { %v2947_v26 = vmul.f32 %v3909_v29, %v2894_v60  ;;  %v3911_v2 = vadd.f32 %v3864_v34, %v3672_v33  ;;  %v2637_v61 = vpop.f32.mrb[27].mxu0  ;;  %v2919_v46 = vpop.permute.xlu1 %2918 }
 0x20a   :  { %v2945_v3 = vmul.f32 %v3910_v9, %v5874_v49  ;;  %v3912_v40 = vadd.f32 %v2637_v61, %v1427_v42 }
 0x20b   :  { %v2979_v17 = vadd.f32 %v2947_v26, %v2723_v14  ;;  %v2948_v52 = vmul.f32 %v3911_v2, %v2899_v16 }
 0x20c   :  { %v2977_v41 = vadd.f32 %v2945_v3, %v2721_v63  ;;  %v2946_v12 = vmul.f32 %v3912_v40, %v2889_v31  ;;  %v2727_v31 = vld [vmem:[%s5995_s1 + $0xf0] sm:$0xff] }
 0x20d   :  { %3011 = vst [vmem:[%s5996_s4 + $0xd0] sm:$0xff] %v2979_v17  ;;  %v2980_v49 = vadd.f32 %v2948_v52, %v2724_v45  ;;  %v3675_v55 = vpop.f32.mrb[28].mxu1 }
 0x20e   :  { %3009 = vst [vmem:[%s5996_s4 + $0xc0] sm:$0xff] %v2977_v41  ;;  %v2978_v10 = vadd.f32 %v2946_v12, %v2722_v59  ;;  %v3867_v37 = vpop.f32.mrb[28].mxu0  ;;  %v1440_v53 = vpop.f32.mrb[29].mxu1 }
 0x20f   :  { %3012 = vst [vmem:[%s5996_s4 + $0xd8] sm:$0xff] %v2980_v49  ;;  %v3913_v50 = vadd.f32 %v3867_v37, %v3675_v55  ;;  %v2650_v27 = vpop.f32.mrb[29].mxu0  ;;  %v3676_v44 = vpop.f32.mrb[30].mxu1 }
 0x210   :  { %3010 = vst [vmem:[%s5996_s4 + $0xc8] sm:$0xff] %v2978_v10  ;;  %v3914_v24 = vadd.f32 %v2650_v27, %v1440_v53  ;;  %v3868_v39 = vpop.f32.mrb[30].mxu0  ;;  %v1443_v60 = vpop.f32.mrb[31].mxu1 }
 0x211   :  { %v2951_v13 = vmul.f32 %v3913_v50, %v2914_v0  ;;  %v3915_v54 = vadd.f32 %v3868_v39, %v3676_v44  ;;  %v2653_v8 = vpop.f32.mrb[31].mxu0 }
 0x212   :  { %v2949_v32 = vmul.f32 %v3914_v24, %v2904_v7  ;;  %v3916_v57 = vadd.f32 %v2653_v8, %v1443_v60 }
 0x213   :  { %v2983_v23 = vadd.f32 %v2951_v13, %v2727_v31  ;;  %v2952_v47 = vmul.f32 %v3915_v54, %v2919_v46 }
 0x214   :  { %v2981_v35 = vadd.f32 %v2949_v32, %v2725_v1  ;;  %v2950_v11 = vmul.f32 %v3916_v57, %v2909_v62 }
 0x215   :  { %3015 = vst [vmem:[%s5996_s4 + $0xf0] sm:$0xff] %v2983_v23  ;;  %v2984_v18 = vadd.f32 %v2952_v47, %v2728_v20 }
 0x216   :  { %3013 = vst [vmem:[%s5996_s4 + $0xe0] sm:$0xff] %v2981_v35  ;;  %v2982_v5 = vadd.f32 %v2950_v11, %v2726_v19 }
 0x217   :  { %3016 = vst [vmem:[%s5996_s4 + $0xf8] sm:$0xff] %v2984_v18 }
 0x218   :  { %3014 = vst [vmem:[%s5996_s4 + $0xe8] sm:$0xff] %v2982_v5 }

</bundles_post_ra>
